<compile_context>
chip_gen: v7x
topology: tpu7x:2x2x1
jax: 0.10.0
libtpu: 0.0.40
codegen_flags: <defaults>
</compile_context>

<pallas_src>
import math
import jax
import jax.numpy as jnp
from jax.experimental import pallas as pl
from jax.experimental.pallas import tpu as pltpu


def _fourier_mlp_kernel(x_ref, proj_ref, wc_ref, ws_ref, b1_ref, *refs):
    """refs = (w2, b2, ..., w_last_padded, b_last_padded, out_ref).

    NOTE: rows are fully independent.  The last grid block may overhang the
    real row count (no wrapper-side padding); Pallas masks the output
    writeback, and the garbage tail rows only ever feed row-local math.  Do
    not add cross-row reductions here without restoring explicit padding.
    """
    o_ref = refs[-1]
    tail = refs[:-1]
    n_tail = len(tail) // 2

    x = x_ref[...]                                   # (tm, 2) f32
    proj = proj_ref[...]                             # (2, P)  f32, 2*pi already folded in

    # K=2 contraction as two broadcast FMAs on the VPU (avoid a 2-wide MXU op).
    z = x[:, 0:1] * proj[0:1, :] + x[:, 1:2] * proj[1:2, :]   # (tm, P)
    c = jnp.cos(z)                                   # f32 range-reduction polys (VALU)
    s = jnp.sin(z)

    mdt = wc_ref.dtype                               # bf16 (or f32) matmul operands
    h = (jnp.dot(c.astype(mdt), wc_ref[...], preferred_element_type=jnp.float32)
         + jnp.dot(s.astype(mdt), ws_ref[...], preferred_element_type=jnp.float32)
         + b1_ref[...])                              # (tm, F1) f32

    def _sigmoid(v):
        # 1 / (1 + exp(-v)); exp + reciprocal on the EUP (approx ~2^-12 rel err,
        # fine for the 1e-2 tolerance; switch approx=False if tighter is needed).
        return pl.reciprocal(1.0 + jnp.exp(-v), approx=True)

    if n_tail == 0:
        h = _sigmoid(h)                              # first linear == regressor
    else:
        h = jnp.maximum(h, 0.0)                      # ReLU after first MLP layer
        for l in range(n_tail):
            w_ref = tail[2 * l]
            b = tail[2 * l + 1][...]                 # (1, F) f32
            h = jnp.dot(h.astype(w_ref.dtype), w_ref[...],
                        preferred_element_type=jnp.float32) + b
            if l < n_tail - 1:
                h = jnp.maximum(h, 0.0)              # ReLU between MLP layers
            else:
                h = _sigmoid(h)                      # Sigmoid after regressor

    o_ref[...] = h.astype(o_ref.dtype)               # narrow (tm, 8) store


def prepare_fourier_mlp_params(projector, coef, mlp_weights, mlp_biases,
                               reg_w, reg_b, *,
                               matmul_dtype=jnp.bfloat16, padded_out=8):
    """One-time host-side weight preparation (call once, reuse across forwards).

    - folds the 2*pi phase factor into the projector,
    - folds the encoder `coef` into the first linear layer,
    - de-interleaves W1 rows into cos-half / sin-half matrices,
    - zero-pads the 3-wide regressor to `padded_out` (=8) stored lanes,
    - casts matmul operands to `matmul_dtype` (biases stay f32).
    """
    weights = [jnp.asarray(w, jnp.float32) for w in list(mlp_weights) + [reg_w]]
    biases = [jnp.asarray(b, jnp.float32) for b in list(mlp_biases) + [reg_b]]
    out_dim = int(weights[-1].shape[1])
    assert padded_out >= out_dim

    # Fold 2*pi into the projector: removes one (tm, P) VALU multiply per tile.
    proj = (2.0 * math.pi) * jnp.asarray(projector, jnp.float32)

    # Fold coef (applied to the interleaved [cos0,sin0,...] encoding) into W1 rows.
    # NOTE: folded in f32 then cast to bf16 — exact for coef == 1; keep W1 in
    # f32 instead if coef ever has a large dynamic range.
    weights[0] = weights[0] * jnp.asarray(coef, jnp.float32).reshape(-1, 1)

    # Zero-pad the final (regressor) layer to the narrow stored-slab width.
    pad_cols = padded_out - out_dim
    weights[-1] = jnp.pad(weights[-1], ((0, 0), (0, pad_cols)))
    biases[-1] = jnp.pad(biases[-1], ((0, pad_cols),))

    # Split first linear into cos / sin halves (even / odd interleaved rows),
    # so the kernel never concatenates along the lane axis.
    w1 = weights[0]
    w_cos = w1[0::2].astype(matmul_dtype)            # (P, F1)
    w_sin = w1[1::2].astype(matmul_dtype)            # (P, F1)
    b1 = biases[0].reshape(1, -1).astype(jnp.float32)

    tail = [(w.astype(matmul_dtype), b.reshape(1, -1).astype(jnp.float32))
            for w, b in zip(weights[1:], biases[1:])]

    return {
        "projector": proj, "w_cos": w_cos, "w_sin": w_sin, "b1": b1,
        "tail": tail, "out_dim": out_dim, "padded_out": padded_out,
    }


_TM_CAP = 4096   # v7x-safe tile cap: peak VMEM well under the 32 MiB scoped limit.


def _pick_tile(n, cap=_TM_CAP):
    """Row-tile selection.

    - Small N (<= cap): one sublane-aligned block -> a single grid step
      (single-TC v5e/v6e gain nothing from two steps; avoids 0.35 us overhead).
    - Large N: largest power-of-two tile <= cap that still gives >= 2 grid
      steps, so v7x's two TensorCores both get work and per-step overhead is
      amortized over the ~40 B/row of HBM traffic.
    """
    if n <= cap:
        return max(8, ((n + 7) // 8) * 8)            # one (possibly overhanging) block
    t = 1 << ((n // 2).bit_length() - 1)             # largest pow2 giving >= 2 steps
    return max(256, min(cap, t))


def fourier_mlp_forward(x, params, *, tm=None):
    """x: (N, 2) f32 coordinates. Returns (N, out_dim) f32."""
    x = jnp.asarray(x, jnp.float32)
    N = int(x.shape[0])
    tm = _pick_tile(N) if tm is None else tm
    grid_m = pl.cdiv(N, tm)          # ragged N: Pallas masks the partial last block

    projector = params["projector"]
    w_cos, w_sin, b1 = params["w_cos"], params["w_sin"], params["b1"]
    tail = params["tail"]
    out_dim = params["out_dim"]
    padded_out = params["padded_out"]

    P, F1 = int(w_cos.shape[0]), int(w_cos.shape[1])

    flat_params = [projector, w_cos, w_sin, b1]
    in_specs = [
        pl.BlockSpec((tm, 2), lambda i: (i, 0)),                 # x tile
        pl.BlockSpec(projector.shape, lambda i: (0, 0)),         # resident weights
        pl.BlockSpec(w_cos.shape, lambda i: (0, 0)),
        pl.BlockSpec(w_sin.shape, lambda i: (0, 0)),
        pl.BlockSpec(b1.shape, lambda i: (0, 0)),
    ]
    for w, b in tail:
        flat_params += [w, b]
        in_specs += [pl.BlockSpec(w.shape, lambda i: (0, 0)),
                     pl.BlockSpec(b.shape, lambda i: (0, 0))]

    # Advisory cost estimate for XLA's scheduler (updated for the narrow output).
    flops = N * (4 * P + 4 * P * F1)
    for w, _ in tail:
        flops += N * 2 * int(w.shape[0]) * int(w.shape[1])
    last_width = int(tail[-1][0].shape[1]) if tail else F1
    transcendentals = N * (2 * P + last_width)
    bytes_accessed = (4 * N * 2 + 4 * N * padded_out
                      + sum(int(p.size) * p.dtype.itemsize for p in flat_params))

    # VMEM budget at tm=4096: double-buffered x (lane-padded ~2 MiB) + out
    # (~2 MiB) tiles, ~50 KB of resident weights, and a few MiB of f32
    # intermediates (z, cos, sin, h, bf16 casts) -> comfortably inside an
    # explicit 32 MiB scoped limit on v5e (128 MiB phys), v6e (128 MiB) and
    # v7x (64 MiB per TensorCore).
    out = pl.pallas_call(
        _fourier_mlp_kernel,
        out_shape=jax.ShapeDtypeStruct((N, padded_out), jnp.float32),
        grid=(grid_m,),
        in_specs=in_specs,
        out_specs=pl.BlockSpec((tm, padded_out), lambda i: (i, 0)),
        compiler_params=pltpu.CompilerParams(
            dimension_semantics=("parallel",),
            vmem_limit_bytes=32 * 1024 * 1024),
        cost_estimate=pl.CostEstimate(flops=flops,
                                      transcendentals=transcendentals,
                                      bytes_accessed=bytes_accessed),
    )(x, *flat_params)

    return out[:, :out_dim]


def _reference_forward(x, projector, coef, mlp_weights, mlp_biases, reg_w, reg_b):
    """Pure-JAX f32 reference mirroring the PyTorch module (interleaved encoder)."""
    z = x @ projector                                            # (N, P)
    ang = 2.0 * jnp.pi * z
    enc = jnp.stack([jnp.cos(ang), jnp.sin(ang)], axis=-1)       # view_as_real
    enc = enc.reshape(x.shape[0], -1) * coef                     # (N, 2P) interleaved
    h = enc
    for w, b in zip(mlp_weights, mlp_biases):
        h = jnp.maximum(h @ w + b, 0.0)
    return jax.nn.sigmoid(h @ reg_w + reg_b)


if __name__ == "__main__":
    num_phases = 64
    encoder_scale = 10.0
    mlp_feature_list = [64, 64]
    N = 300                                                      # ragged on purpose

    key = jax.random.PRNGKey(0)
    k_proj, k_x, *k_layers = jax.random.split(key, 2 + 2 * (len(mlp_feature_list) + 1))

    # Encoder params (FurierEncoder.__init__): projector ~ N(0, scale), coef = ones.
    projector = encoder_scale * jax.random.normal(k_proj, (2, num_phases), jnp.float32)
    coef = jnp.ones((1, num_phases * 2), jnp.float32)

    # MLP + regressor params (Linear-style uniform init), stored (in, out).
    mlp_weights, mlp_biases = [], []
    in_f = num_phases * 2
    layer_keys = iter(k_layers)
    for out_f in mlp_feature_list:
        bound = 1.0 / math.sqrt(in_f)
        mlp_weights.append(jax.random.uniform(next(layer_keys), (in_f, out_f),
                                              jnp.float32, -bound, bound))
        mlp_biases.append(jax.random.uniform(next(layer_keys), (out_f,),
                                             jnp.float32, -bound, bound))
        in_f = out_f
    bound = 1.0 / math.sqrt(in_f)
    reg_w = jax.random.uniform(k_layers[-2], (in_f, 3), jnp.float32, -bound, bound)
    reg_b = jax.random.uniform(k_layers[-1], (3,), jnp.float32, -bound, bound)

    # Input: N 2-D coordinates in [0, 1).
    x = jax.random.uniform(k_x, (N, 2), jnp.float32)

    # One-time weight preparation, then the fused kernel forward.
    params = prepare_fourier_mlp_params(projector, coef, mlp_weights, mlp_biases,
                                        reg_w, reg_b, matmul_dtype=jnp.bfloat16)
    ref = _reference_forward(x, projector, coef, mlp_weights, mlp_biases, reg_w, reg_b)

    # Single-block path (default tile: one sublane-aligned, slightly overhanging block).
    out = jax.block_until_ready(fourier_mlp_forward(x, params))
    assert out.shape == (N, 3) and out.dtype == jnp.float32
    err = float(jnp.max(jnp.abs(out - ref)))
    assert jnp.allclose(out, ref, atol=1e-2, rtol=1e-2), err

    # Multi-step ragged-grid path (forced small tile -> partial last block).
    out2 = jax.block_until_ready(fourier_mlp_forward(x, params, tm=128))
    err2 = float(jnp.max(jnp.abs(out2 - ref)))
    assert jnp.allclose(out2, ref, atol=1e-2, rtol=1e-2), err2

    print("KERNEL_OK")
</pallas_src>

<mosaic_0001>
module attributes {stable_mosaic.version = 11 : i64} {
  func.func @_fourier_mlp_kernel(%arg0: i32, %arg1: memref<304x2xf32, #tpu.memory_space<vmem>>, %arg2: memref<2x64xf32, #tpu.memory_space<vmem>>, %arg3: memref<64x64xbf16, #tpu.memory_space<vmem>>, %arg4: memref<64x64xbf16, #tpu.memory_space<vmem>>, %arg5: memref<1x64xf32, #tpu.memory_space<vmem>>, %arg6: memref<64x64xbf16, #tpu.memory_space<vmem>>, %arg7: memref<1x64xf32, #tpu.memory_space<vmem>>, %arg8: memref<64x8xbf16, #tpu.memory_space<vmem>>, %arg9: memref<1x8xf32, #tpu.memory_space<vmem>>, %arg10: memref<304x8xf32, #tpu.memory_space<vmem>>) attributes {dimension_semantics = [#tpu.dimension_semantics<parallel>], iteration_bounds = array<i64: 1>, scalar_prefetch = 0 : i64, scratch_operands = 0 : i64, tpu.core_type = #tpu.core_type<tc>, window_params = [{transform_indices = @transform_0, window_bounds = array<i64: 304, 2>}, {pipeline_mode = #tpu.pipeline_mode<synchronous>, transform_indices = @transform_1, window_bounds = array<i64: 2, 64>}, {pipeline_mode = #tpu.pipeline_mode<synchronous>, transform_indices = @transform_2, window_bounds = array<i64: 64, 64>}, {pipeline_mode = #tpu.pipeline_mode<synchronous>, transform_indices = @transform_3, window_bounds = array<i64: 64, 64>}, {pipeline_mode = #tpu.pipeline_mode<synchronous>, transform_indices = @transform_4, window_bounds = array<i64: 1, 64>}, {pipeline_mode = #tpu.pipeline_mode<synchronous>, transform_indices = @transform_5, window_bounds = array<i64: 64, 64>}, {pipeline_mode = #tpu.pipeline_mode<synchronous>, transform_indices = @transform_6, window_bounds = array<i64: 1, 64>}, {pipeline_mode = #tpu.pipeline_mode<synchronous>, transform_indices = @transform_7, window_bounds = array<i64: 64, 8>}, {pipeline_mode = #tpu.pipeline_mode<synchronous>, transform_indices = @transform_8, window_bounds = array<i64: 1, 8>}, {transform_indices = @transform_9, window_bounds = array<i64: 304, 8>}]} {
    %c0 = arith.constant 0 : index
    %c0_0 = arith.constant 0 : index
    %0 = vector.load %arg1[%c0, %c0_0] : memref<304x2xf32, #tpu.memory_space<vmem>>, vector<304x2xf32>
    %c0_1 = arith.constant 0 : index
    %c0_2 = arith.constant 0 : index
    %1 = vector.load %arg2[%c0_1, %c0_2] : memref<2x64xf32, #tpu.memory_space<vmem>>, vector<2x64xf32>
    %2 = vector.extract_strided_slice %0 {offsets = [0, 0], sizes = [304, 1], strides = [1, 1]} : vector<304x2xf32> to vector<304x1xf32>
    %3 = vector.extract_strided_slice %1 {offsets = [0, 0], sizes = [1, 64], strides = [1, 1]} : vector<2x64xf32> to vector<1x64xf32>
    %4 = vector.broadcast %2 : vector<304x1xf32> to vector<304x64xf32>
    %5 = vector.broadcast %3 : vector<1x64xf32> to vector<304x64xf32>
    %6 = arith.mulf %4, %5 : vector<304x64xf32>
    %7 = vector.extract_strided_slice %0 {offsets = [0, 1], sizes = [304, 1], strides = [1, 1]} : vector<304x2xf32> to vector<304x1xf32>
    %8 = vector.extract_strided_slice %1 {offsets = [1, 0], sizes = [1, 64], strides = [1, 1]} : vector<2x64xf32> to vector<1x64xf32>
    %9 = vector.broadcast %7 : vector<304x1xf32> to vector<304x64xf32>
    %10 = vector.broadcast %8 : vector<1x64xf32> to vector<304x64xf32>
    %11 = arith.mulf %9, %10 : vector<304x64xf32>
    %12 = arith.addf %6, %11 : vector<304x64xf32>
    %13 = math.cos %12 : vector<304x64xf32>
    %14 = math.sin %12 : vector<304x64xf32>
    %15 = arith.truncf %13 : vector<304x64xf32> to vector<304x64xbf16>
    %c0_3 = arith.constant 0 : index
    %c0_4 = arith.constant 0 : index
    %16 = vector.load %arg3[%c0_3, %c0_4] : memref<64x64xbf16, #tpu.memory_space<vmem>>, vector<64x64xbf16>
    %cst = arith.constant dense<0.000000e+00> : vector<304x64xf32>
    %17 = tpu.matmul %15, %16, %cst {dimension_numbers = #tpu.dot_dimension_numbers<[1], [0], [0], [1], [0, 0, 1, 1], [], []>} : vector<304x64xbf16>, vector<64x64xbf16>, vector<304x64xf32> -> vector<304x64xf32>
    %18 = arith.truncf %14 : vector<304x64xf32> to vector<304x64xbf16>
    %c0_5 = arith.constant 0 : index
    %c0_6 = arith.constant 0 : index
    %19 = vector.load %arg4[%c0_5, %c0_6] : memref<64x64xbf16, #tpu.memory_space<vmem>>, vector<64x64xbf16>
    %cst_7 = arith.constant dense<0.000000e+00> : vector<304x64xf32>
    %20 = tpu.matmul %18, %19, %cst_7 {dimension_numbers = #tpu.dot_dimension_numbers<[1], [0], [0], [1], [0, 0, 1, 1], [], []>} : vector<304x64xbf16>, vector<64x64xbf16>, vector<304x64xf32> -> vector<304x64xf32>
    %21 = arith.addf %17, %20 : vector<304x64xf32>
    %c0_8 = arith.constant 0 : index
    %c0_9 = arith.constant 0 : index
    %22 = vector.load %arg5[%c0_8, %c0_9] : memref<1x64xf32, #tpu.memory_space<vmem>>, vector<1x64xf32>
    %23 = vector.broadcast %22 : vector<1x64xf32> to vector<304x64xf32>
    %24 = arith.addf %21, %23 : vector<304x64xf32>
    %cst_10 = arith.constant 0.000000e+00 : f32
    %25 = vector.broadcast %cst_10 : f32 to vector<304x64xf32>
    %26 = arith.maximumf %24, %25 : vector<304x64xf32>
    %c0_11 = arith.constant 0 : index
    %c0_12 = arith.constant 0 : index
    %27 = vector.load %arg7[%c0_11, %c0_12] : memref<1x64xf32, #tpu.memory_space<vmem>>, vector<1x64xf32>
    %28 = arith.truncf %26 : vector<304x64xf32> to vector<304x64xbf16>
    %c0_13 = arith.constant 0 : index
    %c0_14 = arith.constant 0 : index
    %29 = vector.load %arg6[%c0_13, %c0_14] : memref<64x64xbf16, #tpu.memory_space<vmem>>, vector<64x64xbf16>
    %cst_15 = arith.constant dense<0.000000e+00> : vector<304x64xf32>
    %30 = tpu.matmul %28, %29, %cst_15 {dimension_numbers = #tpu.dot_dimension_numbers<[1], [0], [0], [1], [0, 0, 1, 1], [], []>} : vector<304x64xbf16>, vector<64x64xbf16>, vector<304x64xf32> -> vector<304x64xf32>
    %31 = vector.broadcast %27 : vector<1x64xf32> to vector<304x64xf32>
    %32 = arith.addf %30, %31 : vector<304x64xf32>
    %cst_16 = arith.constant 0.000000e+00 : f32
    %33 = vector.broadcast %cst_16 : f32 to vector<304x64xf32>
    %34 = arith.maximumf %32, %33 : vector<304x64xf32>
    %c0_17 = arith.constant 0 : index
    %c0_18 = arith.constant 0 : index
    %35 = vector.load %arg9[%c0_17, %c0_18] : memref<1x8xf32, #tpu.memory_space<vmem>>, vector<1x8xf32>
    %36 = arith.truncf %34 : vector<304x64xf32> to vector<304x64xbf16>
    %c0_19 = arith.constant 0 : index
    %c0_20 = arith.constant 0 : index
    %37 = vector.load %arg8[%c0_19, %c0_20] : memref<64x8xbf16, #tpu.memory_space<vmem>>, vector<64x8xbf16>
    %cst_21 = arith.constant dense<0.000000e+00> : vector<304x8xf32>
    %38 = tpu.matmul %36, %37, %cst_21 {dimension_numbers = #tpu.dot_dimension_numbers<[1], [0], [0], [1], [0, 0, 1, 1], [], []>} : vector<304x64xbf16>, vector<64x8xbf16>, vector<304x8xf32> -> vector<304x8xf32>
    %39 = vector.broadcast %35 : vector<1x8xf32> to vector<304x8xf32>
    %40 = arith.addf %38, %39 : vector<304x8xf32>
    %cst_22 = arith.constant 0.000000e+00 : f32
    %41 = vector.broadcast %cst_22 : f32 to vector<304x8xf32>
    %42 = arith.subf %41, %40 : vector<304x8xf32>
    %43 = math.exp %42 : vector<304x8xf32>
    %cst_23 = arith.constant 1.000000e+00 : f32
    %44 = vector.broadcast %cst_23 : f32 to vector<304x8xf32>
    %45 = arith.addf %44, %43 : vector<304x8xf32>
    %46 = tpu.reciprocal %45 {approx = true} : vector<304x8xf32> -> vector<304x8xf32>
    %c0_24 = arith.constant 0 : index
    %c0_25 = arith.constant 0 : index
    %47 = vector.load %arg10[%c0_24, %c0_25] : memref<304x8xf32, #tpu.memory_space<vmem>>, vector<304x8xf32>
    tpu.vector_store %arg10[%c0_24, %c0_25], %46 {strides = array<i32>} : memref<304x8xf32, #tpu.memory_space<vmem>>, vector<304x8xf32>,
    return
  }
  func.func @transform_0(%arg0: i32) -> (i32, i32) {
    %c0_i32 = arith.constant 0 : i32
    %c0_i32_0 = arith.constant 0 : i32
    return %arg0, %c0_i32 : i32, i32
  }
  func.func @transform_1(%arg0: i32) -> (i32, i32) {
    %c0_i32 = arith.constant 0 : i32
    %c0_i32_0 = arith.constant 0 : i32
    %c0_i32_1 = arith.constant 0 : i32
    return %c0_i32, %c0_i32_0 : i32, i32
  }
  func.func @transform_2(%arg0: i32) -> (i32, i32) {
    %c0_i32 = arith.constant 0 : i32
    %c0_i32_0 = arith.constant 0 : i32
    %c0_i32_1 = arith.constant 0 : i32
    return %c0_i32, %c0_i32_0 : i32, i32
  }
  func.func @transform_3(%arg0: i32) -> (i32, i32) {
    %c0_i32 = arith.constant 0 : i32
    %c0_i32_0 = arith.constant 0 : i32
    %c0_i32_1 = arith.constant 0 : i32
    return %c0_i32, %c0_i32_0 : i32, i32
  }
  func.func @transform_4(%arg0: i32) -> (i32, i32) {
    %c0_i32 = arith.constant 0 : i32
    %c0_i32_0 = arith.constant 0 : i32
    %c0_i32_1 = arith.constant 0 : i32
    return %c0_i32, %c0_i32_0 : i32, i32
  }
  func.func @transform_5(%arg0: i32) -> (i32, i32) {
    %c0_i32 = arith.constant 0 : i32
    %c0_i32_0 = arith.constant 0 : i32
    %c0_i32_1 = arith.constant 0 : i32
    return %c0_i32, %c0_i32_0 : i32, i32
  }
  func.func @transform_6(%arg0: i32) -> (i32, i32) {
    %c0_i32 = arith.constant 0 : i32
    %c0_i32_0 = arith.constant 0 : i32
    %c0_i32_1 = arith.constant 0 : i32
    return %c0_i32, %c0_i32_0 : i32, i32
  }
  func.func @transform_7(%arg0: i32) -> (i32, i32) {
    %c0_i32 = arith.constant 0 : i32
    %c0_i32_0 = arith.constant 0 : i32
    %c0_i32_1 = arith.constant 0 : i32
    return %c0_i32, %c0_i32_0 : i32, i32
  }
  func.func @transform_8(%arg0: i32) -> (i32, i32) {
    %c0_i32 = arith.constant 0 : i32
    %c0_i32_0 = arith.constant 0 : i32
    %c0_i32_1 = arith.constant 0 : i32
    return %c0_i32, %c0_i32_0 : i32, i32
  }
  func.func @transform_9(%arg0: i32) -> (i32, i32) {
    %c0_i32 = arith.constant 0 : i32
    %c0_i32_0 = arith.constant 0 : i32
    return %arg0, %c0_i32 : i32, i32
  }
}

</mosaic_0001>

<bundles_post_ra>
// kernel: tpu_custom_call.1
= control target key start
LH: loop header
LB: loop body
LE: loop exit
PB: predicated region body
PF: predicated region fallthrough
CT: control target
= control target key end

     0   :  { %v17052_v0 = vmov 1   ;;  %v17049_v4 = vmov 0   ;;  %v262_v31 = vlaneseq  ;;  %s17028_s0 = inlined_call_operand.vmem [shape: f32[300,2], index: 0, kind: input, shape index: {}]   ;;  %s17029_s1 = inlined_call_operand.vmem [shape: f32[2,64], index: 1, kind: input, shape index: {}]   ;;  %s17030_s3 = inlined_call_operand.vmem [shape: bf16[64,64], index: 3, kind: input, shape index: {}]   ;;  %s17031_s2 = inlined_call_operand.vmem [shape: bf16[64,64], index: 2, kind: input, shape index: {}]   ;;  %s17032_s5 = inlined_call_operand.vmem [shape: bf16[64,64], index: 5, kind: input, shape index: {}]   ;;  %s17033_s4 = inlined_call_operand.vmem [shape: f32[1,64], index: 4, kind: input, shape index: {}]   ;;  %s17034_s7 = inlined_call_operand.vmem [shape: bf16[64,8], index: 7, kind: input, shape index: {}]   ;;  %s17035_s6 = inlined_call_operand.vmem [shape: f32[1,64], index: 6, kind: input, shape index: {}]   ;;  %s17036_s8 = inlined_call_operand.vmem [shape: f32[1,8], index: 8, kind: input, shape index: {}]   ;;  %s17037_s9 = inlined_call_operand.vmem [shape: f32[300,8], index: 9, kind: output, shape index: {}]  }
   0x1   :  { %10934 = vset.pattern.permute.xlu0 %v17052_v0  ;;  %10932 = vset.pattern.permute.xlu1 %v17052_v0  ;;  %v35_v1 = vld [vmem:[%s17028_s0 + $0x10] sm:$0xff]  ;;  %v33_v2 = vld [vmem:[%s17028_s0] sm:$0xff]  ;;  %v34_v3 = vld [vmem:[%s17028_s0 + $0x8] sm:$0xff] }
   0x2   :  { %313 = vperm.xlu0 %10934, %v35_v1   ;;  %305 = vperm.xlu1 %10932, %v33_v2   ;;  %v36_v5 = vld [vmem:[%s17028_s0 + $0x18] sm:$0xff]  ;;  %v38_v6 = vld [vmem:[%s17028_s0 + $0x28] sm:$0xff]  ;;  %v37_v7 = vld [vmem:[%s17028_s0 + $0x20] sm:$0xff]  ;;  %v263_v32 = vshrl.u32 %v262_v31, 7 }
   0x3   :  { %v39_v8 = vld [vmem:[%s17028_s0 + $0x30] sm:$0xff]  ;;  %v40_v10 = vld [vmem:[%s17028_s0 + $0x38] sm:$0xff]  ;;  %v42_v11 = vld [vmem:[%s17028_s0 + $0x48] sm:$0xff] }
   0x4   :  { %v43_v9 = vld [vmem:[%s17028_s0 + $0x50] sm:$0xff]  ;;  %v46_v12 = vld [vmem:[%s17028_s0 + $0x68] sm:$0xff]  ;;  %v41_v13 = vld [vmem:[%s17028_s0 + $0x40] sm:$0xff]  ;;  %v458_v33 = vsub.s32 1, %v263_v32  ;;  %v264_v34 = vsub.s32 0, %v263_v32 }
   0x5   :  { %v47_v14 = vld [vmem:[%s17028_s0 + $0x70] sm:$0xff]  ;;  %v44_v16 = vld [vmem:[%s17028_s0 + $0x58] sm:$0xff]  ;;  %v50_v17 = vld [vmem:[%s17028_s0 + $0x88] sm:$0xff] }
   0x6   :  { %10935 = vset.pattern.permute.xlu0 %v17049_v4  ;;  %309 = vperm.xlu1 %10932, %v34_v3   ;;  %v51_v15 = vld [vmem:[%s17028_s0 + $0x90] sm:$0xff]  ;;  %v45_v18 = vld [vmem:[%s17028_s0 + $0x60] sm:$0xff]  ;;  %v54_v19 = vld [vmem:[%s17028_s0 + $0xa8] sm:$0xff] }
   0x7   :  { %74 = vperm.xlu0 %10935, %v33_v2   ;;  %v55_v20 = vld [vmem:[%s17028_s0 + $0xb0] sm:$0xff]  ;;  %v48_v21 = vld [vmem:[%s17028_s0 + $0x78] sm:$0xff]  ;;  %v11449_v23 = vld [vmem:[%s17028_s0 + $0xc8] sm:$0xff] }
   0x8   :  { %v59_v22 = vld [vmem:[%s17028_s0 + $0xd0] sm:$0xff]  ;;  %v49_v24 = vld [vmem:[%s17028_s0 + $0x80] sm:$0xff]  ;;  %v11461_v25 = vld [vmem:[%s17028_s0 + $0xe8] sm:$0xff] }
   0x9   :  { %v63_v26 = vld [vmem:[%s17028_s0 + $0xf0] sm:$0xff]  ;;  %v52_v27 = vld [vmem:[%s17028_s0 + $0x98] sm:$0xff]  ;;  %v11477_v28 = vld [vmem:[%s17028_s0 + $0x108] sm:$0xff] }
   0xa   :  { %10933 = vset.pattern.permute.xlu1 %v17049_v4  ;;  %v67_v29 = vld [vmem:[%s17028_s0 + $0x110] sm:$0xff]  ;;  %v53_v30 = vld [vmem:[%s17028_s0 + $0xa0] sm:$0xff]  ;;  %v56_v36 = vld [vmem:[%s17028_s0 + $0xb8] sm:$0xff] }
   0xb   :  { %79 = vperm.xlu0 %10935, %v34_v3   ;;  %89 = vperm.xlu1 %10933, %v36_v5   ;;  %v71_v35 = vld [vmem:[%s17029_s1] sm:$0x3]  ;;  %v17054_v3 = vmov 683565275  }
   0xc   :  { %v11498_v39 = vrot.slane %v71_v35, %v458_v33  ;;  %v11500_v40 = vrot.slane %v71_v35, %v264_v34  ;;  %v57_v47 = vld [vmem:[%s17028_s0 + $0xc0] sm:$0xff] }
   0xe   :  { %17317 = vst [vmem:[#allocation2_spill] sm:$0xff] %v11500_v40 }
   0xf   :  { %84 = vperm.xlu0 %10935, %v35_v1   ;;  %10936 = vset.pattern.permute.xlu1 %v17052_v0 }
  0x10   :  { %317 = vperm.xlu1 %10936, %v36_v5  }
  0x13   :  { %99 = vperm.xlu0 %10935, %v38_v6  }
  0x14   :  { %10937 = vset.pattern.permute.xlu1 %v17049_v4 }
  0x15   :  { %94 = vperm.xlu1 %10937, %v37_v7  }
  0x17   :  { %104 = vperm.xlu0 %10935, %v39_v8  }
  0x19   :  { %10938 = vset.pattern.permute.xlu1 %v17052_v0 }
  0x1a   :  { %321 = vperm.xlu1 %10938, %v37_v7  }
  0x1b   :  { %10940 = vset.pattern.permute.xlu0 %v17052_v0 }
  0x1c   :  { %329 = vperm.xlu0 %10940, %v39_v8  }
  0x1e   :  { %325 = vperm.xlu1 %10938, %v38_v6   ;;  %v17045_v6 = vmov 2475754826  }
  0x20   :  { %345 = vperm.xlu0 %10940, %v43_v9  }
  0x22   :  { %10939 = vset.pattern.permute.xlu1 %v17049_v4 }
  0x23   :  { %109 = vperm.xlu1 %10939, %v40_v10  }
  0x24   :  { %10945 = vset.pattern.permute.xlu0 %v17049_v4 }
  0x25   :  { %119 = vperm.xlu0 %10945, %v42_v11  }
  0x27   :  { %10941 = vset.pattern.permute.xlu1 %v17052_v0 }
  0x28   :  { %333 = vperm.xlu1 %10941, %v40_v10  }
  0x29   :  { %124 = vperm.xlu0 %10945, %v43_v9   ;;  %v60_v9 = vld [vmem:[%s17028_s0 + $0xd8] sm:$0xff] }
  0x2c   :  { %10942 = vset.pattern.permute.xlu1 %v17049_v4 }
  0x2d   :  { %139 = vperm.xlu0 %10945, %v46_v12   ;;  %114 = vperm.xlu1 %10942, %v41_v13  }
  0x31   :  { %144 = vperm.xlu0 %10945, %v47_v14   ;;  %10943 = vset.pattern.permute.xlu1 %v17052_v0 }
  0x32   :  { %337 = vperm.xlu1 %10943, %v41_v13  }
  0x35   :  { %10950 = vset.pattern.permute.xlu0 %v17052_v0 }
  0x36   :  { %361 = vperm.xlu0 %10950, %v47_v14   ;;  %341 = vperm.xlu1 %10943, %v42_v11   ;;  %v17043_v11 = vmov 2131351028   ;;  %v17047_v14 = vmov 2102212464  }
  0x3a   :  { %377 = vperm.xlu0 %10950, %v51_v15   ;;  %10944 = vset.pattern.permute.xlu1 %v17049_v4 }
  0x3b   :  { %129 = vperm.xlu1 %10944, %v44_v16  }
  0x3e   :  { %10955 = vset.pattern.permute.xlu0 %v17049_v4 }
  0x3f   :  { %159 = vperm.xlu0 %10955, %v50_v17   ;;  %10946 = vset.pattern.permute.xlu1 %v17052_v0 }
  0x40   :  { %349 = vperm.xlu1 %10946, %v44_v16  }
  0x43   :  { %164 = vperm.xlu0 %10955, %v51_v15  }
  0x44   :  { %10947 = vset.pattern.permute.xlu1 %v17049_v4 }
  0x45   :  { %134 = vperm.xlu1 %10947, %v45_v18  }
  0x47   :  { %179 = vperm.xlu0 %10955, %v54_v19  }
  0x49   :  { %10948 = vset.pattern.permute.xlu1 %v17052_v0 }
  0x4a   :  { %353 = vperm.xlu1 %10948, %v45_v18  }
  0x4b   :  { %184 = vperm.xlu0 %10955, %v55_v20  }
  0x4e   :  { %357 = vperm.xlu1 %10948, %v46_v12  }
  0x4f   :  { %10960 = vset.pattern.permute.xlu0 %v17052_v0 }
  0x50   :  { %393 = vperm.xlu0 %10960, %v55_v20   ;;  %v17056_v20 = vmov 1326507024  }
  0x52   :  { %10949 = vset.pattern.permute.xlu1 %v17049_v4 }
  0x53   :  { %149 = vperm.xlu1 %10949, %v48_v21  }
  0x54   :  { %409 = vperm.xlu0 %10960, %v59_v22  }
  0x57   :  { %10951 = vset.pattern.permute.xlu1 %v17052_v0 }
  0x58   :  { %10965 = vset.pattern.permute.xlu0 %v17049_v4  ;;  %365 = vperm.xlu1 %10951, %v48_v21  }
  0x59   :  { %199 = vperm.xlu0 %10965, %v11449_v23  }
  0x5c   :  { %10952 = vset.pattern.permute.xlu1 %v17049_v4 }
  0x5d   :  { %204 = vperm.xlu0 %10965, %v59_v22   ;;  %154 = vperm.xlu1 %10952, %v49_v24  }
  0x61   :  { %219 = vperm.xlu0 %10965, %v11461_v25   ;;  %10953 = vset.pattern.permute.xlu1 %v17052_v0 }
  0x62   :  { %369 = vperm.xlu1 %10953, %v49_v24  }
  0x65   :  { %10970 = vset.pattern.permute.xlu0 %v17052_v0 }
  0x66   :  { %425 = vperm.xlu0 %10970, %v63_v26   ;;  %373 = vperm.xlu1 %10953, %v50_v17   ;;  %v17076_v17 = vmov 920167782  }
  0x6a   :  { %10971 = vset.pattern.permute.xlu0 %v17049_v4  ;;  %10954 = vset.pattern.permute.xlu1 %v17049_v4 }
  0x6b   :  { %224 = vperm.xlu0 %10971, %v63_v26   ;;  %169 = vperm.xlu1 %10954, %v52_v27  }
  0x6f   :  { %239 = vperm.xlu0 %10971, %v11477_v28   ;;  %10956 = vset.pattern.permute.xlu1 %v17052_v0 }
  0x70   :  { %381 = vperm.xlu1 %10956, %v52_v27  }
  0x73   :  { %244 = vperm.xlu0 %10971, %v67_v29  }
  0x74   :  { %10957 = vset.pattern.permute.xlu1 %v17049_v4 }
  0x75   :  { %174 = vperm.xlu1 %10957, %v53_v30  }
  0x77   :  { %10976 = vset.pattern.permute.xlu0 %v17052_v0 }
  0x78   :  { %441 = vperm.xlu0 %10976, %v67_v29  }
  0x79   :  { %10958 = vset.pattern.permute.xlu1 %v17052_v0 }
  0x7a   :  { %385 = vperm.xlu1 %10958, %v53_v30  }
  0x7c   :  { %10979 = vset.pattern.permute.xlu0 %v17049_v4 }
  0x7e   :  { %389 = vperm.xlu1 %10958, %v54_v19  }
  0x81   :  { %v314_v37 = vpop.permute.xlu0 %313  ;;  %v306_v38 = vpop.permute.xlu1 %305 }
  0x82   :  { %10959 = vset.pattern.permute.xlu1 %v17049_v4  ;;  %v460_v42 = vmul.f32 %v11498_v39, %v306_v38  ;;  %v462_v61 = vmul.f32 %v11498_v39, %v314_v37 }
  0x83   :  { %189 = vperm.xlu1 %10959, %v56_v36  }
  0x85   :  { %v310_v44 = vpop.permute.xlu1 %309 }
  0x86   :  { %v75_v41 = vpop.permute.xlu0 %74  ;;  %v461_v48 = vmul.f32 %v11498_v39, %v310_v44  ;;  %v61_v44 = vld [vmem:[%s17028_s0 + $0xe0] sm:$0xff] }
  0x87   :  { %v266_v43 = vmul.f32 %v11500_v40, %v75_v41  ;;  %10961 = vset.pattern.permute.xlu1 %v17052_v0 }
  0x88   :  { %397 = vperm.xlu1 %10961, %v56_v36  }
  0x89   :  { %v11505_v45 = vadd.f32 %v460_v42, %v266_v43 }
  0x8a   :  { %v80_v46 = vpop.permute.xlu0 %79 }
  0x8b   :  { %17318 = vst [vmem:[#allocation3_spill] sm:$0xff] %v11505_v45  ;;  %v539_v49 = vand.u32 2139095040, %v11505_v45  ;;  %v267_v50 = vmul.f32 %v11500_v40, %v80_v46  ;;  %v536_v62 = vand.u32 2147483647, %v11505_v45 }
  0x8c   :  { %10962 = vset.pattern.permute.xlu1 %v17049_v4 }
  0x8d   :  { %v540_v51 = vshrl.u32 %v539_v49, 23  ;;  %v11514_v52 = vadd.f32 %v461_v48, %v267_v50  ;;  %194 = vperm.xlu1 %10962, %v57_v47   ;;  %v543_v22 = vand.u32 8388607, %v536_v62 }
  0x8e   :  { %v85_v60 = vpop.permute.xlu0 %84 }
  0x8f   :  { %17319 = vst [vmem:[#allocation4_spill] sm:$0xff] %v11514_v52  ;;  %v9943_v53 = vadd.s32 4294967169, %v540_v51  ;;  %v642_v54 = vand.u32 2139095040, %v11514_v52  ;;  %v268_v8 = vmul.f32 %v11500_v40, %v85_v60  ;;  %v544_v35 = vor.u32 8388608, %v543_v22 }
  0x91   :  { %v546_v55 = vadd.s32 1, %v9943_v53  ;;  %10963 = vset.pattern.permute.xlu1 %v17052_v0  ;;  %v643_v56 = vshrl.u32 %v642_v54, 23  ;;  %v11548_v31 = vadd.f32 %v462_v61, %v268_v8  ;;  %v11576_v48 = vshll.u32 %v544_v35, 8  ;;  %v90_v54 = vpop.permute.xlu1 %89 }
  0x92   :  { %401 = vperm.xlu1 %10963, %v57_v47  }
  0x93   :  { %vm547_vm0 = vcmp.gt.s32.totalorder %v546_v55, 0  ;;  %v9947_v58 = vadd.s32 4294967169, %v643_v56  ;;  %17320 = vst [vmem:[#allocation5_spill] sm:$0xff] %v11548_v31  ;;  %v745_v42 = vand.u32 2139095040, %v11548_v31 }
  0x94   :  { %v548_v57 = vsel %vm547_vm0, %v546_v55, 0 }
  0x95   :  { %v550_v59 = vand.u32 31, %v548_v57  ;;  %v649_v1 = vadd.s32 1, %v9947_v58  ;;  %v11523_v2 = vshrl.u32 %v548_v57, 5  ;;  %v746_v49 = vshrl.u32 %v745_v42, 23 }
  0x96   :  { %405 = vperm.xlu1 %10963, %v11449_v23   ;;  %v17042_v57 = vand.u32 2147483647, %v11514_v52 }
  0x97   :  { %v11521_v63 = vsub.s32 32, %v550_v59  ;;  %v553_v5 = vshll.u32 %v17054_v3, %v550_v59  ;;  %v556_v7 = vshll.u32 %v17045_v6, %v550_v59  ;;  %v559_v13 = vshll.u32 %v17043_v11, %v550_v59 }
  0x98   :  { %v562_v16 = vshll.u32 %v17047_v14, %v550_v59  ;;  %v565_v19 = vshll.u32 %v17076_v17, %v550_v59  ;;  %vm650_vm1 = vcmp.gt.s32.totalorder %v649_v1, 0  ;;  %vm571_vm2 = vcmp.lt.s32.totalorder %v11523_v2, 4 }
  0x99   :  { %v554_v10 = vshrl.u32 %v17045_v6, %v11521_v63  ;;  %v557_v12 = vshrl.u32 %v17043_v11, %v11521_v63  ;;  %v560_v15 = vshrl.u32 %v17047_v14, %v11521_v63  ;;  %v563_v18 = vshrl.u32 %v17076_v17, %v11521_v63 }
  0x9a   :  { %v566_v21 = vshrl.u32 %v17056_v20, %v11521_v63  ;;  %10964 = vset.pattern.permute.xlu1 %v17049_v4  ;;  %v651_v30 = vsel %vm650_vm1, %v649_v1, 0  ;;  %vm568_vm3 = vcmp.lt.s32.totalorder %v11523_v2, 1  ;;  %vm570_vm4 = vcmp.lt.s32.totalorder %v11523_v2, 3 }
  0x9b   :  { %v555_v23 = vor.u32 %v554_v10, %v553_v5  ;;  %v558_v24 = vor.u32 %v557_v12, %v556_v7  ;;  %209 = vperm.xlu1 %10964, %v60_v9   ;;  %v561_v26 = vor.u32 %v560_v15, %v559_v13  ;;  %v564_v27 = vor.u32 %v563_v18, %v562_v16 }
  0x9c   :  { %v567_v29 = vor.u32 %v566_v21, %v565_v19  ;;  %v653_v34 = vand.u32 31, %v651_v30  ;;  %vm569_vm5 = vcmp.lt.s32.totalorder %v11523_v2, 2  ;;  %v11598_v1 = vshrl.u32 %v651_v30, 5 }
  0x9d   :  { %v577_v32 = vsel %vm571_vm2, %v564_v27, 920167782  ;;  %v576_v36 = vsel %vm568_vm3, %v555_v23, %v558_v24  ;;  %v580_v38 = vsel %vm568_vm3, %v558_v24, %v561_v26  ;;  %v573_v58 = vsel %vm571_vm2, %v561_v26, 2102212464 }
  0x9e   :  { %v581_v33 = vsel %vm571_vm2, %v567_v29, 1326507024  ;;  %v578_v37 = vsel %vm570_vm4, %v561_v26, %v577_v32  ;;  %v11567_v43 = vsub.s32 32, %v653_v34  ;;  %v665_v60 = vshll.u32 %v17047_v14, %v653_v34  ;;  %v318_v26 = vpop.permute.xlu1 %317 }
  0x9f   :  { %10966 = vset.pattern.permute.xlu1 %v17052_v0  ;;  %v582_v41 = vsel %vm570_vm4, %v564_v27, %v581_v33  ;;  %v579_v46 = vsel %vm569_vm5, %v576_v36, %v578_v37  ;;  %v9951_v8 = vadd.s32 4294967169, %v746_v49  ;;  %v656_v10 = vshll.u32 %v17054_v3, %v653_v34 }
  0xa0   :  { %413 = vperm.xlu1 %10966, %v60_v9   ;;  %v583_v47 = vsel %vm569_vm5, %v580_v38, %v582_v41  ;;  %v11580_v50 = vmul.u32.u64.low %v11576_v48, %v579_v46  ;;  %v11581_v51 = vmul.u32.u64.high %v11576_v48, %v579_v46, %v11580_v50  ;;  %v666_v53 = vshrl.u32 %v17076_v17, %v11567_v43 }
  0xa1   :  { %v11587_v55 = vmul.u32.u64.low %v11576_v48, %v583_v47  ;;  %v11588_v56 = vmul.u32.u64.high %v11576_v48, %v583_v47, %v11587_v55  ;;  %v657_v59 = vshrl.u32 %v17045_v6, %v11567_v43  ;;  %v669_v61 = vshrl.u32 %v17056_v20, %v11567_v43 }
  0xa2   :  { %v660_v5 = vshrl.u32 %v17043_v11, %v11567_v43  ;;  %v663_v7 = vshrl.u32 %v17047_v14, %v11567_v43  ;;  %v552_v9 = vshrl.u32 %v17054_v3, %v11521_v63  ;;  %v667_v12 = vor.u32 %v666_v53, %v665_v60 }
  0xa3   :  { %v668_v13 = vshll.u32 %v17076_v17, %v653_v34  ;;  %v646_v15 = vand.u32 8388607, %v17042_v57  ;;  %v659_v16 = vshll.u32 %v17045_v6, %v653_v34  ;;  %v662_v18 = vshll.u32 %v17043_v11, %v653_v34 }
  0xa4   :  { %10967 = vset.pattern.permute.xlu1 %v17049_v4  ;;  %v572_v19 = vsel %vm568_vm3, %v552_v9, %v555_v23  ;;  %v574_v21 = vsel %vm570_vm4, %v558_v24, %v573_v58  ;;  %v11617_v63 = vor.u32 %v657_v59, %v656_v10  ;;  %vm674_vm6 = vcmp.lt.s32.totalorder %v11598_v1, 4 }
  0xa5   :  { %214 = vperm.xlu1 %10967, %v61_v44   ;;  %v670_v22 = vor.u32 %v669_v61, %v668_v13  ;;  %v11619_v27 = vor.u32 %v660_v5, %v659_v16  ;;  %v664_v29 = vor.u32 %v663_v7, %v662_v18  ;;  %v752_v30 = vadd.s32 1, %v9951_v8 }
  0xa6   :  { %v594_v32 = vadd.s32 1, %v11581_v51  ;;  %v680_v33 = vsel %vm674_vm6, %v667_v12, 920167782  ;;  %v575_v23 = vsel %vm569_vm5, %v572_v19, %v574_v21  ;;  %vm593_vm7 = vc.u32 %v11588_v56, %v11580_v50 }
  0xa7   :  { %vm753_vm8 = vcmp.gt.s32.totalorder %v752_v30, 0  ;;  %v463_v24 = vmul.f32 %v11498_v39, %v318_v26  ;;  %vm671_vm9 = vcmp.lt.s32.totalorder %v11598_v1, 1  ;;  %vm673_vm10 = vcmp.lt.s32.totalorder %v11598_v1, 3 }
  0xa8   :  { %v684_v34 = vsel %vm674_vm6, %v670_v22, 1326507024  ;;  %v754_v35 = vsel %vm753_vm8, %v752_v30, 0  ;;  %v647_v36 = vor.u32 8388608, %v646_v15  ;;  %v681_v2 = vsel %vm673_vm10, %v664_v29, %v680_v33 }
  0xa9   :  { %10968 = vset.pattern.permute.xlu1 %v17052_v0  ;;  %v756_v37 = vand.u32 31, %v754_v35  ;;  %v595_v38 = vsel %vm593_vm7, %v594_v32, %v11581_v51  ;;  %v269_v41 = vmul.f32 %v11500_v40, %v90_v54  ;;  %v591_v42 = vmul.u32 %v11576_v48, %v575_v23 }
  0xaa   :  { %417 = vperm.xlu1 %10968, %v61_v44   ;;  %vm672_vm11 = vcmp.lt.s32.totalorder %v11598_v1, 2  ;;  %v683_v44 = vsel %vm671_vm9, %v11619_v27, %v664_v29  ;;  %v685_v46 = vsel %vm673_vm10, %v667_v12, %v684_v34  ;;  %v17041_v49 = vand.u32 2147483647, %v11548_v31 }
  0xab   :  { %v11654_v51 = vsub.s32 32, %v756_v37  ;;  %v11656_v53 = vadd.f32 %v463_v24, %v269_v41  ;;  %v596_v54 = vadd.s32 %v595_v38, %v591_v42  ;;  %v687_v48 = vshll.u32 %v647_v36, 8 }
  0xac   :  { %v686_v55 = vsel %vm672_vm11, %v683_v44, %v685_v46  ;;  %v749_v60 = vand.u32 8388607, %v17041_v49  ;;  %v768_v61 = vshll.u32 %v17047_v14, %v756_v37  ;;  %v11673_v12 = vshrl.u32 %v754_v35, 5 }
  0xad   :  { %17321 = vst [vmem:[#allocation6_spill] sm:$0xff] %v11656_v53  ;;  %v769_v5 = vshrl.u32 %v17076_v17, %v11654_v51  ;;  %v848_v7 = vand.u32 2139095040, %v11656_v53  ;;  %v597_v8 = vadd.s32 536870912, %v596_v54  ;;  %v759_v13 = vshll.u32 %v17054_v3, %v756_v37 }
  0xae   :  { %421 = vperm.xlu1 %10968, %v11461_v25   ;;  %v679_v25 = vsel %vm671_vm9, %v11617_v63, %v11619_v27  ;;  %v11670_v9 = vmul.u32.u64.low %v687_v48, %v686_v55  ;;  %v11671_v10 = vmul.u32.u64.high %v687_v48, %v686_v55, %v11670_v9  ;;  %v762_v15 = vshll.u32 %v17045_v6, %v756_v37 }
  0xaf   :  { %v682_v47 = vsel %vm672_vm11, %v679_v25, %v681_v2  ;;  %v771_v16 = vshll.u32 %v17076_v17, %v756_v37  ;;  %v772_v18 = vshrl.u32 %v17056_v20, %v11654_v51  ;;  %v760_v19 = vshrl.u32 %v17045_v6, %v11654_v51 }
  0xb0   :  { %v11660_v58 = vmul.u32.u64.low %v687_v48, %v682_v47  ;;  %v11661_v59 = vmul.u32.u64.high %v687_v48, %v682_v47, %v11660_v58  ;;  %v763_v21 = vshrl.u32 %v17043_v11, %v11654_v51  ;;  %v765_v22 = vshll.u32 %v17043_v11, %v756_v37 }
  0xb1   :  { %v766_v26 = vshrl.u32 %v17047_v14, %v11654_v51  ;;  %v770_v30 = vor.u32 %v769_v5, %v768_v61  ;;  %v849_v32 = vshrl.u32 %v848_v7, 23  ;;  %v11687_v33 = vshrl.u32 %v597_v8, 30 }
  0xb2   :  { %10969 = vset.pattern.permute.xlu1 %v17049_v4  ;;  %vm777_vm12 = vcmp.lt.s32.totalorder %v11673_v12, 4  ;;  %v655_v23 = vshrl.u32 %v17054_v3, %v11567_v43  ;;  %v676_v24 = vsel %vm674_vm6, %v664_v29, 2102212464  ;;  %v773_v34 = vor.u32 %v772_v18, %v771_v16 }
  0xb3   :  { %v750_v35 = vor.u32 8388608, %v749_v60  ;;  %v761_v36 = vor.u32 %v760_v19, %v759_v13  ;;  %v764_v25 = vor.u32 %v763_v21, %v762_v15  ;;  %v767_v2 = vor.u32 %v766_v26, %v765_v22  ;;  %v95_v60 = vpop.permute.xlu1 %94 }
  0xb4   :  { %vm774_vm13 = vcmp.lt.s32.totalorder %v11673_v12, 1  ;;  %vm776_vm14 = vcmp.lt.s32.totalorder %v11673_v12, 3  ;;  %v783_v37 = vsel %vm777_vm12, %v770_v30, 920167782  ;;  %v9955_v38 = vadd.s32 4294967169, %v849_v32 }
  0xb5   :  { %v599_v41 = vshll.u32 %v11687_v33, 30  ;;  %v675_v43 = vsel %vm671_vm9, %v655_v23, %v11617_v63  ;;  %v677_v29 = vsel %vm673_vm10, %v11619_v27, %v676_v24  ;;  %vm696_vm15 = vc.u32 %v11671_v10, %v11660_v58  ;;  %v64_v24 = vld [vmem:[%s17028_s0 + $0xf8] sm:$0xff] }
  0xb6   :  { %v697_v42 = vadd.s32 1, %v11661_v59  ;;  %v787_v44 = vsel %vm777_vm12, %v773_v34, 1326507024  ;;  %vm775_vm0 = vcmp.lt.s32.totalorder %v11673_v12, 2  ;;  %v782_v46 = vsel %vm774_vm13, %v761_v36, %v764_v25  ;;  %229 = vperm.xlu1 %10969, %v64_v24  }
  0xb7   :  { %v784_v63 = vsel %vm776_vm14, %v767_v2, %v783_v37  ;;  %v855_v47 = vadd.s32 1, %v9955_v38  ;;  %v678_v27 = vsel %vm672_vm11, %v675_v43, %v677_v29  ;;  %v11717_v55 = vshll.u32 %v750_v35, 8  ;;  %v322_v26 = vpop.permute.xlu1 %321  ;;  %v11765_v29 = vpop.permute.xlu0 %99 }
  0xb8   :  { %v11719_v61 = vsub.s32 %v596_v54, %v599_v41  ;;  %v786_v5 = vsel %vm774_vm13, %v764_v25, %v767_v2  ;;  %v788_v7 = vsel %vm776_vm14, %v770_v30, %v787_v44  ;;  %v698_v8 = vsel %vm696_vm15, %v697_v42, %v11661_v59 }
  0xb9   :  { %vm856_vm1 = vcmp.gt.s32.totalorder %v855_v47, 0  ;;  %v785_v9 = vsel %vm775_vm0, %v782_v46, %v784_v63  ;;  %v694_v1 = vmul.u32 %v687_v48, %v678_v27  ;;  %v789_v15 = vsel %vm775_vm0, %v786_v5, %v788_v7 }
  0xba   :  { %v857_v13 = vsel %vm856_vm1, %v855_v47, 0  ;;  %v602_v54 = vsub.s32 0, %v11719_v61  ;;  %v11734_v19 = vmul.u32.u64.low %v11717_v55, %v785_v9  ;;  %v11735_v21 = vmul.u32.u64.high %v11717_v55, %v785_v9, %v11734_v19  ;;  %10972 = vset.pattern.permute.xlu1 %v17052_v0 }
  0xbb   :  { %v859_v16 = vand.u32 31, %v857_v13  ;;  %v11731_v18 = vadd.s32 %v698_v8, %v694_v1  ;;  %v758_v59 = vshrl.u32 %v17054_v3, %v11654_v51  ;;  %v779_v48 = vsel %vm777_vm12, %v767_v2, 2102212464  ;;  %429 = vperm.xlu1 %10972, %v64_v24  }
  0xbc   :  { %v11745_v30 = vmul.u32.u64.low %v11717_v55, %v789_v15  ;;  %v11746_v32 = vmul.u32.u64.high %v11717_v55, %v789_v15, %v11745_v30  ;;  %v17039_v23 = vand.u32 2147483647, %v11656_v53  ;;  %v9944_v34 = vmin.u32 %v602_v54, %v11719_v61 }
  0xbd   :  { %v11740_v22 = vsub.s32 32, %v859_v16  ;;  %v700_v51 = vadd.s32 536870912, %v11731_v18  ;;  %v464_v37 = vmul.f32 %v11498_v39, %v322_v26  ;;  %v778_v2 = vsel %vm774_vm13, %v758_v59, %v761_v36  ;;  %v105_v30 = vpop.permute.xlu0 %104 }
  0xbe   :  { %v780_v38 = vsel %vm776_vm14, %v764_v25, %v779_v48  ;;  %v11767_v42 = vshrl.u32 %v857_v13, 5  ;;  %v862_v44 = vshll.u32 %v17054_v3, %v859_v16  ;;  %v865_v46 = vshll.u32 %v17045_v6, %v859_v16 }
  0xbf   :  { %v863_v35 = vshrl.u32 %v17045_v6, %v11740_v22  ;;  %v866_v41 = vshrl.u32 %v17043_v11, %v11740_v22  ;;  %v869_v43 = vshrl.u32 %v17047_v14, %v11740_v22  ;;  %v868_v63 = vshll.u32 %v17043_v11, %v859_v16  ;;  %10973 = vset.pattern.permute.xlu1 %v17049_v4 }
  0xc0   :  { %v871_v36 = vshll.u32 %v17047_v14, %v859_v16  ;;  %v872_v25 = vshrl.u32 %v17076_v17, %v11740_v22  ;;  %v874_v47 = vshll.u32 %v17076_v17, %v859_v16  ;;  %v875_v27 = vshrl.u32 %v17056_v20, %v11740_v22 }
  0xc1   :  { %v781_v5 = vsel %vm775_vm0, %v778_v2, %v780_v38  ;;  %v800_v7 = vadd.s32 1, %v11735_v21  ;;  %v852_v8 = vand.u32 8388607, %v17039_v23  ;;  %v864_v9 = vor.u32 %v863_v35, %v862_v44 }
  0xc2   :  { %v867_v13 = vor.u32 %v866_v41, %v865_v46  ;;  %v870_v1 = vor.u32 %v869_v43, %v868_v63  ;;  %v873_v15 = vor.u32 %v872_v25, %v871_v36  ;;  %v876_v54 = vor.u32 %v875_v27, %v874_v47  ;;  %v330_v36 = vpop.permute.xlu0 %329 }
  0xc3   :  { %v11784_v16 = vshrl.u32 %v700_v51, 30  ;;  %vm799_vm2 = vc.u32 %v11746_v32, %v11734_v19  ;;  %vm880_vm3 = vcmp.lt.s32.totalorder %v11767_v42, 4  ;;  %v270_v12 = vmul.f32 %v11500_v40, %v95_v60 }
  0xc4   :  { %v604_v59 = vclz %v9944_v34  ;;  %v797_v26 = vmul.u32 %v11717_v55, %v781_v5  ;;  %v886_v48 = vsel %vm880_vm3, %v873_v15, 920167782  ;;  %v853_v35 = vor.u32 8388608, %v852_v8 }
  0xc5   :  { %vm877_vm4 = vcmp.lt.s32.totalorder %v11767_v42, 1  ;;  %vm879_vm5 = vcmp.lt.s32.totalorder %v11767_v42, 3  ;;  %v11795_v24 = vadd.f32 %v464_v37, %v270_v12  ;;  %v801_v51 = vsel %vm799_vm2, %v800_v7, %v11735_v21 }
  0xc6   :  { %v885_v2 = vsel %vm877_vm4, %v864_v9, %v867_v13  ;;  %v887_v60 = vsel %vm879_vm5, %v870_v1, %v886_v48  ;;  %v890_v55 = vsel %vm880_vm3, %v876_v54, 1326507024  ;;  %v702_v34 = vshll.u32 %v11784_v16, 30 }
  0xc7   :  { %17322 = vst [vmem:[#allocation7_spill] sm:$0xff] %v11795_v24  ;;  %v889_v38 = vsel %vm877_vm4, %v867_v13, %v870_v1  ;;  %v891_v37 = vsel %vm879_vm5, %v873_v15, %v890_v55  ;;  %v9945_v21 = vadd.s32 4294967294, %v604_v59  ;;  %vm878_vm6 = vcmp.lt.s32.totalorder %v11767_v42, 2 }
  0xc8   :  { %v802_v41 = vadd.s32 %v801_v51, %v797_v26  ;;  %v888_v43 = vsel %vm878_vm6, %v885_v2, %v887_v60  ;;  %v892_v44 = vsel %vm878_vm6, %v889_v38, %v891_v37  ;;  %v893_v46 = vshll.u32 %v853_v35, 8 }
  0xc9   :  { %v951_v63 = vand.u32 2139095040, %v11795_v24  ;;  %v11817_v25 = vsub.s32 %v11731_v18, %v702_v34  ;;  %v272_v47 = vmul.f32 %v11500_v40, %v105_v30  ;;  %vm9946_vm7 = vcmp.lt.s32.totalorder %v9945_v21, 0 }
  0xca   :  { %v11820_v27 = vmul.u32.u64.low %v893_v46, %v888_v43  ;;  %v11821_v5 = vmul.u32.u64.high %v893_v46, %v888_v43, %v11820_v27  ;;  %v803_v8 = vadd.s32 536870912, %v802_v41  ;;  %v466_v12 = vmul.f32 %v11498_v39, %v330_v36 }
  0xcb   :  { %v952_v7 = vshrl.u32 %v951_v63, 23  ;;  %v11824_v15 = vmul.u32.u64.low %v893_v46, %v892_v44  ;;  %v11825_v54 = vmul.u32.u64.high %v893_v46, %v892_v44, %v11824_v15  ;;  %v607_v26 = vsel %vm9946_vm7, 0, %v9945_v21 }
  0xcc   :  { %v705_v48 = vsub.s32 0, %v11817_v25  ;;  %v882_v18 = vsel %vm880_vm3, %v870_v1, 2102212464  ;;  %v11831_v35 = vshrl.u32 %v803_v8, 30  ;;  %v861_v51 = vshrl.u32 %v17054_v3, %v11740_v22 }
  0xcd   :  { %v9959_v59 = vadd.s32 4294967169, %v952_v7  ;;  %v11835_v2 = vadd.f32 %v466_v12, %v272_v47  ;;  %v608_v60 = vsub.s32 32, %v607_v26  ;;  %v612_v55 = vsub.s32 4294967266, %v607_v26 }
  0xce   :  { %v9948_v34 = vmin.u32 %v705_v48, %v11817_v25  ;;  %v881_v38 = vsel %vm877_vm4, %v861_v51, %v864_v9  ;;  %v883_v37 = vsel %vm879_vm5, %v867_v13, %v882_v18  ;;  %v592_v21 = vadd.s32 %v11580_v50, %v11588_v56 }
  0xcf   :  { %v958_v30 = vadd.s32 1, %v9959_v59  ;;  %17323 = vst [vmem:[#allocation8_spill] sm:$0xff] %v11835_v2  ;;  %v622_v43 = vsub.s32 4, %v11687_v33  ;;  %v903_v22 = vadd.s32 1, %v11821_v5  ;;  %v805_v63 = vshll.u32 %v11831_v35, 30 }
  0xd0   :  { %vm902_vm9 = vc.u32 %v11825_v54, %v11820_v27  ;;  %v1157_v36 = vand.u32 2139095040, %v11835_v2  ;;  %v610_v9 = vshrl.u32 %v592_v21, %v608_v60  ;;  %v884_v13 = vsel %vm878_vm6, %v881_v38, %v883_v37 }
  0xd1   :  { %vm959_vm8 = vcmp.gt.s32.totalorder %v958_v30, 0  ;;  %vm538_vm10 = vcmp.lt.s32.totalorder %v11505_v45, 0  ;;  %v613_v50 = vadd.s32 127, %v612_v55  ;;  %v707_v56 = vclz %v9948_v34 }
  0xd2   :  { %v960_v1 = vsel %vm959_vm8, %v958_v30, 0  ;;  %v609_v7 = vshll.u32 %v11719_v61, %v607_v26  ;;  %v11859_v8 = vsel %vm538_vm10, %v622_v43, %v11687_v33  ;;  %v904_v15 = vsel %vm902_vm9, %v903_v22, %v11821_v5 }
  0xd3   :  { %v962_v44 = vand.u32 31, %v960_v1  ;;  %17324 = vst [vmem:[#allocation9_spill] sm:$0xff] %v11859_v8  ;;  %v271_v12 = vmul.f32 %v11500_v40, %v11765_v29  ;;  %v11866_v42 = vadd.s32 %v11660_v58, %v11671_v10  ;;  %v11868_v59 = vsub.s32 %v802_v41, %v805_v63 }
  0xd4   :  { %v900_v48 = vmul.u32 %v893_v46, %v884_v13  ;;  %v1158_v18 = vshrl.u32 %v1157_v36, 23  ;;  %v11870_v30 = vor.u32 %v610_v9, %v609_v7  ;;  %v614_v26 = vshll.u32 %v613_v50, 23  ;;  %v326_v36 = vpop.permute.xlu1 %325 }
  0xd5   :  { %v11852_v47 = vsub.s32 32, %v962_v44  ;;  %v9949_v29 = vadd.s32 4294967294, %v707_v56  ;;  %v17038_v58 = vand.u32 2147483647, %v11795_v24  ;;  %v974_v46 = vshll.u32 %v17047_v14, %v962_v44 }
  0xd6   :  { %v11877_v51 = vadd.s32 %v904_v15, %v900_v48  ;;  %v977_v60 = vshll.u32 %v17076_v17, %v962_v44  ;;  %v808_v55 = vsub.s32 0, %v11868_v59  ;;  %v11887_v34 = vshrl.u32 %v960_v1, 5 }
  0xd7   :  { %v975_v33 = vshrl.u32 %v17076_v17, %v11852_v47  ;;  %v978_v5 = vshrl.u32 %v17056_v20, %v11852_v47  ;;  %v966_v10 = vshrl.u32 %v17045_v6, %v11852_v47  ;;  %v969_v41 = vshrl.u32 %v17043_v11, %v11852_v47 }
  0xd8   :  { %v972_v38 = vshrl.u32 %v17047_v14, %v11852_v47  ;;  %v9967_v37 = vadd.s32 4294967169, %v1158_v18  ;;  %v965_v21 = vshll.u32 %v17054_v3, %v962_v44  ;;  %v968_v43 = vshll.u32 %v17045_v6, %v962_v44 }
  0xd9   :  { %v976_v22 = vor.u32 %v975_v33, %v974_v46  ;;  %v979_v63 = vor.u32 %v978_v5, %v977_v60  ;;  %vm9950_vm11 = vcmp.lt.s32.totalorder %v9949_v29, 0  ;;  %v906_v9 = vadd.s32 536870912, %v11877_v51 }
  0xda   :  { %v955_v13 = vand.u32 8388607, %v17038_v58  ;;  %v971_v1 = vshll.u32 %v17043_v11, %v962_v44  ;;  %v615_v50 = vor.u32 4788187, %v614_v26  ;;  %v618_v56 = vcvt.s32.f32 %v11870_v30 }
  0xdb   :  { %v11898_v7 = vor.u32 %v966_v10, %v965_v21  ;;  %v11900_v15 = vor.u32 %v969_v41, %v968_v43  ;;  %vm983_vm12 = vcmp.lt.s32.totalorder %v11887_v34, 4  ;;  %v1164_v18 = vadd.s32 1, %v9967_v37  ;;  %v346_v43 = vpop.permute.xlu0 %345 }
  0xdc   :  { %v11902_v48 = vor.u32 %v972_v38, %v971_v1  ;;  %v465_v33 = vmul.f32 %v11498_v39, %v326_v36  ;;  %v11906_v5 = vsel %vm9950_vm11, 0, %v9949_v29  ;;  %v11909_v46 = vmin.u32 %v808_v55, %v11868_v59 }
  0xdd   :  { %v989_v44 = vsel %vm983_vm12, %v976_v22, 920167782  ;;  %v993_v30 = vsel %vm983_vm12, %v979_v63, 1326507024  ;;  %v11915_v26 = vshrl.u32 %v906_v9, 30  ;;  %v956_v10 = vor.u32 8388608, %v955_v13 }
  0xde   :  { %vm980_vm13 = vcmp.lt.s32.totalorder %v11887_v34, 1  ;;  %vm1165_vm14 = vcmp.gt.s32.totalorder %v1164_v18, 0  ;;  %vm982_vm15 = vcmp.lt.s32.totalorder %v11887_v34, 3  ;;  %v17040_v41 = vand.u32 2147483647, %v11835_v2 }
  0xdf   :  { %v988_v29 = vsel %vm980_vm13, %v11898_v7, %v11900_v15  ;;  %v1166_v60 = vsel %vm1165_vm14, %v1164_v18, 0  ;;  %v990_v55 = vsel %vm982_vm15, %v11902_v48, %v989_v44  ;;  %v992_v38 = vsel %vm980_vm13, %v11900_v15, %v11902_v48 }
  0xe0   :  { %v994_v37 = vsel %vm982_vm15, %v976_v22, %v993_v30  ;;  %v1168_v21 = vand.u32 31, %v1166_v60  ;;  %v616_v63 = vand.u32 2147483647, %v615_v50  ;;  %v715_v36 = vsub.s32 4294967266, %v11906_v5 }
  0xe1   :  { %v11934_v9 = vadd.f32 %v465_v33, %v271_v12  ;;  %v11937_v13 = vmul.f32 %v11498_v39, %v346_v43  ;;  %v810_v1 = vclz %v11909_v46  ;;  %v908_v18 = vshll.u32 %v11915_v26, 30 }
  0xe2   :  { %vm981_vm0 = vcmp.lt.s32.totalorder %v11887_v34, 2  ;;  %v11942_v44 = vsub.s32 32, %v1168_v21  ;;  %v11948_v30 = vshll.u32 %v956_v10, 8  ;;  %v1161_v12 = vand.u32 8388607, %v17040_v41 }
  0xe3   :  { %17325 = vst [vmem:[#allocation10_spill] sm:$0xff] %v11934_v9  ;;  %v991_v22 = vsel %vm981_vm0, %v988_v29, %v990_v55  ;;  %v995_v50 = vsel %vm981_vm0, %v992_v38, %v994_v37  ;;  %v1171_v33 = vshll.u32 %v17054_v3, %v1168_v21  ;;  %v1174_v43 = vshll.u32 %v17045_v6, %v1168_v21 }
  0xe4   :  { %v1172_v46 = vshrl.u32 %v17045_v6, %v11942_v44  ;;  %v1175_v58 = vshrl.u32 %v17043_v11, %v11942_v44  ;;  %v11958_v23 = vshrl.u32 %v1166_v60, 5  ;;  %v1177_v29 = vshll.u32 %v17043_v11, %v1168_v21  ;;  %v65_v60 = vld [vmem:[%s17028_s0 + $0x100] sm:$0xff] }
  0xe5   :  { %v1178_v10 = vshrl.u32 %v17047_v14, %v11942_v44  ;;  %v1054_v55 = vand.u32 2139095040, %v11934_v9  ;;  %v11965_v38 = vsub.s32 %v11877_v51, %v908_v18  ;;  %v1180_v49 = vshll.u32 %v17047_v14, %v1168_v21  ;;  %234 = vperm.xlu1 %10973, %v65_v60  }
  0xe6   :  { %v11968_v37 = vmul.u32.u64.low %v11948_v30, %v991_v22  ;;  %v11969_v41 = vmul.u32.u64.high %v11948_v30, %v991_v22, %v11968_v37  ;;  %v11977_v57 = vmul.u32.u64.low %v11948_v30, %v995_v50  ;;  %v11978_v61 = vmul.u32.u64.high %v11948_v30, %v995_v50, %v11977_v57 }
  0xe7   :  { %v1181_v11 = vshrl.u32 %v17076_v17, %v11942_v44  ;;  %v1183_v51 = vshll.u32 %v17076_v17, %v1168_v21  ;;  %v11983_v18 = vor.u32 %v1172_v46, %v1171_v33  ;;  %v11985_v22 = vor.u32 %v1175_v58, %v1174_v43 }
  0xe8   :  { %v1179_v6 = vor.u32 %v1178_v10, %v1177_v29  ;;  %v1184_v14 = vshrl.u32 %v17056_v20, %v11942_v44  ;;  %vm1186_vm1 = vcmp.lt.s32.totalorder %v11958_v23, 1  ;;  %vm1188_vm2 = vcmp.lt.s32.totalorder %v11958_v23, 3 }
  0xe9   :  { %v1182_v4 = vor.u32 %v1181_v11, %v1180_v49  ;;  %vm1189_vm3 = vcmp.lt.s32.totalorder %v11958_v23, 4  ;;  %v619_v57 = vmul.f32 %v618_v56, %v616_v63  ;;  %v11994_v21 = vadd.s32 %v11734_v19, %v11746_v32  ;;  %10974 = vset.pattern.permute.xlu1 %v17052_v0 }
  0xea   :  { %v1162_v50 = vor.u32 8388608, %v1161_v12  ;;  %v1185_v33 = vor.u32 %v1184_v14, %v1183_v51  ;;  %v716_v58 = vadd.s32 127, %v715_v36  ;;  %v964_v46 = vshrl.u32 %v17054_v3, %v11852_v47  ;;  %v110_v47 = vpop.permute.xlu1 %109  ;;  %433 = vperm.xlu1 %10974, %v65_v60  }
  0xeb   :  { %v985_v11 = vsel %vm983_vm12, %v11902_v48, 2102212464  ;;  %v1195_v49 = vsel %vm1189_vm3, %v1182_v4, 920167782  ;;  %vm1187_vm4 = vcmp.lt.s32.totalorder %v11958_v23, 2  ;;  %v1194_v14 = vsel %vm1186_vm1, %v11983_v18, %v11985_v22 }
  0xec   :  { %v1196_v19 = vsel %vm1188_vm2, %v1179_v6, %v1195_v49  ;;  %v1055_v32 = vshrl.u32 %v1054_v55, 23  ;;  %v711_v56 = vsub.s32 32, %v11906_v5  ;;  %v9953_v48 = vadd.s32 4294967294, %v810_v1 }
  0xed   :  { %v911_v63 = vsub.s32 0, %v11965_v38  ;;  %v1198_v36 = vsel %vm1186_vm1, %v11985_v22, %v1179_v6  ;;  %v984_v12 = vsel %vm980_vm13, %v964_v46, %v11898_v7  ;;  %v986_v43 = vsel %vm982_vm15, %v11900_v15, %v985_v11 }
  0xee   :  { %v1199_v29 = vsel %vm1189_vm3, %v1185_v33, 1326507024  ;;  %v12024_v10 = vshll.u32 %v1162_v50, 8  ;;  %vm12028_vm5 = vcmp.le.f32.partialorder %v536_v62, 0.7853982  ;;  %v17326_v1 = vmov 0  ;;  %437 = vperm.xlu1 %10974, %v11477_v28  }
  0xef   :  { %v17327_v1 = vsel %vm12028_vm5, 4294967295, %v17326_v1  ;;  %v620_v55 = vxor.u32 2147483648, %v619_v57  ;;  %v1006_v60 = vadd.s32 1, %v11969_v41  ;;  %v1197_v7 = vsel %vm1187_vm4, %v1194_v14, %v1196_v19  ;;  %v334_v19 = vpop.permute.xlu1 %333 }
  0xf0   :  { %17328 = vst [vmem:[#allocation11_spill] sm:$0xff] %v17327_v1  ;;  %v1200_v15 = vsel %vm1188_vm2, %v1182_v4, %v1199_v29  ;;  %v717_v51 = vshll.u32 %v716_v58, 23  ;;  %vm1005_vm6 = vc.u32 %v11978_v61, %v11968_v37  ;;  %v9963_v62 = vadd.s32 4294967169, %v1055_v32 }
  0xf1   :  { %v1201_v50 = vsel %vm1187_vm4, %v1198_v36, %v1200_v15  ;;  %v713_v33 = vshrl.u32 %v11866_v42, %v711_v56  ;;  %vm9954_vm7 = vcmp.lt.s32.totalorder %v9953_v48, 0  ;;  %v9956_v46 = vmin.u32 %v911_v63, %v11965_v38 }
  0xf2   :  { %v987_v11 = vsel %vm981_vm0, %v984_v12, %v986_v43  ;;  %v12047_v4 = vmul.u32.u64.low %v12024_v10, %v1197_v7  ;;  %v12048_v58 = vmul.u32.u64.high %v12024_v10, %v1197_v7, %v12047_v4  ;;  %v17051_v49 = vand.u32 2147483647, %v11934_v9  ;;  %v12117_v9 = vpop.permute.xlu0 %119 }
  0xf3   :  { %v1061_v14 = vadd.s32 1, %v9963_v62  ;;  %v1007_v32 = vsel %vm1005_vm6, %v1006_v60, %v11969_v41  ;;  %v1170_v28 = vshrl.u32 %v17054_v3, %v11942_v44  ;;  %v12059_v34 = vor.u32 4788187, %v717_v51 }
  0xf4   :  { %v12056_v42 = vmul.u32.u64.low %v12024_v10, %v1201_v50  ;;  %v12057_v56 = vmul.u32.u64.high %v12024_v10, %v1201_v50, %v12056_v42  ;;  %v1003_v63 = vmul.u32 %v11948_v30, %v987_v11  ;;  %v1191_v36 = vsel %vm1189_vm3, %v1179_v6, 2102212464 }
  0xf5   :  { %vm1062_vm8 = vcmp.gt.s32.totalorder %v1061_v14, 0  ;;  %v17329_v12 = vmov 0   ;;  %v621_v41 = vsel %vm538_vm10, %v620_v55, %v619_v57  ;;  %v913_v43 = vclz %v9956_v46 }
  0xf6   :  { %10975 = vset.pattern.permute.xlu1 %v17329_v12  ;;  %v1063_v29 = vsel %vm1062_vm8, %v1061_v14, 0  ;;  %v467_v44 = vmul.f32 %v11498_v39, %v334_v19  ;;  %v712_v60 = vshll.u32 %v11817_v25, %v11906_v5  ;;  %v12071_v7 = vsel %vm9954_vm7, 0, %v9953_v48 }
  0xf7   :  { %v12073_v30 = vadd.s32 %v1007_v32, %v1003_v63  ;;  %v1065_v15 = vand.u32 31, %v1063_v29  ;;  %v1190_v6 = vsel %vm1186_vm1, %v1170_v28, %v11983_v18  ;;  %v1192_v57 = vsel %vm1188_vm2, %v11985_v22, %v1191_v36 }
  0xf8   :  { %v1058_v55 = vand.u32 8388607, %v17051_v49  ;;  %v273_v51 = vmul.f32 %v11500_v40, %v110_v47  ;;  %v12087_v25 = vsel %vm12028_vm5, %v11505_v45, %v621_v41  ;;  %v12089_v5 = vor.u32 %v713_v33, %v712_v60 }
  0xf9   :  { %v1066_v50 = vsub.s32 32, %v1065_v15  ;;  %v814_v18 = vsub.s32 32, %v12071_v7  ;;  %v818_v62 = vsub.s32 4294967266, %v12071_v7  ;;  %v9957_v22 = vadd.s32 4294967294, %v913_v43 }
  0xfa   :  { %v12094_v46 = vadd.f32 %v467_v44, %v273_v51  ;;  %v1009_v11 = vadd.s32 536870912, %v12073_v30  ;;  %v1193_v47 = vsel %vm1187_vm4, %v1190_v6, %v1192_v57  ;;  %v1212_v14 = vadd.s32 1, %v12048_v58 }
  0xfb   :  { %v17331_v19 = vmov 2475754826   ;;  %vm1211_vm9 = vc.u32 %v12057_v56, %v12047_v4  ;;  %v1059_v32 = vor.u32 8388608, %v1058_v55  ;;  %v17332_v28 = vmov 2131351028  }
  0xfc   :  { %17330 = vst [vmem:[#allocation12_spill] sm:$0xff] %v12094_v46  ;;  %v1069_v33 = vshrl.u32 %v17331_v19, %v1066_v50  ;;  %v1072_v42 = vshrl.u32 %v17332_v28, %v1066_v50  ;;  %v17333_v63 = vmov 2102212464   ;;  %v1068_v41 = vshll.u32 %v17054_v3, %v1065_v15 }
  0xfd   :  { %v1075_v36 = vshrl.u32 %v17333_v63, %v1066_v50  ;;  %v1071_v43 = vshll.u32 %v17331_v19, %v1065_v15  ;;  %v1077_v44 = vshll.u32 %v17333_v63, %v1065_v15  ;;  %v1078_v23 = vshrl.u32 %v17076_v17, %v1066_v50 }
  0xfe   :  { %v1209_v60 = vmul.u32 %v12024_v10, %v1193_v47  ;;  %v1064_v6 = vshrl.u32 %v1063_v29, 5  ;;  %v1074_v57 = vshll.u32 %v17332_v28, %v1065_v15  ;;  %v1260_v51 = vand.u32 2139095040, %v12094_v46 }
  0xff   :  { %v1213_v55 = vsel %vm1211_vm9, %v1212_v14, %v12048_v58  ;;  %v1070_v49 = vor.u32 %v1069_v33, %v1068_v41  ;;  %v1073_v0 = vor.u32 %v1072_v42, %v1071_v43  ;;  %v1079_v48 = vor.u32 %v1078_v23, %v1077_v44 }
 0x100   :  { %v815_v3 = vshll.u32 %v11868_v59, %v12071_v7  ;;  %v1076_v20 = vor.u32 %v1075_v36, %v1074_v57  ;;  %v1080_v45 = vshll.u32 %v17076_v17, %v1065_v15  ;;  %v17334_v1 = vmov 1326507024  }
 0x101   :  { %v1081_v8 = vshrl.u32 %v17334_v1, %v1066_v50  ;;  %v819_v10 = vadd.s32 127, %v818_v62  ;;  %vm9958_vm10 = vcmp.lt.s32.totalorder %v9957_v22, 0  ;;  %v12119_v29 = vshrl.u32 %v1009_v11, 30 }
 0x102   :  { %v1099_v47 = vshll.u32 %v1059_v32, 8  ;;  %vm641_vm11 = vcmp.lt.s32.totalorder %v11514_v52, 0  ;;  %v12122_v58 = vadd.s32 %v1213_v55, %v1209_v60  ;;  %vm1083_vm12 = vcmp.lt.s32.totalorder %v1064_v6, 1  ;;  %v125_v60 = vpop.permute.xlu0 %124 }
 0x103   :  { %v1082_v14 = vor.u32 %v1081_v8, %v1080_v45  ;;  %vm1086_vm13 = vcmp.lt.s32.totalorder %v1064_v6, 4  ;;  %vm1085_vm14 = vcmp.lt.s32.totalorder %v1064_v6, 3  ;;  %v1091_v59 = vsel %vm1083_vm12, %v1070_v49, %v1073_v0 }
 0x104   :  { %v1092_v7 = vsel %vm1086_vm13, %v1079_v48, 920167782  ;;  %v1261_v15 = vshrl.u32 %v1260_v51, 23  ;;  %vm1084_vm15 = vcmp.lt.s32.totalorder %v1064_v6, 2  ;;  %v1088_v33 = vsel %vm1086_vm13, %v1076_v20, 2102212464 }
 0x105   :  { %v1093_v62 = vsel %vm1085_vm14, %v1076_v20, %v1092_v7  ;;  %v1095_v11 = vsel %vm1083_vm12, %v1073_v0, %v1076_v20  ;;  %v1011_v32 = vshll.u32 %v12119_v29, 30  ;;  %v17335_v42 = vmov 683565275  }
 0x106   :  { %v1067_v36 = vshrl.u32 %v17335_v42, %v1066_v50  ;;  %v1094_v41 = vsel %vm1084_vm15, %v1091_v59, %v1093_v62  ;;  %v1096_v45 = vsel %vm1086_vm13, %v1082_v14, 1326507024  ;;  %v1215_v8 = vadd.s32 536870912, %v12122_v58 }
 0x107   :  { %v1097_v43 = vsel %vm1085_vm14, %v1079_v48, %v1096_v45  ;;  %v12132_v44 = vmul.u32.u64.low %v1099_v47, %v1094_v41  ;;  %v12133_v23 = vmul.u32.u64.high %v1099_v47, %v1094_v41, %v12132_v44  ;;  %v1089_v20 = vsel %vm1085_vm14, %v1073_v0, %v1088_v33 }
 0x108   :  { %v1087_v57 = vsel %vm1083_vm12, %v1067_v36, %v1070_v49  ;;  %v1098_v51 = vsel %vm1084_vm15, %v1095_v11, %v1097_v43  ;;  %v9971_v55 = vadd.s32 4294967169, %v1261_v15  ;;  %v816_v50 = vshrl.u32 %v11994_v21, %v814_v18 }
 0x109   :  { %17336 = vst [vmem:[#allocation13_spill] sm:$0xff] %v12132_v44  ;;  %v820_v59 = vshll.u32 %v819_v10, 23  ;;  %v12140_v14 = vmul.u32.u64.low %v1099_v47, %v1098_v51  ;;  %v12141_v7 = vmul.u32.u64.high %v1099_v47, %v1098_v51, %v12140_v14  ;;  %v721_v48 = vcvt.s32.f32 %v12089_v5 }
 0x10a   :  { %v12145_v62 = vsel %vm9958_vm10, 0, %v9957_v22  ;;  %v1267_v41 = vadd.s32 1, %v9971_v55  ;;  %v276_v45 = vmul.f32 %v11500_v40, %v125_v60  ;;  %v12149_v49 = vsub.s32 %v12073_v30, %v1011_v32 }
 0x10b   :  { %17337 = vst [vmem:[#allocation14_spill] sm:$0xff] %v12141_v7  ;;  %v12151_v0 = vshrl.u32 %v1215_v8, 30  ;;  %v1090_v15 = vsel %vm1084_vm15, %v1087_v57, %v1089_v20  ;;  %v1109_v21 = vadd.s32 1, %v12133_v23  ;;  %10998 = vcosq.f32 %v12087_v25 }
 0x10c   :  { %v17339_v18 = vand.u32 2147483647, %v12059_v34  ;;  %v17340_v22 = vsub.s32 4, %v11784_v16  ;;  %vm1268_vm0 = vcmp.gt.s32.totalorder %v1267_v41, 0  ;;  %v12167_v30 = vor.u32 %v816_v50, %v815_v3 }
 0x10d   :  { %17338 = vst [vmem:[#allocation15_spill] sm:$0xff] %v12151_v0  ;;  %v12169_v6 = vor.u32 4788187, %v820_v59  ;;  %v921_v33 = vsub.s32 4294967266, %v12145_v62  ;;  %v17063_v11 = vand.u32 2147483647, %v12094_v46  ;;  %v1106_v32 = vmul.u32 %v1099_v47, %v1090_v15 }
 0x10e   :  { %v12158_v5 = vmul.f32 %v721_v48, %v17339_v18  ;;  %v12165_v10 = vsel %vm641_vm11, %v17340_v22, %v11784_v16  ;;  %vm1108_vm1 = vc.u32 %v12141_v7, %v12132_v44  ;;  %v1269_v34 = vsel %vm1268_vm0, %v1267_v41, 0 }
 0x10f   :  { %17341 = vst [vmem:[#allocation16_spill] sm:$0xff] %v12165_v10  ;;  %v12176_v36 = vadd.f32 %v11937_v13, %v276_v45  ;;  %11000 = vsinq.f32 %v12087_v25  ;;  %v1014_v16 = vsub.s32 0, %v12149_v49  ;;  %v1217_v3 = vshll.u32 %v12151_v0, 30 }
 0x110   :  { %v1110_v8 = vsel %vm1108_vm1, %v1109_v21, %v12133_v23  ;;  %v723_v43 = vxor.u32 2147483648, %v12158_v5  ;;  %v901_v47 = vadd.s32 %v11820_v27, %v11825_v54  ;;  %v1271_v57 = vand.u32 31, %v1269_v34 }
 0x111   :  { %17342 = vst [vmem:[#allocation17_spill] sm:$0xff] %v12176_v36  ;;  %v12185_v60 = vadd.s32 %v1110_v8, %v1106_v32  ;;  %v822_v20 = vand.u32 2147483647, %v12169_v6  ;;  %v824_v13 = vcvt.s32.f32 %v12167_v30  ;;  %v917_v25 = vsub.s32 32, %v12145_v62 }
 0x112   :  { %v918_v51 = vshll.u32 %v11965_v38, %v12145_v62  ;;  %v922_v55 = vadd.s32 127, %v921_v33  ;;  %v1264_v23 = vand.u32 8388607, %v17063_v11  ;;  %v1272_v50 = vsub.s32 32, %v1271_v57 }
 0x113   :  { %v1569_v59 = vand.u32 2139095040, %v12176_v36  ;;  %v9960_v27 = vmin.u32 %v1014_v16, %v12149_v49  ;;  %v12197_v54 = vsub.s32 %v12122_v58, %v1217_v3  ;;  %v1112_v14 = vadd.s32 536870912, %v12185_v60 }
 0x114   :  { %v12200_v48 = vshrl.u32 %v1269_v34, 5  ;;  %v1274_v41 = vshll.u32 %v17335_v42, %v1271_v57  ;;  %v1275_v38 = vshrl.u32 %v17331_v19, %v1272_v50  ;;  %v1277_v62 = vshll.u32 %v17331_v19, %v1271_v57 }
 0x115   :  { %v1278_v45 = vshrl.u32 %v17332_v28, %v1272_v50  ;;  %v1280_v15 = vshll.u32 %v17332_v28, %v1271_v57  ;;  %v1281_v21 = vshrl.u32 %v17333_v63, %v1272_v50  ;;  %v1283_v18 = vshll.u32 %v17333_v63, %v1271_v57  ;;  %v12210_v22 = vpop.eup %10998 }
 0x116   :  { %v1284_v58 = vshrl.u32 %v17076_v17, %v1272_v50  ;;  %17343 = vst [vmem:[#allocation18_spill] sm:$0xff] %v12210_v22  ;;  %v1265_v30 = vor.u32 8388608, %v1264_v23  ;;  %v1276_v6 = vor.u32 %v1275_v38, %v1274_v41  ;;  %v1570_v32 = vshrl.u32 %v1569_v59, 23 }
 0x117   :  { %v1279_v33 = vor.u32 %v1278_v45, %v1277_v62  ;;  %v1282_v34 = vor.u32 %v1281_v21, %v1280_v15  ;;  %v1286_v3 = vshll.u32 %v17076_v17, %v1271_v57  ;;  %v1287_v8 = vshrl.u32 %v17334_v1, %v1272_v50 }
 0x118   :  { %v1285_v16 = vor.u32 %v1284_v58, %v1283_v18  ;;  %v919_v11 = vshrl.u32 %v901_v47, %v917_v25  ;;  %v923_v10 = vshll.u32 %v922_v55, 23  ;;  %v1016_v46 = vclz %v9960_v27 }
 0x119   :  { %v1220_v0 = vsub.s32 0, %v12197_v54  ;;  %v12215_v44 = vpop.eup %11000  ;;  %v17345_v7 = vand.u32 2147483647, %v11514_v52  ;;  %v17346_v23 = vmov 0  ;;  %v12223_v59 = vshrl.u32 %v1112_v14, 30 }
 0x11a   :  { %17344 = vst [vmem:[#allocation19_spill] sm:$0xff] %v12215_v44  ;;  %v1288_v41 = vor.u32 %v1287_v8, %v1286_v3  ;;  %vm1289_vm3 = vcmp.lt.s32.totalorder %v12200_v48, 1  ;;  %vm1292_vm4 = vcmp.lt.s32.totalorder %v12200_v48, 4  ;;  %vm1291_vm6 = vcmp.lt.s32.totalorder %v12200_v48, 3 }
 0x11b   :  { %vm12219_vm2 = vcmp.le.f32.partialorder %v17345_v7, 0.7853982  ;;  %v1297_v47 = vsel %vm1289_vm3, %v1276_v6, %v1279_v33  ;;  %v1298_v57 = vsel %vm1292_vm4, %v1285_v16, 920167782  ;;  %v12232_v25 = vshll.u32 %v1265_v30, 8 }
 0x11c   :  { %v17347_v23 = vsel %vm12219_vm2, 4294967295, %v17346_v23  ;;  %vm1290_vm7 = vcmp.lt.s32.totalorder %v12200_v48, 2  ;;  %v1299_v7 = vsel %vm1291_vm6, %v1282_v34, %v1298_v57  ;;  %v1301_v55 = vsel %vm1289_vm3, %v1279_v33, %v1282_v34 }
 0x11d   :  { %17348 = vst [vmem:[#allocation20_spill] sm:$0xff] %v17347_v23  ;;  %v9983_v27 = vadd.s32 4294967169, %v1570_v32  ;;  %v9961_v14 = vadd.s32 4294967294, %v1016_v46  ;;  %v9968_v38 = vmin.u32 %v1220_v0, %v12197_v54  ;;  %v1300_v62 = vsel %vm1290_vm7, %v1297_v47, %v1299_v7 }
 0x11e   :  { %v1302_v45 = vsel %vm1292_vm4, %v1288_v41, 1326507024  ;;  %v1114_v15 = vshll.u32 %v12223_v59, 30  ;;  %v12248_v18 = vmul.u32.u64.low %v12232_v25, %v1300_v62  ;;  %v12249_v58 = vmul.u32.u64.high %v12232_v25, %v1300_v62, %v12248_v18 }
 0x11f   :  { %v1303_v21 = vsel %vm1291_vm6, %v1285_v16, %v1302_v45  ;;  %v724_v46 = vsel %vm641_vm11, %v723_v43, %v12158_v5  ;;  %v12255_v0 = vmul.f32 %v824_v13, %v822_v20  ;;  %v12257_v30 = vor.u32 %v919_v11, %v918_v51 }
 0x120   :  { %v1304_v32 = vsel %vm1290_vm7, %v1301_v55, %v1303_v21  ;;  %v1294_v3 = vsel %vm1292_vm4, %v1282_v34, 2102212464  ;;  %v1576_v41 = vadd.s32 1, %v9983_v27  ;;  %v12267_v47 = vor.u32 4788187, %v923_v10  ;;  %v115_v27 = vpop.permute.xlu1 %114 }
 0x121   :  { %v12264_v16 = vmul.u32.u64.low %v12232_v25, %v1304_v32  ;;  %v12265_v8 = vmul.u32.u64.high %v12232_v25, %v1304_v32, %v12264_v16  ;;  %vm9962_vm8 = vcmp.lt.s32.totalorder %v9961_v14, 0  ;;  %v1222_v57 = vclz %v9968_v38 }
 0x122   :  { %v1273_v5 = vshrl.u32 %v17335_v42, %v1272_v50  ;;  %v12272_v43 = vsub.s32 %v12185_v60, %v1114_v15  ;;  %v17070_v20 = vand.u32 2147483647, %v12176_v36  ;;  %vm1577_vm9 = vcmp.gt.s32.totalorder %v1576_v41, 0 }
 0x123   :  { %v12278_v13 = vsel %vm12219_vm2, %v11514_v52, %v724_v46  ;;  %v1295_v51 = vsel %vm1291_vm6, %v1279_v33, %v1294_v3  ;;  %v1578_v50 = vsel %vm1577_vm9, %v1576_v41, 0  ;;  %v12287_v60 = vadd.s32 %v11968_v37, %v11978_v61  ;;  %v12296_v33 = vpop.permute.xlu0 %139  ;;  %v68_v61 = vld [vmem:[%s17028_s0 + $0x118] sm:$0xff] }
 0x124   :  { %v1293_v10 = vsel %vm1289_vm3, %v1273_v5, %v1276_v6  ;;  %v12289_v7 = vsel %vm9962_vm8, 0, %v9961_v14  ;;  %v1315_v55 = vadd.s32 1, %v12249_v58  ;;  %v9969_v6 = vadd.s32 4294967294, %v1222_v57  ;;  %249 = vperm.xlu1 %10975, %v68_v61   ;;  %v338_v38 = vpop.permute.xlu1 %337 }
 0x125   :  { %vm1314_vm10 = vc.u32 %v12265_v8, %v12248_v18  ;;  %v1117_v37 = vsub.s32 0, %v12272_v43  ;;  %v1296_v14 = vsel %vm1290_vm7, %v1293_v10, %v1295_v51  ;;  %v1573_v45 = vand.u32 8388607, %v17070_v20 }
 0x126   :  { %v1580_v15 = vand.u32 31, %v1578_v50  ;;  %v1024_v46 = vsub.s32 4294967266, %v12289_v7  ;;  %v1579_v32 = vshrl.u32 %v1578_v50, 5  ;;  %v274_v3 = vmul.f32 %v11500_v40, %v115_v27 }
 0x127   :  { %v1316_v16 = vsel %vm1314_vm10, %v1315_v55, %v12249_v58  ;;  %vm9970_vm11 = vcmp.lt.s32.totalorder %v9969_v6, 0  ;;  %v1312_v5 = vmul.u32 %v12232_v25, %v1296_v14  ;;  %v12316_v20 = vmin.u32 %v1117_v37, %v12272_v43  ;;  %v145_v14 = vpop.permute.xlu0 %144 }
 0x128   :  { %v1581_v41 = vsub.s32 32, %v1580_v15  ;;  %v1583_v57 = vshll.u32 %v17335_v42, %v1580_v15  ;;  %v1586_v48 = vshll.u32 %v17331_v19, %v1580_v15  ;;  %v1589_v10 = vshll.u32 %v17332_v28, %v1580_v15 }
 0x129   :  { %v1592_v51 = vshll.u32 %v17333_v63, %v1580_v15  ;;  %v1574_v50 = vor.u32 8388608, %v1573_v45  ;;  %v17349_v55 = vmov 1   ;;  %v12321_v11 = vadd.s32 %v1316_v16, %v1312_v5 }
 0x12a   :  { %v1584_v27 = vshrl.u32 %v17331_v19, %v1581_v41  ;;  %v1587_v58 = vshrl.u32 %v17332_v28, %v1581_v41  ;;  %10977 = vset.pattern.permute.xlu1 %v17349_v55  ;;  %v1590_v62 = vshrl.u32 %v17333_v63, %v1581_v41  ;;  %v1593_v25 = vshrl.u32 %v17076_v17, %v1581_v41 }
 0x12b   :  { %vm1598_vm12 = vcmp.lt.s32.totalorder %v1579_v32, 1  ;;  %445 = vperm.xlu1 %10977, %v68_v61   ;;  %vm1600_vm13 = vcmp.lt.s32.totalorder %v1579_v32, 3  ;;  %vm1601_vm14 = vcmp.lt.s32.totalorder %v1579_v32, 4  ;;  %v1582_v45 = vshrl.u32 %v17335_v42, %v1581_v41 }
 0x12c   :  { %v1585_v34 = vor.u32 %v1584_v27, %v1583_v57  ;;  %v1588_v37 = vor.u32 %v1587_v58, %v1586_v48  ;;  %v1591_v21 = vor.u32 %v1590_v62, %v1589_v10  ;;  %v1594_v52 = vor.u32 %v1593_v25, %v1592_v51  ;;  %v362_v58 = vpop.permute.xlu0 %361 }
 0x12d   :  { %v1595_v22 = vshll.u32 %v17076_v17, %v1580_v15  ;;  %v1596_v16 = vshrl.u32 %v17334_v1, %v1581_v41  ;;  %vm1599_vm15 = vcmp.lt.s32.totalorder %v1579_v32, 2  ;;  %v1614_v5 = vshll.u32 %v1574_v50, 8 }
 0x12e   :  { %v468_v44 = vmul.f32 %v11498_v39, %v338_v38  ;;  %v1318_v23 = vadd.s32 536870912, %v12321_v11  ;;  %v1603_v61 = vsel %vm1601_vm14, %v1591_v21, 2102212464  ;;  %v1606_v57 = vsel %vm1598_vm12, %v1585_v34, %v1588_v37 }
 0x12f   :  { %v1607_v48 = vsel %vm1601_vm14, %v1594_v52, 920167782  ;;  %10978 = vset.pattern.permute.xlu1 %v17329_v12  ;;  %vm744_vm0 = vcmp.lt.s32.totalorder %v11548_v31, 0  ;;  %v1025_v62 = vadd.s32 127, %v1024_v46  ;;  %v1225_v15 = vsel %vm9970_vm11, 0, %v9969_v6 }
 0x130   :  { %v1597_v41 = vor.u32 %v1596_v16, %v1595_v22  ;;  %v1608_v10 = vsel %vm1600_vm13, %v1591_v21, %v1607_v48  ;;  %v1602_v38 = vsel %vm1598_vm12, %v1582_v45, %v1585_v34  ;;  %v1604_v51 = vsel %vm1600_vm13, %v1588_v37, %v1603_v61 }
 0x131   :  { %v1609_v50 = vsel %vm1599_vm15, %v1606_v57, %v1608_v10  ;;  %v1610_v27 = vsel %vm1598_vm12, %v1588_v37, %v1591_v21  ;;  %v12346_v46 = vadd.f32 %v468_v44, %v274_v3  ;;  %v1230_v22 = vsub.s32 4294967266, %v1225_v15 }
 0x132   :  { %v1611_v25 = vsel %vm1601_vm14, %v1597_v41, 1326507024  ;;  %v12342_v12 = vmul.u32.u64.low %v1614_v5, %v1609_v50  ;;  %v12343_v17 = vmul.u32.u64.high %v1614_v5, %v1609_v50, %v12342_v12  ;;  %v1119_v6 = vclz %v12316_v20 }
 0x133   :  { %17350 = vst [vmem:[#allocation21_spill] sm:$0xff] %v12346_v46  ;;  %v12349_v16 = vshrl.u32 %v1318_v23, 30  ;;  %v1612_v34 = vsel %vm1600_vm13, %v1594_v52, %v1611_v25  ;;  %v17351_v45 = vand.u32 2147483647, %v11548_v31  ;;  %v17352_v21 = vmov 0 }
 0x134   :  { %v1605_v37 = vsel %vm1599_vm15, %v1602_v38, %v1604_v51  ;;  %v1613_v61 = vsel %vm1599_vm15, %v1610_v27, %v1612_v34  ;;  %v280_v44 = vmul.f32 %v11500_v40, %v145_v14  ;;  %v474_v3 = vmul.f32 %v11498_v39, %v362_v58 }
 0x135   :  { %vm12354_vm1 = vcmp.le.f32.partialorder %v17351_v45, 0.7853982  ;;  %v17355_v20 = vsub.s32 32, %v12289_v7  ;;  %v1210_v52 = vadd.s32 %v12047_v4, %v12057_v56  ;;  %v1026_v41 = vshll.u32 %v1025_v62, 23 }
 0x136   :  { %v17353_v21 = vsel %vm12354_vm1, 4294967295, %v17352_v21  ;;  %v12367_v57 = vmul.u32.u64.low %v1614_v5, %v1613_v61  ;;  %v12368_v48 = vmul.u32.u64.high %v1614_v5, %v1613_v61, %v12367_v57  ;;  %v1226_v10 = vsub.s32 32, %v1225_v15 }
 0x137   :  { %17354 = vst [vmem:[#allocation22_spill] sm:$0xff] %v17353_v21  ;;  %v1022_v23 = vshrl.u32 %v12287_v60, %v17355_v20  ;;  %v1624_v38 = vadd.s32 1, %v12343_v17  ;;  %v1363_v32 = vand.u32 2139095040, %v12346_v46  ;;  %v1021_v14 = vshll.u32 %v12149_v49, %v12289_v7 }
 0x138   :  { %v1231_v51 = vadd.s32 127, %v1230_v22  ;;  %v1320_v50 = vshll.u32 %v12349_v16, 30  ;;  %v1621_v27 = vmul.u32 %v1614_v5, %v1605_v37  ;;  %11002 = vcosq.f32 %v12278_v13 }
 0x139   :  { %vm847_vm3 = vcmp.lt.s32.totalorder %v11656_v53, 0  ;;  %v9965_v4 = vadd.s32 4294967294, %v1119_v6  ;;  %v1364_v56 = vshrl.u32 %v1363_v32, 23  ;;  %v12377_v60 = vadd.f32 %v474_v3, %v280_v44 }
 0x13a   :  { %v17357_v62 = vxor.u32 2147483648, %v12255_v0  ;;  %v17358_v49 = vand.u32 2147483647, %v12267_v47  ;;  %v17359_v7 = vcvt.s32.f32 %v12257_v30  ;;  %v1023_v5 = vor.u32 %v1022_v23, %v1021_v14 }
 0x13b   :  { %17356 = vst [vmem:[#allocation23_spill] sm:$0xff] %v12377_v60  ;;  %vm1623_vm4 = vc.u32 %v12368_v48, %v12342_v12  ;;  %v1027_v22 = vor.u32 4788187, %v1026_v41  ;;  %v1227_v6 = vshll.u32 %v12197_v54, %v1225_v15  ;;  %v1228_v34 = vshrl.u32 %v1210_v52, %v1226_v10 }
 0x13c   :  { %v827_v58 = vsel %vm744_vm0, %v17357_v62, %v12255_v0  ;;  %v928_v25 = vmul.f32 %v17359_v7, %v17358_v49  ;;  %v1625_v45 = vsel %vm1623_vm4, %v1624_v38, %v12343_v17  ;;  %v1232_v37 = vshll.u32 %v1231_v51, 23 }
 0x13d   :  { %v12393_v61 = vsub.s32 %v12321_v11, %v1320_v50  ;;  %v12395_v0 = vadd.s32 %v1625_v45, %v1621_v27  ;;  %v9975_v47 = vadd.s32 4294967169, %v1364_v56  ;;  %11004 = vsinq.f32 %v12278_v13 }
 0x13e   :  { %v17360_v30 = vsub.s32 4, %v11831_v35  ;;  %vm9966_vm6 = vcmp.lt.s32.totalorder %v9965_v4, 0  ;;  %v1981_v54 = vand.u32 2139095040, %v12377_v60  ;;  %v12409_v17 = vsel %vm12354_vm1, %v11548_v31, %v827_v58 }
 0x13f   :  { %v931_v11 = vsub.s32 4, %v11915_v26  ;;  %v1627_v15 = vadd.s32 536870912, %v12395_v0  ;;  %v1370_v13 = vadd.s32 1, %v9975_v47  ;;  %v929_v3 = vxor.u32 2147483648, %v928_v25 }
 0x140   :  { %v12403_v44 = vsel %vm744_vm0, %v17360_v30, %v11831_v35  ;;  %v1028_v20 = vand.u32 2147483647, %v1027_v22  ;;  %v1030_v23 = vcvt.s32.f32 %v1023_v5  ;;  %v1229_v52 = vor.u32 %v1228_v34, %v1227_v6 }
 0x141   :  { %17361 = vst [vmem:[#allocation24_spill] sm:$0xff] %v12403_v44  ;;  %v17362_v35 = vand.u32 2147483647, %v11656_v53  ;;  %v17363_v57 = vmov 0  ;;  %v1233_v41 = vor.u32 4788187, %v1232_v37  ;;  %11006 = vcosq.f32 %v12409_v17 }
 0x142   :  { %v12419_v10 = vsel %vm9966_vm6, 0, %v9965_v4  ;;  %v1323_v38 = vsub.s32 0, %v12393_v61  ;;  %vm1371_vm8 = vcmp.gt.s32.totalorder %v1370_v13, 0  ;;  %v12422_v32 = vshrl.u32 %v1627_v15, 30  ;;  %v12435_v62 = vpop.eup %11002 }
 0x143   :  { %vm12415_vm7 = vcmp.le.f32.partialorder %v17362_v35, 0.7853982  ;;  %v17078_v14 = vand.u32 2147483647, %v12346_v46  ;;  %v1372_v51 = vsel %vm1371_vm8, %v1370_v13, 0  ;;  %v1982_v50 = vshrl.u32 %v1981_v54, 23 }
 0x144   :  { %v17364_v57 = vsel %vm12415_vm7, 4294967295, %v17363_v57  ;;  %v12429_v27 = vsel %vm847_vm3, %v931_v11, %v11915_v26  ;;  %v12433_v4 = vmul.f32 %v11500_v40, %v12117_v9  ;;  %v1374_v56 = vand.u32 31, %v1372_v51  ;;  %17367 = vst [vmem:[#allocation27_spill] sm:$0xff] %v12435_v62 }
 0x145   :  { %17365 = vst [vmem:[#allocation25_spill] sm:$0xff] %v17364_v57  ;;  %17366 = vst [vmem:[#allocation26_spill] sm:$0xff] %v12429_v27  ;;  %v930_v58 = vsel %vm847_vm3, %v929_v3, %v928_v25  ;;  %v1031_v49 = vmul.f32 %v1030_v23, %v1028_v20  ;;  %v1236_v5 = vcvt.s32.f32 %v1229_v52  ;;  %vm950_vm9 = vcmp.lt.s32.totalorder %v11795_v24, 0  ;;  %v17381_v57 = vld [vmem:[#allocation15_spill] sm:$0xff] }
 0x146   :  { %v1234_v22 = vand.u32 2147483647, %v1233_v41  ;;  %v1127_v26 = vsub.s32 4294967266, %v12419_v10  ;;  %v9972_v6 = vmin.u32 %v1323_v38, %v12393_v61  ;;  %v12443_v34 = vsub.s32 32, %v1374_v56 }
 0x147   :  { %v1629_v9 = vshll.u32 %v12422_v32, 30  ;;  %v1367_v45 = vand.u32 8388607, %v17078_v14  ;;  %v12448_v37 = vshrl.u32 %v1372_v51, 5  ;;  %v9999_v25 = vadd.s32 4294967169, %v1982_v50  ;;  %v12456_v15 = vpop.eup %11004 }
 0x148   :  { %v1377_v47 = vshll.u32 %v17335_v42, %v1374_v56  ;;  %v1378_v30 = vshrl.u32 %v17331_v19, %v12443_v34  ;;  %v1380_v54 = vshll.u32 %v17331_v19, %v1374_v56  ;;  %v1381_v11 = vshrl.u32 %v17332_v28, %v12443_v34  ;;  %17368 = vst [vmem:[#allocation28_spill] sm:$0xff] %v12456_v15 }
 0x149   :  { %v1383_v13 = vshll.u32 %v17332_v28, %v1374_v56  ;;  %v1384_v3 = vshrl.u32 %v17333_v63, %v12443_v34  ;;  %v1386_v20 = vshll.u32 %v17333_v63, %v1374_v56  ;;  %v17369_v23 = vmov 920167782  }
 0x14a   :  { %v1387_v52 = vshrl.u32 %v17369_v23, %v12443_v34  ;;  %v12464_v35 = vor.u32 %v1378_v30, %v1377_v47  ;;  %v12466_v41 = vor.u32 %v1381_v11, %v1380_v54  ;;  %v1389_v38 = vshll.u32 %v17369_v23, %v1374_v56 }
 0x14b   :  { %v1390_v51 = vshrl.u32 %v17334_v1, %v12443_v34  ;;  %v933_v50 = vsel %vm12415_vm7, %v11656_v53, %v930_v58  ;;  %v1032_v14 = vxor.u32 2147483648, %v1031_v49  ;;  %v1385_v7 = vor.u32 %v1384_v3, %v1383_v13  ;;  %v12483_v13 = vpop.eup %11006 }
 0x14c   :  { %v1388_v31 = vor.u32 %v1387_v52, %v1386_v20  ;;  %v17370_v27 = vand.u32 2147483647, %v11795_v24  ;;  %v17371_v21 = vmov 0  ;;  %v1237_v47 = vmul.f32 %v1236_v5, %v1234_v22  ;;  %17374 = vst [vmem:[#allocation30_spill] sm:$0xff] %v12483_v13 }
 0x14d   :  { %v1123_v30 = vsub.s32 32, %v12419_v10  ;;  %v1128_v56 = vadd.s32 127, %v1127_v26  ;;  %v1391_v54 = vor.u32 %v1390_v51, %v1389_v38  ;;  %vm1156_vm11 = vcmp.lt.s32.totalorder %v11835_v2, 0 }
 0x14e   :  { %vm12476_vm10 = vcmp.le.f32.partialorder %v17370_v27, 0.7853982  ;;  %v1325_v11 = vclz %v9972_v6  ;;  %v1368_v44 = vor.u32 8388608, %v1367_v45  ;;  %vm1392_vm12 = vcmp.lt.s32.totalorder %v12448_v37, 1  ;;  %v17379_v45 = vld [vmem:[#allocation14_spill] sm:$0xff] }
 0x14f   :  { %v17372_v21 = vsel %vm12476_vm10, 4294967295, %v17371_v21  ;;  %v1988_v58 = vadd.s32 1, %v9999_v25  ;;  %v12486_v3 = vsub.s32 %v12395_v0, %v1629_v9  ;;  %vm1394_vm13 = vcmp.lt.s32.totalorder %v12448_v37, 3  ;;  %v17380_v25 = vld [vmem:[#allocation13_spill] sm:$0xff] }
 0x150   :  { %17373 = vst [vmem:[#allocation29_spill] sm:$0xff] %v17372_v21  ;;  %vm1395_vm14 = vcmp.lt.s32.totalorder %v12448_v37, 4  ;;  %v1400_v27 = vsel %vm1392_vm12, %v12464_v35, %v12466_v41  ;;  %v1033_v5 = vsel %vm950_vm9, %v1032_v14, %v1031_v49  ;;  %v1404_v0 = vsel %vm1392_vm12, %v12466_v41, %v1385_v7 }
 0x151   :  { %v1401_v22 = vsel %vm1395_vm14, %v1388_v31, 920167782  ;;  %v1405_v26 = vsel %vm1395_vm14, %v1391_v54, 1326507024  ;;  %v17375_v6 = vand.u32 2147483647, %v11835_v2  ;;  %v1107_v20 = vadd.s32 %v17380_v25, %v17379_v45 }
 0x152   :  { %v17376_v9 = vmov 0  ;;  %vm1393_vm0 = vcmp.lt.s32.totalorder %v12448_v37, 2  ;;  %v1402_v14 = vsel %vm1394_vm13, %v1385_v7, %v1401_v22  ;;  %v1406_v49 = vsel %vm1394_vm13, %v1388_v31, %v1405_v26 }
 0x153   :  { %vm12505_vm15 = vcmp.le.f32.partialorder %v17375_v6, 0.7853982  ;;  %v1129_v52 = vshll.u32 %v1128_v56, 23  ;;  %v1403_v38 = vsel %vm1393_vm0, %v1400_v27, %v1402_v14  ;;  %v1407_v51 = vsel %vm1393_vm0, %v1404_v0, %v1406_v49  ;;  %v342_v6 = vpop.permute.xlu1 %341  ;;  %v69_v27 = vld [vmem:[%s17028_s0 + $0x120] sm:$0xff] }
 0x154   :  { %v17377_v9 = vsel %vm12505_vm15, 4294967295, %v17376_v9  ;;  %v12520_v54 = vshll.u32 %v1368_v44, 8  ;;  %v1238_v53 = vxor.u32 2147483648, %v1237_v47  ;;  %v9973_v45 = vadd.s32 4294967294, %v1325_v11  ;;  %254 = vperm.xlu1 %10978, %v69_v27  }
 0x155   :  { %17378 = vst [vmem:[#allocation31_spill] sm:$0xff] %v17377_v9  ;;  %v1632_v25 = vsub.s32 0, %v12486_v3  ;;  %vm1989_vm3 = vcmp.gt.s32.totalorder %v1988_v58, 0  ;;  %v1240_v22 = vsub.s32 4, %v17381_v57  ;;  %v1125_v13 = vshrl.u32 %v1107_v20, %v1123_v30 }
 0x156   :  { %v12525_v31 = vmul.u32.u64.low %v12520_v54, %v1403_v38  ;;  %v12526_v56 = vmul.u32.u64.high %v12520_v54, %v1403_v38, %v12525_v31  ;;  %v12533_v44 = vmul.u32.u64.low %v12520_v54, %v1407_v51  ;;  %v12534_v0 = vmul.u32.u64.high %v12520_v54, %v1407_v51, %v12533_v44 }
 0x157   :  { %v1990_v11 = vsel %vm1989_vm3, %v1988_v58, 0  ;;  %v469_v26 = vmul.f32 %v11498_v39, %v342_v6  ;;  %11008 = vsinq.f32 %v12409_v17  ;;  %v1036_v30 = vsel %vm12476_vm10, %v11795_v24, %v1033_v5 }
 0x158   :  { %v1124_v20 = vshll.u32 %v12272_v43, %v12419_v10  ;;  %v1130_v14 = vor.u32 4788187, %v1129_v52  ;;  %v1239_v49 = vsel %vm1156_vm11, %v1238_v53, %v1237_v47  ;;  %vm9974_vm4 = vcmp.lt.s32.totalorder %v9973_v45, 0  ;;  %10980 = vset.pattern.permute.xlu1 %v17349_v55 }
 0x159   :  { %v9984_v38 = vmin.u32 %v1632_v25, %v12486_v3  ;;  %v1992_v58 = vand.u32 31, %v1990_v11  ;;  %11010 = vcosq.f32 %v933_v50  ;;  %v17382_v51 = vsub.s32 4, %v12119_v29  ;;  %449 = vperm.xlu1 %10980, %v69_v27  }
 0x15a   :  { %v1126_v5 = vor.u32 %v1125_v13, %v1124_v20  ;;  %v1397_v43 = vsel %vm1395_vm14, %v1385_v7, 2102212464  ;;  %11012 = vsinq.f32 %v933_v50  ;;  %v12558_v53 = vsel %vm1156_vm11, %v1240_v22, %v17381_v57 }
 0x15b   :  { %v12551_v17 = vsel %vm950_vm9, %v17382_v51, %v12119_v29  ;;  %17384 = vst [vmem:[#allocation13_spill] sm:$0xff] %v12558_v53  ;;  %v1376_v10 = vshrl.u32 %v17335_v42, %v12443_v34  ;;  %v12563_v47 = vadd.f32 %v469_v26, %v12433_v4  ;;  %11014 = vcosq.f32 %v1036_v30 }
 0x15c   :  { %17383 = vst [vmem:[#allocation14_spill] sm:$0xff] %v12551_v17  ;;  %v12569_v29 = vsel %vm12505_vm15, %v11835_v2, %v1239_v49  ;;  %v1131_v7 = vand.u32 2147483647, %v1130_v14  ;;  %v12572_v50 = vsel %vm9974_vm4, 0, %v9973_v45  ;;  %v1634_v57 = vclz %v9984_v38  ;;  %v130_v45 = vpop.permute.xlu1 %129 }
 0x15d   :  { %17385 = vst [vmem:[#allocation15_spill] sm:$0xff] %v12563_v47  ;;  %v1396_v34 = vsel %vm1392_vm12, %v1376_v10, %v12464_v35  ;;  %v1398_v4 = vsel %vm1394_vm13, %v12466_v41, %v1397_v43  ;;  %v12580_v13 = vsub.s32 32, %v1992_v58  ;;  %11016 = vsinq.f32 %v1036_v30 }
 0x15e   :  { %v1133_v52 = vcvt.s32.f32 %v1126_v5  ;;  %v1418_v25 = vadd.s32 1, %v12526_v56  ;;  %11018 = vcosq.f32 %v12569_v29  ;;  %v1313_v22 = vadd.s32 %v12248_v18, %v12265_v8 }
 0x15f   :  { %vm1417_vm6 = vc.u32 %v12534_v0, %v12525_v31  ;;  %v1466_v35 = vand.u32 2139095040, %v12563_v47  ;;  %v1333_v27 = vsub.s32 4294967266, %v12572_v50  ;;  %v1399_v26 = vsel %vm1393_vm0, %v1396_v34, %v1398_v4 }
 0x160   :  { %v12590_v41 = vmul.f32 %v1133_v52, %v1131_v7  ;;  %v9985_v30 = vadd.s32 4294967294, %v1634_v57  ;;  %v2004_v14 = vshll.u32 %v17333_v63, %v1992_v58  ;;  %v2005_v18 = vshrl.u32 %v17369_v23, %v12580_v13  ;;  %v350_v52 = vpop.permute.xlu1 %349 }
 0x161   :  { %v12600_v8 = vpop.eup %11008  ;;  %v1419_v49 = vsel %vm1417_vm6, %v1418_v25, %v12526_v56  ;;  %v12603_v38 = vshrl.u32 %v1990_v11, 5  ;;  %v2007_v51 = vshll.u32 %v17369_v23, %v1992_v58  ;;  %v2008_v37 = vshrl.u32 %v17334_v1, %v12580_v13  ;;  %v17389_v25 = vld [vmem:[#allocation10_spill] sm:$0xff] }
 0x162   :  { %17386 = vst [vmem:[#allocation32_spill] sm:$0xff] %v12600_v8  ;;  %v1415_v5 = vmul.u32 %v12520_v54, %v1399_v26  ;;  %v1995_v43 = vshll.u32 %v17335_v42, %v1992_v58  ;;  %v1998_v10 = vshll.u32 %v17331_v19, %v1992_v58  ;;  %v1467_v7 = vshrl.u32 %v1466_v35, 23 }
 0x163   :  { %v12611_v57 = vpop.eup %11010  ;;  %v1996_v34 = vshrl.u32 %v17331_v19, %v12580_v13  ;;  %v1999_v56 = vshrl.u32 %v17332_v28, %v12580_v13  ;;  %v2001_v11 = vshll.u32 %v17332_v28, %v1992_v58  ;;  %v2002_v4 = vshrl.u32 %v17333_v63, %v12580_v13 }
 0x164   :  { %17387 = vst [vmem:[#allocation33_spill] sm:$0xff] %v12611_v57  ;;  %v12620_v54 = vpop.eup %11012  ;;  %vm1053_vm8 = vcmp.lt.s32.totalorder %v17389_v25, 0  ;;  %v1135_v35 = vxor.u32 2147483648, %v12590_v41  ;;  %v12624_v26 = vadd.s32 %v1419_v49, %v1415_v5  ;;  %v2006_v44 = vor.u32 %v2005_v18, %v2004_v14  ;;  %v12728_v57 = vpop.permute.xlu0 %377 }
 0x165   :  { %17388 = vst [vmem:[#allocation34_spill] sm:$0xff] %v12620_v54  ;;  %v277_v6 = vmul.f32 %v11500_v40, %v130_v45  ;;  %v12627_v20 = vpop.eup %11014  ;;  %v1329_v2 = vsub.s32 32, %v12572_v50  ;;  %v17391_v58 = vand.u32 2147483647, %v12377_v60  ;;  %v2009_v53 = vor.u32 %v2008_v37, %v2007_v51 }
 0x166   :  { %17390 = vst [vmem:[#allocation35_spill] sm:$0xff] %v12627_v20  ;;  %vm2013_vm9 = vcmp.lt.s32.totalorder %v12603_v38, 4  ;;  %v1330_v24 = vshll.u32 %v12393_v61, %v12572_v50  ;;  %v1334_v21 = vadd.s32 127, %v1333_v27  ;;  %vm9986_vm11 = vcmp.lt.s32.totalorder %v9985_v30, 0 }
 0x167   :  { %v1985_v9 = vand.u32 8388607, %v17391_v58  ;;  %v471_v49 = vmul.f32 %v11498_v39, %v350_v52  ;;  %v12636_v14 = vpop.eup %11016  ;;  %v12638_v45 = vor.u32 %v1996_v34, %v1995_v43  ;;  %v12640_v18 = vor.u32 %v1999_v56, %v1998_v10 }
 0x168   :  { %17392 = vst [vmem:[#allocation36_spill] sm:$0xff] %v12636_v14  ;;  %v2003_v5 = vor.u32 %v2002_v4, %v2001_v11  ;;  %v9979_v20 = vadd.s32 4294967169, %v1467_v7  ;;  %v12642_v17 = vpop.eup %11018  ;;  %v1421_v51 = vadd.s32 536870912, %v12624_v26  ;;  %vm2010_vm12 = vcmp.lt.s32.totalorder %v12603_v38, 1 }
 0x169   :  { %17393 = vst [vmem:[#allocation37_spill] sm:$0xff] %v12642_v17  ;;  %vm2012_vm13 = vcmp.lt.s32.totalorder %v12603_v38, 3  ;;  %v2019_v61 = vsel %vm2013_vm9, %v2006_v44, 920167782  ;;  %v1331_v50 = vshrl.u32 %v1313_v22, %v1329_v2  ;;  %v1986_v27 = vor.u32 8388608, %v1985_v9 }
 0x16a   :  { %v2023_v37 = vsel %vm2013_vm9, %v2009_v53, 1326507024  ;;  %v1473_v43 = vadd.s32 1, %v9979_v20  ;;  %v1335_v10 = vshll.u32 %v1334_v21, 23  ;;  %v12652_v7 = vsel %vm9986_vm11, 0, %v9985_v30 }
 0x16b   :  { %v17093_v34 = vand.u32 2147483647, %v12563_v47  ;;  %v12655_v56 = vadd.f32 %v471_v49, %v277_v6  ;;  %vm2011_vm14 = vcmp.lt.s32.totalorder %v12603_v38, 2  ;;  %v2018_v2 = vsel %vm2010_vm12, %v12638_v45, %v12640_v18 }
 0x16c   :  { %v2020_v9 = vsel %vm2012_vm13, %v2003_v5, %v2019_v61  ;;  %vm1474_vm0 = vcmp.gt.s32.totalorder %v1473_v43, 0  ;;  %v12664_v53 = vshrl.u32 %v1421_v51, 30  ;;  %v2022_v21 = vsel %vm2010_vm12, %v12640_v18, %v2003_v5 }
 0x16d   :  { %17394 = vst [vmem:[#allocation38_spill] sm:$0xff] %v12655_v56  ;;  %v2024_v6 = vsel %vm2012_vm13, %v2006_v44, %v2023_v37  ;;  %v1475_v22 = vsel %vm1474_vm0, %v1473_v43, 0  ;;  %v12674_v30 = vsel %vm1053_vm8, %v1135_v35, %v12590_v41  ;;  %v1622_v20 = vadd.s32 %v12342_v12, %v12368_v48 }
 0x16e   :  { %v12678_v11 = vshll.u32 %v1986_v27, 8  ;;  %v1477_v4 = vand.u32 31, %v1475_v22  ;;  %v12680_v52 = vor.u32 %v1331_v50, %v1330_v24  ;;  %v12682_v58 = vor.u32 4788187, %v1335_v10 }
 0x16f   :  { %v1638_v49 = vsub.s32 32, %v12652_v7  ;;  %v2021_v44 = vsel %vm2011_vm14, %v2018_v2, %v2020_v9  ;;  %v1642_v51 = vsub.s32 4294967266, %v12652_v7  ;;  %v2025_v41 = vsel %vm2011_vm14, %v2022_v21, %v2024_v6 }
 0x170   :  { %v12690_v35 = vsub.s32 32, %v1477_v4  ;;  %v1672_v12 = vand.u32 2139095040, %v12655_v56  ;;  %v1423_v48 = vshll.u32 %v12664_v53, 30  ;;  %v1994_v24 = vshrl.u32 %v17335_v42, %v12580_v13 }
 0x171   :  { %v2015_v61 = vsel %vm2013_vm9, %v2003_v5, 2102212464  ;;  %v1470_v50 = vand.u32 8388607, %v17093_v34  ;;  %v12701_v27 = vmul.u32.u64.low %v12678_v11, %v2021_v44  ;;  %v12702_v37 = vmul.u32.u64.high %v12678_v11, %v2021_v44, %v12701_v27 }
 0x172   :  { %v1481_v43 = vshrl.u32 %v17331_v19, %v12690_v35  ;;  %v1484_v10 = vshrl.u32 %v17332_v28, %v12690_v35  ;;  %v12710_v2 = vmul.u32.u64.low %v12678_v11, %v2025_v41  ;;  %v12711_v13 = vmul.u32.u64.high %v12678_v11, %v2025_v41, %v12710_v2 }
 0x173   :  { %v1480_v5 = vshll.u32 %v17335_v42, %v1477_v4  ;;  %v1487_v9 = vshrl.u32 %v17333_v63, %v12690_v35  ;;  %v1483_v21 = vshll.u32 %v17331_v19, %v1477_v4  ;;  %v1489_v6 = vshll.u32 %v17333_v63, %v1477_v4 }
 0x174   :  { %v1490_v44 = vshrl.u32 %v17369_v23, %v12690_v35  ;;  %v1673_v34 = vshrl.u32 %v1672_v12, 23  ;;  %v12721_v17 = vsub.s32 %v12624_v26, %v1423_v48  ;;  %v12723_v14 = vshrl.u32 %v1475_v22, 5 }
 0x175   :  { %v12725_v41 = vor.u32 %v1481_v43, %v1480_v5  ;;  %v1486_v2 = vshll.u32 %v17332_v28, %v1477_v4  ;;  %v12730_v54 = vor.u32 %v1484_v10, %v1483_v21  ;;  %v1492_v62 = vshll.u32 %v17369_v23, %v1477_v4 }
 0x176   :  { %v1491_v8 = vor.u32 %v1490_v44, %v1489_v6  ;;  %v1493_v15 = vshrl.u32 %v17334_v1, %v12690_v35  ;;  %v1337_v12 = vand.u32 2147483647, %v12682_v58  ;;  %v1639_v26 = vshll.u32 %v12486_v3, %v12652_v7 }
 0x177   :  { %v1640_v22 = vshrl.u32 %v1622_v20, %v1638_v49  ;;  %v1488_v48 = vor.u32 %v1487_v9, %v1486_v2  ;;  %v2014_v43 = vsel %vm2010_vm12, %v1994_v24, %v12638_v45  ;;  %v2016_v10 = vsel %vm2012_vm13, %v12640_v18, %v2015_v61  ;;  %v17399_v45 = vld [vmem:[#allocation12_spill] sm:$0xff] }
 0x178   :  { %v1494_v5 = vor.u32 %v1493_v15, %v1492_v62  ;;  %v9987_v4 = vadd.s32 4294967169, %v1673_v34  ;;  %v1643_v21 = vadd.s32 127, %v1642_v51  ;;  %v1426_v6 = vsub.s32 0, %v12721_v17  ;;  %v12769_v51 = vpop.permute.xlu0 %159 }
 0x179   :  { %vm1495_vm3 = vcmp.lt.s32.totalorder %v12723_v14, 1  ;;  %vm1498_vm4 = vcmp.lt.s32.totalorder %v12723_v14, 4  ;;  %v17395_v3 = vand.u32 2147483647, %v17389_v25  ;;  %v17396_v7 = vmov 0 }
 0x17a   :  { %vm1259_vm9 = vcmp.lt.s32.totalorder %v17399_v45, 0  ;;  %v1471_v20 = vor.u32 8388608, %v1470_v50  ;;  %vm1497_vm11 = vcmp.lt.s32.totalorder %v12723_v14, 3  ;;  %v1503_v62 = vsel %vm1495_vm3, %v12725_v41, %v12730_v54 }
 0x17b   :  { %vm12749_vm6 = vcmp.le.f32.partialorder %v17395_v3, 0.7853982  ;;  %v1504_v15 = vsel %vm1498_vm4, %v1491_v8, 920167782  ;;  %v2017_v18 = vsel %vm2011_vm14, %v2014_v43, %v2016_v10  ;;  %v2036_v34 = vadd.s32 1, %v12702_v37 }
 0x17c   :  { %v17397_v7 = vsel %vm12749_vm6, 4294967295, %v17396_v7  ;;  %v1505_v58 = vsel %vm1497_vm11, %v1488_v48, %v1504_v15  ;;  %v1507_v49 = vsel %vm1495_vm3, %v12730_v54, %v1488_v48  ;;  %vm2035_vm12 = vc.u32 %v12711_v13, %v12701_v27 }
 0x17d   :  { %17398 = vst [vmem:[#allocation39_spill] sm:$0xff] %v17397_v7  ;;  %vm1496_vm13 = vcmp.lt.s32.totalorder %v12723_v14, 2  ;;  %v1508_v38 = vsel %vm1498_vm4, %v1494_v5, 1326507024  ;;  %v1679_v24 = vadd.s32 1, %v9987_v4  ;;  %v1339_v61 = vcvt.s32.f32 %v12680_v52 }
 0x17e   :  { %v9976_v50 = vmin.u32 %v1426_v6, %v12721_v17  ;;  %v1506_v9 = vsel %vm1496_vm13, %v1503_v62, %v1505_v58  ;;  %v1509_v44 = vsel %vm1497_vm11, %v1491_v8, %v1508_v38  ;;  %v2033_v2 = vmul.u32 %v12678_v11, %v2017_v18 }
 0x17f   :  { %v1510_v43 = vsel %vm1496_vm13, %v1507_v49, %v1509_v44  ;;  %v12785_v10 = vshll.u32 %v1471_v20, 8  ;;  %vm1680_vm14 = vcmp.gt.s32.totalorder %v1679_v24, 0  ;;  %v12787_v5 = vmul.f32 %v1339_v61, %v1337_v12  ;;  %v70_v20 = vld [vmem:[%s17028_s0 + $0x128] sm:$0xff] }
 0x180   :  { %v12789_v4 = vor.u32 %v1640_v22, %v1639_v26  ;;  %v1644_v52 = vshll.u32 %v1643_v21, 23  ;;  %v2037_v6 = vsel %vm2035_vm12, %v2036_v34, %v12702_v37  ;;  %v17101_v8 = vand.u32 2147483647, %v12655_v56  ;;  %v165_v21 = vpop.permute.xlu0 %164  ;;  %259 = vperm.xlu0 %10979, %v70_v20   ;;  %453 = vperm.xlu1 %10980, %v70_v20  }
 0x181   :  { %v12793_v3 = vmul.u32.u64.low %v12785_v10, %v1506_v9  ;;  %v12794_v62 = vmul.u32.u64.high %v12785_v10, %v1506_v9, %v12793_v3  ;;  %v1681_v11 = vsel %vm1680_vm14, %v1679_v24, 0  ;;  %v1428_v15 = vclz %v9976_v50 }
 0x182   :  { %v12802_v12 = vmul.u32.u64.low %v12785_v10, %v1510_v43  ;;  %v12803_v26 = vmul.u32.u64.high %v12785_v10, %v1510_v43, %v12802_v12  ;;  %v1683_v22 = vand.u32 31, %v1681_v11  ;;  %11020 = vsinq.f32 %v12569_v29 }
 0x183   :  { %v17400_v37 = vsub.s32 4, %v12223_v59  ;;  %v12815_v34 = vmul.f32 %v11500_v40, %v12296_v33  ;;  %v12817_v58 = vadd.s32 %v2037_v6, %v2033_v2  ;;  %v12823_v49 = vsel %vm12749_vm6, %v17389_v25, %v12674_v30 }
 0x184   :  { %v1341_v29 = vxor.u32 2147483648, %v12787_v5  ;;  %v17402_v38 = vsub.s32 4, %v12349_v16  ;;  %v478_v33 = vmul.f32 %v11498_v39, %v12728_v57  ;;  %v1479_v24 = vshrl.u32 %v17335_v42, %v12690_v35  ;;  %10981 = vset.pattern.permute.xlu0 %v17349_v55 }
 0x185   :  { %v12811_v18 = vsel %vm1053_vm8, %v17400_v37, %v12223_v59  ;;  %v1500_v61 = vsel %vm1498_vm4, %v1488_v48, 2102212464  ;;  %v12839_v30 = vsub.s32 32, %v1683_v22  ;;  %v284_v50 = vmul.f32 %v11500_v40, %v165_v21 }
 0x186   :  { %17401 = vst [vmem:[#allocation40_spill] sm:$0xff] %v12811_v18  ;;  %v12831_v59 = vsel %vm1259_vm9, %v17402_v38, %v12349_v16  ;;  %v1645_v9 = vor.u32 4788187, %v1644_v52  ;;  %v1648_v44 = vcvt.s32.f32 %v12789_v4  ;;  %v9977_v2 = vadd.s32 4294967294, %v1428_v15 }
 0x187   :  { %17403 = vst [vmem:[#allocation41_spill] sm:$0xff] %v12831_v59  ;;  %v1676_v16 = vand.u32 8388607, %v17101_v8  ;;  %v2039_v57 = vadd.s32 536870912, %v12817_v58  ;;  %v1499_v35 = vsel %vm1495_vm3, %v1479_v24, %v12725_v41  ;;  %v1687_v48 = vshrl.u32 %v17331_v19, %v12839_v30 }
 0x188   :  { %v1690_v43 = vshrl.u32 %v17332_v28, %v12839_v30  ;;  %v1501_v4 = vsel %vm1497_vm11, %v12730_v54, %v1500_v61  ;;  %v1686_v52 = vshll.u32 %v17335_v42, %v1683_v22  ;;  %v1689_v55 = vshll.u32 %v17331_v19, %v1683_v22 }
 0x189   :  { %v1693_v6 = vshrl.u32 %v17333_v63, %v12839_v30  ;;  %v12861_v20 = vshrl.u32 %v1681_v11, 5  ;;  %v1692_v41 = vshll.u32 %v17332_v28, %v1683_v22  ;;  %v1695_v15 = vshll.u32 %v17333_v63, %v1683_v22 }
 0x18a   :  { %v1696_v12 = vshrl.u32 %v17369_v23, %v12839_v30  ;;  %v17404_v21 = vand.u32 2147483647, %v17399_v45  ;;  %v17405_v54 = vmov 0  ;;  %vm1520_vm0 = vc.u32 %v12803_v26, %v12793_v3 }
 0x18b   :  { %v1521_v37 = vadd.s32 1, %v12794_v62  ;;  %v1688_v11 = vor.u32 %v1687_v48, %v1686_v52  ;;  %v1691_v38 = vor.u32 %v1690_v43, %v1689_v55  ;;  %v1694_v24 = vor.u32 %v1693_v6, %v1692_v41 }
 0x18c   :  { %vm12869_vm8 = vcmp.le.f32.partialorder %v17404_v21, 0.7853982  ;;  %v1697_v61 = vor.u32 %v1696_v12, %v1695_v15  ;;  %v1698_v8 = vshll.u32 %v17369_v23, %v1683_v22  ;;  %v1699_v59 = vshrl.u32 %v17334_v1, %v12839_v30  ;;  %v12883_v56 = vpop.eup %11020 }
 0x18d   :  { %v17406_v54 = vsel %vm12869_vm8, 4294967295, %v17405_v54  ;;  %v1646_v25 = vand.u32 2147483647, %v1645_v9  ;;  %v1502_v21 = vsel %vm1496_vm13, %v1499_v35, %v1501_v4  ;;  %v1677_v7 = vor.u32 8388608, %v1676_v16  ;;  %17409 = vst [vmem:[#allocation44_spill] sm:$0xff] %v12883_v56 }
 0x18e   :  { %17407 = vst [vmem:[#allocation42_spill] sm:$0xff] %v17406_v54  ;;  %v12881_v18 = vadd.f32 %v478_v33, %v284_v50  ;;  %v12885_v47 = vshrl.u32 %v2039_v57, 30  ;;  %v1700_v48 = vor.u32 %v1699_v59, %v1698_v8  ;;  %vm1701_vm3 = vcmp.lt.s32.totalorder %v12861_v20, 1 }
 0x18f   :  { %vm1704_vm4 = vcmp.lt.s32.totalorder %v12861_v20, 4  ;;  %vm1568_vm11 = vcmp.lt.s32.totalorder %v12176_v36, 0  ;;  %v1522_v14 = vsel %vm1520_vm0, %v1521_v37, %v12794_v62  ;;  %vm1703_vm12 = vcmp.lt.s32.totalorder %v12861_v20, 3  ;;  %v10982_v37 = vld [vmem:[%s17030_s3] sm:$0xff]  }
 0x190   :  { %17408 = vst [vmem:[#allocation43_spill] sm:$0xff] %v12881_v18  ;;  %v1709_v22 = vsel %vm1701_vm3, %v1688_v11, %v1691_v38  ;;  %v1710_v33 = vsel %vm1704_vm4, %v1697_v61, 920167782  ;;  %vm9978_vm13 = vcmp.lt.s32.totalorder %v9977_v2, 0  ;;  %v1518_v8 = vmul.u32 %v12785_v10, %v1502_v21 }
 0x191   :  { %vm1702_vm14 = vcmp.lt.s32.totalorder %v12861_v20, 2  ;;  %v1711_v59 = vsel %vm1703_vm12, %v1694_v24, %v1710_v33  ;;  %v1342_v62 = vsel %vm1259_vm9, %v1341_v29, %v12787_v5  ;;  %v1649_v50 = vmul.f32 %v1648_v44, %v1646_v25  ;;  %v10983_v33 = vld [vmem:[%s17031_s2] sm:$0xff]  }
 0x192   :  { %v1712_v9 = vsel %vm1702_vm14, %v1709_v22, %v1711_v59  ;;  %v1713_v16 = vsel %vm1701_vm3, %v1691_v38, %v1694_v24  ;;  %11022 = vcosq.f32 %v12823_v49  ;;  %v17410_v10 = vand.u32 2147483647, %v12176_v36  ;;  %v135_v22 = vpop.permute.xlu1 %134 }
 0x193   :  { %v17411_v57 = vmov 0  ;;  %v12917_v35 = vadd.s32 %v1522_v14, %v1518_v8  ;;  %v1714_v5 = vsel %vm1704_vm4, %v1700_v48, 1326507024  ;;  %v12921_v25 = vshll.u32 %v1677_v7, 8 }
 0x194   :  { %vm12913_vm0 = vcmp.le.f32.partialorder %v17410_v10, 0.7853982  ;;  %v1431_v29 = vsel %vm9978_vm13, 0, %v9977_v2  ;;  %v2041_v44 = vshll.u32 %v12885_v47, 30  ;;  %v1715_v43 = vsel %vm1703_vm12, %v1697_v61, %v1714_v5 }
 0x195   :  { %v17412_v57 = vsel %vm12913_vm0, 4294967295, %v17411_v57  ;;  %v2393_v4 = vand.u32 2139095040, %v12881_v18  ;;  %v1345_v52 = vsel %vm12869_vm8, %v17399_v45, %v1342_v62  ;;  %v1716_v55 = vsel %vm1702_vm14, %v1713_v16, %v1715_v43 }
 0x196   :  { %17413 = vst [vmem:[#allocation45_spill] sm:$0xff] %v17412_v57  ;;  %v12933_v6 = vmul.u32.u64.low %v12921_v25, %v1712_v9  ;;  %v12934_v41 = vmul.u32.u64.high %v12921_v25, %v1712_v9, %v12933_v6  ;;  %v1650_v7 = vxor.u32 2147483648, %v1649_v50  ;;  %v1432_v61 = vsub.s32 32, %v1431_v29 }
 0x197   :  { %v12938_v2 = vmul.u32.u64.low %v12921_v25, %v1716_v55  ;;  %v12939_v15 = vmul.u32.u64.high %v12921_v25, %v1716_v55, %v12938_v2  ;;  %v2394_v12 = vshrl.u32 %v2393_v4, 23  ;;  %v1436_v21 = vsub.s32 4294967266, %v1431_v29 }
 0x198   :  { %v1524_v48 = vadd.s32 536870912, %v12917_v35  ;;  %v1706_v14 = vsel %vm1704_vm4, %v1694_v24, 2102212464  ;;  %11024 = vsinq.f32 %v12823_v49  ;;  %v12952_v8 = vsub.s32 %v12817_v58, %v2041_v44 }
 0x199   :  { %v1685_v59 = vshrl.u32 %v17335_v42, %v12839_v30  ;;  %v10015_v62 = vadd.s32 4294967169, %v2394_v12  ;;  %v1416_v16 = vadd.s32 %v12525_v31, %v12534_v0  ;;  %v12961_v24 = vmul.f32 %v11500_v40, %v12769_v51 }
 0x19a   :  { %11026 = vcosq.f32 %v1345_v52  ;;  %v1707_v58 = vsel %vm1703_vm12, %v1691_v38, %v1706_v14  ;;  %v17112_v5 = vmov 0.0   ;;  %v1651_v31 = vsel %vm1568_vm11, %v1650_v7, %v1649_v50  ;;  %v10985_v38 = vld [vmem:[%s17031_s2 + $0x8] sm:$0xff]   ;;  %v10987_v14 = vld [vmem:[%s17031_s2 + $0x10] sm:$0xff]  }
 0x19b   :  { %v1705_v49 = vsel %vm1701_vm3, %v1685_v59, %v1688_v11  ;;  %v2400_v10 = vadd.s32 1, %v10015_v62  ;;  %10434 = vmatprep.subr.bf16.mxu0 %v17112_v5  ;;  %10518 = vmatprep.subr.bf16.mxu1 %v17112_v5  ;;  %v1434_v0 = vshrl.u32 %v1416_v16, %v1432_v61  ;;  %v1437_v30 = vadd.s32 127, %v1436_v21  ;;  %v10984_v11 = vld [vmem:[%s17030_s3 + $0x8] sm:$0xff]  }
 0x19c   :  { %v12971_v51 = vshrl.u32 %v1524_v48, 30  ;;  %10435 = vmatpush3.bf16.msra.mxu0 %v10982_v37  ;;  %10519 = vmatpush3.bf16.msra.mxu1 %v10983_v33  ;;  %11028 = vsinq.f32 %v1345_v52  ;;  %v2044_v44 = vsub.s32 0, %v12952_v8  ;;  %v17108_v43 = vand.u32 2147483647, %v12881_v18  ;;  %v12983_v50 = vpop.eup %11022  ;;  %v354_v52 = vpop.permute.xlu1 %353  ;;  %v10986_v48 = vld [vmem:[%s17030_s3 + $0x10] sm:$0xff]  }
 0x19d   :  { %vm2401_vm9 = vcmp.gt.s32.totalorder %v2400_v10, 0  ;;  %10436 = vmatprep.subr.bf16.mxu0 %v17112_v5  ;;  %10520 = vmatprep.subr.bf16.mxu1 %v17112_v5  ;;  %17414 = vst [vmem:[#allocation46_spill] sm:$0xff] %v12983_v50  ;;  %v1433_v4 = vshll.u32 %v12721_v17, %v1431_v29  ;;  %v1708_v55 = vsel %vm1702_vm14, %v1705_v49, %v1707_v58  ;;  %v1727_v7 = vadd.s32 1, %v12934_v41 }
 0x19e   :  { %v2402_v2 = vsel %vm2401_vm9, %v2400_v10, 0  ;;  %v12992_v12 = vsel %vm12913_vm0, %v12176_v36, %v1651_v31  ;;  %vm1726_vm3 = vc.u32 %v12939_v15, %v12933_v6  ;;  %v1438_v17 = vshll.u32 %v1437_v30, 23 }
 0x19f   :  { %v2404_v61 = vand.u32 31, %v2402_v2  ;;  %v12997_v21 = vor.u32 %v1434_v0, %v1433_v4  ;;  %v1526_v20 = vshll.u32 %v12971_v51, 30  ;;  %v278_v29 = vmul.f32 %v11500_v40, %v135_v22 }
 0x1a0   :  { %10437 = vmatpush3.bf16.msra.mxu0 %v10984_v11  ;;  %10521 = vmatpush3.bf16.msra.mxu1 %v10985_v38  ;;  %v10000_v33 = vmin.u32 %v2044_v44, %v12952_v8  ;;  %v1724_v59 = vmul.u32 %v12921_v25, %v1708_v55  ;;  %v472_v16 = vmul.f32 %v11498_v39, %v354_v52  ;;  %v2397_v49 = vand.u32 8388607, %v17108_v43  ;;  %v10988_v55 = vld [vmem:[%s17030_s3 + $0x18] sm:$0xff]  }
 0x1a1   :  { %v2405_v62 = vsub.s32 32, %v2404_v61  ;;  %10438 = vmatprep.subr.bf16.mxu0 %v17112_v5  ;;  %10522 = vmatprep.subr.bf16.mxu1 %v17112_v5  ;;  %v1728_v22 = vsel %vm1726_vm3, %v1727_v7, %v12934_v41  ;;  %v2407_v58 = vshll.u32 %v17335_v42, %v2404_v61  ;;  %v2410_v10 = vshll.u32 %v17331_v19, %v2404_v61  ;;  %v10989_v7 = vld [vmem:[%s17031_s2 + $0x18] sm:$0xff]  }
 0x1a2   :  { %v13020_v25 = vpop.eup %11024  ;;  %v13022_v31 = vshrl.u32 %v2402_v2, 5  ;;  %v2413_v30 = vshll.u32 %v17332_v28, %v2404_v61  ;;  %v2416_v11 = vshll.u32 %v17333_v63, %v2404_v61  ;;  %v1439_v38 = vor.u32 4788187, %v1438_v17 }
 0x1a3   :  { %17415 = vst [vmem:[#allocation47_spill] sm:$0xff] %v13020_v25  ;;  %v2408_v0 = vshrl.u32 %v17331_v19, %v2405_v62  ;;  %v13028_v41 = vsub.s32 %v12917_v35, %v1526_v20  ;;  %v2411_v44 = vshrl.u32 %v17332_v28, %v2405_v62  ;;  %v2414_v4 = vshrl.u32 %v17333_v63, %v2405_v62 }
 0x1a4   :  { %10439 = vmatpush3.bf16.msra.mxu0 %v10986_v48  ;;  %10523 = vmatpush3.bf16.msra.mxu1 %v10987_v14  ;;  %v13038_v2 = vpop.eup %11026  ;;  %v2046_v52 = vclz %v10000_v33  ;;  %v13040_v17 = vadd.s32 %v1728_v22, %v1724_v59  ;;  %v2417_v35 = vshrl.u32 %v17369_v23, %v2405_v62  ;;  %v13043_v20 = vadd.f32 %v472_v16, %v278_v29 }
 0x1a5   :  { %17416 = vst [vmem:[#allocation48_spill] sm:$0xff] %v13038_v2  ;;  %10440 = vmatprep.subr.bf16.mxu0 %v17112_v5  ;;  %v2398_v48 = vor.u32 8388608, %v2397_v49  ;;  %v2409_v14 = vor.u32 %v2408_v0, %v2407_v58  ;;  %v2412_v43 = vor.u32 %v2411_v44, %v2410_v10  ;;  %v2419_v37 = vshll.u32 %v17369_v23, %v2404_v61 }
 0x1a6   :  { %17417 = vst [vmem:[#allocation49_spill] sm:$0xff] %v13043_v20  ;;  %10524 = vmatprep.subr.bf16.mxu1 %v17112_v5  ;;  %v13048_v9 = vpop.eup %11028  ;;  %v2415_v57 = vor.u32 %v2414_v4, %v2413_v30  ;;  %v2418_v45 = vor.u32 %v2417_v35, %v2416_v11  ;;  %v2420_v33 = vshrl.u32 %v17334_v1, %v2405_v62  ;;  %vm2422_vm4 = vcmp.lt.s32.totalorder %v13022_v31, 1 }
 0x1a7   :  { %17418 = vst [vmem:[#allocation50_spill] sm:$0xff] %v13048_v9  ;;  %v1440_v29 = vand.u32 2147483647, %v1439_v38  ;;  %v1529_v59 = vsub.s32 0, %v13028_v41  ;;  %vm2424_vm13 = vcmp.lt.s32.totalorder %v13022_v31, 3  ;;  %vm2425_vm14 = vcmp.lt.s32.totalorder %v13022_v31, 4 }
 0x1a8   :  { %10441 = vmatpush3.bf16.msra.mxu0 %v10988_v55  ;;  %10525 = vmatpush3.bf16.msra.mxu1 %v10989_v7  ;;  %v1730_v61 = vadd.s32 536870912, %v13040_v17  ;;  %v2421_v16 = vor.u32 %v2420_v33, %v2419_v37  ;;  %vm2423_vm9 = vcmp.lt.s32.totalorder %v13022_v31, 2  ;;  %v1775_v22 = vand.u32 2139095040, %v13043_v20  ;;  %v180_v31 = vpop.permute.xlu0 %179 }
 0x1a9   :  { %10602 = vmatprep.subr.bf16.mxu0 %v17112_v5  ;;  %10686 = vmatprep.subr.bf16.mxu1 %v17112_v5  ;;  %v10001_v49 = vadd.s32 4294967294, %v2046_v52  ;;  %v2430_v58 = vsel %vm2422_vm4, %v2409_v14, %v2412_v43  ;;  %v2431_v10 = vsel %vm2425_vm14, %v2418_v45, 920167782  ;;  %v2438_v0 = vshll.u32 %v2398_v48, 8 }
 0x1aa   :  { %v1442_v30 = vcvt.s32.f32 %v12997_v21  ;;  %v2406_v37 = vshrl.u32 %v17335_v42, %v2405_v62  ;;  %v2432_v11 = vsel %vm2424_vm13, %v2415_v57, %v2431_v10  ;;  %v2434_v38 = vsel %vm2422_vm4, %v2412_v43, %v2415_v57 }
 0x1ab   :  { %vm1980_vm3 = vcmp.lt.s32.totalorder %v12377_v60, 0  ;;  %v9980_v44 = vmin.u32 %v1529_v59, %v13028_v41  ;;  %v2427_v4 = vsel %vm2425_vm14, %v2415_v57, 2102212464  ;;  %v2433_v55 = vsel %vm2423_vm9, %v2430_v58, %v2432_v11 }
 0x1ac   :  { %v2435_v21 = vsel %vm2425_vm14, %v2421_v16, 1326507024  ;;  %v1443_v62 = vmul.f32 %v1442_v30, %v1440_v29  ;;  %v13079_v7 = vshrl.u32 %v1730_v61, 30  ;;  %v1776_v35 = vshrl.u32 %v1775_v22, 23 }
 0x1ad   :  { %v2436_v52 = vsel %vm2424_vm13, %v2418_v45, %v2435_v21  ;;  %vm10002_vm12 = vcmp.lt.s32.totalorder %v10001_v49, 0  ;;  %v13085_v33 = vmul.u32.u64.low %v2438_v0, %v2433_v55  ;;  %v13086_v59 = vmul.u32.u64.high %v2438_v0, %v2433_v55, %v13085_v33 }
 0x1ae   :  { %v2437_v48 = vsel %vm2423_vm9, %v2434_v38, %v2436_v52  ;;  %v2426_v57 = vsel %vm2422_vm4, %v2406_v37, %v2409_v14  ;;  %v2428_v29 = vsel %vm2424_vm13, %v2412_v43, %v2427_v4  ;;  %v17419_v45 = vsub.s32 4, %v12422_v32  ;;  %v358_v38 = vpop.permute.xlu1 %357 }
 0x1af   :  { %v13093_v61 = vmul.u32.u64.low %v2438_v0, %v2437_v48  ;;  %v13094_v16 = vmul.u32.u64.high %v2438_v0, %v2437_v48, %v13093_v61  ;;  %11030 = vcosq.f32 %v12992_v12  ;;  %v1531_v58 = vclz %v9980_v44 }
 0x1b0   :  { %v13101_v22 = vsel %vm1568_vm11, %v17419_v45, %v12422_v32  ;;  %v9991_v10 = vadd.s32 4294967169, %v1776_v35  ;;  %v17421_v14 = vsub.s32 4, %v12664_v53  ;;  %vm17422_vm4 = vcmp.lt.s32.totalorder %v12346_v46, 0 }
 0x1b1   :  { %17420 = vst [vmem:[#allocation51_spill] sm:$0xff] %v13101_v22  ;;  %v2049_v30 = vsel %vm10002_vm12, 0, %v10001_v49  ;;  %v1732_v37 = vshll.u32 %v13079_v7, 30  ;;  %v17111_v11 = vand.u32 2147483647, %v13043_v20  ;;  %v2034_v32 = vadd.s32 %v12701_v27, %v12711_v13  ;;  %vm17425_vm13 = vmmov %vm17422_vm4  ;;  %v185_v22 = vpop.permute.xlu0 %184 }
 0x1b2   :  { %v13109_v43 = vsel %vm17422_vm4, %v17421_v14, %v12664_v53  ;;  %v2429_v44 = vsel %vm2423_vm9, %v2426_v57, %v2428_v29  ;;  %v2448_v4 = vadd.s32 1, %v13086_v59  ;;  %v1782_v55 = vadd.s32 1, %v9991_v10 }
 0x1b3   :  { %17423 = vst [vmem:[#allocation52_spill] sm:$0xff] %v13109_v43  ;;  %v1444_v21 = vxor.u32 2147483648, %v1443_v62  ;;  %v2050_v52 = vsub.s32 32, %v2049_v30  ;;  %v2064_v53 = vsub.s32 4, %v12885_v47  ;;  %vm2447_vm11 = vc.u32 %v13094_v16, %v13085_v33 }
 0x1b4   :  { %v2054_v49 = vsub.s32 4294967266, %v2049_v30  ;;  %v9981_v35 = vadd.s32 4294967294, %v1531_v58  ;;  %vm1783_vm12 = vcmp.gt.s32.totalorder %v1782_v55, 0  ;;  %v473_v48 = vmul.f32 %v11498_v39, %v358_v38 }
 0x1b5   :  { %v13123_v27 = vsub.s32 %v13040_v17, %v1732_v37  ;;  %v2445_v13 = vmul.u32 %v2438_v0, %v2429_v44  ;;  %v1779_v57 = vand.u32 8388607, %v17111_v11  ;;  %v1784_v29 = vsel %vm1783_vm12, %v1782_v55, 0 }
 0x1b6   :  { %11032 = vsinq.f32 %v12992_v12  ;;  %v2449_v61 = vsel %vm2447_vm11, %v2448_v4, %v13086_v59  ;;  %v13130_v45 = vmul.f32 %v11500_v40, %v180_v31  ;;  %v1786_v58 = vand.u32 31, %v1784_v29 }
 0x1b7   :  { %v13134_v10 = vsel %vm17425_vm13, %v1444_v21, %v1443_v62  ;;  %v2051_v17 = vshll.u32 %v12952_v8, %v2049_v30  ;;  %v2052_v0 = vshrl.u32 %v2034_v32, %v2050_v52  ;;  %v13140_v14 = vsel %vm1980_vm3, %v2064_v53, %v12885_v47 }
 0x1b8   :  { %17424 = vst [vmem:[#allocation53_spill] sm:$0xff] %v13130_v45  ;;  %17426 = vst [vmem:[#allocation54_spill] sm:$0xff] %v13140_v14  ;;  %v2055_v37 = vadd.s32 127, %v2054_v49  ;;  %vm9982_vm14 = vcmp.lt.s32.totalorder %v9981_v35, 0  ;;  %v1787_v12 = vsub.s32 32, %v1786_v58  ;;  %v13143_v59 = vadd.f32 %v473_v48, %v12815_v34 }
 0x1b9   :  { %v1735_v38 = vsub.s32 0, %v13123_v27  ;;  %v13146_v44 = vadd.s32 %v2449_v61, %v2445_v13  ;;  %v1780_v62 = vor.u32 8388608, %v1779_v57  ;;  %v1789_v4 = vshll.u32 %v17335_v42, %v1786_v58  ;;  %v13149_v8 = vpop.eup %11030 }
 0x1ba   :  { %17427 = vst [vmem:[#allocation55_spill] sm:$0xff] %v13143_v59  ;;  %17428 = vst [vmem:[#allocation56_spill] sm:$0xff] %v13149_v8  ;;  %v1790_v30 = vshrl.u32 %v17331_v19, %v1787_v12  ;;  %v1792_v47 = vshll.u32 %v17331_v19, %v1786_v58  ;;  %v1793_v32 = vshrl.u32 %v17332_v28, %v1787_v12  ;;  %v1785_v21 = vshrl.u32 %v1784_v29, 5 }
 0x1bb   :  { %v1796_v55 = vshrl.u32 %v17333_v63, %v1787_v12  ;;  %v1795_v34 = vshll.u32 %v17332_v28, %v1786_v58  ;;  %v1798_v52 = vshll.u32 %v17333_v63, %v1786_v58  ;;  %v1799_v53 = vshrl.u32 %v17369_v23, %v1787_v12 }
 0x1bc   :  { %v1791_v49 = vor.u32 %v1790_v30, %v1789_v4  ;;  %v1794_v48 = vor.u32 %v1793_v32, %v1792_v47  ;;  %v1802_v13 = vshrl.u32 %v17334_v1, %v1787_v12  ;;  %v1878_v31 = vand.u32 2139095040, %v13143_v59 }
 0x1bd   :  { %v2451_v57 = vadd.s32 536870912, %v13146_v44  ;;  %v1797_v61 = vor.u32 %v1796_v55, %v1795_v34  ;;  %v1800_v11 = vor.u32 %v1799_v53, %v1798_v52  ;;  %v1801_v5 = vshll.u32 %v17369_v23, %v1786_v58 }
 0x1be   :  { %v2053_v14 = vor.u32 %v2052_v0, %v2051_v17  ;;  %v2056_v29 = vshll.u32 %v2055_v37, 23  ;;  %v13163_v36 = vsel %vm9982_vm14, 0, %v9981_v35  ;;  %v9988_v8 = vmin.u32 %v1735_v38, %v13123_v27 }
 0x1bf   :  { %v17429_v4 = vand.u32 2147483647, %v12346_v46  ;;  %v17430_v30 = vmov 0  ;;  %v1803_v47 = vor.u32 %v1802_v13, %v1801_v5  ;;  %vm1804_vm4 = vcmp.lt.s32.totalorder %v1785_v21, 1 }
 0x1c0   :  { %vm1807_vm11 = vcmp.lt.s32.totalorder %v1785_v21, 4  ;;  %v1820_v32 = vshll.u32 %v1780_v62, 8  ;;  %v13172_v55 = vpop.eup %11032  ;;  %vm1806_vm12 = vcmp.lt.s32.totalorder %v1785_v21, 3  ;;  %v1812_v58 = vsel %vm1804_vm4, %v1791_v49, %v1794_v48 }
 0x1c1   :  { %vm13168_vm9 = vcmp.le.f32.partialorder %v17429_v4, 0.7853982  ;;  %17433 = vst [vmem:[#allocation58_spill] sm:$0xff] %v13172_v55  ;;  %v1813_v35 = vsel %vm1807_vm11, %v1800_v11, 920167782  ;;  %v1879_v17 = vshrl.u32 %v1878_v31, 23  ;;  %v1788_v5 = vshrl.u32 %v17335_v42, %v1787_v12  ;;  %v394_v12 = vpop.permute.xlu0 %393 }
 0x1c2   :  { %v17431_v30 = vsel %vm13168_vm9, 4294967295, %v17430_v30  ;;  %v13176_v0 = vshrl.u32 %v2451_v57, 30  ;;  %vm1805_vm13 = vcmp.lt.s32.totalorder %v1785_v21, 2  ;;  %v1809_v37 = vsel %vm1807_vm11, %v1797_v61, 2102212464 }
 0x1c3   :  { %17432 = vst [vmem:[#allocation57_spill] sm:$0xff] %v17431_v30  ;;  %v1814_v38 = vsel %vm1806_vm12, %v1797_v61, %v1813_v35  ;;  %v2057_v34 = vor.u32 4788187, %v2056_v29  ;;  %v1816_v52 = vsel %vm1804_vm4, %v1794_v48, %v1797_v61  ;;  %v1539_v53 = vsub.s32 4294967266, %v13163_v36 }
 0x1c4   :  { %v1815_v62 = vsel %vm1805_vm13, %v1812_v58, %v1814_v38  ;;  %v1817_v13 = vsel %vm1807_vm11, %v1803_v47, 1326507024  ;;  %v1808_v57 = vsel %vm1804_vm4, %v1788_v5, %v1791_v49  ;;  %v1810_v55 = vsel %vm1806_vm12, %v1794_v48, %v1809_v37 }
 0x1c5   :  { %v13185_v4 = vmul.u32.u64.low %v1820_v32, %v1815_v62  ;;  %v13186_v31 = vmul.u32.u64.high %v1820_v32, %v1815_v62, %v13185_v4  ;;  %v1818_v29 = vsel %vm1806_vm12, %v1800_v11, %v1817_v13  ;;  %v9995_v35 = vadd.s32 4294967169, %v1879_v17 }
 0x1c6   :  { %v2060_v43 = vcvt.s32.f32 %v2053_v14  ;;  %v1737_v58 = vclz %v9988_v8  ;;  %v2453_v61 = vshll.u32 %v13176_v0, 30  ;;  %v1819_v38 = vsel %vm1805_vm13, %v1816_v52, %v1818_v29 }
 0x1c7   :  { %v2058_v2 = vand.u32 2147483647, %v2057_v34  ;;  %v13194_v47 = vmul.u32.u64.low %v1820_v32, %v1819_v38  ;;  %v13195_v9 = vmul.u32.u64.high %v1820_v32, %v1819_v38, %v13194_v47  ;;  %v1885_v62 = vadd.s32 1, %v9995_v35 }
 0x1c8   :  { %v1811_v56 = vsel %vm1805_vm13, %v1808_v57, %v1810_v55  ;;  %v1830_v49 = vadd.s32 1, %v13186_v31  ;;  %v288_v48 = vmul.f32 %v11500_v40, %v185_v22  ;;  %v482_v11 = vmul.f32 %v11498_v39, %v394_v12 }
 0x1c9   :  { %v13205_v14 = vsel %vm13168_vm9, %v12346_v46, %v13134_v10  ;;  %v1535_v8 = vsub.s32 32, %v13163_v36  ;;  %v1540_v17 = vadd.s32 127, %v1539_v53  ;;  %vm1886_vm14 = vcmp.gt.s32.totalorder %v1885_v62, 0 }
 0x1ca   :  { %v9989_v37 = vadd.s32 4294967294, %v1737_v58  ;;  %v13209_v21 = vsub.s32 %v13146_v44, %v2453_v61  ;;  %v17121_v55 = vand.u32 2147483647, %v13143_v59  ;;  %v1887_v34 = vsel %vm1886_vm14, %v1885_v62, 0 }
 0x1cb   :  { %v1519_v22 = vadd.s32 %v12793_v3, %v12803_v26  ;;  %v1827_v5 = vmul.u32 %v1820_v32, %v1811_v56  ;;  %vm1829_vm4 = vc.u32 %v13195_v9, %v13185_v4  ;;  %v1889_v10 = vand.u32 31, %v1887_v34 }
 0x1cc   :  { %v2061_v52 = vmul.f32 %v2060_v43, %v2058_v2  ;;  %v1536_v53 = vshll.u32 %v13028_v41, %v13163_v36  ;;  %v1831_v13 = vsel %vm1829_vm4, %v1830_v49, %v13186_v31  ;;  %v13219_v57 = vadd.f32 %v482_v11, %v288_v48 }
 0x1cd   :  { %v1537_v44 = vshrl.u32 %v1519_v22, %v1535_v8  ;;  %v1541_v29 = vshll.u32 %v1540_v17, 23  ;;  %v13221_v35 = vadd.s32 %v1831_v13, %v1827_v5  ;;  %v1890_v12 = vsub.s32 32, %v1889_v10 }
 0x1ce   :  { %17434 = vst [vmem:[#allocation59_spill] sm:$0xff] %v13219_v57  ;;  %vm9990_vm11 = vcmp.lt.s32.totalorder %v9989_v37, 0  ;;  %v2456_v56 = vsub.s32 0, %v13209_v21  ;;  %v1882_v3 = vand.u32 8388607, %v17121_v55  ;;  %v1892_v26 = vshll.u32 %v17335_v42, %v1889_v10 }
 0x1cf   :  { %v1893_v2 = vshrl.u32 %v17331_v19, %v1890_v12  ;;  %v1895_v36 = vshll.u32 %v17331_v19, %v1889_v10  ;;  %v1896_v41 = vshrl.u32 %v17332_v28, %v1890_v12  ;;  %v1898_v43 = vshll.u32 %v17332_v28, %v1889_v10 }
 0x1d0   :  { %v1833_v32 = vadd.s32 536870912, %v13221_v35  ;;  %v1899_v31 = vshrl.u32 %v17333_v63, %v1890_v12  ;;  %v1901_v58 = vshll.u32 %v17333_v63, %v1889_v10  ;;  %v1902_v61 = vshrl.u32 %v17369_v23, %v1890_v12 }
 0x1d1   :  { %v1888_v38 = vshrl.u32 %v1887_v34, 5  ;;  %v1894_v47 = vor.u32 %v1893_v2, %v1892_v26  ;;  %v1897_v62 = vor.u32 %v1896_v41, %v1895_v36  ;;  %v2805_v49 = vand.u32 2139095040, %v13219_v57 }
 0x1d2   :  { %v1900_v48 = vor.u32 %v1899_v31, %v1898_v43  ;;  %v1903_v11 = vor.u32 %v1902_v61, %v1901_v58  ;;  %v1904_v8 = vshll.u32 %v17369_v23, %v1889_v10  ;;  %v1905_v17 = vshrl.u32 %v17334_v1, %v1890_v12 }
 0x1d3   :  { %11034 = vcosq.f32 %v13205_v14  ;;  %v2062_v22 = vxor.u32 2147483648, %v2061_v52  ;;  %v1538_v5 = vor.u32 %v1537_v44, %v1536_v53  ;;  %v1542_v13 = vor.u32 4788187, %v1541_v29 }
 0x1d4   :  { %v13240_v55 = vsel %vm9990_vm11, 0, %v9989_v37  ;;  %v13242_v46 = vshrl.u32 %v1833_v32, 30  ;;  %v1883_v34 = vor.u32 8388608, %v1882_v3  ;;  %v1906_v26 = vor.u32 %v1905_v17, %v1904_v8 }
 0x1d5   :  { %v10016_v2 = vmin.u32 %v2456_v56, %v13209_v21  ;;  %vm1907_vm12 = vcmp.lt.s32.totalorder %v1888_v38, 1  ;;  %vm1910_vm13 = vcmp.lt.s32.totalorder %v1888_v38, 4  ;;  %v2806_v36 = vshrl.u32 %v2805_v49, 23 }
 0x1d6   :  { %vm1909_vm14 = vcmp.lt.s32.totalorder %v1888_v38, 3  ;;  %v1912_v10 = vsel %vm1910_vm13, %v1900_v48, 2102212464  ;;  %v1915_v41 = vsel %vm1907_vm12, %v1894_v47, %v1897_v62  ;;  %v1916_v43 = vsel %vm1910_vm13, %v1903_v11, 920167782 }
 0x1d7   :  { %v1891_v31 = vshrl.u32 %v17335_v42, %v1890_v12  ;;  %vm1908_vm4 = vcmp.lt.s32.totalorder %v1888_v38, 2  ;;  %v1917_v53 = vsel %vm1909_vm14, %v1900_v48, %v1916_v43  ;;  %v1919_v44 = vsel %vm1907_vm12, %v1897_v62, %v1900_v48 }
 0x1d8   :  { %v1835_v37 = vshll.u32 %v13242_v46, 30  ;;  %v1918_v29 = vsel %vm1908_vm4, %v1915_v41, %v1917_v53  ;;  %v1920_v3 = vsel %vm1910_vm13, %v1906_v26, 1326507024  ;;  %v1923_v32 = vshll.u32 %v1883_v34, 8 }
 0x1d9   :  { %v1911_v58 = vsel %vm1907_vm12, %v1891_v31, %v1894_v47  ;;  %v1913_v56 = vsel %vm1909_vm14, %v1897_v62, %v1912_v10  ;;  %v1921_v61 = vsel %vm1909_vm14, %v1903_v11, %v1920_v3  ;;  %v10031_v8 = vadd.s32 4294967169, %v2806_v36 }
 0x1da   :  { %v1745_v49 = vsub.s32 4294967266, %v13240_v55  ;;  %v1922_v17 = vsel %vm1908_vm4, %v1919_v44, %v1921_v61  ;;  %v13250_v30 = vmul.u32.u64.low %v1923_v32, %v1918_v29  ;;  %v13251_v54 = vmul.u32.u64.high %v1923_v32, %v1918_v29, %v13250_v30  ;;  %v410_v29 = vpop.permute.xlu0 %409 }
 0x1db   :  { %v13256_v12 = vsel %vm1980_vm3, %v2062_v22, %v2061_v52  ;;  %v2458_v48 = vclz %v10016_v2  ;;  %v13258_v41 = vmul.u32.u64.low %v1923_v32, %v1922_v17  ;;  %v13259_v26 = vmul.u32.u64.high %v1923_v32, %v1922_v17, %v13258_v41 }
 0x1dc   :  { %v1543_v47 = vand.u32 2147483647, %v1542_v13  ;;  %v1725_v62 = vadd.s32 %v12933_v6, %v12939_v15  ;;  %v1914_v11 = vsel %vm1908_vm4, %v1911_v58, %v1913_v56  ;;  %v2812_v34 = vadd.s32 1, %v10031_v8 }
 0x1dd   :  { %v13264_v36 = vpop.eup %11034  ;;  %v1741_v10 = vsub.s32 32, %v13240_v55  ;;  %v13268_v43 = vsub.s32 %v13221_v35, %v1835_v37  ;;  %v17126_v52 = vand.u32 2147483647, %v13219_v57  ;;  %v1545_v22 = vcvt.s32.f32 %v1538_v5  ;;  %v150_v37 = vpop.permute.xlu1 %149 }
 0x1de   :  { %17435 = vst [vmem:[#allocation60_spill] sm:$0xff] %v13264_v36  ;;  %v1746_v2 = vadd.s32 127, %v1745_v49  ;;  %v1933_v31 = vadd.s32 1, %v13251_v54  ;;  %vm2813_vm3 = vcmp.gt.s32.totalorder %v2812_v34, 0  ;;  %vm17130_vm11 = vmmov 0  }
 0x1df   :  { %v17436_v13 = vmov 0.0   ;;  %v10017_v6 = vadd.s32 4294967294, %v2458_v48  ;;  %v1930_v15 = vmul.u32 %v1923_v32, %v1914_v11  ;;  %vm1932_vm12 = vc.u32 %v13259_v26, %v13250_v30 }
 0x1e0   :  { %10442 = vmatprep.mubr.msk.bf16.mxu0 %vm17130_vm11, %v17436_v13  ;;  %10526 = vmatprep.mubr.msk.bf16.mxu1 %vm17130_vm11, %v17436_v13  ;;  %v2814_v35 = vsel %vm2813_vm3, %v2812_v34, 0  ;;  %v13278_v38 = vmul.f32 %v1545_v22, %v1543_v47  ;;  %v1742_v5 = vshll.u32 %v13123_v27, %v13240_v55  ;;  %v1934_v53 = vsel %vm1932_vm12, %v1933_v31, %v13251_v54 }
 0x1e1   :  { %v2816_v44 = vand.u32 31, %v2814_v35  ;;  %v1743_v3 = vshrl.u32 %v1725_v62, %v1741_v10  ;;  %v1838_v58 = vsub.s32 0, %v13268_v43  ;;  %v1935_v56 = vadd.s32 %v1934_v53, %v1930_v15  ;;  %v366_v53 = vpop.permute.xlu1 %365 }
 0x1e2   :  { %v2809_v32 = vand.u32 8388607, %v17126_v52  ;;  %v1747_v61 = vshll.u32 %v1746_v2, 23  ;;  %vm10018_vm13 = vcmp.lt.s32.totalorder %v10017_v6, 0  ;;  %v2815_v55 = vshrl.u32 %v2814_v35, 5  ;;  %v13300_v52 = vpop.permute.xlu0 %199 }
 0x1e3   :  { %v2817_v8 = vsub.s32 32, %v2816_v44  ;;  %v2819_v49 = vshll.u32 %v17335_v42, %v2816_v44  ;;  %v2822_v17 = vshll.u32 %v17331_v19, %v2816_v44  ;;  %v1936_v27 = vadd.s32 536870912, %v1935_v56  ;;  %17438 = vst [vmem:[#allocation62_spill] sm:$0xff] %v13300_v52 }
 0x1e4   :  { %v2825_v54 = vshll.u32 %v17332_v28, %v2816_v44  ;;  %v2828_v62 = vshll.u32 %v17333_v63, %v2816_v44  ;;  %v9992_v11 = vmin.u32 %v1838_v58, %v13268_v43  ;;  %v2810_v10 = vor.u32 8388608, %v2809_v32 }
 0x1e5   :  { %v2820_v48 = vshrl.u32 %v17331_v19, %v2817_v8  ;;  %v2823_v41 = vshrl.u32 %v17332_v28, %v2817_v8  ;;  %v2826_v47 = vshrl.u32 %v17333_v63, %v2817_v8  ;;  %v13294_v34 = vshrl.u32 %v1936_v27, 30 }
 0x1e6   :  { %v2829_v22 = vshrl.u32 %v17369_v23, %v2817_v8  ;;  %v13297_v2 = vor.u32 4788187, %v1747_v61  ;;  %v2831_v35 = vshll.u32 %v17369_v23, %v2816_v44  ;;  %v13303_v36 = vsel %vm10018_vm13, 0, %v10017_v6 }
 0x1e7   :  { %17437 = vst [vmem:[#allocation61_spill] sm:$0xff] %v13294_v34  ;;  %v2821_v31 = vor.u32 %v2820_v48, %v2819_v49  ;;  %v2824_v15 = vor.u32 %v2823_v41, %v2822_v17  ;;  %v1938_v45 = vshll.u32 %v13294_v34, 30  ;;  %v2818_v58 = vshrl.u32 %v17335_v42, %v2817_v8 }
 0x1e8   :  { %v281_v32 = vmul.f32 %v11500_v40, %v150_v37  ;;  %v2827_v27 = vor.u32 %v2826_v47, %v2825_v54  ;;  %v2830_v50 = vor.u32 %v2829_v22, %v2828_v62  ;;  %v2832_v61 = vshrl.u32 %v17334_v1, %v2817_v8 }
 0x1e9   :  { %vm2834_vm14 = vcmp.lt.s32.totalorder %v2815_v55, 1  ;;  %v1840_v49 = vclz %v9992_v11  ;;  %vm2836_vm4 = vcmp.lt.s32.totalorder %v2815_v55, 3  ;;  %v2850_v44 = vshll.u32 %v2810_v10, 8 }
 0x1ea   :  { %v475_v17 = vmul.f32 %v11498_v39, %v366_v53  ;;  %v2833_v48 = vor.u32 %v2832_v61, %v2831_v35  ;;  %vm2835_vm3 = vcmp.lt.s32.totalorder %v2815_v55, 2  ;;  %vm2837_vm12 = vcmp.lt.s32.totalorder %v2815_v55, 4  ;;  %v205_v35 = vpop.permute.xlu0 %204  ;;  %v17443_v53 = vld [vmem:[#allocation15_spill] sm:$0xff] }
 0x1eb   :  { %v2842_v6 = vsel %vm2834_vm14, %v2821_v31, %v2824_v15  ;;  %v17439_v41 = vand.u32 2147483647, %v12377_v60  ;;  %v17440_v25 = vmov 0  ;;  %v13317_v37 = vsub.s32 %v1935_v56, %v1938_v45 }
 0x1ec   :  { %v2838_v8 = vsel %vm2834_vm14, %v2818_v58, %v2821_v31  ;;  %v2839_v54 = vsel %vm2837_vm12, %v2827_v27, 2102212464  ;;  %v2843_v47 = vsel %vm2837_vm12, %v2830_v50, 920167782  ;;  %v2846_v10 = vsel %vm2834_vm14, %v2824_v15, %v2827_v27 }
 0x1ed   :  { %vm13313_vm13 = vcmp.le.f32.partialorder %v17439_v41, 0.7853982  ;;  %v2840_v62 = vsel %vm2836_vm4, %v2824_v15, %v2839_v54  ;;  %v2844_v11 = vsel %vm2836_vm4, %v2827_v27, %v2843_v47  ;;  %v2847_v22 = vsel %vm2837_vm12, %v2833_v48, 1326507024 }
 0x1ee   :  { %v17441_v25 = vsel %vm13313_vm13, 4294967295, %v17440_v25  ;;  %vm1465_vm11 = vcmp.lt.s32.totalorder %v17443_v53, 0  ;;  %v1744_v61 = vor.u32 %v1743_v3, %v1742_v5  ;;  %v2466_v41 = vsub.s32 4294967266, %v13303_v36 }
 0x1ef   :  { %17442 = vst [vmem:[#allocation63_spill] sm:$0xff] %v17441_v25  ;;  %v2845_v45 = vsel %vm2835_vm3, %v2842_v6, %v2844_v11  ;;  %v13326_v56 = vadd.f32 %v475_v17, %v281_v32  ;;  %v2848_v31 = vsel %vm2836_vm4, %v2830_v50, %v2847_v22  ;;  %v486_v54 = vmul.f32 %v11498_v39, %v410_v29 }
 0x1f0   :  { %v13329_v58 = vmul.u32.u64.low %v2850_v44, %v2845_v45  ;;  %v13330_v52 = vmul.u32.u64.high %v2850_v44, %v2845_v45, %v13329_v58  ;;  %v1941_v15 = vsub.s32 0, %v13317_v37  ;;  %v2841_v27 = vsel %vm2835_vm3, %v2838_v8, %v2840_v62 }
 0x1f1   :  { %17444 = vst [vmem:[#allocation64_spill] sm:$0xff] %v13326_v56  ;;  %v2849_v5 = vsel %vm2835_vm3, %v2846_v10, %v2848_v31  ;;  %v292_v3 = vmul.f32 %v11500_v40, %v205_v35  ;;  %v17445_v48 = vand.u32 2147483647, %v17443_v53  ;;  %v17446_v32 = vmov 0 }
 0x1f2   :  { %v1749_v50 = vand.u32 2147483647, %v13297_v2  ;;  %v9993_v17 = vadd.s32 4294967294, %v1840_v49  ;;  %v13345_v6 = vmul.u32.u64.low %v2850_v44, %v2849_v5  ;;  %v13346_v47 = vmul.u32.u64.high %v2850_v44, %v2849_v5, %v13345_v6  ;;  %v17449_v49 = vld [vmem:[#allocation38_spill] sm:$0xff] }
 0x1f3   :  { %vm13340_vm14 = vcmp.le.f32.partialorder %v17445_v48, 0.7853982  ;;  %v2446_v29 = vadd.s32 %v13085_v33, %v13094_v16  ;;  %v2462_v55 = vsub.s32 32, %v13303_v36  ;;  %v2467_v8 = vadd.s32 127, %v2466_v41 }
 0x1f4   :  { %v17447_v32 = vsel %vm13340_vm14, 4294967295, %v17446_v32  ;;  %v2084_v62 = vand.u32 2139095040, %v13326_v56  ;;  %v1547_v11 = vxor.u32 2147483648, %v13278_v38  ;;  %v1751_v10 = vcvt.s32.f32 %v1744_v61 }
 0x1f5   :  { %17448 = vst [vmem:[#allocation65_spill] sm:$0xff] %v17447_v32  ;;  %v2857_v22 = vmul.u32 %v2850_v44, %v2841_v27  ;;  %v2860_v35 = vadd.s32 1, %v13330_v52  ;;  %v1549_v2 = vsub.s32 4, %v12971_v51  ;;  %vm1671_vm4 = vcmp.lt.s32.totalorder %v17449_v49, 0 }
 0x1f6   :  { %v9996_v45 = vmin.u32 %v1941_v15, %v13317_v37  ;;  %v2085_v31 = vshrl.u32 %v2084_v62, 23  ;;  %v13357_v5 = vadd.f32 %v486_v54, %v292_v3  ;;  %v2066_v33 = vsel %vm13313_vm13, %v12377_v60, %v13256_v12 }
 0x1f7   :  { %v1752_v16 = vmul.f32 %v1751_v10, %v1749_v50  ;;  %vm9994_vm3 = vcmp.lt.s32.totalorder %v9993_v17, 0  ;;  %vm2859_vm12 = vc.u32 %v13346_v47, %v13329_v58  ;;  %v2463_v44 = vshll.u32 %v13209_v21, %v13303_v36 }
 0x1f8   :  { %17450 = vst [vmem:[#allocation66_spill] sm:$0xff] %v13357_v5  ;;  %v2464_v61 = vshrl.u32 %v2446_v29, %v2462_v55  ;;  %v2468_v41 = vshll.u32 %v2467_v8, 23  ;;  %v2861_v15 = vsel %vm2859_vm12, %v2860_v35, %v13330_v52  ;;  %11036 = vsinq.f32 %v13205_v14 }
 0x1f9   :  { %v1548_v54 = vsel %vm1465_vm11, %v1547_v11, %v13278_v38  ;;  %v13372_v27 = vadd.s32 %v2861_v15, %v2857_v22  ;;  %v10003_v12 = vadd.s32 4294967169, %v2085_v31  ;;  %v13377_v3 = vsel %vm1465_vm11, %v1549_v2, %v12971_v51 }
 0x1fa   :  { %17451 = vst [vmem:[#allocation67_spill] sm:$0xff] %v13377_v3  ;;  %v13379_v48 = vsel %vm9994_vm3, 0, %v9993_v17  ;;  %v1943_v21 = vclz %v9996_v45  ;;  %v3217_v36 = vand.u32 2139095040, %v13357_v5  ;;  %11038 = vcosq.f32 %v2066_v33 }
 0x1fb   :  { %v1755_v14 = vsub.s32 4, %v13079_v7  ;;  %v2863_v52 = vadd.s32 536870912, %v13372_v27  ;;  %v2091_v50 = vadd.s32 1, %v10003_v12  ;;  %v13387_v38 = vsel %vm13340_vm14, %v17443_v53, %v1548_v54 }
 0x1fc   :  { %v1753_v6 = vxor.u32 2147483648, %v1752_v16  ;;  %v2465_v29 = vor.u32 %v2464_v61, %v2463_v44  ;;  %v2469_v51 = vor.u32 4788187, %v2468_v41  ;;  %11040 = vsinq.f32 %v2066_v33 }
 0x1fd   :  { %v1848_v17 = vsub.s32 4294967266, %v13379_v48  ;;  %v17132_v55 = vand.u32 2147483647, %v13326_v56  ;;  %vm2092_vm11 = vcmp.gt.s32.totalorder %v2091_v50, 0  ;;  %v9997_v8 = vadd.s32 4294967294, %v1943_v21 }
 0x1fe   :  { %v13391_v62 = vshrl.u32 %v2863_v52, 30  ;;  %v2093_v11 = vsel %vm2092_vm11, %v2091_v50, 0  ;;  %v3218_v10 = vshrl.u32 %v3217_v36, 23  ;;  %11042 = vcosq.f32 %v13387_v38  ;;  %v155_v52 = vpop.permute.xlu1 %154 }
 0x1ff   :  { %v13397_v22 = vsel %vm1671_vm4, %v1755_v14, %v13079_v7  ;;  %v2095_v2 = vand.u32 31, %v2093_v11  ;;  %v13402_v45 = vsel %vm1671_vm4, %v1753_v6, %v1752_v16  ;;  %v2470_v31 = vand.u32 2147483647, %v2469_v51 }
 0x200   :  { %17452 = vst [vmem:[#allocation68_spill] sm:$0xff] %v13391_v62  ;;  %17453 = vst [vmem:[#allocation69_spill] sm:$0xff] %v13397_v22  ;;  %v2472_v33 = vcvt.s32.f32 %v2465_v29  ;;  %v1828_v44 = vadd.s32 %v13185_v4, %v13195_v9  ;;  %v1844_v61 = vsub.s32 32, %v13379_v48  ;;  %v1849_v41 = vadd.s32 127, %v1848_v17 }
 0x201   :  { %v2088_v15 = vand.u32 8388607, %v17132_v55  ;;  %v2096_v7 = vsub.s32 32, %v2095_v2  ;;  %vm9998_vm3 = vcmp.lt.s32.totalorder %v9997_v8, 0  ;;  %v2865_v54 = vshll.u32 %v13391_v62, 30  ;;  %v17466_v62 = vld [vmem:[#allocation28_spill] sm:$0xff] }
 0x202   :  { %v2094_v12 = vshrl.u32 %v2093_v11, 5  ;;  %v10047_v21 = vadd.s32 4294967169, %v3218_v10  ;;  %v13410_v36 = vpop.eup %11036  ;;  %v2098_v16 = vshll.u32 %v17335_v42, %v2095_v2  ;;  %v2101_v9 = vshll.u32 %v17331_v19, %v2095_v2 }
 0x203   :  { %17454 = vst [vmem:[#allocation70_spill] sm:$0xff] %v13410_v36  ;;  %v2099_v14 = vshrl.u32 %v17331_v19, %v2096_v7  ;;  %v2102_v4 = vshrl.u32 %v17332_v28, %v2096_v7  ;;  %v2104_v50 = vshll.u32 %v17332_v28, %v2095_v2  ;;  %v2105_v6 = vshrl.u32 %v17333_v63, %v2096_v7 }
 0x204   :  { %v2107_v29 = vshll.u32 %v17333_v63, %v2095_v2  ;;  %v2108_v51 = vshrl.u32 %v17369_v23, %v2096_v7  ;;  %v13420_v17 = vpop.eup %11038  ;;  %v2110_v55 = vshll.u32 %v17369_v23, %v2095_v2  ;;  %v2111_v35 = vshrl.u32 %v17334_v1, %v2096_v7 }
 0x205   :  { %17455 = vst [vmem:[#allocation71_spill] sm:$0xff] %v13420_v17  ;;  %v2100_v11 = vor.u32 %v2099_v14, %v2098_v16  ;;  %v2103_v10 = vor.u32 %v2102_v4, %v2101_v9  ;;  %v13424_v60 = vmul.f32 %v2472_v33, %v2470_v31  ;;  %v2106_v25 = vor.u32 %v2105_v6, %v2104_v50 }
 0x206   :  { %v2109_v22 = vor.u32 %v2108_v51, %v2107_v29  ;;  %v13427_v53 = vmul.f32 %v11500_v40, %v155_v52  ;;  %v13429_v36 = vpop.eup %11040  ;;  %v1845_v32 = vshll.u32 %v13268_v43, %v13379_v48  ;;  %v1846_v3 = vshrl.u32 %v1828_v44, %v1844_v61 }
 0x207   :  { %17456 = vst [vmem:[#allocation72_spill] sm:$0xff] %v13429_v36  ;;  %v1850_v17 = vshll.u32 %v1849_v41, 23  ;;  %v2112_v16 = vor.u32 %v2111_v35, %v2110_v55  ;;  %v13434_v14 = vsel %vm9998_vm3, 0, %v9997_v8  ;;  %v2089_v2 = vor.u32 8388608, %v2088_v15 }
 0x208   :  { %vm2113_vm4 = vcmp.lt.s32.totalorder %v2094_v12, 1  ;;  %v3224_v31 = vadd.s32 1, %v10047_v21  ;;  %v13436_v33 = vpop.eup %11042  ;;  %v13439_v9 = vsub.s32 %v13372_v27, %v2865_v54  ;;  %vm2115_vm12 = vcmp.lt.s32.totalorder %v2094_v12, 3 }
 0x209   :  { %17457 = vst [vmem:[#allocation73_spill] sm:$0xff] %v13436_v33  ;;  %vm2116_vm11 = vcmp.lt.s32.totalorder %v2094_v12, 4  ;;  %v2121_v4 = vsel %vm2113_vm4, %v2100_v11, %v2103_v10  ;;  %v2125_v48 = vsel %vm2113_vm4, %v2103_v10, %v2106_v25  ;;  %v2097_v8 = vshrl.u32 %v17335_v42, %v2096_v7 }
 0x20a   :  { %v2118_v52 = vsel %vm2116_vm11, %v2106_v25, 2102212464  ;;  %v2122_v43 = vsel %vm2116_vm11, %v2109_v22, 920167782  ;;  %v2126_v55 = vsel %vm2116_vm11, %v2112_v16, 1326507024  ;;  %v13463_v51 = vadd.s32 %v13250_v30, %v13259_v26 }
 0x20b   :  { %vm2114_vm3 = vcmp.lt.s32.totalorder %v2094_v12, 2  ;;  %v2123_v35 = vsel %vm2115_vm12, %v2106_v25, %v2122_v43  ;;  %v2127_v44 = vsel %vm2115_vm12, %v2109_v22, %v2126_v55  ;;  %v2129_v41 = vshll.u32 %v2089_v2, 8 }
 0x20c   :  { %v2124_v61 = vsel %vm2114_vm3, %v2121_v4, %v2123_v35  ;;  %v2128_v27 = vsel %vm2114_vm3, %v2125_v48, %v2127_v44  ;;  %v17140_v15 = vand.u32 2147483647, %v13357_v5  ;;  %v2868_v54 = vsub.s32 0, %v13439_v9 }
 0x20d   :  { %v2117_v21 = vsel %vm2113_vm4, %v2097_v8, %v2100_v11  ;;  %v2119_v50 = vsel %vm2115_vm12, %v2103_v10, %v2118_v52  ;;  %vm3225_vm11 = vcmp.gt.s32.totalorder %v3224_v31, 0  ;;  %v13459_v22 = vor.u32 %v1846_v3, %v1845_v32  ;;  %v17458_v52 = vld [vmem:[#allocation9_spill] sm:$0xff] }
 0x20e   :  { %v13452_v7 = vmul.u32.u64.low %v2129_v41, %v2128_v27  ;;  %v13453_v6 = vmul.u32.u64.high %v2129_v41, %v2128_v27, %v13452_v7  ;;  %v13455_v25 = vmul.u32.u64.low %v2129_v41, %v2124_v61  ;;  %v13456_v29 = vmul.u32.u64.high %v2129_v41, %v2124_v61, %v13455_v25 }
 0x20f   :  { %v1951_v16 = vsub.s32 4294967266, %v13434_v14  ;;  %v3226_v2 = vsel %vm3225_vm11, %v3224_v31, 0  ;;  %v13466_v11 = vor.u32 4788187, %v1850_v17  ;;  %v2120_v10 = vsel %vm2114_vm3, %v2117_v21, %v2119_v50 }
 0x210   :  { %v3228_v4 = vand.u32 31, %v3226_v2  ;;  %v13472_v48 = vsel %vm12028_vm5, 0, %v17458_v52  ;;  %v13479_v30 = vadd.s32 %v13329_v58, %v13346_v47  ;;  %v3221_v26 = vand.u32 8388607, %v17140_v15 }
 0x211   :  { %v10032_v12 = vmin.u32 %v2868_v54, %v13439_v9  ;;  %vm2138_vm4 = vc.u32 %v13453_v6, %v13455_v25  ;;  %v2139_v17 = vadd.s32 1, %v13456_v29  ;;  %v13487_v55 = vadd.s32 127, %v1951_v16 }
 0x212   :  { %v3229_v31 = vsub.s32 32, %v3228_v4  ;;  %v2136_v8 = vmul.u32 %v2129_v41, %v2120_v10  ;;  %v3231_v35 = vshll.u32 %v17335_v42, %v3228_v4  ;;  %v3234_v44 = vshll.u32 %v17331_v19, %v3228_v4 }
 0x213   :  { %v2140_v58 = vsel %vm2138_vm4, %v2139_v17, %v13456_v29  ;;  %v3227_v47 = vshrl.u32 %v3226_v2, 5  ;;  %v3222_v21 = vor.u32 8388608, %v3221_v26  ;;  %v3237_v50 = vshll.u32 %v17332_v28, %v3228_v4 }
 0x214   :  { %v3232_v61 = vshrl.u32 %v17331_v19, %v3229_v31  ;;  %v3235_v27 = vshrl.u32 %v17332_v28, %v3229_v31  ;;  %v2141_v54 = vadd.s32 %v2140_v58, %v2136_v8  ;;  %v3238_v7 = vshrl.u32 %v17333_v63, %v3229_v31 }
 0x215   :  { %v2870_v16 = vclz %v10032_v12  ;;  %v3230_v41 = vshrl.u32 %v17335_v42, %v3229_v31  ;;  %v3240_v10 = vshll.u32 %v17333_v63, %v3228_v4  ;;  %v3241_v52 = vshrl.u32 %v17369_v23, %v3229_v31  ;;  %v17461_v12 = vld [vmem:[#allocation16_spill] sm:$0xff] }
 0x216   :  { %v2142_v43 = vadd.s32 536870912, %v2141_v54  ;;  %v3233_v29 = vor.u32 %v3232_v61, %v3231_v35  ;;  %v3236_v2 = vor.u32 %v3235_v27, %v3234_v44  ;;  %v3243_v17 = vshll.u32 %v17369_v23, %v3228_v4 }
 0x217   :  { %v3239_v15 = vor.u32 %v3238_v7, %v3237_v50  ;;  %v3242_v3 = vor.u32 %v3241_v52, %v3240_v10  ;;  %v3244_v26 = vshrl.u32 %v17334_v1, %v3229_v31  ;;  %vm3246_vm5 = vcmp.lt.s32.totalorder %v3227_v47, 1 }
 0x218   :  { %v13502_v58 = vshrl.u32 %v2142_v43, 30  ;;  %vm3249_vm12 = vcmp.lt.s32.totalorder %v3227_v47, 4  ;;  %v728_v36 = vsel %vm12219_vm2, 0, %v17461_v12  ;;  %vm3248_vm3 = vcmp.lt.s32.totalorder %v3227_v47, 3 }
 0x219   :  { %v3245_v33 = vor.u32 %v3244_v26, %v3243_v17  ;;  %v3251_v35 = vsel %vm3249_vm12, %v3239_v15, 2102212464  ;;  %v3262_v44 = vshll.u32 %v3222_v21, 8  ;;  %v10033_v4 = vadd.s32 4294967294, %v2870_v16  ;;  %v17463_v26 = vld [vmem:[#allocation19_spill] sm:$0xff] }
 0x21a   :  { %17460 = vst [vmem:[#allocation9_spill] sm:$0xff] %v13502_v58  ;;  %v2144_v61 = vshll.u32 %v13502_v58, 30  ;;  %vm3247_vm11 = vcmp.lt.s32.totalorder %v3227_v47, 2  ;;  %v3254_v31 = vsel %vm3246_vm5, %v3233_v29, %v3236_v2  ;;  %v3250_v27 = vsel %vm3246_vm5, %v3230_v41, %v3233_v29  ;;  %v17464_v41 = vld [vmem:[#allocation18_spill] sm:$0xff] }
 0x21b   :  { %v3255_v50 = vsel %vm3249_vm12, %v3242_v3, 920167782  ;;  %v4543_v7 = vadd.s32 3, %v13472_v48  ;;  %v4647_v10 = vadd.s32 3, %v728_v36  ;;  %v3252_v52 = vsel %vm3248_vm3, %v3236_v2, %v3251_v35 }
 0x21c   :  { %v13513_v32 = vsub.s32 %v2141_v54, %v2144_v61  ;;  %v3256_v43 = vsel %vm3248_vm3, %v3239_v15, %v3255_v50  ;;  %v3258_v21 = vsel %vm3246_vm5, %v3236_v2, %v3239_v15  ;;  %v3259_v17 = vsel %vm3249_vm12, %v3245_v33, 1326507024  ;;  %v17465_v2 = vld [vmem:[#allocation3_spill] sm:$0xff] }
 0x21d   :  { %v3257_v16 = vsel %vm3247_vm11, %v3254_v31, %v3256_v43  ;;  %v632_v12 = vxor.u32 2147483648, %v17463_v26  ;;  %v635_v29 = vxor.u32 2147483648, %v17464_v41  ;;  %v3260_v58 = vsel %vm3248_vm3, %v3242_v3, %v3259_v17  ;;  %v17467_v17 = vld [vmem:[#allocation27_spill] sm:$0xff] }
 0x21e   :  { %v2147_v8 = vsub.s32 0, %v13513_v32  ;;  %v13524_v54 = vmul.u32.u64.low %v3262_v44, %v3257_v16  ;;  %v13525_v61 = vmul.u32.u64.high %v3262_v44, %v3257_v16, %v13524_v54  ;;  %v3253_v35 = vsel %vm3247_vm11, %v3250_v27, %v3252_v52  ;;  %v370_v52 = vpop.permute.xlu1 %369 }
 0x21f   :  { %v3261_v15 = vsel %vm3247_vm11, %v3258_v21, %v3260_v58  ;;  %v4544_v31 = vand.u32 3, %v4543_v7  ;;  %v4648_v33 = vand.u32 3, %v4647_v10  ;;  %vm10034_vm4 = vcmp.lt.s32.totalorder %v10033_v4, 0 }
 0x220   :  { %v10004_v50 = vmin.u32 %v2147_v8, %v13513_v32  ;;  %v13532_v43 = vmul.u32.u64.low %v3262_v44, %v3261_v15  ;;  %v13533_v5 = vmul.u32.u64.high %v3262_v44, %v3261_v15, %v13532_v43  ;;  %v735_v3 = vxor.u32 2147483648, %v17466_v62 }
 0x221   :  { %v738_v16 = vxor.u32 2147483648, %v17467_v17  ;;  %vm4546_vm5 = vcmp.eq.s32.totalorder %v4544_v31, 0  ;;  %vm4549_vm12 = vcmp.eq.s32.totalorder %v4544_v31, 2  ;;  %v3269_v56 = vmul.u32 %v3262_v44, %v3253_v35  ;;  %v17468_v43 = vld [vmem:[#allocation4_spill] sm:$0xff] }
 0x222   :  { %v3272_v47 = vadd.s32 1, %v13525_v61  ;;  %v4548_v58 = vsel %vm4546_vm5, %v17464_v41, %v632_v12  ;;  %v4551_v27 = vsel %vm4549_vm12, %v635_v29, %v17463_v26  ;;  %v13540_v7 = vsel %vm10034_vm4, 0, %v10033_v4 }
 0x223   :  { %vm4545_vm3 = vcmp.lt.s32.totalorder %v4544_v31, 2  ;;  %vm4649_vm11 = vcmp.lt.s32.totalorder %v4648_v33, 2  ;;  %v629_v8 = vand.u32 3, %v13472_v48  ;;  %v2149_v10 = vclz %v10004_v50 }
 0x224   :  { %vm3271_vm2 = vc.u32 %v13533_v5, %v13524_v54  ;;  %vm4650_vm13 = vcmp.eq.s32.totalorder %v4648_v33, 0  ;;  %vm4653_vm0 = vcmp.eq.s32.totalorder %v4648_v33, 2  ;;  %v4552_v21 = vsel %vm4545_vm3, %v4548_v58, %v4551_v27 }
 0x225   :  { %v3273_v44 = vsel %vm3271_vm2, %v3272_v47, %v13525_v61  ;;  %v4652_v35 = vsel %vm4650_vm13, %v17467_v17, %v735_v3  ;;  %v4655_v15 = vsel %vm4653_vm0, %v738_v16, %v17466_v62  ;;  %v2878_v4 = vsub.s32 4294967266, %v13540_v7 }
 0x226   :  { %v3274_v31 = vadd.s32 %v3273_v44, %v3269_v56  ;;  %vm17157_vm4 = vweird.f32 %v17468_v43  ;;  %v4656_v48 = vsel %vm4649_vm11, %v4652_v35, %v4655_v15  ;;  %v17469_v50 = vsub.s32 32, %v13434_v14 }
 0x227   :  { %v17470_v33 = vshll.u32 %v13487_v55, 23  ;;  %v4657_v61 = vsel %vm17157_vm4, nan, %v4656_v48  ;;  %v732_v47 = vand.u32 3, %v728_v36  ;;  %v10005_v58 = vadd.s32 4294967294, %v2149_v10  ;;  %v374_v48 = vpop.permute.xlu1 %373 }
 0x228   :  { %v1949_v34 = vshrl.u32 %v13463_v51, %v17469_v50  ;;  %v3275_v27 = vadd.s32 536870912, %v3274_v31  ;;  %vm17471_vm0 = vweird.f32 %v17465_v2  ;;  %vm17158_vm13 = vcmask 523264  }
 0x229   :  { %v13555_v40 = vor.u32 4788187, %v17470_v33  ;;  %v4553_v56 = vsel %vm17471_vm0, nan, %v4552_v21  ;;  %v2874_v44 = vsub.s32 32, %v13540_v7  ;;  %vm631_vm2 = vcmp.eq.s32.totalorder %v629_v8, 0 }
 0x22a   :  { %v8429_v35 = vpack.c.bf16 %v4657_v61, %v4553_v56  ;;  %vm634_vm5 = vcmp.eq.s32.totalorder %v629_v8, 2  ;;  %v2879_v51 = vadd.s32 127, %v2878_v4  ;;  %v13562_v15 = vshrl.u32 %v3275_v27, 30 }
 0x22b   :  { %v633_v55 = vsel %vm631_vm2, %v17464_v41, %v632_v12  ;;  %v636_v50 = vsel %vm634_vm5, %v635_v29, %v17463_v26  ;;  %v17472_v36 = vand.u32 2147483647, %v17449_v49  ;;  %v17473_v10 = vmov 0 }
 0x22c   :  { %v2875_v21 = vshll.u32 %v13439_v9, %v13540_v7  ;;  %10443 = vmatmul.mubr.msk.bf16.vlgmr.msra.gmra.mrb[0].mxu0 %vm17158_vm13, %v8429_v35  ;;  %vm630_vm3 = vcmp.lt.s32.totalorder %v629_v8, 2  ;;  %vm734_vm11 = vcmp.eq.s32.totalorder %v732_v47, 0  ;;  %v476_v4 = vmul.f32 %v11498_v39, %v370_v52 }
 0x22d   :  { %vm13568_vm12 = vcmp.le.f32.partialorder %v17472_v36, 0.7853982  ;;  %vm10006_vm0 = vcmp.lt.s32.totalorder %v10005_v58, 0  ;;  %v3277_v12 = vshll.u32 %v13562_v15, 30  ;;  %v736_v26 = vsel %vm734_vm11, %v17467_v17, %v735_v3 }
 0x22e   :  { %v17474_v10 = vsel %vm13568_vm12, 4294967295, %v17473_v10  ;;  %vm737_vm2 = vcmp.eq.s32.totalorder %v732_v47, 2  ;;  %vm17476_vm5 = vmmov 0   ;;  %vm2392_vm4 = vcmp.lt.s32.totalorder %v12881_v18, 0 }
 0x22f   :  { %17475 = vst [vmem:[#allocation11_spill] sm:$0xff] %v17474_v10  ;;  %10446 = vmatprep.mubr.msk.bf16.mxu0 %vm17476_vm5, %v17436_v13  ;;  %v637_v41 = vsel %vm630_vm3, %v633_v55, %v636_v50  ;;  %v739_v9 = vsel %vm737_vm2, %v738_v16, %v17466_v62  ;;  %v13583_v29 = vadd.f32 %v476_v4, %v13427_v53  ;;  %v2880_v52 = vshll.u32 %v2879_v51, 23 }
 0x230   :  { %v477_v7 = vmul.f32 %v11498_v39, %v374_v48  ;;  %v2876_v8 = vshrl.u32 %v13479_v30, %v2874_v44  ;;  %v13587_v33 = vsub.s32 %v3274_v31, %v3277_v12  ;;  %vm733_vm11 = vcmp.lt.s32.totalorder %v732_v47, 2 }
 0x231   :  { %17477 = vst [vmem:[#allocation16_spill] sm:$0xff] %v13583_v29  ;;  %vm17162_vm13 = vcmp.lt.s32.totalorder %v13043_v20, 0  ;;  %v17478_v3 = vshll.u32 %v13317_v37, %v13434_v14  ;;  %v13594_v61 = vsel %vm10006_vm0, 0, %v10005_v58  ;;  %v740_v62 = vsel %vm733_vm11, %v736_v26, %v739_v9 }
 0x232   :  { %v2187_v53 = vand.u32 2139095040, %v13583_v29  ;;  %v3280_v16 = vsub.s32 0, %v13587_v33  ;;  %vm17479_vm3 = vweird.f32 %v17465_v2  ;;  %vm17480_vm2 = vweird.f32 %v17468_v43 }
 0x233   :  { %v1950_v17 = vor.u32 %v1949_v34, %v17478_v3  ;;  %v638_v30 = vsel %vm17479_vm3, nan, %v637_v41  ;;  %v741_v31 = vsel %vm17480_vm2, nan, %v740_v62  ;;  %v13603_v47 = vadd.f32 %v477_v7, %v12961_v24 }
 0x234   :  { %v1852_v37 = vand.u32 2147483647, %v13466_v11  ;;  %v1955_v34 = vand.u32 2147483647, %v13555_v40  ;;  %v8402_v14 = vpack.c.bf16 %v741_v31, %v638_v30  ;;  %v2188_v58 = vshrl.u32 %v2187_v53, 23 }
 0x235   :  { %17481 = vst [vmem:[#allocation20_spill] sm:$0xff] %v13603_v47  ;;  %v1854_v27 = vcvt.s32.f32 %v13459_v22  ;;  %v2877_v56 = vor.u32 %v2876_v8, %v2875_v21  ;;  %v2881_v44 = vor.u32 4788187, %v2880_v52  ;;  %v2157_v35 = vsub.s32 4294967266, %v13594_v61 }
 0x236   :  { %v1957_v2 = vcvt.s32.f32 %v1950_v17  ;;  %v10048_v51 = vmin.u32 %v3280_v16, %v13587_v33  ;;  %vm17482_vm0 = vcmask 523264   ;;  %v17160_v24 = vand.u32 2147483647, %v13583_v29 }
 0x237   :  { %10527 = vmatmul.mubr.msk.bf16.vlgmr.msra.gmra.mrb[0].mxu1 %vm17482_vm0, %v8402_v14  ;;  %v10007_v43 = vadd.s32 4294967169, %v2188_v58  ;;  %11044 = vsinq.f32 %v13387_v38  ;;  %v1757_v40 = vsel %vm13568_vm12, %v17449_v49, %v13402_v45  ;;  %v1858_v22 = vsub.s32 4, %v13242_v46  ;;  %v17496_v49 = vld [vmem:[#allocation34_spill] sm:$0xff] }
 0x238   :  { %v2290_v11 = vand.u32 2139095040, %v13603_v47  ;;  %10530 = vmatprep.mubr.msk.bf16.mxu1 %vm17476_vm5, %v17436_v13  ;;  %v2474_v55 = vxor.u32 2147483648, %v13424_v60  ;;  %v13622_v50 = vmul.f32 %v1854_v27, %v1852_v37  ;;  %v13624_v48 = vmul.f32 %v1957_v2, %v1955_v34 }
 0x239   :  { %v2194_v36 = vadd.s32 1, %v10007_v43  ;;  %v17483_v38 = vsub.s32 4, %v13176_v0  ;;  %v2882_v21 = vand.u32 2147483647, %v2881_v44  ;;  %v2884_v4 = vcvt.s32.f32 %v2877_v56 }
 0x23a   :  { %v13633_v12 = vadd.s32 127, %v2157_v35  ;;  %11046 = vcosq.f32 %v1757_v40  ;;  %v3282_v26 = vclz %v10048_v51  ;;  %v2191_v41 = vand.u32 8388607, %v17160_v24  ;;  %v17493_v24 = vld [vmem:[#allocation26_spill] sm:$0xff] }
 0x23b   :  { %v13631_v45 = vsel %vm2392_vm4, %v17483_v38, %v13176_v0  ;;  %vm2195_vm11 = vcmp.gt.s32.totalorder %v2194_v36, 0  ;;  %11048 = vsinq.f32 %v1757_v40  ;;  %v13640_v9 = vsel %vm17162_vm13, %v1858_v22, %v13242_v46 }
 0x23c   :  { %17484 = vst [vmem:[#allocation19_spill] sm:$0xff] %v13631_v45  ;;  %17485 = vst [vmem:[#allocation18_spill] sm:$0xff] %v13640_v9  ;;  %v2196_v7 = vsel %vm2195_vm11, %v2194_v36, 0  ;;  %v2291_v8 = vshrl.u32 %v2290_v11, 23  ;;  %v13645_v0 = vsel %vm2392_vm4, %v2474_v55, %v13424_v60  ;;  %v13649_v62 = vmul.f32 %v2884_v4, %v2882_v21  ;;  %v17495_v9 = vld [vmem:[#allocation5_spill] sm:$0xff] }
 0x23d   :  { %v2198_v17 = vand.u32 31, %v2196_v7  ;;  %v2137_v53 = vadd.s32 %v13455_v25, %v13453_v6  ;;  %v2153_v46 = vsub.s32 32, %v13594_v61  ;;  %v2159_v16 = vshll.u32 %v13633_v12, 23 }
 0x23e   :  { %v10049_v30 = vadd.s32 4294967294, %v3282_v26  ;;  %v2192_v31 = vor.u32 8388608, %v2191_v41  ;;  %v17159_v60 = vand.u32 2147483647, %v13603_v47  ;;  %v2197_v34 = vshrl.u32 %v2196_v7, 5 }
 0x23f   :  { %v2199_v37 = vsub.s32 32, %v2198_v17  ;;  %v2201_v14 = vshll.u32 %v17335_v42, %v2198_v17  ;;  %v2204_v58 = vshll.u32 %v17331_v19, %v2198_v17  ;;  %v10011_v27 = vadd.s32 4294967169, %v2291_v8 }
 0x240   :  { %v2207_v6 = vshll.u32 %v17332_v28, %v2198_v17  ;;  %v2210_v2 = vshll.u32 %v17333_v63, %v2198_v17  ;;  %v2213_v43 = vshll.u32 %v17369_v23, %v2198_v17  ;;  %v2294_v36 = vand.u32 8388607, %v17159_v60 }
 0x241   :  { %v2202_v56 = vshrl.u32 %v17331_v19, %v2199_v37  ;;  %v2205_v44 = vshrl.u32 %v17332_v28, %v2199_v37  ;;  %v2208_v25 = vshrl.u32 %v17333_v63, %v2199_v37  ;;  %v13662_v35 = vpop.eup %11044  ;;  %v2211_v51 = vshrl.u32 %v17369_v23, %v2199_v37 }
 0x242   :  { %17486 = vst [vmem:[#allocation3_spill] sm:$0xff] %v13662_v35  ;;  %v2214_v40 = vshrl.u32 %v17334_v1, %v2199_v37  ;;  %vm10050_vm4 = vcmp.lt.s32.totalorder %v10049_v30, 0  ;;  %v2232_v4 = vshll.u32 %v2192_v31, 8  ;;  %v2200_v26 = vshrl.u32 %v17335_v42, %v2199_v37 }
 0x243   :  { %v2203_v22 = vor.u32 %v2202_v56, %v2201_v14  ;;  %v2206_v11 = vor.u32 %v2205_v44, %v2204_v58  ;;  %v2209_v55 = vor.u32 %v2208_v25, %v2207_v6  ;;  %v2212_v38 = vor.u32 %v2211_v51, %v2210_v2 }
 0x244   :  { %v2215_v21 = vor.u32 %v2214_v40, %v2213_v43  ;;  %v13670_v12 = vpop.eup %11046  ;;  %vm2216_vm3 = vcmp.lt.s32.totalorder %v2197_v34, 1  ;;  %vm2219_vm2 = vcmp.lt.s32.totalorder %v2197_v34, 4  ;;  %v2297_v41 = vadd.s32 1, %v10011_v27 }
 0x245   :  { %17487 = vst [vmem:[#allocation28_spill] sm:$0xff] %v13670_v12  ;;  %v13673_v7 = vpop.eup %11048  ;;  %vm2218_vm0 = vcmp.lt.s32.totalorder %v2197_v34, 3  ;;  %v2221_v8 = vsel %vm2219_vm2, %v2209_v55, 2102212464  ;;  %v2224_v17 = vsel %vm2216_vm3, %v2203_v22, %v2206_v11  ;;  %v2225_v14 = vsel %vm2219_vm2, %v2212_v38, 920167782 }
 0x246   :  { %17488 = vst [vmem:[#allocation27_spill] sm:$0xff] %v13673_v7  ;;  %vm2217_vm11 = vcmp.lt.s32.totalorder %v2197_v34, 2  ;;  %v2226_v58 = vsel %vm2218_vm0, %v2209_v55, %v2225_v14  ;;  %v2228_v56 = vsel %vm2216_vm3, %v2206_v11, %v2209_v55  ;;  %v2229_v44 = vsel %vm2219_vm2, %v2215_v21, 1326507024 }
 0x247   :  { %v2220_v6 = vsel %vm2216_vm3, %v2200_v26, %v2203_v22  ;;  %v2222_v25 = vsel %vm2218_vm0, %v2206_v11, %v2221_v8  ;;  %v2227_v31 = vsel %vm2217_vm11, %v2224_v17, %v2226_v58  ;;  %v2230_v2 = vsel %vm2218_vm0, %v2212_v38, %v2229_v44 }
 0x248   :  { %v2231_v37 = vsel %vm2217_vm11, %v2228_v56, %v2230_v2  ;;  %v13677_v51 = vmul.u32.u64.low %v2232_v4, %v2227_v31  ;;  %v13678_v43 = vmul.u32.u64.high %v2232_v4, %v2227_v31, %v13677_v51  ;;  %v2295_v27 = vor.u32 8388608, %v2294_v36 }
 0x249   :  { %v13683_v40 = vadd.s32 %v13524_v54, %v13533_v5  ;;  %v13685_v60 = vmul.u32.u64.low %v2232_v4, %v2231_v37  ;;  %v13686_v14 = vmul.u32.u64.high %v2232_v4, %v2231_v37, %v13685_v60  ;;  %vm2298_vm2 = vcmp.gt.s32.totalorder %v2297_v41, 0  ;;  %v17489_v5 = vld [vmem:[#allocation24_spill] sm:$0xff] }
 0x24a   :  { %v13691_v11 = vsel %vm10050_vm4, 0, %v10049_v30  ;;  %v2223_v55 = vsel %vm2217_vm11, %v2220_v6, %v2222_v25  ;;  %v2299_v38 = vsel %vm2298_vm2, %v2297_v41, 0  ;;  %v13694_v21 = vshrl.u32 %v2137_v53, %v2153_v46  ;;  %v17491_v30 = vld [vmem:[#allocation32_spill] sm:$0xff]  ;;  %v17492_v6 = vld [vmem:[#allocation30_spill] sm:$0xff] }
 0x24b   :  { %v13696_v36 = vor.u32 4788187, %v2159_v16  ;;  %v2301_v26 = vand.u32 31, %v2299_v38  ;;  %v831_v8 = vsel %vm12354_vm1, 0, %v17489_v5  ;;  %v2242_v17 = vadd.s32 1, %v13678_v43 }
 0x24c   :  { %v13703_v58 = vshll.u32 %v2295_v27, 8  ;;  %v2239_v41 = vmul.u32 %v2232_v4, %v2223_v55  ;;  %vm2241_vm4 = vc.u32 %v13686_v14, %v13677_v51  ;;  %v2300_v16 = vshrl.u32 %v2299_v38, 5 }
 0x24d   :  { %v2302_v53 = vsub.s32 32, %v2301_v26  ;;  %v2243_v46 = vsel %vm2241_vm4, %v2242_v17, %v13678_v43  ;;  %v2304_v44 = vshll.u32 %v17335_v42, %v2301_v26  ;;  %v2307_v37 = vshll.u32 %v17331_v19, %v2301_v26 }
 0x24e   :  { %v2244_v31 = vadd.s32 %v2243_v46, %v2239_v41  ;;  %v2310_v4 = vshll.u32 %v17332_v28, %v2301_v26  ;;  %v2313_v5 = vshll.u32 %v17333_v63, %v2301_v26  ;;  %v934_v41 = vsel %vm12415_vm7, 0, %v17493_v24 }
 0x24f   :  { %v2305_v2 = vshrl.u32 %v17331_v19, %v2302_v53  ;;  %v2308_v27 = vshrl.u32 %v17332_v28, %v2302_v53  ;;  %v2311_v55 = vshrl.u32 %v17333_v63, %v2302_v53  ;;  %v2314_v43 = vshrl.u32 %v17369_v23, %v2302_v53 }
 0x250   :  { %v2245_v38 = vadd.s32 536870912, %v2244_v31  ;;  %v2316_v22 = vshll.u32 %v17369_v23, %v2301_v26  ;;  %v2317_v60 = vshrl.u32 %v17334_v1, %v2302_v53  ;;  %vm2319_vm1 = vcmp.lt.s32.totalorder %v2300_v16, 1 }
 0x251   :  { %v2306_v54 = vor.u32 %v2305_v2, %v2304_v44  ;;  %v2309_v17 = vor.u32 %v2308_v27, %v2307_v37  ;;  %v2312_v46 = vor.u32 %v2311_v55, %v2310_v4  ;;  %v2315_v52 = vor.u32 %v2314_v43, %v2313_v5 }
 0x252   :  { %v13724_v34 = vshrl.u32 %v2245_v38, 30  ;;  %vm2322_vm3 = vcmp.lt.s32.totalorder %v2300_v16, 4  ;;  %v4751_v25 = vadd.s32 3, %v831_v8  ;;  %v2303_v56 = vshrl.u32 %v17335_v42, %v2302_v53 }
 0x253   :  { %v2318_v45 = vor.u32 %v2317_v60, %v2316_v22  ;;  %v2324_v44 = vsel %vm2322_vm3, %v2312_v46, 2102212464  ;;  %v2327_v2 = vsel %vm2319_vm1, %v2306_v54, %v2309_v17  ;;  %vm2320_vm0 = vcmp.lt.s32.totalorder %v2300_v16, 2 }
 0x254   :  { %v2247_v37 = vshll.u32 %v13724_v34, 30  ;;  %vm2321_vm7 = vcmp.lt.s32.totalorder %v2300_v16, 3  ;;  %v2328_v24 = vsel %vm2322_vm3, %v2315_v52, 920167782  ;;  %v2323_v3 = vsel %vm2319_vm1, %v2303_v56, %v2306_v54 }
 0x255   :  { %v2329_v27 = vsel %vm2321_vm7, %v2312_v46, %v2328_v24  ;;  %v2331_v26 = vsel %vm2319_vm1, %v2309_v17, %v2312_v46  ;;  %v2332_v4 = vsel %vm2322_vm3, %v2318_v45, 1326507024  ;;  %v2325_v5 = vsel %vm2321_vm7, %v2309_v17, %v2324_v44  ;;  %v13740_v45 = vpop.permute.xlu0 %219  ;;  %v17497_v44 = vld [vmem:[#allocation33_spill] sm:$0xff] }
 0x256   :  { %v13728_v55 = vsub.s32 %v2244_v31, %v2247_v37  ;;  %v2330_v43 = vsel %vm2320_vm0, %v2327_v2, %v2329_v27  ;;  %v2333_v38 = vsel %vm2321_vm7, %v2315_v52, %v2332_v4  ;;  %vm834_vm11 = vweird.f32 %v17495_v9 }
 0x257   :  { %v2334_v22 = vsel %vm2320_vm0, %v2331_v26, %v2333_v38  ;;  %v13734_v60 = vmul.u32.u64.low %v13703_v58, %v2330_v43  ;;  %v13735_v53 = vmul.u32.u64.high %v13703_v58, %v2330_v43, %v13734_v60  ;;  %v4752_v52 = vand.u32 3, %v4751_v25 }
 0x258   :  { %v2250_v54 = vsub.s32 0, %v13728_v55  ;;  %v13743_v31 = vmul.u32.u64.low %v13703_v58, %v2334_v22  ;;  %v13744_v17 = vmul.u32.u64.high %v13703_v58, %v2334_v22, %v13743_v31  ;;  %v2326_v46 = vsel %vm2320_vm0, %v2323_v3, %v2325_v5 }
 0x259   :  { %v944_v2 = vxor.u32 2147483648, %v17497_v44  ;;  %v4855_v37 = vadd.s32 3, %v934_v41  ;;  %v835_v24 = vand.u32 3, %v831_v8  ;;  %vm4753_vm2 = vcmp.lt.s32.totalorder %v4752_v52, 2  ;;  %v426_v56 = vpop.permute.xlu0 %425 }
 0x25a   :  { %v10008_v27 = vmin.u32 %v2250_v54, %v13728_v55  ;;  %vm4754_vm4 = vcmp.eq.s32.totalorder %v4752_v52, 0  ;;  %vm4757_vm1 = vcmp.eq.s32.totalorder %v4752_v52, 2  ;;  %v2345_v26 = vadd.s32 1, %v13735_v53 }
 0x25b   :  { %v17498_v4 = vxor.u32 2147483648, %v17491_v30  ;;  %v17499_v25 = vxor.u32 2147483648, %v17492_v6  ;;  %v4856_v3 = vand.u32 3, %v4855_v37  ;;  %v17500_v5 = vsub.s32 4294967266, %v13691_v11 }
 0x25c   :  { %v2342_v8 = vmul.u32 %v13703_v58, %v2326_v46  ;;  %vm2344_vm3 = vc.u32 %v13744_v17, %v13734_v60  ;;  %v17501_v54 = vand.u32 2147483647, %v12881_v18  ;;  %v17502_v31 = vmov 0 }
 0x25d   :  { %v4756_v43 = vsel %vm4754_vm4, %v17492_v6, %v17498_v4  ;;  %v4759_v16 = vsel %vm4757_vm1, %v17499_v25, %v17491_v30  ;;  %v3291_v38 = vadd.s32 127, %v17500_v5  ;;  %v2346_v52 = vsel %vm2344_vm3, %v2345_v26, %v13735_v53  ;;  %v17505_v4 = vld [vmem:[#allocation6_spill] sm:$0xff] }
 0x25e   :  { %v4760_v22 = vsel %vm4753_vm2, %v4756_v43, %v4759_v16  ;;  %vm13763_vm0 = vcmp.le.f32.partialorder %v17501_v54, 0.7853982  ;;  %vm4858_vm4 = vcmp.eq.s32.totalorder %v4856_v3, 0  ;;  %v938_v37 = vand.u32 3, %v934_v41  ;;  %v170_v43 = vpop.permute.xlu1 %169 }
 0x25f   :  { %v17503_v31 = vsel %vm13763_vm0, 4294967295, %v17502_v31  ;;  %v2252_v25 = vclz %v10008_v27  ;;  %v2347_v5 = vadd.s32 %v2346_v52, %v2342_v8  ;;  %v17506_v58 = vxor.u32 2147483648, %v17496_v49 }
 0x260   :  { %17504 = vst [vmem:[#allocation4_spill] sm:$0xff] %v17503_v31  ;;  %vm4861_vm2 = vcmp.eq.s32.totalorder %v4856_v3, 2  ;;  %v4761_v16 = vsel %vm834_vm11, nan, %v4760_v22  ;;  %vm4857_vm1 = vcmp.lt.s32.totalorder %v4856_v3, 2  ;;  %vm837_vm3 = vcmp.eq.s32.totalorder %v835_v24, 0 }
 0x261   :  { %v4860_v46 = vsel %vm4858_vm4, %v17497_v44, %v17506_v58  ;;  %v4863_v54 = vsel %vm4861_vm2, %v944_v2, %v17496_v49  ;;  %v2348_v53 = vadd.s32 536870912, %v2347_v5  ;;  %v17507_v41 = vxor.u32 2147483648, %v17491_v30 }
 0x262   :  { %v4864_v26 = vsel %vm4857_vm1, %v4860_v46, %v4863_v54  ;;  %vm840_vm13 = vcmp.eq.s32.totalorder %v835_v24, 2  ;;  %v3287_v8 = vshll.u32 %v13587_v33, %v13691_v11  ;;  %v17508_v52 = vsub.s32 32, %v13691_v11 }
 0x263   :  { %v839_v27 = vsel %vm837_vm3, %v17492_v6, %v17507_v41  ;;  %vm17509_vm4 = vweird.f32 %v17505_v4  ;;  %v17510_v58 = vxor.u32 2147483648, %v17492_v6  ;;  %v17511_v54 = vshll.u32 %v13513_v32, %v13594_v61 }
 0x264   :  { %v3288_v22 = vshrl.u32 %v13683_v40, %v17508_v52  ;;  %v4865_v3 = vsel %vm17509_vm4, nan, %v4864_v26  ;;  %v3292_v12 = vshll.u32 %v3291_v38, 23  ;;  %v13793_v7 = vshrl.u32 %v2348_v53, 30 }
 0x265   :  { %v842_v46 = vsel %vm840_vm13, %v17510_v58, %v17491_v30  ;;  %v2156_v41 = vor.u32 %v13694_v21, %v17511_v54  ;;  %vm836_vm2 = vcmp.lt.s32.totalorder %v835_v24, 2  ;;  %v17512_v33 = vand.u32 2147483647, %v13043_v20  ;;  %v225_v21 = vpop.permute.xlu0 %224  ;;  %v382_v24 = vpop.permute.xlu1 %381 }
 0x266   :  { %v17513_v40 = vmov 0  ;;  %v10009_v11 = vadd.s32 4294967294, %v2252_v25  ;;  %v490_v30 = vmul.f32 %v11498_v39, %v426_v56  ;;  %v8430_v6 = vpack.c.bf16 %v4865_v3, %v4761_v16  ;;  %v17522_v16 = vld [vmem:[#allocation2_spill] sm:$0xff] }
 0x267   :  { %vm13797_vm1 = vcmp.le.f32.partialorder %v17512_v33, 0.7853982  ;;  %v843_v26 = vsel %vm836_vm2, %v839_v27, %v842_v46  ;;  %v2161_v32 = vand.u32 2147483647, %v13696_v36  ;;  %v2350_v61 = vshll.u32 %v13793_v7, 30 }
 0x268   :  { %v17514_v40 = vsel %vm13797_vm1, 4294967295, %v17513_v40  ;;  %vm940_vm13 = vcmp.eq.s32.totalorder %v938_v37, 0  ;;  %vm943_vm4 = vcmp.eq.s32.totalorder %v938_v37, 2  ;;  %v17516_v38 = vand.u32 2147483647, %v13143_v59 }
 0x269   :  { %17515 = vst [vmem:[#allocation24_spill] sm:$0xff] %v17514_v40  ;;  %v17517_v53 = vmov 0  ;;  %v3289_v52 = vor.u32 %v3288_v22, %v3287_v8  ;;  %vm17520_vm3 = vcmask 523264   ;;  %v17521_v56 = vxor.u32 2147483648, %v17496_v49 }
 0x26a   :  { %vm13807_vm7 = vcmp.le.f32.partialorder %v17516_v38, 0.7853982  ;;  %10447 = vmatmul.mubr.msk.bf16.gmra.mrb[4].mxu0 %vm17520_vm3, %v8430_v6  ;;  %v945_v36 = vsel %vm943_vm4, %v944_v2, %v17496_v49  ;;  %v296_v27 = vmul.f32 %v17522_v16, %v225_v21  ;;  %v3293_v3 = vor.u32 4788187, %v3292_v12 }
 0x26b   :  { %v17518_v53 = vsel %vm13807_vm7, 4294967295, %v17517_v53  ;;  %v942_v25 = vsel %vm940_vm13, %v17497_v44, %v17521_v56  ;;  %v13817_v58 = vsub.s32 %v2347_v5, %v2350_v61  ;;  %v844_v46 = vsel %vm834_vm11, nan, %v843_v26  ;;  %10450 = vmatprep.mubr.msk.bf16.mxu0 %vm17476_vm5, %v17436_v13 }
 0x26c   :  { %17519 = vst [vmem:[#allocation22_spill] sm:$0xff] %v17518_v53  ;;  %vm939_vm2 = vcmp.lt.s32.totalorder %v938_v37, 2  ;;  %v17523_v8 = vand.u32 2147483647, %v13219_v57  ;;  %v17524_v22 = vmov 0  ;;  %vm10010_vm13 = vcmp.lt.s32.totalorder %v10009_v11, 0 }
 0x26d   :  { %v946_v49 = vsel %vm939_vm2, %v942_v25, %v945_v36  ;;  %v13829_v44 = vadd.f32 %v490_v30, %v296_v27  ;;  %v479_v12 = vmul.f32 %v11498_v39, %v382_v24  ;;  %v2478_v9 = vsel %vm13763_vm0, %v12881_v18, %v13645_v0  ;;  %v17535_v25 = vld [vmem:[#allocation61_spill] sm:$0xff] }
 0x26e   :  { %vm13825_vm3 = vcmp.le.f32.partialorder %v17523_v8, 0.7853982  ;;  %v17528_v2 = vxor.u32 2147483648, %v13622_v50  ;;  %vm17529_vm11 = vcmp.lt.s32.totalorder %v13043_v20, 0  ;;  %vm17530_vm4 = vweird.f32 %v17505_v4  ;;  %v17537_v8 = vld [vmem:[#allocation62_spill] sm:$0xff] }
 0x26f   :  { %v17525_v22 = vsel %vm13825_vm3, 4294967295, %v17524_v22  ;;  %17527 = vst [vmem:[#allocation30_spill] sm:$0xff] %v13829_v44  ;;  %v947_v5 = vsel %vm17530_vm4, nan, %v946_v49  ;;  %v285_v54 = vmul.f32 %v17522_v16, %v170_v43  ;;  %v2163_v33 = vcvt.s32.f32 %v2156_v41 }
 0x270   :  { %17526 = vst [vmem:[#allocation32_spill] sm:$0xff] %v17525_v22  ;;  %v1857_v37 = vsel %vm17529_vm11, %v17528_v2, %v13622_v50  ;;  %v2353_v30 = vsub.s32 0, %v13817_v58  ;;  %v8403_v6 = vpack.c.bf16 %v947_v5, %v844_v46  ;;  %v3629_v26 = vand.u32 2139095040, %v13829_v44 }
 0x271   :  { %v17531_v0 = vxor.u32 2147483648, %v13624_v48  ;;  %vm17532_vm2 = vcmp.lt.s32.totalorder %v13143_v59, 0  ;;  %v2886_v21 = vxor.u32 2147483648, %v13649_v62  ;;  %v13852_v50 = vsel %vm10010_vm13, 0, %v10009_v11 }
 0x272   :  { %v13854_v4 = vadd.f32 %v479_v12, %v285_v54  ;;  %v2164_v24 = vmul.f32 %v2163_v33, %v2161_v32  ;;  %v3294_v43 = vand.u32 2147483647, %v3293_v3  ;;  %v3296_v41 = vcvt.s32.f32 %v3289_v52  ;;  %vm17539_vm4 = vmmov %vm17532_vm2  ;;  %v17541_v54 = vld [vmem:[#allocation64_spill] sm:$0xff] }
 0x273   :  { %v1960_v61 = vsel %vm17532_vm2, %v17531_v0, %v13624_v48  ;;  %vm17534_vm11 = vcmask 523264   ;;  %v3630_v38 = vshrl.u32 %v3629_v26, 23  ;;  %11050 = vcosq.f32 %v2478_v9 }
 0x274   :  { %17533 = vst [vmem:[#allocation26_spill] sm:$0xff] %v13854_v4  ;;  %10531 = vmatmul.mubr.msk.bf16.gmra.mrb[4].mxu1 %vm17534_vm11, %v8403_v6  ;;  %v1860_v56 = vsel %vm13797_vm1, %v13043_v20, %v1857_v37  ;;  %v1961_v36 = vsub.s32 4, %v17535_v25  ;;  %v17165_v48 = vand.u32 2147483647, %v13829_v44  ;;  %v2260_v11 = vsub.s32 4294967266, %v13852_v50  ;;  %v17542_v6 = vld [vmem:[#allocation68_spill] sm:$0xff] }
 0x275   :  { %10534 = vmatprep.mubr.msk.bf16.mxu1 %vm17476_vm5, %v17436_v13  ;;  %v10012_v32 = vmin.u32 %v2353_v30, %v13817_v58  ;;  %v10063_v52 = vadd.s32 4294967169, %v3630_v38  ;;  %v2496_v27 = vand.u32 2139095040, %v13854_v4  ;;  %11052 = vsinq.f32 %v2478_v9 }
 0x276   :  { %v13870_v3 = vsel %vm13807_vm7, %v13143_v59, %v1960_v61  ;;  %vm17536_vm13 = vcmp.lt.s32.totalorder %v13219_v57, 0  ;;  %v13877_v49 = vmul.f32 %v17522_v16, %v17537_v8  ;;  %v2165_v12 = vxor.u32 2147483648, %v2164_v24 }
 0x277   :  { %v2887_v46 = vsel %vm17536_vm13, %v2886_v21, %v13649_v62  ;;  %v13879_v2 = vmul.f32 %v3296_v41, %v3294_v43  ;;  %v3636_v37 = vadd.s32 1, %v10063_v52  ;;  %v2497_v5 = vshrl.u32 %v2496_v27, 23 }
 0x278   :  { %17538 = vst [vmem:[#allocation25_spill] sm:$0xff] %v13877_v49  ;;  %11054 = vcosq.f32 %v1860_v56  ;;  %v13884_v9 = vsel %vm17539_vm4, %v1961_v36, %v17535_v25  ;;  %vm17173_vm2 = vcmp.lt.s32.totalorder %v17541_v54, 0  ;;  %v3633_v62 = vand.u32 8388607, %v17165_v48 }
 0x279   :  { %17540 = vst [vmem:[#allocation5_spill] sm:$0xff] %v13884_v9  ;;  %11056 = vsinq.f32 %v1860_v56  ;;  %v13889_v33 = vadd.s32 127, %v2260_v11  ;;  %v2355_v30 = vclz %v10012_v32  ;;  %vm3637_vm11 = vcmp.gt.s32.totalorder %v3636_v37, 0 }
 0x27a   :  { %11058 = vcosq.f32 %v13870_v3  ;;  %v13896_v0 = vsel %vm13825_vm3, %v13219_v57, %v2887_v46  ;;  %v10019_v61 = vadd.s32 4294967169, %v2497_v5  ;;  %v13900_v21 = vsel %vm17173_vm2, %v2165_v12, %v2164_v24 }
 0x27b   :  { %v2240_v41 = vadd.s32 %v13677_v51, %v13686_v14  ;;  %v3638_v38 = vsel %vm3637_vm11, %v3636_v37, 0  ;;  %v13907_v56 = vadd.s32 %v13734_v60, %v13744_v17  ;;  %v3634_v25 = vor.u32 8388608, %v3633_v62 }
 0x27c   :  { %v3640_v36 = vand.u32 31, %v3638_v38  ;;  %v17171_v11 = vand.u32 2147483647, %v13854_v4  ;;  %v2256_v32 = vsub.s32 32, %v13852_v50  ;;  %v2262_v52 = vshll.u32 %v13889_v33, 23 }
 0x27d   :  { %v10013_v27 = vadd.s32 4294967294, %v2355_v30  ;;  %v13914_v46 = vpop.eup %11050  ;;  %v3639_v51 = vshrl.u32 %v3638_v38, 5  ;;  %v2503_v60 = vadd.s32 1, %v10019_v61  ;;  %v3674_v48 = vshll.u32 %v3634_v25, 8 }
 0x27e   :  { %17543 = vst [vmem:[#allocation34_spill] sm:$0xff] %v13914_v46  ;;  %v3641_v14 = vsub.s32 32, %v3640_v36  ;;  %v3643_v8 = vshll.u32 %v17335_v42, %v3640_v36  ;;  %v3646_v17 = vshll.u32 %v17331_v19, %v3640_v36  ;;  %v3649_v12 = vshll.u32 %v17332_v28, %v3640_v36 }
 0x27f   :  { %v3652_v37 = vshll.u32 %v17333_v63, %v3640_v36  ;;  %v3655_v5 = vshll.u32 %v17369_v23, %v3640_v36  ;;  %v13921_v62 = vpop.eup %11052  ;;  %v2500_v38 = vand.u32 8388607, %v17171_v11  ;;  %vm10014_vm13 = vcmp.lt.s32.totalorder %v10013_v27, 0 }
 0x280   :  { %17544 = vst [vmem:[#allocation33_spill] sm:$0xff] %v13921_v62  ;;  %v3642_v33 = vshrl.u32 %v17335_v42, %v3641_v14  ;;  %v3644_v30 = vshrl.u32 %v17331_v19, %v3641_v14  ;;  %v3647_v61 = vshrl.u32 %v17332_v28, %v3641_v14  ;;  %v3650_v26 = vshrl.u32 %v17333_v63, %v3641_v14 }
 0x281   :  { %v3653_v43 = vshrl.u32 %v17369_v23, %v3641_v14  ;;  %v3656_v24 = vshrl.u32 %v17334_v1, %v3641_v14  ;;  %vm3658_vm4 = vcmp.lt.s32.totalorder %v3639_v51, 1  ;;  %vm2504_vm11 = vcmp.gt.s32.totalorder %v2503_v60, 0 }
 0x282   :  { %v13931_v22 = vpop.eup %11054  ;;  %v3645_v36 = vor.u32 %v3644_v30, %v3643_v8  ;;  %v3648_v25 = vor.u32 %v3647_v61, %v3646_v17  ;;  %v3651_v46 = vor.u32 %v3650_v26, %v3649_v12  ;;  %vm3659_vm2 = vcmp.lt.s32.totalorder %v3639_v51, 2 }
 0x283   :  { %17545 = vst [vmem:[#allocation6_spill] sm:$0xff] %v13931_v22  ;;  %v13933_v18 = vpop.eup %11056  ;;  %v3654_v62 = vor.u32 %v3653_v43, %v3652_v37  ;;  %v3657_v11 = vor.u32 %v3656_v24, %v3655_v5  ;;  %vm3660_vm3 = vcmp.lt.s32.totalorder %v3639_v51, 3  ;;  %vm3661_vm0 = vcmp.lt.s32.totalorder %v3639_v51, 4 }
 0x284   :  { %17546 = vst [vmem:[#allocation61_spill] sm:$0xff] %v13933_v18  ;;  %v13935_v31 = vpop.eup %11058  ;;  %v3662_v59 = vsel %vm3658_vm4, %v3642_v33, %v3645_v36  ;;  %v3663_v20 = vsel %vm3661_vm0, %v3651_v46, 2102212464  ;;  %v3666_v14 = vsel %vm3658_vm4, %v3645_v36, %v3648_v25  ;;  %v3670_v22 = vsel %vm3658_vm4, %v3648_v25, %v3651_v46  ;;  %v17553_v36 = vld [vmem:[#allocation35_spill] sm:$0xff] }
 0x285   :  { %17547 = vst [vmem:[#allocation62_spill] sm:$0xff] %v13935_v31  ;;  %v3667_v53 = vsel %vm3661_vm0, %v3654_v62, 920167782  ;;  %v3664_v9 = vsel %vm3660_vm3, %v3648_v25, %v3663_v20  ;;  %v3671_v30 = vsel %vm3661_vm0, %v3657_v11, 1326507024  ;;  %v2501_v40 = vor.u32 8388608, %v2500_v38 }
 0x286   :  { %v3668_v8 = vsel %vm3660_vm3, %v3651_v46, %v3667_v53  ;;  %v13938_v18 = vsel %vm10014_vm13, 0, %v10013_v27  ;;  %v3672_v43 = vsel %vm3660_vm3, %v3654_v62, %v3671_v30  ;;  %v2505_v24 = vsel %vm2504_vm11, %v2503_v60, 0  ;;  %v17548_v27 = vld [vmem:[#allocation14_spill] sm:$0xff] }
 0x287   :  { %v3669_v26 = vsel %vm3659_vm2, %v3666_v14, %v3668_v8  ;;  %v3665_v17 = vsel %vm3659_vm2, %v3662_v59, %v3664_v9  ;;  %v3673_v12 = vsel %vm3659_vm2, %v3670_v22, %v3672_v43  ;;  %v13948_v20 = vshrl.u32 %v2240_v41, %v2256_v32  ;;  %v17550_v59 = vld [vmem:[#allocation36_spill] sm:$0xff] }
 0x288   :  { %v13944_v37 = vmul.u32.u64.low %v3674_v48, %v3669_v26  ;;  %v13945_v5 = vmul.u32.u64.high %v3674_v48, %v3669_v26, %v13944_v37  ;;  %v13950_v53 = vmul.u32.u64.low %v3674_v48, %v3673_v12  ;;  %v13951_v11 = vmul.u32.u64.high %v3674_v48, %v3673_v12, %v13950_v53  ;;  %v17551_v22 = vld [vmem:[#allocation40_spill] sm:$0xff] }
 0x289   :  { %v13956_v33 = vsel %vm12476_vm10, 0, %v17548_v27  ;;  %v13958_v62 = vor.u32 4788187, %v2262_v52  ;;  %v2507_v60 = vand.u32 31, %v2505_v24  ;;  %v13964_v38 = vsel %vm12749_vm6, 0, %v17551_v22 }
 0x28a   :  { %v3681_v32 = vmul.u32 %v3674_v48, %v3665_v17  ;;  %v13967_v61 = vshll.u32 %v2501_v40, 8  ;;  %v3684_v14 = vadd.s32 1, %v13945_v5  ;;  %v2506_v8 = vshrl.u32 %v2505_v24, 5 }
 0x28b   :  { %v2508_v52 = vsub.s32 32, %v2507_v60  ;;  %v4959_v30 = vadd.s32 3, %v13956_v33  ;;  %vm3683_vm10 = vc.u32 %v13951_v11, %v13944_v37  ;;  %v2510_v26 = vshll.u32 %v17335_v42, %v2507_v60 }
 0x28c   :  { %v2513_v43 = vshll.u32 %v17331_v19, %v2507_v60  ;;  %v5063_v12 = vadd.s32 3, %v13964_v38  ;;  %v3685_v40 = vsel %vm3683_vm10, %v3684_v14, %v13945_v5  ;;  %v2516_v24 = vshll.u32 %v17332_v28, %v2507_v60 }
 0x28d   :  { %v2511_v48 = vshrl.u32 %v17331_v19, %v2508_v52  ;;  %v2514_v17 = vshrl.u32 %v17332_v28, %v2508_v52  ;;  %v3686_v53 = vadd.s32 %v3685_v40, %v3681_v32  ;;  %v2517_v27 = vshrl.u32 %v17333_v63, %v2508_v52 }
 0x28e   :  { %v2519_v46 = vshll.u32 %v17333_v63, %v2507_v60  ;;  %v2520_v22 = vshrl.u32 %v17369_v23, %v2508_v52  ;;  %v2522_v25 = vshll.u32 %v17369_v23, %v2507_v60  ;;  %v2523_v9 = vshrl.u32 %v17334_v1, %v2508_v52 }
 0x28f   :  { %v2512_v51 = vor.u32 %v2511_v48, %v2510_v26  ;;  %v2515_v41 = vor.u32 %v2514_v17, %v2513_v43  ;;  %v3687_v5 = vadd.s32 536870912, %v3686_v53  ;;  %v2509_v14 = vshrl.u32 %v17335_v42, %v2508_v52  ;;  %v17555_v48 = vld [vmem:[#allocation7_spill] sm:$0xff]  ;;  %v13992_v17 = vpop.permute.xlu0 %239 }
 0x290   :  { %v2518_v31 = vor.u32 %v2517_v27, %v2516_v24  ;;  %v2521_v10 = vor.u32 %v2520_v22, %v2519_v46  ;;  %v2524_v49 = vor.u32 %v2523_v9, %v2522_v25  ;;  %vm2525_vm6 = vcmp.lt.s32.totalorder %v2506_v8, 1  ;;  %17556 = vst [vmem:[#allocation14_spill] sm:$0xff] %v13992_v17 }
 0x291   :  { %vm2527_vm0 = vcmp.lt.s32.totalorder %v2506_v8, 3  ;;  %vm2528_vm3 = vcmp.lt.s32.totalorder %v2506_v8, 4  ;;  %v13987_v32 = vshrl.u32 %v3687_v5, 30  ;;  %v2533_v35 = vsel %vm2525_vm6, %v2512_v51, %v2515_v41 }
 0x292   :  { %v2530_v40 = vsel %vm2528_vm3, %v2518_v31, 2102212464  ;;  %v2534_v4 = vsel %vm2528_vm3, %v2521_v10, 920167782  ;;  %vm2526_vm2 = vcmp.lt.s32.totalorder %v2506_v8, 2  ;;  %v2537_v60 = vsel %vm2525_vm6, %v2515_v41, %v2518_v31 }
 0x293   :  { %17554 = vst [vmem:[#allocation68_spill] sm:$0xff] %v13987_v32  ;;  %v2535_v26 = vsel %vm2527_vm0, %v2518_v31, %v2534_v4  ;;  %v2538_v43 = vsel %vm2528_vm3, %v2524_v49, 1326507024  ;;  %v3689_v52 = vshll.u32 %v13987_v32, 30  ;;  %v2529_v9 = vsel %vm2525_vm6, %v2509_v14, %v2512_v51  ;;  %v17557_v31 = vld [vmem:[#allocation47_spill] sm:$0xff]  ;;  %v17558_v32 = vld [vmem:[#allocation46_spill] sm:$0xff] }
 0x294   :  { %v2531_v25 = vsel %vm2527_vm0, %v2515_v41, %v2530_v40  ;;  %v2536_v24 = vsel %vm2526_vm2, %v2533_v35, %v2535_v26  ;;  %v2539_v27 = vsel %vm2527_vm0, %v2521_v10, %v2538_v43  ;;  %v1147_v4 = vxor.u32 2147483648, %v17557_v31 }
 0x295   :  { %v13998_v46 = vmul.u32.u64.low %v13967_v61, %v2536_v24  ;;  %v13999_v22 = vmul.u32.u64.high %v13967_v61, %v2536_v24, %v13998_v46  ;;  %v14003_v49 = vsub.s32 %v3686_v53, %v3689_v52  ;;  %v2540_v5 = vsel %vm2526_vm2, %v2537_v60, %v2539_v27  ;;  %v175_v24 = vpop.permute.xlu1 %174 }
 0x296   :  { %v1150_v44 = vxor.u32 2147483648, %v17558_v32  ;;  %v4960_v51 = vand.u32 3, %v4959_v30  ;;  %v2532_v41 = vsel %vm2526_vm2, %v2529_v9, %v2531_v25  ;;  %v5064_v10 = vand.u32 3, %v5063_v12  ;;  %v245_v12 = vpop.permute.xlu0 %244  ;;  %v17561_v9 = vld [vmem:[#allocation10_spill] sm:$0xff] }
 0x297   :  { %v14009_v35 = vmul.u32.u64.low %v13967_v61, %v2540_v5  ;;  %v14010_v14 = vmul.u32.u64.high %v13967_v61, %v2540_v5, %v14009_v35  ;;  %v3692_v40 = vsub.s32 0, %v14003_v49  ;;  %v1041_v26 = vand.u32 3, %v13956_v33 }
 0x298   :  { %vm4962_vm4 = vcmp.eq.s32.totalorder %v4960_v51, 0  ;;  %vm4965_vm11 = vcmp.eq.s32.totalorder %v4960_v51, 2  ;;  %v2551_v53 = vadd.s32 1, %v13999_v22  ;;  %vm4961_vm10 = vcmp.lt.s32.totalorder %v4960_v51, 2 }
 0x299   :  { %v17559_v60 = vxor.u32 2147483648, %v17550_v59  ;;  %v17560_v8 = vxor.u32 2147483648, %v17553_v36  ;;  %v2548_v52 = vmul.u32 %v13967_v61, %v2532_v41  ;;  %vm5066_vm0 = vcmp.eq.s32.totalorder %v5064_v10, 0  ;;  %v17563_v41 = vld [vmem:[#allocation66_spill] sm:$0xff] }
 0x29a   :  { %vm2550_vm3 = vc.u32 %v14010_v14, %v13998_v46  ;;  %vm5065_vm2 = vcmp.lt.s32.totalorder %v5064_v10, 2  ;;  %v5068_v33 = vsel %vm5066_vm0, %v17558_v32, %v1147_v4  ;;  %vm5069_vm13 = vcmp.eq.s32.totalorder %v5064_v10, 2 }
 0x29b   :  { %v4964_v30 = vsel %vm4962_vm4, %v17553_v36, %v17559_v60  ;;  %v4967_v43 = vsel %vm4965_vm11, %v17560_v8, %v17550_v59  ;;  %v10064_v27 = vmin.u32 %v3692_v40, %v14003_v49  ;;  %v2552_v5 = vsel %vm2550_vm3, %v2551_v53, %v13999_v22 }
 0x29c   :  { %v4968_v25 = vsel %vm4961_vm10, %v4964_v30, %v4967_v43  ;;  %vm17562_vm4 = vweird.f32 %v17555_v48  ;;  %v5071_v51 = vsel %vm5069_vm13, %v1150_v44, %v17557_v31  ;;  %vm3216_vm11 = vcmp.lt.s32.totalorder %v17563_v41, 0 }
 0x29d   :  { %v4969_v61 = vsel %vm17562_vm4, nan, %v4968_v25  ;;  %v2553_v35 = vadd.s32 %v2552_v5, %v2548_v52  ;;  %v5072_v60 = vsel %vm5065_vm2, %v5068_v33, %v5071_v51  ;;  %vm1043_vm10 = vcmp.eq.s32.totalorder %v1041_v26, 0 }
 0x29e   :  { %vm1046_vm6 = vcmp.eq.s32.totalorder %v1041_v26, 2  ;;  %v17564_v30 = vand.u32 2147483647, %v17541_v54  ;;  %v17565_v10 = vmov 0  ;;  %vm17568_vm7 = vweird.f32 %v17561_v9 }
 0x29f   :  { %v5073_v22 = vsel %vm17568_vm7, nan, %v5072_v60  ;;  %v17569_v40 = vxor.u32 2147483648, %v17550_v59  ;;  %v1048_v43 = vsel %vm1046_vm6, %v17560_v8, %v17550_v59  ;;  %v1144_v52 = vand.u32 3, %v13964_v38  ;;  %v442_v38 = vpop.permute.xlu0 %441 }
 0x2a0   :  { %vm14034_vm0 = vcmp.le.f32.partialorder %v17564_v30, 0.7853982  ;;  %v17570_v25 = vshll.u32 %v13728_v55, %v13852_v50  ;;  %v17571_v5 = vsub.s32 4294967266, %v13938_v18  ;;  %v2554_v30 = vadd.s32 536870912, %v2553_v35 }
 0x2a1   :  { %v17566_v10 = vsel %vm14034_vm0, 4294967295, %v17565_v10  ;;  %v1045_v53 = vsel %vm1043_vm10, %v17553_v36, %v17569_v40  ;;  %v8431_v60 = vpack.c.bf16 %v5073_v22, %v4969_v61  ;;  %v17572_v17 = vand.u32 2147483647, %v17563_v41  ;;  %v386_v61 = vpop.permute.xlu1 %385 }
 0x2a2   :  { %17567 = vst [vmem:[#allocation29_spill] sm:$0xff] %v17566_v10  ;;  %v2259_v33 = vor.u32 %v13948_v20, %v17570_v25  ;;  %v2364_v51 = vadd.s32 127, %v17571_v5  ;;  %v17573_v40 = vmov 0  ;;  %v3694_v36 = vclz %v10064_v27  ;;  %v17580_v5 = vld [vmem:[#allocation9_spill] sm:$0xff] }
 0x2a3   :  { %vm14055_vm7 = vcmp.le.f32.partialorder %v17572_v17, 0.7853982  ;;  %v300_v59 = vmul.f32 %v17522_v16, %v245_v12  ;;  %vm1042_vm13 = vcmp.lt.s32.totalorder %v1041_v26, 2  ;;  %vm1146_vm6 = vcmp.eq.s32.totalorder %v1144_v52, 0 }
 0x2a4   :  { %v17574_v40 = vsel %vm14055_vm7, 4294967295, %v17573_v40  ;;  %v14060_v55 = vshrl.u32 %v2554_v30, 30  ;;  %vm17576_vm3 = vcmask 523264   ;;  %v1049_v50 = vsel %vm1042_vm13, %v1045_v53, %v1048_v43 }
 0x2a5   :  { %17575 = vst [vmem:[#allocation36_spill] sm:$0xff] %v17574_v40  ;;  %10451 = vmatmul.mubr.msk.bf16.gmra.mrb[8].mxu0 %vm17576_vm3, %v8431_v60  ;;  %v1148_v20 = vsel %vm1146_vm6, %v17558_v32, %v1147_v4  ;;  %vm1149_vm2 = vcmp.eq.s32.totalorder %v1144_v52, 2  ;;  %v2264_v17 = vand.u32 2147483647, %v13958_v62  ;;  %v2359_v22 = vsub.s32 32, %v13938_v18  ;;  %vm17582_vm6 = vmmov %vm17576_vm3 }
 0x2a6   :  { %vm1145_vm4 = vcmp.lt.s32.totalorder %v1144_v52, 2  ;;  %v1151_v27 = vsel %vm1149_vm2, %v1150_v44, %v17557_v31  ;;  %10454 = vmatprep.mubr.msk.bf16.mxu0 %vm17476_vm5, %v17436_v13  ;;  %v2365_v26 = vshll.u32 %v2364_v51, 23  ;;  %v2556_v12 = vshll.u32 %v14060_v55, 30 }
 0x2a7   :  { %v1152_v8 = vsel %vm1145_vm4, %v1148_v20, %v1151_v27  ;;  %v494_v53 = vmul.f32 %v11498_v39, %v442_v38  ;;  %vm17577_vm10 = vweird.f32 %v17555_v48  ;;  %vm17578_vm13 = vweird.f32 %v17561_v9 }
 0x2a8   :  { %v1050_v32 = vsel %vm17577_vm10, nan, %v1049_v50  ;;  %v1153_v62 = vsel %vm17578_vm13, nan, %v1152_v8  ;;  %v286_v4 = vmul.f32 %v17522_v16, %v175_v24  ;;  %v480_v43 = vmul.f32 %v11498_v39, %v386_v61 }
 0x2a9   :  { %v10065_v44 = vadd.s32 4294967294, %v3694_v36  ;;  %v14077_v31 = vsub.s32 %v2553_v35, %v2556_v12  ;;  %v8404_v52 = vpack.c.bf16 %v1153_v62, %v1050_v32  ;;  %v14079_v25 = vadd.f32 %v494_v53, %v300_v59 }
 0x2aa   :  { %11060 = vsinq.f32 %v13870_v3  ;;  %v2167_v51 = vsub.s32 4, %v17580_v5  ;;  %v2266_v30 = vcvt.s32.f32 %v2259_v33  ;;  %v14083_v48 = vadd.f32 %v480_v43, %v286_v4  ;;  %v390_v4 = vpop.permute.xlu1 %389 }
 0x2ab   :  { %17579 = vst [vmem:[#allocation40_spill] sm:$0xff] %v14079_v25  ;;  %11062 = vcosq.f32 %v13896_v0  ;;  %v2169_v9 = vsel %vm14034_vm0, %v17541_v54, %v13900_v21  ;;  %v2361_v24 = vshrl.u32 %v13907_v56, %v2359_v22  ;;  %10535 = vmatmul.mubr.msk.bf16.gmra.mrb[8].mxu1 %vm17582_vm6, %v8404_v52  ;;  %v4041_v35 = vand.u32 2139095040, %v14079_v25 }
 0x2ac   :  { %17581 = vst [vmem:[#allocation39_spill] sm:$0xff] %v14083_v48  ;;  %11064 = vsinq.f32 %v13896_v0  ;;  %v17583_v3 = vxor.u32 2147483648, %v13879_v2  ;;  %v2267_v60 = vmul.f32 %v2266_v30, %v2264_v17  ;;  %v2360_v36 = vshll.u32 %v13817_v58, %v13938_v18  ;;  %10538 = vmatprep.mubr.msk.bf16.mxu1 %vm17476_vm5, %v17436_v13 }
 0x2ad   :  { %v2366_v21 = vor.u32 4788187, %v2365_v26  ;;  %vm10066_vm3 = vcmp.lt.s32.totalorder %v10065_v44, 0  ;;  %v2559_v56 = vsub.s32 0, %v14077_v31  ;;  %v4042_v59 = vshrl.u32 %v4041_v35, 23 }
 0x2ae   :  { %v3299_v33 = vsel %vm3216_vm11, %v17583_v3, %v13879_v2  ;;  %v17584_v0 = vsub.s32 4, %v17542_v6  ;;  %vm17585_vm2 = vcmp.lt.s32.totalorder %v13219_v57, 0  ;;  %11066 = vcosq.f32 %v2169_v9 }
 0x2af   :  { %v3300_v2 = vsub.s32 4, %v13562_v15  ;;  %v2599_v18 = vand.u32 2139095040, %v14083_v48  ;;  %v3302_v58 = vsel %vm14055_vm7, %v17563_v41, %v3299_v33  ;;  %v2362_v50 = vor.u32 %v2361_v24, %v2360_v36 }
 0x2b0   :  { %v14109_v38 = vsel %vm17585_vm2, %v17584_v0, %v17542_v6  ;;  %v17194_v20 = vand.u32 2147483647, %v14079_v25  ;;  %v10079_v61 = vadd.s32 4294967169, %v4042_v59  ;;  %vm17587_vm4 = vcmp.lt.s32.totalorder %v17541_v54, 0 }
 0x2b1   :  { %17586 = vst [vmem:[#allocation35_spill] sm:$0xff] %v14109_v38  ;;  %v14120_v17 = vsel %vm17587_vm4, %v2167_v51, %v17580_v5  ;;  %11068 = vsinq.f32 %v2169_v9  ;;  %v14122_v6 = vsel %vm10066_vm3, 0, %v10065_v44  ;;  %v2600_v22 = vshrl.u32 %v2599_v18, 23 }
 0x2b2   :  { %17588 = vst [vmem:[#allocation7_spill] sm:$0xff] %v14120_v17  ;;  %v2268_v27 = vxor.u32 2147483648, %v2267_v60  ;;  %v2367_v26 = vand.u32 2147483647, %v2366_v21  ;;  %v10020_v12 = vmin.u32 %v2559_v56, %v14077_v31  ;;  %v4048_v8 = vadd.s32 1, %v10079_v61 }
 0x2b3   :  { %v14128_v53 = vsel %vm3216_vm11, %v3300_v2, %v13562_v15  ;;  %11070 = vcosq.f32 %v3302_v58  ;;  %v14132_v32 = vmul.f32 %v17522_v16, %v13740_v45  ;;  %v10023_v62 = vadd.s32 4294967169, %v2600_v22 }
 0x2b4   :  { %17589 = vst [vmem:[#allocation47_spill] sm:$0xff] %v14128_v53  ;;  %v2369_v43 = vcvt.s32.f32 %v2362_v50  ;;  %v3702_v44 = vsub.s32 4294967266, %v14122_v6  ;;  %v4045_v52 = vand.u32 8388607, %v17194_v20  ;;  %vm4049_vm10 = vcmp.gt.s32.totalorder %v4048_v8, 0  ;;  %v14137_v5 = vpop.eup %11060 }
 0x2b5   :  { %17590 = vst [vmem:[#allocation46_spill] sm:$0xff] %v14132_v32  ;;  %17591 = vst [vmem:[#allocation10_spill] sm:$0xff] %v14137_v5  ;;  %11072 = vsinq.f32 %v3302_v58  ;;  %vm2186_vm11 = vcmp.lt.s32.totalorder %v13583_v29, 0  ;;  %v4050_v51 = vsel %vm4049_vm10, %v4048_v8, 0  ;;  %v14141_v30 = vpop.eup %11062  ;;  %v2561_v24 = vclz %v10020_v12  ;;  %v17656_v32 = vld [vmem:[#allocation21_spill] sm:$0xff] }
 0x2b6   :  { %17592 = vst [vmem:[#allocation9_spill] sm:$0xff] %v14141_v30  ;;  %v14145_v45 = vsel %vm2186_vm11, %v2268_v27, %v2267_v60  ;;  %v14147_v9 = vmul.f32 %v2369_v43, %v2367_v26  ;;  %v481_v35 = vmul.f32 %v11498_v39, %v390_v4  ;;  %v14150_v3 = vpop.eup %11064  ;;  %v3682_v33 = vadd.s32 %v13944_v37, %v13951_v11  ;;  %v17595_v26 = vld [vmem:[#allocation53_spill] sm:$0xff] }
 0x2b7   :  { %17593 = vst [vmem:[#allocation74_spill] sm:$0xff] %v14150_v3  ;;  %v3698_v36 = vsub.s32 32, %v14122_v6  ;;  %v4052_v21 = vand.u32 31, %v4050_v51  ;;  %v2606_v56 = vadd.s32 1, %v10023_v62  ;;  %v14155_v59 = vadd.s32 127, %v3702_v44 }
 0x2b8   :  { %v4046_v0 = vor.u32 8388608, %v4045_v52  ;;  %v4051_v2 = vshrl.u32 %v4050_v51, 5  ;;  %v14158_v18 = vpop.eup %11066  ;;  %v10021_v37 = vadd.s32 4294967294, %v2561_v24  ;;  %v14166_v12 = vadd.f32 %v481_v35, %v17595_v26 }
 0x2b9   :  { %17594 = vst [vmem:[#allocation75_spill] sm:$0xff] %v14158_v18  ;;  %v4053_v58 = vsub.s32 32, %v4052_v21  ;;  %v4055_v50 = vshll.u32 %v17335_v42, %v4052_v21  ;;  %v4058_v61 = vshll.u32 %v17331_v19, %v4052_v21  ;;  %v4061_v22 = vshll.u32 %v17332_v28, %v4052_v21 }
 0x2ba   :  { %v4064_v11 = vshll.u32 %v17333_v63, %v4052_v21  ;;  %v4067_v27 = vshll.u32 %v17369_v23, %v4052_v21  ;;  %17596 = vst [vmem:[#allocation53_spill] sm:$0xff] %v14166_v12  ;;  %vm2607_vm13 = vcmp.gt.s32.totalorder %v2606_v56, 0  ;;  %v4086_v24 = vshll.u32 %v4046_v0, 8 }
 0x2bb   :  { %v14168_v8 = vpop.eup %11068  ;;  %v4056_v62 = vshrl.u32 %v17331_v19, %v4053_v58  ;;  %v4059_v4 = vshrl.u32 %v17332_v28, %v4053_v58  ;;  %v4062_v43 = vshrl.u32 %v17333_v63, %v4053_v58  ;;  %v4054_v44 = vshrl.u32 %v17335_v42, %v4053_v58 }
 0x2bc   :  { %17597 = vst [vmem:[#allocation76_spill] sm:$0xff] %v14168_v8  ;;  %v4065_v52 = vshrl.u32 %v17369_v23, %v4053_v58  ;;  %v4068_v51 = vshrl.u32 %v17334_v1, %v4053_v58  ;;  %vm4070_vm6 = vcmp.lt.s32.totalorder %v4051_v2, 1  ;;  %vm10022_vm3 = vcmp.lt.s32.totalorder %v10021_v37, 0 }
 0x2bd   :  { %v14176_v21 = vpop.eup %11070  ;;  %v4057_v35 = vor.u32 %v4056_v62, %v4055_v50  ;;  %v4060_v26 = vor.u32 %v4059_v4, %v4058_v61  ;;  %v4063_v20 = vor.u32 %v4062_v43, %v4061_v22  ;;  %v2608_v41 = vsel %vm2607_vm13, %v2606_v56, 0 }
 0x2be   :  { %17598 = vst [vmem:[#allocation77_spill] sm:$0xff] %v14176_v21  ;;  %v4066_v15 = vor.u32 %v4065_v52, %v4064_v11  ;;  %v4069_v60 = vor.u32 %v4068_v51, %v4067_v27  ;;  %vm4071_vm2 = vcmp.lt.s32.totalorder %v4051_v2, 2  ;;  %vm4072_vm4 = vcmp.lt.s32.totalorder %v4051_v2, 3 }
 0x2bf   :  { %v14178_v40 = vpop.eup %11072  ;;  %vm4073_vm10 = vcmp.lt.s32.totalorder %v4051_v2, 4  ;;  %v4078_v53 = vsel %vm4070_vm6, %v4057_v35, %v4060_v26  ;;  %v4074_v57 = vsel %vm4070_vm6, %v4054_v44, %v4057_v35  ;;  %v4082_v0 = vsel %vm4070_vm6, %v4060_v26, %v4063_v20 }
 0x2c0   :  { %17599 = vst [vmem:[#allocation78_spill] sm:$0xff] %v14178_v40  ;;  %v4075_v30 = vsel %vm4073_vm10, %v4063_v20, 2102212464  ;;  %v4079_v58 = vsel %vm4073_vm10, %v4066_v15, 920167782  ;;  %v14183_v11 = vsel %vm10022_vm3, 0, %v10021_v37  ;;  %v14199_v51 = vshrl.u32 %v3682_v33, %v3698_v36 }
 0x2c1   :  { %v4076_v3 = vsel %vm4072_vm4, %v4060_v26, %v4075_v30  ;;  %v4080_v21 = vsel %vm4072_vm4, %v4063_v20, %v4079_v58  ;;  %v4083_v50 = vsel %vm4073_vm10, %v4069_v60, 1326507024  ;;  %v17600_v61 = vand.u32 2147483647, %v14083_v48 }
 0x2c2   :  { %v4081_v56 = vsel %vm4071_vm2, %v4078_v53, %v4080_v21  ;;  %v4084_v27 = vsel %vm4072_vm4, %v4066_v15, %v4083_v50  ;;  %v14186_v62 = vshrl.u32 %v2608_v41, 5  ;;  %v4077_v4 = vsel %vm4071_vm2, %v4074_v57, %v4076_v3 }
 0x2c3   :  { %v2603_v22 = vand.u32 8388607, %v17600_v61  ;;  %v4085_v43 = vsel %vm4071_vm2, %v4082_v0, %v4084_v27  ;;  %v14190_v44 = vmul.u32.u64.low %v4086_v24, %v4081_v56  ;;  %v14191_v52 = vmul.u32.u64.high %v4086_v24, %v4081_v56, %v14190_v44 }
 0x2c4   :  { %v14196_v30 = vmul.u32.u64.low %v4086_v24, %v4085_v43  ;;  %v14197_v60 = vmul.u32.u64.high %v4086_v24, %v4085_v43, %v14196_v30  ;;  %v2610_v37 = vand.u32 31, %v2608_v41  ;;  %v2702_v57 = vand.u32 2139095040, %v14166_v12 }
 0x2c5   :  { %v2604_v15 = vor.u32 8388608, %v2603_v22  ;;  %v2569_v3 = vsub.s32 4294967266, %v14183_v11  ;;  %v4093_v2 = vmul.u32 %v4086_v24, %v4077_v4  ;;  %vm2628_vm13 = vcmp.lt.s32.totalorder %v14186_v62, 1 }
 0x2c6   :  { %v2611_v21 = vsub.s32 32, %v2610_v37  ;;  %v4096_v35 = vadd.s32 1, %v14191_v52  ;;  %v2613_v26 = vshll.u32 %v17335_v42, %v2610_v37  ;;  %v2616_v58 = vshll.u32 %v17331_v19, %v2610_v37 }
 0x2c7   :  { %vm2629_vm6 = vcmp.lt.s32.totalorder %v14186_v62, 2  ;;  %vm4095_vm3 = vc.u32 %v14197_v60, %v14190_v44  ;;  %v2619_v33 = vshll.u32 %v17332_v28, %v2610_v37  ;;  %v2622_v36 = vshll.u32 %v17333_v63, %v2610_v37 }
 0x2c8   :  { %v2614_v41 = vshrl.u32 %v17331_v19, %v2611_v21  ;;  %v4097_v24 = vsel %vm4095_vm3, %v4096_v35, %v14191_v52  ;;  %v2617_v0 = vshrl.u32 %v17332_v28, %v2611_v21  ;;  %v2620_v50 = vshrl.u32 %v17333_v63, %v2611_v21 }
 0x2c9   :  { %v2623_v61 = vshrl.u32 %v17369_v23, %v2611_v21  ;;  %v17601_v22 = vand.u32 2147483647, %v13583_v29  ;;  %v17602_v56 = vmov 0  ;;  %v4098_v27 = vadd.s32 %v4097_v24, %v4093_v2 }
 0x2ca   :  { %v2615_v4 = vor.u32 %v2614_v41, %v2613_v26  ;;  %v2625_v43 = vshll.u32 %v17369_v23, %v2610_v37  ;;  %v2626_v30 = vshrl.u32 %v17334_v1, %v2611_v21  ;;  %v2618_v53 = vor.u32 %v2617_v0, %v2616_v58 }
 0x2cb   :  { %vm14220_vm2 = vcmp.le.f32.partialorder %v17601_v22, 0.7853982  ;;  %v2621_v52 = vor.u32 %v2620_v50, %v2619_v33  ;;  %v2624_v35 = vor.u32 %v2623_v61, %v2622_v36  ;;  %vm2630_vm4 = vcmp.lt.s32.totalorder %v14186_v62, 3 }
 0x2cc   :  { %v17603_v56 = vsel %vm14220_vm2, 4294967295, %v17602_v56  ;;  %v4099_v20 = vadd.s32 536870912, %v4098_v27  ;;  %v2627_v40 = vor.u32 %v2626_v30, %v2625_v43  ;;  %vm2631_vm10 = vcmp.lt.s32.totalorder %v14186_v62, 4 }
 0x2cd   :  { %17604 = vst [vmem:[#allocation79_spill] sm:$0xff] %v17603_v56  ;;  %v2703_v38 = vshrl.u32 %v2702_v57, 23  ;;  %v2633_v22 = vsel %vm2631_vm10, %v2621_v52, 2102212464  ;;  %v2636_v54 = vsel %vm2628_vm13, %v2615_v4, %v2618_v53  ;;  %v2637_v2 = vsel %vm2631_vm10, %v2624_v35, 920167782 }
 0x2ce   :  { %v2640_v37 = vsel %vm2628_vm13, %v2618_v53, %v2621_v52  ;;  %vm2289_vm3 = vcmp.lt.s32.totalorder %v13603_v47, 0  ;;  %v14233_v26 = vshrl.u32 %v4099_v20, 30  ;;  %v2612_v58 = vshrl.u32 %v17335_v42, %v2611_v21 }
 0x2cf   :  { %v2638_v41 = vsel %vm2630_vm4, %v2621_v52, %v2637_v2  ;;  %v2641_v33 = vsel %vm2631_vm10, %v2627_v40, 1326507024  ;;  %v2644_v24 = vshll.u32 %v2604_v15, 8  ;;  %v10027_v0 = vadd.s32 4294967169, %v2703_v38 }
 0x2d0   :  { %v2639_v57 = vsel %vm2629_vm6, %v2636_v54, %v2638_v41  ;;  %v2642_v36 = vsel %vm2630_vm4, %v2624_v35, %v2641_v33  ;;  %v4101_v50 = vshll.u32 %v14233_v26, 30  ;;  %v2632_v20 = vsel %vm2628_vm13, %v2612_v58, %v2615_v4 }
 0x2d1   :  { %v2634_v21 = vsel %vm2630_vm4, %v2618_v53, %v2633_v22  ;;  %v2643_v61 = vsel %vm2629_vm6, %v2640_v37, %v2642_v36  ;;  %v14252_v54 = vmul.u32.u64.low %v2644_v24, %v2639_v57  ;;  %v14253_v30 = vmul.u32.u64.high %v2644_v24, %v2639_v57, %v14252_v54 }
 0x2d2   :  { %v14249_v40 = vmul.u32.u64.low %v2644_v24, %v2643_v61  ;;  %v14250_v43 = vmul.u32.u64.high %v2644_v24, %v2643_v61, %v14249_v40  ;;  %v17605_v38 = vsub.s32 4, %v13724_v34  ;;  %v2570_v4 = vadd.s32 127, %v2569_v3 }
 0x2d3   :  { %v17204_v53 = vand.u32 2147483647, %v14166_v12  ;;  %v2709_v52 = vadd.s32 1, %v10027_v0  ;;  %v14268_v35 = vsel %vm14220_vm2, %v13583_v29, %v14145_v45  ;;  %v2371_v22 = vxor.u32 2147483648, %v14147_v9 }
 0x2d4   :  { %v14261_v15 = vsel %vm2186_vm11, %v17605_v38, %v13724_v34  ;;  %v2373_v2 = vsub.s32 4, %v13793_v7  ;;  %v2635_v37 = vsel %vm2629_vm6, %v2632_v20, %v2634_v21  ;;  %v17607_v34 = vshll.u32 %v14003_v49, %v14122_v6 }
 0x2d5   :  { %17606 = vst [vmem:[#allocation80_spill] sm:$0xff] %v14261_v15  ;;  %v17608_v58 = vshll.u32 %v14155_v59, 23  ;;  %v14280_v33 = vsub.s32 %v4098_v27, %v4101_v50  ;;  %vm2710_vm11 = vcmp.gt.s32.totalorder %v2709_v52, 0  ;;  %v2565_v45 = vsub.s32 32, %v14183_v11 }
 0x2d6   :  { %v3701_v3 = vor.u32 %v14199_v51, %v17607_v34  ;;  %vm2653_vm13 = vc.u32 %v14250_v43, %v14252_v54  ;;  %v2654_v57 = vadd.s32 1, %v14253_v30  ;;  %v2711_v62 = vsel %vm2710_vm11, %v2709_v52, 0 }
 0x2d7   :  { %v3705_v41 = vor.u32 4788187, %v17608_v58  ;;  %v2571_v36 = vshll.u32 %v2570_v4, 23  ;;  %v2651_v0 = vmul.u32 %v2644_v24, %v2635_v37  ;;  %v2706_v49 = vand.u32 8388607, %v17204_v53 }
 0x2d8   :  { %v2713_v6 = vand.u32 31, %v2711_v62  ;;  %11074 = vcosq.f32 %v14268_v35  ;;  %v14292_v59 = vsel %vm2289_vm3, %v2373_v2, %v13793_v7  ;;  %v2549_v51 = vadd.s32 %v13998_v46, %v14010_v14 }
 0x2d9   :  { %17609 = vst [vmem:[#allocation81_spill] sm:$0xff] %v14292_v59  ;;  %v2655_v27 = vsel %vm2653_vm13, %v2654_v57, %v14253_v30  ;;  %v14300_v24 = vsel %vm2289_vm3, %v2371_v22, %v14147_v9  ;;  %v4104_v50 = vsub.s32 0, %v14280_v33  ;;  %v3706_v61 = vand.u32 2147483647, %v3705_v41  ;;  %v17611_v59 = vld [vmem:[#allocation13_spill] sm:$0xff] }
 0x2da   :  { %v2656_v20 = vadd.s32 %v2655_v27, %v2651_v0  ;;  %v2714_v21 = vsub.s32 32, %v2713_v6  ;;  %v3708_v40 = vcvt.s32.f32 %v3701_v3  ;;  %v2566_v7 = vshll.u32 %v14077_v31, %v14183_v11 }
 0x2db   :  { %v2567_v38 = vshrl.u32 %v2549_v51, %v2565_v45  ;;  %v14305_v4 = vor.u32 4788187, %v2571_v36  ;;  %v2707_v14 = vor.u32 8388608, %v2706_v49  ;;  %v10080_v37 = vmin.u32 %v4104_v50, %v14280_v33 }
 0x2dc   :  { %v2657_v46 = vadd.s32 536870912, %v2656_v20  ;;  %v2717_v30 = vshrl.u32 %v17331_v19, %v2714_v21  ;;  %v2720_v52 = vshrl.u32 %v17332_v28, %v2714_v21  ;;  %v2723_v9 = vshrl.u32 %v17333_v63, %v2714_v21 }
 0x2dd   :  { %v2726_v22 = vshrl.u32 %v17369_v23, %v2714_v21  ;;  %v2729_v2 = vshrl.u32 %v17334_v1, %v2714_v21  ;;  %v2716_v31 = vshll.u32 %v17335_v42, %v2713_v6  ;;  %v2719_v11 = vshll.u32 %v17331_v19, %v2713_v6 }
 0x2de   :  { %v14313_v34 = vshrl.u32 %v2657_v46, 30  ;;  %v2712_v3 = vshrl.u32 %v2711_v62, 5  ;;  %v2722_v58 = vshll.u32 %v17332_v28, %v2713_v6  ;;  %v2725_v41 = vshll.u32 %v17333_v63, %v2713_v6 }
 0x2df   :  { %v2728_v45 = vshll.u32 %v17369_v23, %v2713_v6  ;;  %v14320_v57 = vmul.f32 %v3708_v40, %v3706_v61  ;;  %v2718_v0 = vor.u32 %v2717_v30, %v2716_v31  ;;  %v2721_v49 = vor.u32 %v2720_v52, %v2719_v11 }
 0x2e0   :  { %17610 = vst [vmem:[#allocation82_spill] sm:$0xff] %v14313_v34  ;;  %v2659_v36 = vshll.u32 %v14313_v34, 30  ;;  %v2568_v51 = vor.u32 %v2567_v38, %v2566_v7  ;;  %v2724_v27 = vor.u32 %v2723_v9, %v2722_v58  ;;  %v2727_v50 = vor.u32 %v2726_v22, %v2725_v41 }
 0x2e1   :  { %v2730_v46 = vor.u32 %v2729_v2, %v2728_v45  ;;  %v2573_v53 = vand.u32 2147483647, %v14305_v4  ;;  %v2747_v62 = vshll.u32 %v2707_v14, 8  ;;  %v1243_v15 = vsel %vm12505_vm15, 0, %v17611_v59  ;;  %v17618_v4 = vld [vmem:[#allocation41_spill] sm:$0xff] }
 0x2e2   :  { %v14324_v29 = vsub.s32 %v2656_v20, %v2659_v36  ;;  %v14329_v6 = vpop.eup %11074  ;;  %v17614_v61 = vand.u32 2147483647, %v13603_v47  ;;  %v17615_v40 = vmov 0  ;;  %v4106_v7 = vclz %v10080_v37 }
 0x2e3   :  { %17613 = vst [vmem:[#allocation13_spill] sm:$0xff] %v14329_v6  ;;  %v2715_v38 = vshrl.u32 %v17335_v42, %v2714_v21  ;;  %vm2731_vm4 = vcmp.lt.s32.totalorder %v2712_v3, 1  ;;  %v14341_v14 = vsel %vm12869_vm8, 0, %v17618_v4  ;;  %vm2733_vm15 = vcmp.lt.s32.totalorder %v2712_v3, 3 }
 0x2e4   :  { %vm14333_vm6 = vcmp.le.f32.partialorder %v17614_v61, 0.7853982  ;;  %v2662_v56 = vsub.s32 0, %v14324_v29  ;;  %vm2734_vm10 = vcmp.lt.s32.totalorder %v2712_v3, 4  ;;  %v2739_v59 = vsel %vm2731_vm4, %v2718_v0, %v2721_v49 }
 0x2e5   :  { %v17616_v40 = vsel %vm14333_vm6, 4294967295, %v17615_v40  ;;  %v2736_v30 = vsel %vm2734_vm10, %v2724_v27, 2102212464  ;;  %v2740_v52 = vsel %vm2734_vm10, %v2727_v50, 920167782  ;;  %v2743_v9 = vsel %vm2731_vm4, %v2721_v49, %v2724_v27 }
 0x2e6   :  { %17617 = vst [vmem:[#allocation31_spill] sm:$0xff] %v17616_v40  ;;  %v2744_v22 = vsel %vm2734_vm10, %v2730_v46, 1326507024  ;;  %v10024_v2 = vmin.u32 %v2662_v56, %v14324_v29  ;;  %vm2732_vm3 = vcmp.lt.s32.totalorder %v2712_v3, 2  ;;  %v2741_v21 = vsel %vm2733_vm15, %v2724_v27, %v2740_v52 }
 0x2e7   :  { %v5167_v37 = vadd.s32 3, %v1243_v15  ;;  %v10081_v31 = vadd.s32 4294967294, %v4106_v7  ;;  %v2735_v11 = vsel %vm2731_vm4, %v2715_v38, %v2718_v0  ;;  %v2742_v58 = vsel %vm2732_vm3, %v2739_v59, %v2741_v21  ;;  %v17620_v0 = vld [vmem:[#allocation14_spill] sm:$0xff]  ;;  %v17622_v38 = vld [vmem:[#allocation44_spill] sm:$0xff] }
 0x2e8   :  { %v2745_v41 = vsel %vm2733_vm15, %v2727_v50, %v2744_v22  ;;  %v2664_v45 = vclz %v10024_v2  ;;  %v2737_v36 = vsel %vm2733_vm15, %v2721_v49, %v2736_v30  ;;  %v5271_v4 = vadd.s32 3, %v14341_v14  ;;  %v17623_v30 = vld [vmem:[#allocation37_spill] sm:$0xff] }
 0x2e9   :  { %v2746_v61 = vsel %vm2732_vm3, %v2743_v9, %v2745_v41  ;;  %v14354_v56 = vmul.u32.u64.low %v2747_v62, %v2742_v58  ;;  %v14355_v6 = vmul.u32.u64.high %v2747_v62, %v2742_v58, %v14354_v56  ;;  %11076 = vsinq.f32 %v14268_v35  ;;  %v17625_v41 = vld [vmem:[#allocation48_spill] sm:$0xff]  ;;  %v17629_v35 = vld [vmem:[#allocation30_spill] sm:$0xff] }
 0x2ea   :  { %v14351_v46 = vmul.u32.u64.low %v2747_v62, %v2746_v61  ;;  %v14352_v20 = vmul.u32.u64.high %v2747_v62, %v2746_v61, %v14351_v46  ;;  %v14361_v27 = vmul.f32 %v17522_v16, %v17620_v0  ;;  %v2575_v50 = vcvt.s32.f32 %v2568_v51  ;;  %v17624_v51 = vld [vmem:[#allocation50_spill] sm:$0xff] }
 0x2eb   :  { %v5168_v7 = vand.u32 3, %v5167_v37  ;;  %vm10082_vm8 = vcmp.lt.s32.totalorder %v10081_v31, 0  ;;  %v2738_v49 = vsel %vm2732_vm3, %v2735_v11, %v2737_v36  ;;  %v1250_v59 = vxor.u32 2147483648, %v17622_v38  ;;  %v17626_v46 = vld [vmem:[#allocation8_spill] sm:$0xff] }
 0x2ec   :  { %17621 = vst [vmem:[#allocation41_spill] sm:$0xff] %v14361_v27  ;;  %v1253_v52 = vxor.u32 2147483648, %v17623_v30  ;;  %v14370_v9 = vsel %vm14333_vm6, %v13603_v47, %v14300_v24  ;;  %v14373_v22 = vmul.f32 %v2575_v50, %v2573_v53  ;;  %v10025_v2 = vadd.s32 4294967294, %v2664_v45  ;;  %v190_v50 = vpop.permute.xlu1 %189 }
 0x2ed   :  { %vm2756_vm11 = vc.u32 %v14352_v20, %v14354_v56  ;;  %v2757_v3 = vadd.s32 1, %v14355_v6  ;;  %v1353_v21 = vxor.u32 2147483648, %v17624_v51  ;;  %v5272_v37 = vand.u32 3, %v5271_v4  ;;  %v17627_v4 = vld [vmem:[#allocation12_spill] sm:$0xff] }
 0x2ee   :  { %v14379_v11 = vsel %vm10082_vm8, 0, %v10081_v31  ;;  %v2754_v58 = vmul.u32 %v2747_v62, %v2738_v49  ;;  %vm5170_vm13 = vcmp.eq.s32.totalorder %v5168_v7, 0  ;;  %vm5173_vm4 = vcmp.eq.s32.totalorder %v5168_v7, 2 }
 0x2ef   :  { %v2758_v24 = vsel %vm2756_vm11, %v2757_v3, %v14355_v6  ;;  %v1356_v36 = vxor.u32 2147483648, %v17625_v41  ;;  %v5172_v53 = vsel %vm5170_vm13, %v17623_v30, %v1250_v59  ;;  %v5175_v45 = vsel %vm5173_vm4, %v1253_v52, %v17622_v38 }
 0x2f0   :  { %vm10026_vm15 = vcmp.lt.s32.totalorder %v10025_v2, 0  ;;  %v2759_v61 = vadd.s32 %v2758_v24, %v2754_v58  ;;  %v1247_v0 = vand.u32 3, %v1243_v15  ;;  %v4114_v31 = vsub.s32 4294967266, %v14379_v11 }
 0x2f1   :  { %vm5169_vm8 = vcmp.lt.s32.totalorder %v5168_v7, 2  ;;  %vm5274_vm7 = vcmp.eq.s32.totalorder %v5272_v37, 0  ;;  %vm5277_vm11 = vcmp.eq.s32.totalorder %v5272_v37, 2  ;;  %v14389_v3 = vsel %vm10026_vm15, 0, %v10025_v2 }
 0x2f2   :  { %v2760_v62 = vadd.s32 536870912, %v2759_v61  ;;  %v5176_v6 = vsel %vm5169_vm8, %v5172_v53, %v5175_v45  ;;  %v5276_v49 = vsel %vm5274_vm7, %v17625_v41, %v1353_v21  ;;  %vm5273_vm13 = vcmp.lt.s32.totalorder %v5272_v37, 2 }
 0x2f3   :  { %v5279_v58 = vsel %vm5277_vm11, %v1356_v36, %v17624_v51  ;;  %v1350_v24 = vand.u32 3, %v14341_v14  ;;  %v14393_v15 = vpop.eup %11076  ;;  %vm17225_vm4 = vcmp.lt.s32.totalorder %v17629_v35, 0  ;;  %vm1249_vm3 = vcmp.eq.s32.totalorder %v1247_v0, 0 }
 0x2f4   :  { %17628 = vst [vmem:[#allocation42_spill] sm:$0xff] %v14393_v15  ;;  %v14396_v27 = vshrl.u32 %v2760_v62, 30  ;;  %v5280_v7 = vsel %vm5273_vm13, %v5276_v49, %v5279_v58  ;;  %vm1252_vm10 = vcmp.eq.s32.totalorder %v1247_v0, 2  ;;  %vm17631_vm8 = vweird.f32 %v17626_v46  ;;  %v398_v58 = vpop.permute.xlu1 %397 }
 0x2f5   :  { %v5177_v53 = vsel %vm17631_vm8, nan, %v5176_v6  ;;  %vm17632_vm7 = vweird.f32 %v17627_v4  ;;  %v1251_v37 = vsel %vm1249_vm3, %v17623_v30, %v1250_v59  ;;  %v1254_v45 = vsel %vm1252_vm10, %v1253_v52, %v17622_v38 }
 0x2f6   :  { %17630 = vst [vmem:[#allocation14_spill] sm:$0xff] %v14396_v27  ;;  %v5281_v2 = vsel %vm17632_vm7, nan, %v5280_v7  ;;  %v4094_v14 = vadd.s32 %v14190_v44, %v14197_v60  ;;  %v4110_v47 = vsub.s32 32, %v14379_v11  ;;  %v2762_v62 = vshll.u32 %v14396_v27, 30 }
 0x2f7   :  { %v8432_v49 = vpack.c.bf16 %v5281_v2, %v5177_v53  ;;  %v17633_v15 = vand.u32 2147483647, %v17629_v35  ;;  %v17634_v6 = vmov 0  ;;  %v4115_v7 = vadd.s32 127, %v4114_v31 }
 0x2f8   :  { %v2672_v59 = vsub.s32 4294967266, %v14389_v3  ;;  %vm1248_vm3 = vcmp.lt.s32.totalorder %v1247_v0, 2  ;;  %vm1351_vm10 = vcmp.lt.s32.totalorder %v1350_v24, 2  ;;  %v14415_v38 = vsub.s32 %v2759_v61, %v2762_v62 }
 0x2f9   :  { %vm14410_vm15 = vcmp.le.f32.partialorder %v17633_v15, 0.7853982  ;;  %vm17637_vm11 = vcmask 523264   ;;  %v1255_v44 = vsel %vm1248_vm3, %v1251_v37, %v1254_v45  ;;  %vm1352_vm13 = vcmp.eq.s32.totalorder %v1350_v24, 0 }
 0x2fa   :  { %v17635_v6 = vsel %vm14410_vm15, 4294967295, %v17634_v6  ;;  %10455 = vmatmul.mubr.msk.bf16.gmra.mrb[12].mxu0 %vm17637_vm11, %v8432_v49  ;;  %vm1355_vm8 = vcmp.eq.s32.totalorder %v1350_v24, 2  ;;  %v1354_v60 = vsel %vm1352_vm13, %v17625_v41, %v1353_v21  ;;  %v289_v52 = vmul.f32 %v17522_v16, %v190_v50  ;;  %v17642_v24 = vld [vmem:[#allocation68_spill] sm:$0xff] }
 0x2fb   :  { %17636 = vst [vmem:[#allocation44_spill] sm:$0xff] %v17635_v6  ;;  %v1357_v30 = vsel %vm1355_vm8, %v1356_v36, %v17624_v51  ;;  %v483_v15 = vmul.f32 %v11498_v39, %v398_v58  ;;  %10458 = vmatprep.mubr.msk.bf16.mxu0 %vm17476_vm5, %v17436_v13  ;;  %v4111_v61 = vshll.u32 %v14280_v33, %v14379_v11  ;;  %v2765_v31 = vsub.s32 0, %v14415_v38  ;;  %v17641_v36 = vld [vmem:[#allocation26_spill] sm:$0xff] }
 0x2fc   :  { %v4112_v0 = vshrl.u32 %v4094_v14, %v4110_v47  ;;  %v1358_v53 = vsel %vm1351_vm10, %v1354_v60, %v1357_v30  ;;  %v4116_v2 = vshll.u32 %v4115_v7, 23  ;;  %vm17638_vm7 = vweird.f32 %v17626_v46  ;;  %v17644_v14 = vld [vmem:[#allocation52_spill] sm:$0xff] }
 0x2fd   :  { %v1256_v21 = vsel %vm17638_vm7, nan, %v1255_v44  ;;  %vm17639_vm3 = vweird.f32 %v17627_v4  ;;  %v14431_v41 = vadd.f32 %v483_v15, %v289_v52  ;;  %11078 = vcosq.f32 %v14370_v9 }
 0x2fe   :  { %v1359_v51 = vsel %vm17639_vm3, nan, %v1358_v53  ;;  %vm17224_vm11 = vcmp.lt.s32.totalorder %v17641_v36, 0  ;;  %v10028_v50 = vmin.u32 %v2765_v31, %v14415_v38  ;;  %11080 = vsinq.f32 %v14370_v9 }
 0x2ff   :  { %17640 = vst [vmem:[#allocation37_spill] sm:$0xff] %v14431_v41  ;;  %v8405_v33 = vpack.c.bf16 %v1359_v51, %v1256_v21  ;;  %v2673_v47 = vadd.s32 127, %v2672_v59  ;;  %v17213_v11 = vand.u32 2147483647, %v14431_v41  ;;  %v2908_v46 = vand.u32 2139095040, %v14431_v41  ;;  %v17647_v21 = vld [vmem:[#allocation67_spill] sm:$0xff] }
 0x300   :  { %v2577_v4 = vxor.u32 2147483648, %v14373_v22  ;;  %v2767_v45 = vclz %v10028_v50  ;;  %vm17643_vm10 = vcmask 523264   ;;  %v1449_v49 = vsel %vm13168_vm9, 0, %v17644_v14  ;;  %v17657_v41 = vld [vmem:[#allocation15_spill] sm:$0xff] }
 0x301   :  { %10539 = vmatmul.mubr.msk.bf16.gmra.mrb[12].mxu1 %vm17643_vm10, %v8405_v33  ;;  %v17646_v58 = vxor.u32 2147483648, %v14320_v57  ;;  %v14450_v7 = vor.u32 %v4112_v0, %v4111_v61  ;;  %v14452_v59 = vor.u32 4788187, %v4116_v2  ;;  %v2909_v44 = vshrl.u32 %v2908_v46, 23 }
 0x302   :  { %10542 = vmatprep.mubr.msk.bf16.mxu1 %vm17476_vm5, %v17436_v13  ;;  %v2668_v30 = vsub.s32 32, %v14389_v3  ;;  %v10029_v52 = vadd.s32 4294967294, %v2767_v45  ;;  %v2912_v15 = vand.u32 8388607, %v17213_v11  ;;  %v2674_v31 = vshll.u32 %v2673_v47, 23  ;;  %v17652_v11 = vld [vmem:[#allocation3_spill] sm:$0xff] }
 0x303   :  { %v3711_v9 = vsel %vm17225_vm4, %v17646_v58, %v14320_v57  ;;  %v10035_v53 = vadd.s32 4294967169, %v2909_v44  ;;  %v1552_v61 = vsel %vm13340_vm14, 0, %v17647_v21  ;;  %v5375_v0 = vadd.s32 3, %v1449_v49 }
 0x304   :  { %v14466_v2 = vsel %vm14410_vm15, %v17629_v35, %v3711_v9  ;;  %v14471_v51 = vsel %vm17224_vm11, %v2577_v4, %v14373_v22  ;;  %v2652_v50 = vadd.s32 %v14252_v54, %v14250_v43  ;;  %vm10030_vm9 = vcmp.lt.s32.totalorder %v10029_v52, 0  ;;  %v195_v9 = vpop.permute.xlu1 %194 }
 0x305   :  { %v14479_v46 = vadd.s32 %v14354_v56, %v14352_v20  ;;  %v2915_v45 = vadd.s32 1, %v10035_v53  ;;  %v2913_v22 = vor.u32 8388608, %v2912_v15  ;;  %v5479_v4 = vadd.s32 3, %v1552_v61  ;;  %v17650_v20 = vld [vmem:[#allocation70_spill] sm:$0xff]  ;;  %v17651_v53 = vld [vmem:[#allocation60_spill] sm:$0xff] }
 0x306   :  { %v14483_v62 = vshrl.u32 %v2652_v50, %v2668_v30  ;;  %v14485_v58 = vor.u32 4788187, %v2674_v31  ;;  %v14487_v43 = vsel %vm10030_vm9, 0, %v10029_v52  ;;  %v5376_v54 = vand.u32 3, %v5375_v0  ;;  %v17654_v50 = vld [vmem:[#allocation73_spill] sm:$0xff] }
 0x307   :  { %vm2916_vm14 = vcmp.gt.s32.totalorder %v2915_v45, 0  ;;  %v14489_v44 = vpop.eup %11078  ;;  %v14497_v37 = vand.u32 3, %v1449_v49  ;;  %v14499_v52 = vand.u32 3, %v1552_v61  ;;  %v14502_v47 = vshll.u32 %v2913_v22, 8 }
 0x308   :  { %17649 = vst [vmem:[#allocation50_spill] sm:$0xff] %v14489_v44  ;;  %v2917_v21 = vsel %vm2916_vm14, %v2915_v45, 0  ;;  %v14494_v30 = vpop.eup %11080  ;;  %v5480_v45 = vand.u32 3, %v5479_v4  ;;  %v14505_v33 = vmul.f32 %v17522_v16, %v195_v9  ;;  %v2775_v14 = vsub.s32 4294967266, %v14487_v43 }
 0x309   :  { %17653 = vst [vmem:[#allocation48_spill] sm:$0xff] %v14494_v30  ;;  %v2919_v15 = vand.u32 31, %v2917_v21  ;;  %vm5377_vm13 = vcmp.lt.s32.totalorder %v5376_v54, 2  ;;  %vm5378_vm8 = vcmp.eq.s32.totalorder %v5376_v54, 0  ;;  %v2918_v57 = vshrl.u32 %v2917_v21, 5 }
 0x30a   :  { %vm5381_vm7 = vcmp.eq.s32.totalorder %v5376_v54, 2  ;;  %v17655_v18 = vxor.u32 2147483648, %v17650_v20  ;;  %vm1452_vm10 = vweird.f32 %v17656_v32  ;;  %vm1555_vm9 = vweird.f32 %v17657_v41 }
 0x30b   :  { %v2920_v60 = vsub.s32 32, %v2919_v15  ;;  %v2922_v31 = vshll.u32 %v17335_v42, %v2919_v15  ;;  %v2925_v49 = vshll.u32 %v17331_v19, %v2919_v15  ;;  %v2928_v4 = vshll.u32 %v17332_v28, %v2919_v15 }
 0x30c   :  { %v2931_v0 = vshll.u32 %v17333_v63, %v2919_v15  ;;  %v2934_v6 = vshll.u32 %v17369_v23, %v2919_v15  ;;  %v5380_v8 = vsel %vm5378_vm8, %v17651_v53, %v17655_v18  ;;  %vm2937_vm3 = vcmp.lt.s32.totalorder %v2918_v57, 1 }
 0x30d   :  { %v2923_v61 = vshrl.u32 %v17331_v19, %v2920_v60  ;;  %v2926_v22 = vshrl.u32 %v17332_v28, %v2920_v60  ;;  %v2929_v9 = vshrl.u32 %v17333_v63, %v2920_v60  ;;  %v2932_v56 = vshrl.u32 %v17369_v23, %v2920_v60 }
 0x30e   :  { %v2935_v21 = vshrl.u32 %v17334_v1, %v2920_v60  ;;  %v17658_v15 = vxor.u32 2147483648, %v17651_v53  ;;  %vm2938_vm14 = vcmp.lt.s32.totalorder %v2918_v57, 2  ;;  %vm2940_vm11 = vcmp.lt.s32.totalorder %v2918_v57, 4 }
 0x30f   :  { %v2924_v44 = vor.u32 %v2923_v61, %v2922_v31  ;;  %v2927_v30 = vor.u32 %v2926_v22, %v2925_v49  ;;  %v2930_v40 = vor.u32 %v2929_v9, %v2928_v4  ;;  %v2933_v10 = vor.u32 %v2932_v56, %v2931_v0  ;;  %v402_v9 = vpop.permute.xlu1 %401 }
 0x310   :  { %v2936_v17 = vor.u32 %v2935_v21, %v2934_v6  ;;  %v5383_v5 = vsel %vm5381_vm7, %v17658_v15, %v17650_v20  ;;  %v2921_v31 = vshrl.u32 %v17335_v42, %v2920_v60  ;;  %vm1454_vm4 = vcmp.lt.s32.totalorder %v14497_v37, 2 }
 0x311   :  { %v2945_v49 = vsel %vm2937_vm3, %v2924_v44, %v2927_v30  ;;  %vm2939_vm8 = vcmp.lt.s32.totalorder %v2918_v57, 3  ;;  %v2942_v18 = vsel %vm2940_vm11, %v2930_v40, 2102212464  ;;  %v2946_v6 = vsel %vm2940_vm11, %v2933_v10, 920167782 }
 0x312   :  { %v2949_v56 = vsel %vm2937_vm3, %v2927_v30, %v2930_v40  ;;  %v2941_v0 = vsel %vm2937_vm3, %v2921_v31, %v2924_v44  ;;  %v2943_v61 = vsel %vm2939_vm8, %v2927_v30, %v2942_v18  ;;  %v2947_v22 = vsel %vm2939_vm8, %v2930_v40, %v2946_v6 }
 0x313   :  { %v2950_v4 = vsel %vm2940_vm11, %v2936_v17, 1326507024  ;;  %v2948_v21 = vsel %vm2938_vm14, %v2945_v49, %v2947_v22  ;;  %v5384_v15 = vsel %vm5377_vm13, %v5380_v8, %v5383_v5  ;;  %vm5482_vm7 = vcmp.eq.s32.totalorder %v5480_v45, 0 }
 0x314   :  { %v2951_v27 = vsel %vm2939_vm8, %v2933_v10, %v2950_v4  ;;  %v14534_v34 = vmul.u32.u64.low %v14502_v47, %v2948_v21  ;;  %v14535_v16 = vmul.u32.u64.high %v14502_v47, %v2948_v21, %v14534_v34  ;;  %v17659_v12 = vxor.u32 2147483648, %v17652_v11 }
 0x315   :  { %v2952_v60 = vsel %vm2938_vm14, %v2949_v56, %v2951_v27  ;;  %v2944_v17 = vsel %vm2938_vm14, %v2941_v0, %v2943_v61  ;;  %vm5485_vm11 = vcmp.eq.s32.totalorder %v5480_v45, 2  ;;  %vm5481_vm13 = vcmp.lt.s32.totalorder %v5480_v45, 2  ;;  %v406_v0 = vpop.permute.xlu1 %405 }
 0x316   :  { %v5484_v44 = vsel %vm5482_vm7, %v17654_v50, %v17659_v12  ;;  %v14543_v40 = vmul.u32.u64.low %v14502_v47, %v2952_v60  ;;  %v14544_v30 = vmul.u32.u64.high %v14502_v47, %v2952_v60, %v14543_v40  ;;  %v17660_v10 = vxor.u32 2147483648, %v17654_v50 }
 0x317   :  { %vm1455_vm3 = vcmp.eq.s32.totalorder %v14497_v37, 0  ;;  %vm1458_vm8 = vcmp.eq.s32.totalorder %v14497_v37, 2  ;;  %v2776_v8 = vadd.s32 127, %v2775_v14  ;;  %v17661_v12 = vxor.u32 2147483648, %v17650_v20 }
 0x318   :  { %v5487_v5 = vsel %vm5485_vm11, %v17660_v10, %v17652_v11  ;;  %v17662_v57 = vxor.u32 2147483648, %v17651_v53  ;;  %v17663_v45 = vand.u32 2147483647, %v17641_v36  ;;  %v17664_v49 = vmov 0 }
 0x319   :  { %v5488_v27 = vsel %vm5481_vm13, %v5484_v44, %v5487_v5  ;;  %v1457_v54 = vsel %vm1455_vm3, %v17651_v53, %v17661_v12  ;;  %v2960_v18 = vmul.u32 %v14502_v47, %v2944_v17  ;;  %v2963_v6 = vadd.s32 1, %v14535_v16 }
 0x31a   :  { %v1460_v31 = vsel %vm1458_vm8, %v17662_v57, %v17650_v20  ;;  %vm14559_vm14 = vcmp.le.f32.partialorder %v17663_v45, 0.7853982  ;;  %v5385_v14 = vsel %vm1452_vm10, nan, %v5384_v15  ;;  %v5489_v56 = vsel %vm1555_vm9, nan, %v5488_v27 }
 0x31b   :  { %v17665_v49 = vsel %vm14559_vm14, 4294967295, %v17664_v49  ;;  %vm2962_vm7 = vc.u32 %v14544_v30, %v14534_v34  ;;  %v8433_v20 = vpack.c.bf16 %v5489_v56, %v5385_v14  ;;  %v1461_v53 = vsel %vm1454_vm4, %v1457_v54, %v1460_v31 }
 0x31c   :  { %17666 = vst [vmem:[#allocation8_spill] sm:$0xff] %v17665_v49  ;;  %vm1558_vm11 = vcmp.eq.s32.totalorder %v14499_v52, 0  ;;  %v2964_v47 = vsel %vm2962_vm7, %v2963_v6, %v14535_v16  ;;  %v17667_v61 = vxor.u32 2147483648, %v17652_v11  ;;  %vm1561_vm13 = vcmp.eq.s32.totalorder %v14499_v52, 2 }
 0x31d   :  { %v484_v4 = vmul.f32 %v11498_v39, %v402_v9  ;;  %v2965_v21 = vadd.s32 %v2964_v47, %v2960_v18  ;;  %vm17668_vm3 = vcmask 523264   ;;  %vm1557_vm8 = vcmp.lt.s32.totalorder %v14499_v52, 2 }
 0x31e   :  { %v1560_v22 = vsel %vm1558_vm11, %v17654_v50, %v17667_v61  ;;  %10459 = vmatmul.mubr.msk.bf16.gmra.mrb[16].mxu0 %vm17668_vm3, %v8433_v20  ;;  %v17669_v37 = vmov %v17660_v10  ;;  %v485_v60 = vmul.f32 %v11498_v39, %v406_v0  ;;  %vm17238_vm4 = vcmp.lt.s32.totalorder %v14079_v25, 0  ;;  %v17672_v10 = vld [vmem:[#allocation25_spill] sm:$0xff] }
 0x31f   :  { %v1563_v15 = vsel %vm1561_vm13, %v17669_v37, %v17652_v11  ;;  %v17670_v16 = vsub.s32 32, %v14487_v43  ;;  %v2777_v17 = vshll.u32 %v2776_v8, 23  ;;  %v14591_v9 = vadd.f32 %v484_v4, %v14505_v33  ;;  %10462 = vmatprep.mubr.msk.bf16.mxu0 %vm17476_vm5, %v17436_v13 }
 0x320   :  { %v1564_v40 = vsel %vm1557_vm8, %v1560_v22, %v1563_v15  ;;  %v2966_v52 = vadd.s32 536870912, %v2965_v21  ;;  %v1462_v11 = vsel %vm1452_vm10, nan, %v1461_v53  ;;  %v14600_v5 = vadd.f32 %v485_v60, %v17672_v10  ;;  %vm17677_vm10 = vmmov %vm17668_vm3 }
 0x321   :  { %v2773_v44 = vshrl.u32 %v14479_v46, %v17670_v16  ;;  %17671 = vst [vmem:[#allocation12_spill] sm:$0xff] %v14591_v9  ;;  %v1565_v50 = vsel %vm1555_vm9, nan, %v1564_v40  ;;  %v17674_v46 = vshll.u32 %v14324_v29, %v14389_v3  ;;  %v17234_v27 = vand.u32 2147483647, %v14591_v9 }
 0x322   :  { %17673 = vst [vmem:[#allocation68_spill] sm:$0xff] %v14600_v5  ;;  %v8406_v33 = vpack.c.bf16 %v1565_v50, %v1462_v11  ;;  %v3011_v12 = vand.u32 2139095040, %v14591_v9  ;;  %v17675_v54 = vand.u32 2147483647, %v14452_v59  ;;  %v17676_v32 = vcvt.s32.f32 %v14450_v7  ;;  %v17683_v11 = vld [vmem:[#allocation51_spill] sm:$0xff]  ;;  %v17684_v50 = vld [vmem:[#allocation45_spill] sm:$0xff] }
 0x323   :  { %v2671_v8 = vor.u32 %v14483_v62, %v17674_v46  ;;  %v2772_v41 = vshll.u32 %v14415_v38, %v14487_v43  ;;  %v14614_v31 = vshrl.u32 %v2966_v52, 30  ;;  %v3114_v45 = vand.u32 2139095040, %v14600_v5  ;;  %v17686_v46 = vld [vmem:[#allocation58_spill] sm:$0xff] }
 0x324   :  { %v4121_v57 = vmul.f32 %v17676_v32, %v17675_v54  ;;  %11082 = vcosq.f32 %v14466_v2  ;;  %v2676_v29 = vand.u32 2147483647, %v14485_v58  ;;  %v2778_v3 = vor.u32 4788187, %v2777_v17  ;;  %10543 = vmatmul.mubr.msk.bf16.gmra.mrb[16].mxu1 %vm17677_vm10, %v8406_v33  ;;  %v17687_v33 = vld [vmem:[#allocation56_spill] sm:$0xff]  ;;  %v17688_v54 = vld [vmem:[#allocation69_spill] sm:$0xff] }
 0x325   :  { %v3012_v62 = vshrl.u32 %v3011_v12, 23  ;;  %v2581_v7 = vsel %vm14559_vm14, %v17641_v36, %v14471_v51  ;;  %v2774_v59 = vor.u32 %v2773_v44, %v2772_v41  ;;  %v2968_v38 = vshll.u32 %v14614_v31, 30  ;;  %10546 = vmatprep.mubr.msk.bf16.mxu1 %vm17476_vm5, %v17436_v13  ;;  %v17690_v41 = vld [vmem:[#allocation27_spill] sm:$0xff] }
 0x326   :  { %v3115_v43 = vshrl.u32 %v3114_v45, 23  ;;  %v2678_v18 = vcvt.s32.f32 %v2671_v8  ;;  %v3015_v58 = vand.u32 8388607, %v17234_v27  ;;  %v17233_v14 = vand.u32 2147483647, %v14600_v5  ;;  %v17695_v27 = vld [vmem:[#allocation28_spill] sm:$0xff] }
 0x327   :  { %v10039_v6 = vadd.s32 4294967169, %v3012_v62  ;;  %11084 = vsinq.f32 %v14466_v2  ;;  %v4122_v56 = vxor.u32 2147483648, %v4121_v57  ;;  %v14631_v0 = vsub.s32 %v2965_v21, %v2968_v38 }
 0x328   :  { %v10043_v51 = vadd.s32 4294967169, %v3115_v43  ;;  %11086 = vcosq.f32 %v2581_v7  ;;  %v14633_v20 = vmul.f32 %v2678_v18, %v2676_v29  ;;  %v2779_v53 = vand.u32 2147483647, %v2778_v3 }
 0x329   :  { %v3018_v47 = vadd.s32 1, %v10039_v6  ;;  %v17678_v61 = vsub.s32 4, %v17642_v24  ;;  %vm17679_vm9 = vcmp.lt.s32.totalorder %v17629_v35, 0  ;;  %v17681_v4 = vsub.s32 4, %v14060_v55 }
 0x32a   :  { %vm17682_vm7 = vcmp.lt.s32.totalorder %v17641_v36, 0  ;;  %11088 = vsinq.f32 %v2581_v7  ;;  %v2781_v21 = vcvt.s32.f32 %v2774_v59  ;;  %v3016_v37 = vor.u32 8388608, %v3015_v58 }
 0x32b   :  { %v14640_v22 = vsel %vm17679_vm9, %v17678_v61, %v17642_v24  ;;  %v14647_v2 = vsel %vm17682_vm7, %v17681_v4, %v14060_v55  ;;  %vm3019_vm11 = vcmp.gt.s32.totalorder %v3018_v47, 0  ;;  %v14651_v15 = vand.u32 8388607, %v17233_v14 }
 0x32c   :  { %17680 = vst [vmem:[#allocation52_spill] sm:$0xff] %v14640_v22  ;;  %v3121_v60 = vadd.s32 1, %v10043_v51  ;;  %v14655_v24 = vsel %vm17238_vm4, %v4122_v56, %v4121_v57  ;;  %v2971_v44 = vsub.s32 0, %v14631_v0  ;;  %v3020_v17 = vsel %vm3019_vm11, %v3018_v47, 0 }
 0x32d   :  { %v14660_v40 = vmul.f32 %v2781_v21, %v2779_v53  ;;  %v3022_v52 = vand.u32 31, %v3020_v17  ;;  %vm17685_vm13 = vnez %v17684_v50  ;;  %v1758_v57 = vsel %vm13568_vm12, 0, %v17688_v54 }
 0x32e   :  { %v1655_v10 = vsel %vm17685_vm13, 0, %v17683_v11  ;;  %v14671_v29 = vpop.eup %11082  ;;  %v14673_v62 = vshll.u32 %v3016_v37, 8  ;;  %v3119_v7 = vor.u32 8388608, %v14651_v15  ;;  %vm3122_vm3 = vcmp.gt.s32.totalorder %v3121_v60, 0 }
 0x32f   :  { %17691 = vst [vmem:[#allocation57_spill] sm:$0xff] %v14671_v29  ;;  %v3023_v3 = vsub.s32 32, %v3022_v52  ;;  %v10036_v59 = vmin.u32 %v2971_v44, %v14631_v0  ;;  %v3021_v38 = vshrl.u32 %v3020_v17, 5  ;;  %v3025_v43 = vshll.u32 %v17335_v42, %v3022_v52 }
 0x330   :  { %v3028_v18 = vshll.u32 %v17331_v19, %v3022_v52  ;;  %v3031_v56 = vshll.u32 %v17332_v28, %v3022_v52  ;;  %v3034_v47 = vshll.u32 %v17333_v63, %v3022_v52  ;;  %v3123_v21 = vsel %vm3122_vm3, %v3121_v60, 0 }
 0x331   :  { %v3026_v6 = vshrl.u32 %v17331_v19, %v3023_v3  ;;  %v3029_v58 = vshrl.u32 %v17332_v28, %v3023_v3  ;;  %v3032_v51 = vshrl.u32 %v17333_v63, %v3023_v3  ;;  %v14683_v53 = vpop.eup %11084  ;;  %v3035_v61 = vshrl.u32 %v17369_v23, %v3023_v3 }
 0x332   :  { %17692 = vst [vmem:[#allocation67_spill] sm:$0xff] %v14683_v53  ;;  %v3038_v4 = vshrl.u32 %v17334_v1, %v3023_v3  ;;  %v14688_v37 = vpop.eup %11086  ;;  %v3037_v11 = vshll.u32 %v17369_v23, %v3022_v52  ;;  %v2973_v54 = vclz %v10036_v59  ;;  %v3024_v32 = vshrl.u32 %v17335_v42, %v3023_v3 }
 0x333   :  { %17693 = vst [vmem:[#allocation65_spill] sm:$0xff] %v14688_v37  ;;  %v3027_v15 = vor.u32 %v3026_v6, %v3025_v43  ;;  %v3030_v44 = vor.u32 %v3029_v58, %v3028_v18  ;;  %v3033_v17 = vor.u32 %v3032_v51, %v3031_v56  ;;  %v3036_v14 = vor.u32 %v3035_v61, %v3034_v47 }
 0x334   :  { %v14691_v50 = vpop.eup %11088  ;;  %v3039_v16 = vor.u32 %v3038_v4, %v3037_v11  ;;  %vm3040_vm12 = vcmp.lt.s32.totalorder %v3021_v38, 1  ;;  %vm3043_vm8 = vcmp.lt.s32.totalorder %v3021_v38, 4  ;;  %v3125_v45 = vand.u32 31, %v3123_v21 }
 0x335   :  { %17694 = vst [vmem:[#allocation70_spill] sm:$0xff] %v14691_v50  ;;  %vm3042_vm10 = vcmp.lt.s32.totalorder %v3021_v38, 3  ;;  %v3044_v60 = vsel %vm3040_vm12, %v3024_v32, %v3027_v15  ;;  %v3045_v12 = vsel %vm3043_vm8, %v3033_v17, 2102212464  ;;  %v3048_v43 = vsel %vm3040_vm12, %v3027_v15, %v3030_v44 }
 0x336   :  { %v3046_v18 = vsel %vm3042_vm10, %v3030_v44, %v3045_v12  ;;  %v3049_v6 = vsel %vm3043_vm8, %v3036_v14, 920167782  ;;  %v3052_v58 = vsel %vm3040_vm12, %v3030_v44, %v3033_v17  ;;  %v3053_v52 = vsel %vm3043_vm8, %v3039_v16, 1326507024 }
 0x337   :  { %v10037_v56 = vadd.s32 4294967294, %v2973_v54  ;;  %vm3041_vm9 = vcmp.lt.s32.totalorder %v3021_v38, 2  ;;  %v3050_v59 = vsel %vm3042_vm10, %v3033_v17, %v3049_v6  ;;  %v5583_v51 = vadd.s32 3, %v1655_v10 }
 0x338   :  { %v3051_v3 = vsel %vm3041_vm9, %v3048_v43, %v3050_v59  ;;  %v3054_v47 = vsel %vm3042_vm10, %v3036_v14, %v3053_v52  ;;  %v3126_v61 = vsub.s32 32, %v3125_v45  ;;  %v5687_v55 = vadd.s32 3, %v1758_v57 }
 0x339   :  { %v3047_v4 = vsel %vm3041_vm9, %v3044_v60, %v3046_v18  ;;  %v3055_v11 = vsel %vm3041_vm9, %v3052_v58, %v3054_v47  ;;  %v14695_v8 = vshll.u32 %v3119_v7, 8  ;;  %v14697_v29 = vand.u32 3, %v1655_v10 }
 0x33a   :  { %v14700_v15 = vmul.u32.u64.low %v14673_v62, %v3055_v11  ;;  %v14701_v12 = vmul.u32.u64.high %v14673_v62, %v3055_v11, %v14700_v15  ;;  %v14704_v16 = vmul.u32.u64.low %v14673_v62, %v3051_v3  ;;  %v14705_v44 = vmul.u32.u64.high %v14673_v62, %v3051_v3, %v14704_v16 }
 0x33b   :  { %vm10038_vm7 = vcmp.lt.s32.totalorder %v10037_v56, 0  ;;  %v3124_v38 = vshrl.u32 %v3123_v21, 5  ;;  %v3129_v14 = vshrl.u32 %v17331_v19, %v3126_v61  ;;  %v14709_v17 = vand.u32 3, %v1758_v57 }
 0x33c   :  { %v3128_v7 = vshll.u32 %v17335_v42, %v3125_v45  ;;  %v3131_v10 = vshll.u32 %v17331_v19, %v3125_v45  ;;  %v3132_v54 = vshrl.u32 %v17332_v28, %v3126_v61  ;;  %v3135_v32 = vshrl.u32 %v17333_v63, %v3126_v61 }
 0x33d   :  { %v3063_v60 = vmul.u32 %v14673_v62, %v3047_v4  ;;  %v3134_v43 = vshll.u32 %v17332_v28, %v3125_v45  ;;  %v3137_v18 = vshll.u32 %v17333_v63, %v3125_v45  ;;  %v3138_v21 = vshrl.u32 %v17369_v23, %v3126_v61 }
 0x33e   :  { %vm3065_vm11 = vc.u32 %v14701_v12, %v14704_v16  ;;  %v3066_v57 = vadd.s32 1, %v14705_v44  ;;  %v3130_v6 = vor.u32 %v3129_v14, %v3128_v7  ;;  %v3133_v58 = vor.u32 %v3132_v54, %v3131_v10 }
 0x33f   :  { %v3136_v52 = vor.u32 %v3135_v32, %v3134_v43  ;;  %v3139_v59 = vor.u32 %v3138_v21, %v3137_v18  ;;  %v3140_v3 = vshll.u32 %v17369_v23, %v3125_v45  ;;  %v3141_v47 = vshrl.u32 %v17334_v1, %v3126_v61  ;;  %v17696_v45 = vld [vmem:[#allocation17_spill] sm:$0xff]  ;;  %v17697_v43 = vld [vmem:[#allocation38_spill] sm:$0xff] }
 0x340   :  { %v14725_v62 = vsel %vm10038_vm7, 0, %v10037_v56  ;;  %v3067_v4 = vsel %vm3065_vm11, %v3066_v57, %v14705_v44  ;;  %v3127_v11 = vshrl.u32 %v17335_v42, %v3126_v61  ;;  %v5584_v15 = vand.u32 3, %v5583_v51 }
 0x341   :  { %v3068_v35 = vadd.s32 %v3067_v4, %v3063_v60  ;;  %v3142_v53 = vor.u32 %v3141_v47, %v3140_v3  ;;  %vm3143_vm13 = vcmp.lt.s32.totalorder %v3124_v38, 1  ;;  %vm3146_vm3 = vcmp.lt.s32.totalorder %v3124_v38, 4 }
 0x342   :  { %vm3145_vm12 = vcmp.lt.s32.totalorder %v3124_v38, 3  ;;  %v3147_v14 = vsel %vm3143_vm13, %v3127_v11, %v3130_v6  ;;  %v3148_v7 = vsel %vm3146_vm3, %v3136_v52, 2102212464  ;;  %v3151_v10 = vsel %vm3143_vm13, %v3130_v6, %v3133_v58 }
 0x343   :  { %vm1658_vm8 = vweird.f32 %v17696_v45  ;;  %v3069_v54 = vadd.s32 536870912, %v3068_v35  ;;  %v3149_v56 = vsel %vm3145_vm12, %v3133_v58, %v3148_v7  ;;  %v3152_v32 = vsel %vm3146_vm3, %v3139_v59, 920167782 }
 0x344   :  { %v5688_v44 = vand.u32 3, %v5687_v55  ;;  %v2981_v61 = vsub.s32 4294967266, %v14725_v62  ;;  %vm3144_vm10 = vcmp.lt.s32.totalorder %v3124_v38, 2  ;;  %v3153_v51 = vsel %vm3145_vm12, %v3136_v52, %v3152_v32 }
 0x345   :  { %v3155_v60 = vsel %vm3143_vm13, %v3133_v58, %v3136_v52  ;;  %vm17239_vm9 = vweird.f32 %v17697_v43  ;;  %v14736_v18 = vshrl.u32 %v3069_v54, 30  ;;  %v3150_v21 = vsel %vm3144_vm10, %v3147_v14, %v3149_v56 }
 0x346   :  { %v3154_v57 = vsel %vm3144_vm10, %v3151_v10, %v3153_v51  ;;  %v3156_v6 = vsel %vm3146_vm3, %v3142_v53, 1326507024  ;;  %vm5586_vm7 = vcmp.eq.s32.totalorder %v5584_v15, 0  ;;  %vm5585_vm11 = vcmp.lt.s32.totalorder %v5584_v15, 2  ;;  %v210_v51 = vpop.permute.xlu1 %209 }
 0x347   :  { %v3157_v3 = vsel %vm3145_vm12, %v3139_v59, %v3156_v6  ;;  %v14741_v47 = vmul.u32.u64.low %v14695_v8, %v3154_v57  ;;  %v14742_v4 = vmul.u32.u64.high %v14695_v8, %v3154_v57, %v14741_v47  ;;  %v3071_v55 = vshll.u32 %v14736_v18, 30 }
 0x348   :  { %v3158_v11 = vsel %vm3144_vm10, %v3155_v60, %v3157_v3  ;;  %v17698_v58 = vxor.u32 2147483648, %v17686_v46  ;;  %v17699_v14 = vand.u32 2147483647, %v14079_v25  ;;  %v17700_v53 = vmov 0 }
 0x349   :  { %v14755_v38 = vadd.s32 127, %v2981_v61  ;;  %v14758_v59 = vmul.u32.u64.low %v14695_v8, %v3158_v11  ;;  %v14759_v7 = vmul.u32.u64.high %v14695_v8, %v3158_v11, %v14758_v59  ;;  %vm5589_vm3 = vcmp.eq.s32.totalorder %v5584_v15, 2 }
 0x34a   :  { %v5588_v52 = vsel %vm5586_vm7, %v17687_v33, %v17698_v58  ;;  %vm14751_vm13 = vcmp.le.f32.partialorder %v17699_v14, 0.7853982  ;;  %v14761_v10 = vsub.s32 %v3068_v35, %v3071_v55  ;;  %v3166_v54 = vmul.u32 %v14695_v8, %v3150_v21 }
 0x34b   :  { %v17701_v53 = vsel %vm14751_vm13, 4294967295, %v17700_v53  ;;  %v17703_v56 = vxor.u32 2147483648, %v17687_v33  ;;  %vm5690_vm12 = vcmp.eq.s32.totalorder %v5688_v44, 0  ;;  %v3169_v60 = vadd.s32 1, %v14742_v4 }
 0x34c   :  { %17702 = vst [vmem:[#allocation60_spill] sm:$0xff] %v17701_v53  ;;  %v17704_v61 = vxor.u32 2147483648, %v17690_v41  ;;  %vm5693_vm10 = vcmp.eq.s32.totalorder %v5688_v44, 2  ;;  %v3074_v15 = vsub.s32 0, %v14761_v10  ;;  %vm5689_vm7 = vcmp.lt.s32.totalorder %v5688_v44, 2  ;;  %v17747_v53 = vld [vmem:[#allocation49_spill] sm:$0xff] }
 0x34d   :  { %v5591_v32 = vsel %vm5589_vm3, %v17703_v56, %v17686_v46  ;;  %v17705_v8 = vxor.u32 2147483648, %v17695_v27  ;;  %vm1660_vm4 = vcmp.lt.s32.totalorder %v14697_v29, 2  ;;  %vm1767_vm3 = vcmp.eq.s32.totalorder %v14709_v17, 2 }
 0x34e   :  { %v5592_v57 = vsel %vm5585_vm11, %v5588_v52, %v5591_v32  ;;  %v5692_v6 = vsel %vm5690_vm12, %v17695_v27, %v17704_v61  ;;  %vm3168_vm11 = vc.u32 %v14759_v7, %v14741_v47  ;;  %vm1661_vm12 = vcmp.eq.s32.totalorder %v14697_v29, 0 }
 0x34f   :  { %v5593_v35 = vsel %vm1658_vm8, nan, %v5592_v57  ;;  %v5695_v21 = vsel %vm5693_vm10, %v17705_v8, %v17690_v41  ;;  %v10040_v55 = vmin.u32 %v3074_v15, %v14761_v10  ;;  %v3170_v11 = vsel %vm3168_vm11, %v3169_v60, %v14742_v4  ;;  %v414_v4 = vpop.permute.xlu1 %413 }
 0x350   :  { %v5696_v3 = vsel %vm5689_vm7, %v5692_v6, %v5695_v21  ;;  %v1663_v52 = vsel %vm1661_vm12, %v17687_v33, %v17698_v58  ;;  %v3171_v14 = vadd.s32 %v3170_v11, %v3166_v54  ;;  %vm1664_vm10 = vcmp.eq.s32.totalorder %v14697_v29, 2  ;;  %v17711_v54 = vld [vmem:[#allocation53_spill] sm:$0xff]  ;;  %v17717_v58 = vld [vmem:[#allocation2_spill] sm:$0xff] }
 0x351   :  { %v5697_v44 = vsel %vm17239_vm9, nan, %v5696_v3  ;;  %v3076_v56 = vclz %v10040_v55  ;;  %v17706_v32 = vxor.u32 2147483648, %v17687_v33  ;;  %vm1764_vm11 = vcmp.eq.s32.totalorder %v14709_v17, 0 }
 0x352   :  { %v8434_v59 = vpack.c.bf16 %v5697_v44, %v5593_v35  ;;  %v17707_v60 = vand.u32 2147483647, %v14083_v48  ;;  %v17708_v61 = vmov 0  ;;  %vm2701_vm12 = vcmp.lt.s32.totalorder %v17711_v54, 0 }
 0x353   :  { %v1666_v57 = vsel %vm1664_vm10, %v17706_v32, %v17686_v46  ;;  %v3172_v6 = vadd.s32 536870912, %v3171_v14  ;;  %vm17712_vm7 = vcmask 523264   ;;  %v17713_v46 = vxor.u32 2147483648, %v17690_v41 }
 0x354   :  { %vm14798_vm9 = vcmp.le.f32.partialorder %v17707_v60, 0.7853982  ;;  %10463 = vmatmul.mubr.msk.bf16.gmra.mrb[20].mxu0 %vm17712_vm7, %v8434_v59  ;;  %v1667_v33 = vsel %vm1660_vm4, %v1663_v52, %v1666_v57  ;;  %v17714_v35 = vmov %v17705_v8  ;;  %v2977_v21 = vsub.s32 32, %v14725_v62  ;;  %v17728_v60 = vld [vmem:[#allocation82_spill] sm:$0xff] }
 0x355   :  { %v17709_v61 = vsel %vm14798_vm9, 4294967295, %v17708_v61  ;;  %v1766_v15 = vsel %vm1764_vm11, %v17695_v27, %v17713_v46  ;;  %v1769_v8 = vsel %vm1767_vm3, %v17714_v35, %v17690_v41  ;;  %v10041_v3 = vadd.s32 4294967294, %v3076_v56  ;;  %10466 = vmatprep.mubr.msk.bf16.mxu0 %vm17476_vm5, %v17436_v13 }
 0x356   :  { %17710 = vst [vmem:[#allocation3_spill] sm:$0xff] %v17709_v61  ;;  %v1668_v55 = vsel %vm1658_vm8, nan, %v1667_v33  ;;  %vm17715_vm10 = vcmp.lt.s32.totalorder %v14709_v17, 2  ;;  %v14819_v29 = vshrl.u32 %v3172_v6, 30  ;;  %vm17716_vm4 = vweird.f32 %v17697_v43 }
 0x357   :  { %v1770_v11 = vsel %vm17715_vm10, %v1766_v15, %v1769_v8  ;;  %v293_v27 = vmul.f32 %v17717_v58, %v210_v51  ;;  %v487_v41 = vmul.f32 %v11498_v39, %v414_v4  ;;  %v4126_v45 = vsel %vm14751_vm13, %v14079_v25, %v14655_v24 }
 0x358   :  { %v1771_v44 = vsel %vm17716_vm4, nan, %v1770_v11  ;;  %v2961_v17 = vadd.s32 %v14534_v34, %v14544_v30  ;;  %vm10042_vm8 = vcmp.lt.s32.totalorder %v10041_v3, 0  ;;  %v17718_v59 = vand.u32 2147483647, %v17711_v54  ;;  %v17730_v11 = vld [vmem:[#allocation18_spill] sm:$0xff] }
 0x359   :  { %v8407_v52 = vpack.c.bf16 %v1771_v44, %v1668_v55  ;;  %v17719_v56 = vmov 0  ;;  %v2983_v43 = vshll.u32 %v14755_v38, 23  ;;  %v3079_v51 = vsel %vm10042_vm8, 0, %v10041_v3 }
 0x35a   :  { %vm14833_vm3 = vcmp.le.f32.partialorder %v17718_v59, 0.7853982  ;;  %v3174_v32 = vshll.u32 %v14819_v29, 30  ;;  %v14839_v57 = vadd.f32 %v487_v41, %v293_v27  ;;  %v17723_v24 = vsub.s32 4, %v14233_v26 }
 0x35b   :  { %v17720_v56 = vsel %vm14833_vm3, 4294967295, %v17719_v56  ;;  %vm17724_vm7 = vcmp.lt.s32.totalorder %v14079_v25, 0  ;;  %v17726_v30 = vxor.u32 2147483648, %v14633_v20  ;;  %vm17727_vm11 = vcmp.lt.s32.totalorder %v14083_v48, 0 }
 0x35c   :  { %17721 = vst [vmem:[#allocation73_spill] sm:$0xff] %v17720_v56  ;;  %17722 = vst [vmem:[#allocation21_spill] sm:$0xff] %v14839_v57  ;;  %v14846_v34 = vsel %vm17724_vm7, %v17723_v24, %v14233_v26  ;;  %v2682_v38 = vsub.s32 4, %v17728_v60  ;;  %v2783_v6 = vxor.u32 2147483648, %v14660_v40  ;;  %vm17729_vm10 = vcmask 523264  }
 0x35d   :  { %17725 = vst [vmem:[#allocation15_spill] sm:$0xff] %v14846_v34  ;;  %v2681_v4 = vsel %vm17727_vm11, %v17726_v30, %v14633_v20  ;;  %10547 = vmatmul.mubr.msk.bf16.gmra.mrb[20].mxu1 %vm17729_vm10, %v8407_v52  ;;  %v2979_v33 = vshrl.u32 %v2961_v17, %v2977_v21  ;;  %v3080_v46 = vsub.s32 32, %v3079_v51  ;;  %v3084_v15 = vsub.s32 4294967266, %v3079_v51 }
 0x35e   :  { %v14856_v35 = vsub.s32 %v3171_v14, %v3174_v32  ;;  %10550 = vmatprep.mubr.msk.bf16.mxu1 %vm17476_vm5, %v17436_v13  ;;  %11090 = vcosq.f32 %v4126_v45  ;;  %v2978_v26 = vshll.u32 %v14631_v0, %v14725_v62  ;;  %v17240_v20 = vand.u32 2147483647, %v14839_v57  ;;  %v17732_v62 = vld [vmem:[#allocation14_spill] sm:$0xff] }
 0x35f   :  { %v3320_v8 = vand.u32 2139095040, %v14839_v57  ;;  %v2984_v3 = vor.u32 4788187, %v2983_v43  ;;  %v3064_v55 = vadd.s32 %v14704_v16, %v14701_v12  ;;  %v1861_v44 = vsel %vm13797_vm1, 0, %v17730_v11  ;;  %vm17733_vm1 = vmmov %vm17727_vm11  ;;  %v17739_v11 = vld [vmem:[#allocation61_spill] sm:$0xff] }
 0x360   :  { %v3177_v21 = vsub.s32 0, %v14856_v35  ;;  %v2684_v27 = vsel %vm14798_vm9, %v14083_v48, %v2681_v4  ;;  %v2784_v0 = vsel %vm2701_vm12, %v2783_v6, %v14660_v40  ;;  %v2785_v41 = vsub.s32 4, %v17732_v62 }
 0x361   :  { %v3321_v17 = vshrl.u32 %v3320_v8, 23  ;;  %v2980_v52 = vor.u32 %v2979_v33, %v2978_v26  ;;  %v3082_v59 = vshrl.u32 %v3064_v55, %v3080_v46  ;;  %v3085_v12 = vadd.s32 127, %v3084_v15 }
 0x362   :  { %v10044_v16 = vmin.u32 %v3177_v21, %v14856_v35  ;;  %11092 = vsinq.f32 %v4126_v45  ;;  %v3324_v32 = vand.u32 8388607, %v17240_v20  ;;  %v5791_v24 = vadd.s32 3, %v1861_v44 }
 0x363   :  { %v10051_v43 = vadd.s32 4294967169, %v3321_v17  ;;  %v14883_v30 = vsel %vm17733_vm1, %v2682_v38, %v17728_v60  ;;  %11094 = vcosq.f32 %v2684_v27  ;;  %v2985_v40 = vand.u32 2147483647, %v2984_v3 }
 0x364   :  { %17734 = vst [vmem:[#allocation25_spill] sm:$0xff] %v14883_v30  ;;  %v3081_v4 = vshll.u32 %v14761_v10, %v3079_v51  ;;  %11096 = vsinq.f32 %v2684_v27  ;;  %v14889_v6 = vsel %vm2701_vm12, %v2785_v41, %v17732_v62  ;;  %v14894_v45 = vsel %vm14833_vm3, %v17711_v54, %v2784_v0  ;;  %v17736_v10 = vld [vmem:[#allocation5_spill] sm:$0xff]  ;;  %v17737_v51 = vld [vmem:[#allocation22_spill] sm:$0xff] }
 0x365   :  { %17735 = vst [vmem:[#allocation51_spill] sm:$0xff] %v14889_v6  ;;  %v3327_v33 = vadd.s32 1, %v10051_v43  ;;  %v2987_v46 = vcvt.s32.f32 %v2980_v52  ;;  %v3086_v60 = vshll.u32 %v3085_v12, 23  ;;  %v3179_v38 = vclz %v10044_v16  ;;  %v17740_v27 = vld [vmem:[#allocation6_spill] sm:$0xff] }
 0x366   :  { %v14896_v15 = vor.u32 %v3082_v59, %v3081_v4  ;;  %v3325_v26 = vor.u32 8388608, %v3324_v32  ;;  %vm17738_vm8 = vnez %v17737_v51  ;;  %v5792_v3 = vand.u32 3, %v5791_v24  ;;  %v17742_v52 = vld [vmem:[#allocation10_spill] sm:$0xff] }
 0x367   :  { %vm3328_vm4 = vcmp.gt.s32.totalorder %v3327_v33, 0  ;;  %v1964_v8 = vsel %vm17738_vm8, 0, %v17736_v10  ;;  %v14901_v55 = vmul.f32 %v2987_v46, %v2985_v40  ;;  %v17241_v14 = vxor.u32 2147483648, %v17739_v11  ;;  %v17743_v12 = vld [vmem:[#allocation62_spill] sm:$0xff] }
 0x368   :  { %v3329_v21 = vsel %vm3328_vm4, %v3327_v33, 0  ;;  %v17242_v0 = vxor.u32 2147483648, %v17740_v27  ;;  %v14905_v62 = vpop.eup %11090  ;;  %v14909_v41 = vadd.s32 %v14741_v47, %v14759_v7  ;;  %v14913_v43 = vor.u32 4788187, %v3086_v60 }
 0x369   :  { %17741 = vst [vmem:[#allocation45_spill] sm:$0xff] %v14905_v62  ;;  %v3331_v17 = vand.u32 31, %v3329_v21  ;;  %v10045_v24 = vadd.s32 4294967294, %v3179_v38  ;;  %v5895_v40 = vadd.s32 3, %v1964_v8  ;;  %v14916_v33 = vshll.u32 %v3325_v26, 8 }
 0x36a   :  { %vm5794_vm12 = vcmp.eq.s32.totalorder %v5792_v3, 0  ;;  %vm5797_vm7 = vcmp.eq.s32.totalorder %v5792_v3, 2  ;;  %vm5793_vm11 = vcmp.lt.s32.totalorder %v5792_v3, 2  ;;  %v14924_v46 = vand.u32 3, %v1861_v44 }
 0x36b   :  { %v3332_v4 = vsub.s32 32, %v3331_v17  ;;  %v5796_v47 = vsel %vm5794_vm12, %v17740_v27, %v17241_v14  ;;  %v5799_v7 = vsel %vm5797_vm7, %v17242_v0, %v17739_v11  ;;  %v3334_v38 = vshll.u32 %v17335_v42, %v3331_v17 }
 0x36c   :  { %v14926_v60 = vpop.eup %11092  ;;  %v3337_v10 = vshll.u32 %v17331_v19, %v3331_v17  ;;  %vm10046_vm10 = vcmp.lt.s32.totalorder %v10045_v24, 0  ;;  %v3330_v32 = vshrl.u32 %v3329_v21, 5  ;;  %v3340_v14 = vshll.u32 %v17332_v28, %v3331_v17  ;;  %v14944_v21 = vpop.permute.xlu1 %214 }
 0x36d   :  { %17744 = vst [vmem:[#allocation58_spill] sm:$0xff] %v14926_v60  ;;  %v3335_v26 = vshrl.u32 %v17331_v19, %v3332_v4  ;;  %v3338_v51 = vshrl.u32 %v17332_v28, %v3332_v4  ;;  %v14932_v20 = vpop.eup %11094  ;;  %v3341_v0 = vshrl.u32 %v17333_v63, %v3332_v4  ;;  %v3343_v62 = vshll.u32 %v17333_v63, %v3331_v17 }
 0x36e   :  { %17745 = vst [vmem:[#allocation56_spill] sm:$0xff] %v14932_v20  ;;  %v14936_v44 = vpop.eup %11096  ;;  %v3344_v60 = vshrl.u32 %v17369_v23, %v3332_v4  ;;  %v5800_v34 = vsel %vm5793_vm11, %v5796_v47, %v5799_v7  ;;  %v5896_v22 = vand.u32 3, %v5895_v40  ;;  %v14942_v54 = vand.u32 3, %v1964_v8 }
 0x36f   :  { %17746 = vst [vmem:[#allocation69_spill] sm:$0xff] %v14936_v44  ;;  %v3336_v16 = vor.u32 %v3335_v26, %v3334_v38  ;;  %v3339_v59 = vor.u32 %v3338_v51, %v3337_v10  ;;  %v3342_v25 = vor.u32 %v3341_v0, %v3340_v14  ;;  %v14946_v48 = vsel %vm10046_vm10, 0, %v10045_v24  ;;  %v17748_v10 = vld [vmem:[#allocation55_spill] sm:$0xff] }
 0x370   :  { %v3345_v20 = vor.u32 %v3344_v60, %v3343_v62  ;;  %v3346_v38 = vshll.u32 %v17369_v23, %v3331_v17  ;;  %v3347_v26 = vshrl.u32 %v17334_v1, %v3332_v4  ;;  %v3333_v14 = vshrl.u32 %v17335_v42, %v3332_v4 }
 0x371   :  { %vm3349_vm8 = vcmp.lt.s32.totalorder %v3330_v32, 1  ;;  %vm3351_vm12 = vcmp.lt.s32.totalorder %v3330_v32, 3  ;;  %vm3352_vm7 = vcmp.lt.s32.totalorder %v3330_v32, 4  ;;  %v3187_v47 = vsub.s32 4294967266, %v14946_v48 }
 0x372   :  { %v3348_v3 = vor.u32 %v3347_v26, %v3346_v38  ;;  %v3354_v0 = vsel %vm3352_vm7, %v3342_v25, 2102212464  ;;  %v3357_v8 = vsel %vm3349_vm8, %v3336_v16, %v3339_v59  ;;  %v3358_v40 = vsel %vm3352_vm7, %v3345_v20, 920167782  ;;  %v418_v38 = vpop.permute.xlu1 %417 }
 0x373   :  { %vm3350_vm11 = vcmp.lt.s32.totalorder %v3330_v32, 2  ;;  %v3359_v24 = vsel %vm3351_vm12, %v3342_v25, %v3358_v40  ;;  %v3361_v62 = vsel %vm3349_vm8, %v3339_v59, %v3342_v25  ;;  %v3353_v7 = vsel %vm3349_vm8, %v3333_v14, %v3336_v16 }
 0x374   :  { %v3355_v17 = vsel %vm3351_vm12, %v3339_v59, %v3354_v0  ;;  %v3360_v60 = vsel %vm3350_vm11, %v3357_v8, %v3359_v24  ;;  %v3362_v51 = vsel %vm3352_vm7, %v3348_v3, 1326507024  ;;  %vm5898_vm10 = vcmp.eq.s32.totalorder %v5896_v22, 0 }
 0x375   :  { %v3363_v44 = vsel %vm3351_vm12, %v3345_v20, %v3362_v51  ;;  %v14954_v56 = vmul.u32.u64.low %v14916_v33, %v3360_v60  ;;  %v14955_v4 = vmul.u32.u64.high %v14916_v33, %v3360_v60, %v14954_v56  ;;  %vm5897_vm4 = vcmp.lt.s32.totalorder %v5896_v22, 2 }
 0x376   :  { %v3364_v26 = vsel %vm3350_vm11, %v3361_v62, %v3363_v44  ;;  %v17749_v6 = vxor.u32 2147483648, %v17742_v52  ;;  %vm5901_vm1 = vcmp.eq.s32.totalorder %v5896_v22, 2  ;;  %v3356_v25 = vsel %vm3350_vm11, %v3353_v7, %v3355_v17  ;;  %v422_v60 = vpop.permute.xlu1 %421 }
 0x377   :  { %v14962_v59 = vmul.u32.u64.low %v14916_v33, %v3364_v26  ;;  %v14963_v16 = vmul.u32.u64.high %v14916_v33, %v3364_v26, %v14962_v59  ;;  %v17750_v20 = vxor.u32 2147483648, %v17743_v12  ;;  %v3088_v3 = vand.u32 2147483647, %v14913_v43 }
 0x378   :  { %v5900_v32 = vsel %vm5898_vm10, %v17743_v12, %v17749_v6  ;;  %vm17751_vm8 = vweird.f32 %v17747_v53  ;;  %vm1867_vm12 = vcmp.eq.s32.totalorder %v14924_v46, 0  ;;  %v3188_v8 = vadd.s32 127, %v3187_v47 }
 0x379   :  { %v5903_v14 = vsel %vm5901_vm1, %v17750_v20, %v17742_v52  ;;  %v5801_v44 = vsel %vm17751_vm8, nan, %v5800_v34  ;;  %v3375_v22 = vadd.s32 1, %v14955_v4  ;;  %vm17752_vm7 = vweird.f32 %v17748_v10  ;;  %v17754_v34 = vld [vmem:[#allocation37_spill] sm:$0xff] }
 0x37a   :  { %v5904_v0 = vsel %vm5897_vm4, %v5900_v32, %v5903_v14  ;;  %v17753_v40 = vxor.u32 2147483648, %v17739_v11  ;;  %v3183_v62 = vsub.s32 32, %v14946_v48  ;;  %v3372_v43 = vmul.u32 %v14916_v33, %v3356_v25 }
 0x37b   :  { %v5905_v6 = vsel %vm17752_vm7, nan, %v5904_v0  ;;  %vm1870_vm1 = vcmp.eq.s32.totalorder %v14924_v46, 2  ;;  %vm3374_vm11 = vc.u32 %v14963_v16, %v14954_v56  ;;  %vm1866_vm10 = vcmp.lt.s32.totalorder %v14924_v46, 2 }
 0x37c   :  { %v1869_v24 = vsel %vm1867_vm12, %v17740_v27, %v17753_v40  ;;  %v8435_v7 = vpack.c.bf16 %v5905_v6, %v5801_v44  ;;  %v17755_v47 = vxor.u32 2147483648, %v17740_v27  ;;  %vm1970_vm8 = vcmp.eq.s32.totalorder %v14942_v54, 0  ;;  %v17762_v6 = vld [vmem:[#allocation46_spill] sm:$0xff] }
 0x37d   :  { %v3376_v51 = vsel %vm3374_vm11, %v3375_v22, %v14955_v4  ;;  %vm17756_vm12 = vcmask 523264   ;;  %v17757_v26 = vxor.u32 2147483648, %v17742_v52  ;;  %vm1973_vm7 = vcmp.eq.s32.totalorder %v14942_v54, 2 }
 0x37e   :  { %v1872_v17 = vsel %vm1870_vm1, %v17755_v47, %v17739_v11  ;;  %10467 = vmatmul.mubr.msk.bf16.gmra.mrb[24].mxu0 %vm17756_vm12, %v8435_v7  ;;  %v3189_v25 = vshll.u32 %v3188_v8, 23  ;;  %v3377_v46 = vadd.s32 %v3376_v51, %v3372_v43  ;;  %vm1969_vm4 = vcmp.lt.s32.totalorder %v14942_v54, 2 }
 0x37f   :  { %v1873_v33 = vsel %vm1866_vm10, %v1869_v24, %v1872_v17  ;;  %v1972_v32 = vsel %vm1970_vm8, %v17743_v12, %v17757_v26  ;;  %v17758_v11 = vmov %v17750_v20  ;;  %10470 = vmatprep.mubr.msk.bf16.mxu0 %vm17476_vm5, %v17436_v13  ;;  %v294_v59 = vmul.f32 %v17717_v58, %v14944_v21  ;;  %vm17769_vm10 = vmmov %vm17756_vm12 }
 0x380   :  { %v1975_v27 = vsel %vm1973_vm7, %v17758_v11, %v17742_v52  ;;  %v488_v20 = vmul.f32 %v11498_v39, %v418_v38  ;;  %v489_v14 = vmul.f32 %v11498_v39, %v422_v60  ;;  %v3185_v44 = vshrl.u32 %v14909_v41, %v3183_v62 }
 0x381   :  { %v1976_v4 = vsel %vm1969_vm4, %v1972_v32, %v1975_v27  ;;  %v3378_v0 = vadd.s32 536870912, %v3377_v46  ;;  %vm17759_vm1 = vweird.f32 %v17747_v53  ;;  %vm17760_vm11 = vweird.f32 %v17748_v10 }
 0x382   :  { %v1874_v54 = vsel %vm17759_vm1, nan, %v1873_v33  ;;  %v1977_v52 = vsel %vm17760_vm11, nan, %v1976_v4  ;;  %v2989_v12 = vxor.u32 2147483648, %v14901_v55  ;;  %v15011_v22 = vadd.f32 %v488_v20, %v294_v59  ;;  %v17773_v59 = vld [vmem:[#allocation54_spill] sm:$0xff]  ;;  %v17774_v20 = vld [vmem:[#allocation63_spill] sm:$0xff] }
 0x383   :  { %v8408_v8 = vpack.c.bf16 %v1977_v52, %v1874_v54  ;;  %v15014_v21 = vadd.f32 %v489_v14, %v17762_v6  ;;  %v17764_v38 = vcvt.s32.f32 %v14896_v15  ;;  %v3184_v41 = vshll.u32 %v14856_v35, %v14946_v48 }
 0x384   :  { %17761 = vst [vmem:[#allocation11_spill] sm:$0xff] %v15011_v22  ;;  %v3190_v24 = vor.u32 4788187, %v3189_v25  ;;  %v15020_v53 = vshrl.u32 %v3378_v0, 30  ;;  %v17765_v10 = vand.u32 2147483647, %v17754_v34  ;;  %11098 = vcosq.f32 %v14894_v45 }
 0x385   :  { %17763 = vst [vmem:[#allocation27_spill] sm:$0xff] %v15014_v21  ;;  %v3091_v40 = vmul.f32 %v17764_v38, %v3088_v3  ;;  %v17766_v62 = vmov 0  ;;  %v2991_v43 = vsub.s32 4, %v14614_v31  ;;  %10551 = vmatmul.mubr.msk.bf16.gmra.mrb[24].mxu1 %vm17769_vm10, %v8408_v8  ;;  %v17255_v7 = vand.u32 2147483647, %v15011_v22  ;;  %v17776_v0 = vld [vmem:[#allocation7_spill] sm:$0xff] }
 0x386   :  { %vm15024_vm4 = vcmp.le.f32.partialorder %v17765_v10, 0.7853982  ;;  %v3423_v15 = vand.u32 2139095040, %v15011_v22  ;;  %v3186_v48 = vor.u32 %v3185_v44, %v3184_v41  ;;  %v3380_v35 = vshll.u32 %v15020_v53, 30  ;;  %10554 = vmatprep.mubr.msk.bf16.mxu1 %vm17476_vm5, %v17436_v13 }
 0x387   :  { %v17767_v62 = vsel %vm15024_vm4, 4294967295, %v17766_v62  ;;  %v3526_v3 = vand.u32 2139095040, %v15014_v21  ;;  %11100 = vsinq.f32 %v14894_v45  ;;  %vm17770_vm8 = vcmp.lt.s32.totalorder %v17754_v34, 0 }
 0x388   :  { %17768 = vst [vmem:[#allocation28_spill] sm:$0xff] %v17767_v62  ;;  %v2990_v47 = vsel %vm17770_vm8, %v2989_v12, %v14901_v55  ;;  %vm17265_vm12 = vcmp.lt.s32.totalorder %v14591_v9, 0  ;;  %v3424_v17 = vshrl.u32 %v3423_v15, 23  ;;  %v3092_v60 = vxor.u32 2147483648, %v3091_v40  ;;  %vm17771_vm7 = vmmov %vm17770_vm8 }
 0x389   :  { %v3191_v51 = vand.u32 2147483647, %v3190_v24  ;;  %v15042_v33 = vsub.s32 %v3377_v46, %v3380_v35  ;;  %v3527_v26 = vshrl.u32 %v3526_v3, 23  ;;  %v15047_v32 = vsel %vm17771_vm7, %v2991_v43, %v14614_v31  ;;  %v17778_v3 = vld [vmem:[#allocation72_spill] sm:$0xff] }
 0x38a   :  { %17772 = vst [vmem:[#allocation17_spill] sm:$0xff] %v15047_v32  ;;  %v10055_v25 = vadd.s32 4294967169, %v3424_v17  ;;  %v3427_v45 = vand.u32 8388607, %v17255_v7  ;;  %v17254_v11 = vand.u32 2147483647, %v15014_v21  ;;  %v3193_v55 = vcvt.s32.f32 %v3186_v48 }
 0x38b   :  { %v3383_v27 = vsub.s32 0, %v15042_v33  ;;  %v10059_v4 = vadd.s32 4294967169, %v3527_v26  ;;  %vm17775_vm1 = vnez %v17774_v20  ;;  %v15059_v14 = vsel %vm15024_vm4, %v17754_v34, %v2990_v47  ;;  %v17779_v17 = vld [vmem:[#allocation71_spill] sm:$0xff] }
 0x38c   :  { %v2067_v46 = vsel %vm17775_vm1, 0, %v17773_v59  ;;  %v3430_v44 = vadd.s32 1, %v10055_v25  ;;  %v15065_v52 = vsel %vm14034_vm0, 0, %v17776_v0  ;;  %v15069_v12 = vsel %vm17265_vm12, %v3092_v60, %v3091_v40  ;;  %v17781_v25 = vld [vmem:[#allocation76_spill] sm:$0xff] }
 0x38d   :  { %v15071_v8 = vmul.f32 %v3193_v55, %v3191_v51  ;;  %v10052_v6 = vmin.u32 %v3383_v27, %v15042_v33  ;;  %v3533_v38 = vadd.s32 1, %v10059_v4  ;;  %v3428_v41 = vor.u32 8388608, %v3427_v45  ;;  %v17782_v55 = vld [vmem:[#allocation75_spill] sm:$0xff] }
 0x38e   :  { %vm3431_vm11 = vcmp.gt.s32.totalorder %v3430_v44, 0  ;;  %v3530_v24 = vand.u32 8388607, %v17254_v11  ;;  %v5999_v10 = vadd.s32 3, %v2067_v46  ;;  %v15078_v43 = vadd.s32 %v14954_v56, %v14963_v16  ;;  %v15083_v51 = vpop.eup %11098 }
 0x38f   :  { %v3385_v15 = vclz %v10052_v6  ;;  %v3432_v48 = vsel %vm3431_vm11, %v3430_v44, 0  ;;  %v6103_v40 = vadd.s32 3, %v15065_v52  ;;  %vm3534_vm0 = vcmp.gt.s32.totalorder %v3533_v38, 0  ;;  %17780 = vst [vmem:[#allocation38_spill] sm:$0xff] %v15083_v51 }
 0x390   :  { %v3434_v35 = vand.u32 31, %v3432_v48  ;;  %v15087_v4 = vand.u32 3, %v2067_v46  ;;  %v15091_v59 = vshll.u32 %v3428_v41, 8  ;;  %v3531_v20 = vor.u32 8388608, %v3530_v24 }
 0x391   :  { %v10053_v26 = vadd.s32 4294967294, %v3385_v15  ;;  %v15089_v56 = vpop.eup %11100  ;;  %v15093_v44 = vand.u32 3, %v5999_v10  ;;  %v3433_v0 = vshrl.u32 %v3432_v48, 5  ;;  %v3535_v6 = vsel %vm3534_vm0, %v3533_v38, 0 }
 0x392   :  { %17783 = vst [vmem:[#allocation2_spill] sm:$0xff] %v15089_v56  ;;  %v3435_v16 = vsub.s32 32, %v3434_v35  ;;  %v3437_v54 = vshll.u32 %v17335_v42, %v3434_v35  ;;  %v15096_v11 = vand.u32 3, %v6103_v40  ;;  %v3440_v46 = vshll.u32 %v17331_v19, %v3434_v35 }
 0x393   :  { %vm10054_vm10 = vcmp.lt.s32.totalorder %v10053_v26, 0  ;;  %v3443_v31 = vshll.u32 %v17332_v28, %v3434_v35  ;;  %v3446_v24 = vshll.u32 %v17333_v63, %v3434_v35  ;;  %v3449_v10 = vshll.u32 %v17369_v23, %v3434_v35 }
 0x394   :  { %v3438_v15 = vshrl.u32 %v17331_v19, %v3435_v16  ;;  %v3441_v7 = vshrl.u32 %v17332_v28, %v3435_v16  ;;  %v3444_v41 = vshrl.u32 %v17333_v63, %v3435_v16  ;;  %v3447_v38 = vshrl.u32 %v17369_v23, %v3435_v16 }
 0x395   :  { %v3450_v40 = vshrl.u32 %v17334_v1, %v3435_v16  ;;  %v15107_v45 = vsel %vm10054_vm10, 0, %v10053_v26  ;;  %v15109_v47 = vshll.u32 %v3531_v20, 8  ;;  %vm6002_vm8 = vcmp.eq.s32.totalorder %v15093_v44, 0 }
 0x396   :  { %v3439_v48 = vor.u32 %v3438_v15, %v3437_v54  ;;  %v3442_v27 = vor.u32 %v3441_v7, %v3440_v46  ;;  %v3445_v60 = vor.u32 %v3444_v41, %v3443_v31  ;;  %v3448_v34 = vor.u32 %v3447_v38, %v3446_v24 }
 0x397   :  { %v3451_v62 = vor.u32 %v3450_v40, %v3449_v10  ;;  %vm3455_vm7 = vcmp.lt.s32.totalorder %v3433_v0, 4  ;;  %v3537_v32 = vand.u32 31, %v3535_v6  ;;  %v3436_v51 = vshrl.u32 %v17335_v42, %v3435_v16 }
 0x398   :  { %vm3452_vm1 = vcmp.lt.s32.totalorder %v3433_v0, 1  ;;  %v3457_v7 = vsel %vm3455_vm7, %v3445_v60, 2102212464  ;;  %v17784_v35 = vxor.u32 2147483648, %v17778_v3  ;;  %v3393_v31 = vsub.s32 4294967266, %v15107_v45 }
 0x399   :  { %vm3454_vm11 = vcmp.lt.s32.totalorder %v3433_v0, 3  ;;  %v3460_v26 = vsel %vm3452_vm1, %v3439_v48, %v3442_v27  ;;  %v3461_v20 = vsel %vm3455_vm7, %v3448_v34, 920167782  ;;  %vm3453_vm0 = vcmp.lt.s32.totalorder %v3433_v0, 2 }
 0x39a   :  { %v15117_v54 = vsel %vm6002_vm8, %v17779_v17, %v17784_v35  ;;  %v3456_v15 = vsel %vm3452_vm1, %v3436_v51, %v3439_v48  ;;  %v3462_v46 = vsel %vm3454_vm11, %v3445_v60, %v3461_v20  ;;  %v3464_v41 = vsel %vm3452_vm1, %v3442_v27, %v3445_v60 }
 0x39b   :  { %v3458_v24 = vsel %vm3454_vm11, %v3442_v27, %v3457_v7  ;;  %v3463_v16 = vsel %vm3453_vm0, %v3460_v26, %v3462_v46  ;;  %v3465_v10 = vsel %vm3455_vm7, %v3451_v62, 1326507024  ;;  %v3538_v38 = vsub.s32 32, %v3537_v32 }
 0x39c   :  { %v3466_v40 = vsel %vm3454_vm11, %v3448_v34, %v3465_v10  ;;  %v15124_v35 = vmul.u32.u64.low %v15091_v59, %v3463_v16  ;;  %v15125_v56 = vmul.u32.u64.high %v15091_v59, %v3463_v16, %v15124_v35  ;;  %vm6005_vm10 = vcmp.eq.s32.totalorder %v15093_v44, 2 }
 0x39d   :  { %v3389_v61 = vsub.s32 32, %v15107_v45  ;;  %v3467_v51 = vsel %vm3453_vm0, %v3464_v41, %v3466_v40  ;;  %v3536_v48 = vshrl.u32 %v3535_v6, 5  ;;  %v3541_v60 = vshrl.u32 %v17331_v19, %v3538_v38 }
 0x39e   :  { %v3394_v27 = vadd.s32 127, %v3393_v31  ;;  %v3459_v7 = vsel %vm3453_vm0, %v3456_v15, %v3458_v24  ;;  %v15134_v62 = vmul.u32.u64.low %v15091_v59, %v3467_v51  ;;  %v15135_v34 = vmul.u32.u64.high %v15091_v59, %v3467_v51, %v15134_v62 }
 0x39f   :  { %v3540_v26 = vshll.u32 %v17335_v42, %v3537_v32  ;;  %v3543_v20 = vshll.u32 %v17331_v19, %v3537_v32  ;;  %v3544_v46 = vshrl.u32 %v17332_v28, %v3538_v38  ;;  %v3547_v16 = vshrl.u32 %v17333_v63, %v3538_v38 }
 0x3a0   :  { %v3478_v41 = vadd.s32 1, %v15125_v56  ;;  %v3546_v6 = vshll.u32 %v17332_v28, %v3537_v32  ;;  %v3549_v31 = vshll.u32 %v17333_v63, %v3537_v32  ;;  %v3550_v0 = vshrl.u32 %v17369_v23, %v3538_v38 }
 0x3a1   :  { %v3542_v15 = vor.u32 %v3541_v60, %v3540_v26  ;;  %v3545_v24 = vor.u32 %v3544_v46, %v3543_v20  ;;  %v3552_v10 = vshll.u32 %v17369_v23, %v3537_v32  ;;  %v3553_v40 = vshrl.u32 %v17334_v1, %v3538_v38 }
 0x3a2   :  { %v3475_v51 = vmul.u32 %v15091_v59, %v3459_v7  ;;  %vm3477_vm7 = vc.u32 %v15135_v34, %v15124_v35  ;;  %v3548_v62 = vor.u32 %v3547_v16, %v3546_v6  ;;  %v3551_v30 = vor.u32 %v3550_v0, %v3549_v31  ;;  %v17786_v7 = vld [vmem:[#allocation23_spill] sm:$0xff] }
 0x3a3   :  { %v3391_v21 = vshrl.u32 %v15078_v43, %v3389_v61  ;;  %v3479_v36 = vsel %vm3477_vm7, %v3478_v41, %v15125_v56  ;;  %v3554_v37 = vor.u32 %v3553_v40, %v3552_v10  ;;  %v17785_v60 = vxor.u32 2147483648, %v17779_v17  ;;  %v17787_v43 = vld [vmem:[#allocation64_spill] sm:$0xff] }
 0x3a4   :  { %v3395_v26 = vshll.u32 %v3394_v27, 23  ;;  %v3480_v20 = vadd.s32 %v3479_v36, %v3475_v51  ;;  %v3539_v59 = vshrl.u32 %v17335_v42, %v3538_v38  ;;  %vm3555_vm1 = vcmp.lt.s32.totalorder %v3536_v48, 1  ;;  %v230_v51 = vpop.permute.xlu1 %229 }
 0x3a5   :  { %v6007_v32 = vsel %vm6005_vm10, %v17785_v60, %v17778_v3  ;;  %vm2070_vm11 = vweird.f32 %v17786_v7  ;;  %vm3556_vm0 = vcmp.lt.s32.totalorder %v3536_v48, 2  ;;  %vm3557_vm12 = vcmp.lt.s32.totalorder %v3536_v48, 3 }
 0x3a6   :  { %vm3558_vm8 = vcmp.lt.s32.totalorder %v3536_v48, 4  ;;  %v3563_v61 = vsel %vm3555_vm1, %v3542_v15, %v3545_v24  ;;  %vm17268_vm7 = vweird.f32 %v17787_v43  ;;  %v3481_v56 = vadd.s32 536870912, %v3480_v20 }
 0x3a7   :  { %v3560_v46 = vsel %vm3558_vm8, %v3548_v62, 2102212464  ;;  %v3564_v16 = vsel %vm3558_vm8, %v3551_v30, 920167782  ;;  %v3567_v41 = vsel %vm3555_vm1, %v3545_v24, %v3548_v62  ;;  %v3559_v6 = vsel %vm3555_vm1, %v3539_v59, %v3542_v15 }
 0x3a8   :  { %v3561_v31 = vsel %vm3557_vm12, %v3545_v24, %v3560_v46  ;;  %v3565_v0 = vsel %vm3557_vm12, %v3548_v62, %v3564_v16  ;;  %v3568_v27 = vsel %vm3558_vm8, %v3554_v37, 1326507024  ;;  %v3390_v36 = vshll.u32 %v15042_v33, %v15107_v45  ;;  %v430_v46 = vpop.permute.xlu1 %429 }
 0x3a9   :  { %v15163_v38 = vshrl.u32 %v3481_v56, 30  ;;  %v3566_v10 = vsel %vm3556_vm0, %v3563_v61, %v3565_v0  ;;  %v3569_v40 = vsel %vm3557_vm12, %v3551_v30, %v3568_v27  ;;  %vm17788_vm10 = vcmp.lt.s32.totalorder %v15093_v44, 2 }
 0x3aa   :  { %v3570_v60 = vsel %vm3556_vm0, %v3567_v41, %v3569_v40  ;;  %v15168_v50 = vmul.u32.u64.low %v15109_v47, %v3566_v10  ;;  %v15169_v49 = vmul.u32.u64.high %v15109_v47, %v3566_v10, %v15168_v50  ;;  %v6008_v37 = vsel %vm17788_vm10, %v15117_v54, %v6007_v32 }
 0x3ab   :  { %v3483_v15 = vshll.u32 %v15163_v38, 30  ;;  %v3562_v33 = vsel %vm3556_vm0, %v3559_v6, %v3561_v31  ;;  %v15178_v45 = vmul.u32.u64.low %v15109_v47, %v3570_v60  ;;  %v15179_v24 = vmul.u32.u64.high %v15109_v47, %v3570_v60, %v15178_v45 }
 0x3ac   :  { %v3392_v30 = vor.u32 %v3391_v21, %v3390_v36  ;;  %v3396_v62 = vor.u32 4788187, %v3395_v26  ;;  %vm6106_vm12 = vcmp.eq.s32.totalorder %v15096_v11, 0  ;;  %vm6109_vm8 = vcmp.eq.s32.totalorder %v15096_v11, 2 }
 0x3ad   :  { %v15183_v59 = vsub.s32 %v3480_v20, %v3483_v15  ;;  %vm6105_vm1 = vcmp.lt.s32.totalorder %v15096_v11, 2  ;;  %v17789_v44 = vxor.u32 2147483648, %v17781_v25  ;;  %v17790_v48 = vxor.u32 2147483648, %v17782_v55 }
 0x3ae   :  { %v3578_v61 = vmul.u32 %v15109_v47, %v3562_v33  ;;  %v3581_v21 = vadd.s32 1, %v15169_v49  ;;  %v6009_v26 = vsel %vm2070_vm11, nan, %v6008_v37  ;;  %vm3580_vm0 = vc.u32 %v15179_v24, %v15168_v50  ;;  %v17971_v47 = vld [vmem:[#allocation12_spill] sm:$0xff] }
 0x3af   :  { %v6108_v54 = vsel %vm6106_vm12, %v17782_v55, %v17789_v44  ;;  %v6111_v32 = vsel %vm6109_vm8, %v17790_v48, %v17781_v25  ;;  %v3486_v20 = vsub.s32 0, %v15183_v59  ;;  %vm2073_vm10 = vcmp.eq.s32.totalorder %v15087_v4, 0 }
 0x3b0   :  { %v6112_v56 = vsel %vm6105_vm1, %v6108_v54, %v6111_v32  ;;  %v17791_v16 = vand.u32 2147483647, %v14591_v9  ;;  %v3582_v41 = vsel %vm3580_vm0, %v3581_v21, %v15169_v49  ;;  %v17794_v31 = vxor.u32 2147483648, %v17778_v3 }
 0x3b1   :  { %v6113_v11 = vsel %vm17268_vm7, nan, %v6112_v56  ;;  %vm2076_vm8 = vcmp.eq.s32.totalorder %v15087_v4, 2  ;;  %v10056_v27 = vmin.u32 %v3486_v20, %v15183_v59  ;;  %v3583_v36 = vadd.s32 %v3582_v41, %v3578_v61 }
 0x3b2   :  { %vm15204_vm12 = vcmp.le.f32.partialorder %v17791_v16, 0.7853982  ;;  %v8436_v6 = vpack.c.bf16 %v6113_v11, %v6009_v26  ;;  %v2075_v0 = vsel %vm2073_vm10, %v17779_v17, %v17794_v31  ;;  %v17795_v10 = vxor.u32 2147483648, %v17779_v17 }
 0x3b3   :  { %v2174_v60 = vand.u32 3, %v15065_v52  ;;  %v3397_v37 = vand.u32 2147483647, %v3396_v62  ;;  %vm17796_vm0 = vcmask 523264   ;;  %vm2072_vm7 = vcmp.lt.s32.totalorder %v15087_v4, 2 }
 0x3b4   :  { %v2078_v40 = vsel %vm2076_vm8, %v17795_v10, %v17778_v3  ;;  %10471 = vmatmul.mubr.msk.bf16.gmra.mrb[28].mxu0 %vm17796_vm0, %v8436_v6  ;;  %v297_v49 = vmul.f32 %v17717_v58, %v230_v51  ;;  %v491_v15 = vmul.f32 %v11498_v39, %v430_v46  ;;  %v3399_v33 = vcvt.s32.f32 %v3392_v30 }
 0x3b5   :  { %v3488_v45 = vclz %v10056_v27  ;;  %v3584_v44 = vadd.s32 536870912, %v3583_v36  ;;  %vm2176_vm10 = vcmp.eq.s32.totalorder %v2174_v60, 0  ;;  %10474 = vmatprep.mubr.msk.bf16.mxu0 %vm17476_vm5, %v17436_v13  ;;  %v2079_v3 = vsel %vm2072_vm7, %v2075_v0, %v2078_v40 }
 0x3b6   :  { %v17797_v52 = vxor.u32 2147483648, %v17781_v25  ;;  %vm2179_vm8 = vcmp.eq.s32.totalorder %v2174_v60, 2  ;;  %v15228_v62 = vadd.f32 %v491_v15, %v297_v49  ;;  %v17799_v4 = vand.u32 2147483647, %v14600_v5 }
 0x3b7   :  { %v17800_v51 = vmov 0  ;;  %v10057_v30 = vadd.s32 4294967294, %v3488_v45  ;;  %v15236_v54 = vshrl.u32 %v3584_v44, 30  ;;  %vm2175_vm1 = vcmp.lt.s32.totalorder %v2174_v60, 2  ;;  %v17810_v44 = vld [vmem:[#allocation80_spill] sm:$0xff] }
 0x3b8   :  { %v2178_v17 = vsel %vm2176_vm10, %v17782_v55, %v17797_v52  ;;  %17798 = vst [vmem:[#allocation82_spill] sm:$0xff] %v15228_v62  ;;  %vm15232_vm0 = vcmp.le.f32.partialorder %v17799_v4, 0.7853982  ;;  %v2181_v32 = vsel %vm2179_vm8, %v17790_v48, %v17781_v25  ;;  %v3195_v61 = vxor.u32 2147483648, %v15071_v8  ;;  %v17812_v48 = vld [vmem:[#allocation81_spill] sm:$0xff] }
 0x3b9   :  { %v17801_v51 = vsel %vm15232_vm0, 4294967295, %v17800_v51  ;;  %v3400_v21 = vmul.f32 %v3399_v33, %v3397_v37  ;;  %v2182_v26 = vsel %vm2175_vm1, %v2178_v17, %v2181_v32  ;;  %v3732_v56 = vand.u32 2139095040, %v15228_v62 }
 0x3ba   :  { %17802 = vst [vmem:[#allocation18_spill] sm:$0xff] %v17801_v51  ;;  %vm10058_vm7 = vcmp.lt.s32.totalorder %v10057_v30, 0  ;;  %v3586_v20 = vshll.u32 %v15236_v54, 30  ;;  %v2080_v11 = vsel %vm2070_vm11, nan, %v2079_v3  ;;  %vm17803_vm10 = vweird.f32 %v17787_v43 }
 0x3bb   :  { %v2183_v46 = vsel %vm17803_vm10, nan, %v2182_v26  ;;  %11102 = vcosq.f32 %v15059_v14  ;;  %v3491_v16 = vsel %vm10058_vm7, 0, %v10057_v30  ;;  %v3733_v25 = vshrl.u32 %v3732_v56, 23  ;;  %v17814_v56 = vld [vmem:[#allocation42_spill] sm:$0xff] }
 0x3bc   :  { %v8409_v55 = vpack.c.bf16 %v2183_v46, %v2080_v11  ;;  %v3096_v41 = vsel %vm15204_vm12, %v14591_v9, %v15069_v12  ;;  %v3197_v6 = vsub.s32 4, %v14819_v29  ;;  %v3496_v31 = vsub.s32 4294967266, %v3491_v16  ;;  %v17815_v11 = vld [vmem:[#allocation13_spill] sm:$0xff] }
 0x3bd   :  { %v15254_v0 = vsub.s32 %v3583_v36, %v3586_v20  ;;  %11104 = vsinq.f32 %v15059_v14  ;;  %v3492_v7 = vsub.s32 32, %v3491_v16  ;;  %vm17804_vm11 = vcmask 523264  }
 0x3be   :  { %10555 = vmatmul.mubr.msk.bf16.gmra.mrb[28].mxu1 %vm17804_vm11, %v8409_v55  ;;  %v17269_v43 = vand.u32 2147483647, %v15228_v62  ;;  %v10067_v27 = vadd.s32 4294967169, %v3733_v25  ;;  %v17805_v10 = vsub.s32 4, %v14736_v18  ;;  %vm17806_vm1 = vcmp.lt.s32.totalorder %v14591_v9, 0 }
 0x3bf   :  { %vm17807_vm8 = vcmp.lt.s32.totalorder %v14600_v5, 0  ;;  %v3401_v36 = vxor.u32 2147483648, %v3400_v21  ;;  %v3589_v14 = vsub.s32 0, %v15254_v0  ;;  %10558 = vmatprep.mubr.msk.bf16.mxu1 %vm17476_vm5, %v17436_v13  ;;  %11106 = vcosq.f32 %v3096_v41 }
 0x3c0   :  { %v15264_v40 = vsel %vm17806_vm1, %v17805_v10, %v14736_v18  ;;  %v3196_v12 = vsel %vm17807_vm8, %v3195_v61, %v15071_v8  ;;  %v3476_v60 = vadd.s32 %v15124_v35, %v15135_v34  ;;  %v3497_v37 = vadd.s32 127, %v3496_v31  ;;  %vm17808_vm7 = vmmov %vm17807_vm8  ;;  %v17817_v31 = vld [vmem:[#allocation50_spill] sm:$0xff] }
 0x3c1   :  { %v3739_v49 = vadd.s32 1, %v10067_v27  ;;  %11108 = vsinq.f32 %v3096_v41  ;;  %v15277_v18 = vsel %vm17808_vm7, %v3197_v6, %v14819_v29  ;;  %vm17276_vm10 = vcmp.lt.s32.totalorder %v14839_v57, 0 }
 0x3c2   :  { %17809 = vst [vmem:[#allocation24_spill] sm:$0xff] %v15277_v18  ;;  %v10060_v8 = vmin.u32 %v3589_v14, %v15254_v0  ;;  %v15284_v15 = vsel %vm15232_vm0, %v14600_v5, %v3196_v12  ;;  %v3494_v33 = vshrl.u32 %v3476_v60, %v3492_v7  ;;  %v3736_v35 = vand.u32 8388607, %v17269_v43 }
 0x3c3   :  { %vm3740_vm11 = vcmp.gt.s32.totalorder %v3739_v49, 0  ;;  %v15290_v34 = vsel %vm17276_vm10, %v3401_v36, %v3400_v21  ;;  %v2273_v52 = vsel %vm14220_vm2, 0, %v17810_v44  ;;  %v3493_v17 = vshll.u32 %v15183_v59, %v3491_v16  ;;  %v17816_v16 = vld [vmem:[#allocation48_spill] sm:$0xff] }
 0x3c4   :  { %v3591_v29 = vclz %v10060_v8  ;;  %v3741_v45 = vsel %vm3740_vm11, %v3739_v49, 0  ;;  %v3498_v4 = vshll.u32 %v3497_v37, 23  ;;  %v2376_v61 = vsel %vm14333_vm6, 0, %v17812_v48 }
 0x3c5   :  { %v3743_v30 = vand.u32 31, %v3741_v45  ;;  %v15301_v26 = vadd.s32 %v15168_v50, %v15179_v24  ;;  %v15305_v55 = vpop.eup %11102  ;;  %v3495_v25 = vor.u32 %v3494_v33, %v3493_v17  ;;  %v3737_v41 = vor.u32 8388608, %v3736_v35 }
 0x3c6   :  { %v10061_v21 = vadd.s32 4294967294, %v3591_v29  ;;  %v6207_v27 = vadd.s32 3, %v2273_v52  ;;  %v6311_v10 = vadd.s32 3, %v2376_v61  ;;  %v3499_v50 = vor.u32 4788187, %v3498_v4 }
 0x3c7   :  { %v3744_v59 = vsub.s32 32, %v3743_v30  ;;  %v15309_v12 = vpop.eup %11104  ;;  %v3742_v37 = vshrl.u32 %v3741_v45, 5  ;;  %v3746_v49 = vshll.u32 %v17335_v42, %v3743_v30  ;;  %v3749_v8 = vshll.u32 %v17331_v19, %v3743_v30 }
 0x3c8   :  { %vm10062_vm2 = vcmp.lt.s32.totalorder %v10061_v21, 0  ;;  %v3752_v35 = vshll.u32 %v17332_v28, %v3743_v30  ;;  %v3755_v44 = vshll.u32 %v17333_v63, %v3743_v30  ;;  %v3502_v4 = vcvt.s32.f32 %v3495_v25 }
 0x3c9   :  { %v15311_v24 = vsel %vm10062_vm2, 0, %v10061_v21  ;;  %v3747_v36 = vshrl.u32 %v17331_v19, %v3744_v59  ;;  %v3750_v14 = vshrl.u32 %v17332_v28, %v3744_v59  ;;  %v15318_v33 = vpop.eup %11106  ;;  %v3753_v29 = vshrl.u32 %v17333_v63, %v3744_v59 }
 0x3ca   :  { %v3599_v60 = vsub.s32 4294967266, %v15311_v24  ;;  %17818 = vst [vmem:[#allocation14_spill] sm:$0xff] %v15318_v33  ;;  %v3756_v3 = vshrl.u32 %v17369_v23, %v3744_v59  ;;  %v3758_v48 = vshll.u32 %v17369_v23, %v3743_v30  ;;  %v3759_v45 = vshrl.u32 %v17334_v1, %v3744_v59 }
 0x3cb   :  { %v15324_v17 = vpop.eup %11108  ;;  %v15328_v32 = vshll.u32 %v3737_v41, 8  ;;  %v3748_v21 = vor.u32 %v3747_v36, %v3746_v49  ;;  %v3751_v43 = vor.u32 %v3750_v14, %v3749_v8  ;;  %v3754_v7 = vor.u32 %v3753_v29, %v3752_v35  ;;  %v235_v36 = vpop.permute.xlu1 %234 }
 0x3cc   :  { %v3757_v6 = vor.u32 %v3756_v3, %v3755_v44  ;;  %v3600_v46 = vadd.s32 127, %v3599_v60  ;;  %v3760_v20 = vor.u32 %v3759_v45, %v3758_v48  ;;  %v6208_v5 = vand.u32 3, %v6207_v27 }
 0x3cd   :  { %v6312_v33 = vand.u32 3, %v6311_v10  ;;  %v3500_v9 = vand.u32 2147483647, %v3499_v50  ;;  %vm3764_vm6 = vcmp.lt.s32.totalorder %v3742_v37, 4  ;;  %v15330_v51 = vand.u32 3, %v2273_v52  ;;  %v17819_v50 = vld [vmem:[#allocation16_spill] sm:$0xff] }
 0x3ce   :  { %v15332_v18 = vand.u32 3, %v2376_v61  ;;  %v3595_v30 = vsub.s32 32, %v15311_v24  ;;  %v3745_v25 = vshrl.u32 %v17335_v42, %v3744_v59  ;;  %vm3761_vm1 = vcmp.lt.s32.totalorder %v3742_v37, 1  ;;  %v17820_v52 = vld [vmem:[#allocation20_spill] sm:$0xff] }
 0x3cf   :  { %v3766_v41 = vsel %vm3764_vm6, %v3754_v7, 2102212464  ;;  %vm3763_vm8 = vcmp.lt.s32.totalorder %v3742_v37, 3  ;;  %v3769_v14 = vsel %vm3761_vm1, %v3748_v21, %v3751_v43  ;;  %v3770_v49 = vsel %vm3764_vm6, %v3757_v6, 920167782 }
 0x3d0   :  { %v3773_v60 = vsel %vm3761_vm1, %v3751_v43, %v3754_v7  ;;  %v3601_v8 = vshll.u32 %v3600_v46, 23  ;;  %vm3762_vm7 = vcmp.lt.s32.totalorder %v3742_v37, 2  ;;  %v3771_v27 = vsel %vm3763_vm8, %v3754_v7, %v3770_v49 }
 0x3d1   :  { %v3774_v10 = vsel %vm3764_vm6, %v3760_v20, 1326507024  ;;  %v3765_v61 = vsel %vm3761_vm1, %v3745_v25, %v3748_v21  ;;  %v3767_v35 = vsel %vm3763_vm8, %v3751_v43, %v3766_v41  ;;  %v3772_v29 = vsel %vm3762_vm7, %v3769_v14, %v3771_v27  ;;  %v434_v25 = vpop.permute.xlu1 %433 }
 0x3d2   :  { %v3775_v59 = vsel %vm3763_vm8, %v3757_v6, %v3774_v10  ;;  %v15339_v44 = vmul.f32 %v3502_v4, %v3500_v9  ;;  %v15343_v48 = vmul.u32.u64.low %v15328_v32, %v3772_v29  ;;  %v15344_v45 = vmul.u32.u64.high %v15328_v32, %v3772_v29, %v15343_v48 }
 0x3d3   :  { %v3776_v3 = vsel %vm3762_vm7, %v3773_v60, %v3775_v59  ;;  %vm6210_vm6 = vcmp.eq.s32.totalorder %v6208_v5, 0  ;;  %vm6213_vm10 = vcmp.eq.s32.totalorder %v6208_v5, 2  ;;  %v3596_v43 = vshll.u32 %v15254_v0, %v15311_v24 }
 0x3d4   :  { %v15348_v20 = vmul.u32.u64.low %v15328_v32, %v3776_v3  ;;  %v15349_v46 = vmul.u32.u64.high %v15328_v32, %v3776_v3, %v15348_v20  ;;  %v3768_v6 = vsel %vm3762_vm7, %v3765_v61, %v3767_v35  ;;  %v17821_v9 = vxor.u32 2147483648, %v17814_v56 }
 0x3d5   :  { %v17822_v4 = vxor.u32 2147483648, %v17815_v11  ;;  %v3597_v41 = vshrl.u32 %v15301_v26, %v3595_v30  ;;  %v15361_v14 = vor.u32 4788187, %v3601_v8  ;;  %vm6209_vm1 = vcmp.lt.s32.totalorder %v6208_v5, 2  ;;  %v438_v3 = vpop.permute.xlu1 %437 }
 0x3d6   :  { %v6212_v7 = vsel %vm6210_vm6, %v17815_v11, %v17821_v9  ;;  %vm6314_vm8 = vcmp.eq.s32.totalorder %v6312_v33, 0  ;;  %v17823_v49 = vand.u32 2147483647, %v14839_v57  ;;  %v3787_v24 = vadd.s32 1, %v15344_v45 }
 0x3d7   :  { %v6215_v21 = vsel %vm6213_vm10, %v17822_v4, %v17814_v56  ;;  %v17826_v60 = vxor.u32 2147483648, %v17816_v16  ;;  %vm6317_vm10 = vcmp.eq.s32.totalorder %v6312_v33, 2  ;;  %v3784_v26 = vmul.u32 %v15328_v32, %v3768_v6 }
 0x3d8   :  { %vm15365_vm2 = vcmp.le.f32.partialorder %v17823_v49, 0.7853982  ;;  %v6216_v37 = vsel %vm6209_vm1, %v6212_v7, %v6215_v21  ;;  %vm3786_vm7 = vc.u32 %v15349_v46, %v15343_v48  ;;  %vm6313_vm6 = vcmp.lt.s32.totalorder %v6312_v33, 2 }
 0x3d9   :  { %v6316_v27 = vsel %vm6314_vm8, %v17817_v31, %v17826_v60  ;;  %v17827_v5 = vxor.u32 2147483648, %v17817_v31  ;;  %v3788_v8 = vsel %vm3786_vm7, %v3787_v24, %v15344_v45  ;;  %vm2278_vm1 = vcmp.lt.s32.totalorder %v15330_v51, 2 }
 0x3da   :  { %vm2279_vm11 = vcmp.eq.s32.totalorder %v15330_v51, 0  ;;  %v3789_v61 = vadd.s32 %v3788_v8, %v3784_v26  ;;  %vm17828_vm8 = vweird.f32 %v17819_v50  ;;  %vm17829_vm13 = vweird.f32 %v17820_v52  ;;  %v17838_v26 = vld [vmem:[#allocation41_spill] sm:$0xff] }
 0x3db   :  { %v6319_v30 = vsel %vm6317_vm10, %v17827_v5, %v17816_v16  ;;  %v6217_v35 = vsel %vm17828_vm8, nan, %v6216_v37  ;;  %v17830_v33 = vmov %v17821_v9  ;;  %vm2282_vm10 = vcmp.eq.s32.totalorder %v15330_v51, 2 }
 0x3dc   :  { %v6320_v10 = vsel %vm6313_vm6, %v6316_v27, %v6319_v30  ;;  %v2281_v29 = vsel %vm2279_vm11, %v17815_v11, %v17830_v33  ;;  %vm2381_vm7 = vcmp.lt.s32.totalorder %v15332_v18, 2  ;;  %vm2382_vm6 = vcmp.eq.s32.totalorder %v15332_v18, 0 }
 0x3dd   :  { %v6321_v32 = vsel %vm17829_vm13, nan, %v6320_v10  ;;  %v3790_v45 = vadd.s32 536870912, %v3789_v61  ;;  %v17831_v20 = vmov %v17822_v4  ;;  %v17832_v9 = vmov %v17826_v60 }
 0x3de   :  { %v8437_v59 = vpack.c.bf16 %v6321_v32, %v6217_v35  ;;  %v2284_v6 = vsel %vm2282_vm10, %v17831_v20, %v17814_v56  ;;  %v2384_v7 = vsel %vm2382_vm6, %v17817_v31, %v17832_v9  ;;  %vm2385_vm13 = vcmp.eq.s32.totalorder %v15332_v18, 2 }
 0x3df   :  { %vm17833_vm11 = vcmask 523264   ;;  %v2285_v4 = vsel %vm2278_vm1, %v2281_v29, %v2284_v6  ;;  %v17834_v21 = vmov %v17827_v5  ;;  %v298_v24 = vmul.f32 %v17717_v58, %v235_v36  ;;  %vm17835_vm1 = vmmov %vm17828_vm8 }
 0x3e0   :  { %10475 = vmatmul.mubr.msk.bf16.gmra.mrb[32].mxu0 %vm17833_vm11, %v8437_v59  ;;  %v2387_v49 = vsel %vm2385_vm13, %v17834_v21, %v17816_v16  ;;  %v492_v11 = vmul.f32 %v11498_v39, %v434_v25  ;;  %11110 = vcosq.f32 %v15284_v15  ;;  %v15408_v56 = vshrl.u32 %v3790_v45, 30  ;;  %vm17840_vm10 = vmmov %vm17833_vm11 }
 0x3e1   :  { %v2388_v37 = vsel %vm2381_vm7, %v2384_v7, %v2387_v49  ;;  %10478 = vmatprep.mubr.msk.bf16.mxu0 %vm17476_vm5, %v17436_v13  ;;  %v493_v18 = vmul.f32 %v11498_v39, %v438_v3  ;;  %v3598_v51 = vor.u32 %v3597_v41, %v3596_v43  ;;  %v2286_v60 = vsel %vm17835_vm1, nan, %v2285_v4 }
 0x3e2   :  { %vm17836_vm8 = vweird.f32 %v17820_v52  ;;  %v15417_v31 = vadd.f32 %v492_v11, %v298_v24  ;;  %v3405_v36 = vsel %vm15365_vm2, %v14839_v57, %v15290_v34  ;;  %v3792_v25 = vshll.u32 %v15408_v56, 30 }
 0x3e3   :  { %v2389_v16 = vsel %vm17836_vm8, nan, %v2388_v37  ;;  %v15425_v5 = vadd.f32 %v493_v18, %v17838_v26  ;;  %v3504_v43 = vxor.u32 2147483648, %v15339_v44  ;;  %v3603_v50 = vand.u32 2147483647, %v15361_v14  ;;  %v17850_v26 = vld [vmem:[#allocation33_spill] sm:$0xff] }
 0x3e4   :  { %17837 = vst [vmem:[#allocation5_spill] sm:$0xff] %v15417_v31  ;;  %v8410_v27 = vpack.c.bf16 %v2389_v16, %v2286_v60  ;;  %v17279_v52 = vand.u32 2147483647, %v15417_v31  ;;  %v3835_v41 = vand.u32 2139095040, %v15417_v31  ;;  %11112 = vsinq.f32 %v15284_v15  ;;  %v17848_v60 = vld [vmem:[#allocation4_spill] sm:$0xff] }
 0x3e5   :  { %17839 = vst [vmem:[#allocation22_spill] sm:$0xff] %v15425_v5  ;;  %v3403_v30 = vsub.s32 4, %v15020_v53  ;;  %v3506_v34 = vsub.s32 4, %v15163_v38  ;;  %v15434_v8 = vsub.s32 %v3789_v61, %v3792_v25  ;;  %v3605_v10 = vcvt.s32.f32 %v3598_v51  ;;  %v17847_v51 = vld [vmem:[#allocation19_spill] sm:$0xff] }
 0x3e6   :  { %10559 = vmatmul.mubr.msk.bf16.gmra.mrb[32].mxu1 %vm17840_vm10, %v8410_v27  ;;  %v3836_v35 = vshrl.u32 %v3835_v41, 23  ;;  %v17278_v14 = vand.u32 2147483647, %v15425_v5  ;;  %v3938_v32 = vand.u32 2139095040, %v15425_v5  ;;  %11114 = vcosq.f32 %v3405_v36 }
 0x3e7   :  { %10562 = vmatprep.mubr.msk.bf16.mxu1 %vm17476_vm5, %v17436_v13  ;;  %vm3422_vm7 = vcmp.lt.s32.totalorder %v15011_v22, 0  ;;  %v3795_v15 = vsub.s32 0, %v15434_v8  ;;  %v3839_v61 = vand.u32 8388607, %v17279_v52  ;;  %v15446_v29 = vmul.f32 %v3605_v10, %v3603_v50 }
 0x3e8   :  { %v3505_v33 = vsel %vm3422_vm7, %v3504_v43, %v15339_v44  ;;  %v10071_v59 = vadd.s32 4294967169, %v3836_v35  ;;  %v3939_v3 = vshrl.u32 %v3938_v32, 23  ;;  %vm17841_vm6 = vcmp.lt.s32.totalorder %v14839_v57, 0  ;;  %v17853_v32 = vld [vmem:[#allocation70_spill] sm:$0xff] }
 0x3e9   :  { %v15451_v45 = vsel %vm17841_vm6, %v3403_v30, %v15020_v53  ;;  %11116 = vsinq.f32 %v3405_v36  ;;  %v17842_v20 = vand.u32 2147483647, %v15011_v22  ;;  %v17843_v6 = vmov 0  ;;  %v17851_v30 = vld [vmem:[#allocation34_spill] sm:$0xff] }
 0x3ea   :  { %v10068_v9 = vmin.u32 %v3795_v15, %v15434_v8  ;;  %v15461_v44 = vsel %vm3422_vm7, %v3506_v34, %v15163_v38  ;;  %v3842_v7 = vadd.s32 1, %v10071_v59  ;;  %v10075_v4 = vadd.s32 4294967169, %v3939_v3  ;;  %v15467_v53 = vpop.eup %11110 }
 0x3eb   :  { %vm15455_vm13 = vcmp.le.f32.partialorder %v17842_v20, 0.7853982  ;;  %17846 = vst [vmem:[#allocation6_spill] sm:$0xff] %v15461_v44  ;;  %v15465_v21 = vand.u32 8388607, %v17278_v14  ;;  %v3840_v37 = vor.u32 8388608, %v3839_v61  ;;  %v3785_v18 = vadd.s32 %v15343_v48, %v15349_v46 }
 0x3ec   :  { %v17844_v6 = vsel %vm15455_vm13, 4294967295, %v17843_v6  ;;  %v15472_v49 = vsel %vm15455_vm13, %v15011_v22, %v3505_v33  ;;  %v3797_v11 = vclz %v10068_v9  ;;  %vm3843_vm11 = vcmp.gt.s32.totalorder %v3842_v7, 0  ;;  %v17854_v20 = vld [vmem:[#allocation65_spill] sm:$0xff] }
 0x3ed   :  { %17845 = vst [vmem:[#allocation61_spill] sm:$0xff] %v17844_v6  ;;  %vm17849_vm1 = vnez %v17848_v60  ;;  %v3844_v25 = vsel %vm3843_vm11, %v3842_v7, 0  ;;  %v3945_v27 = vadd.s32 1, %v10075_v4  ;;  %v3943_v41 = vor.u32 8388608, %v15465_v21 }
 0x3ee   :  { %v15481_v16 = vsel %vm17849_vm1, 0, %v17847_v51  ;;  %v10069_v36 = vadd.s32 4294967294, %v3797_v11  ;;  %v3846_v50 = vand.u32 31, %v3844_v25  ;;  %v2582_v48 = vsel %vm14559_vm14, 0, %v14647_v2  ;;  %v15489_v46 = vpop.eup %11112 }
 0x3ef   :  { %v15491_v35 = vshll.u32 %v3840_v37, 8  ;;  %v6415_v61 = vadd.s32 3, %v15481_v16  ;;  %v3845_v59 = vshrl.u32 %v3844_v25, 5  ;;  %vm3946_vm14 = vcmp.gt.s32.totalorder %v3945_v27, 0 }
 0x3f0   :  { %vm10070_vm8 = vcmp.lt.s32.totalorder %v10069_v36, 0  ;;  %v3847_v3 = vsub.s32 32, %v3846_v50  ;;  %v15496_v7 = vpop.eup %11114  ;;  %v3849_v21 = vshll.u32 %v17335_v42, %v3846_v50  ;;  %v3852_v2 = vshll.u32 %v17331_v19, %v3846_v50 }
 0x3f1   :  { %v3800_v33 = vsel %vm10070_vm8, 0, %v10069_v36  ;;  %17855 = vst [vmem:[#allocation10_spill] sm:$0xff] %v15496_v7  ;;  %v3855_v51 = vshll.u32 %v17332_v28, %v3846_v50  ;;  %v3858_v25 = vshll.u32 %v17333_v63, %v3846_v50  ;;  %v15508_v14 = vand.u32 3, %v6415_v61 }
 0x3f2   :  { %v3805_v4 = vsub.s32 4294967266, %v3800_v33  ;;  %v3850_v11 = vshrl.u32 %v17331_v19, %v3847_v3  ;;  %v3853_v37 = vshrl.u32 %v17332_v28, %v3847_v3  ;;  %v3856_v60 = vshrl.u32 %v17333_v63, %v3847_v3 }
 0x3f3   :  { %v15504_v36 = vpop.eup %11116  ;;  %v3859_v10 = vshrl.u32 %v17369_v23, %v3847_v3  ;;  %v6519_v52 = vadd.s32 3, %v2582_v48  ;;  %v3947_v15 = vsel %vm3946_vm14, %v3945_v27, 0  ;;  %v3801_v34 = vsub.s32 32, %v3800_v33 }
 0x3f4   :  { %17856 = vst [vmem:[#allocation62_spill] sm:$0xff] %v15504_v36  ;;  %v3851_v24 = vor.u32 %v3850_v11, %v3849_v21  ;;  %v3854_v38 = vor.u32 %v3853_v37, %v3852_v2  ;;  %v3857_v9 = vor.u32 %v3856_v60, %v3855_v51  ;;  %v3861_v22 = vshll.u32 %v17369_v23, %v3846_v50 }
 0x3f5   :  { %v3860_v43 = vor.u32 %v3859_v10, %v3858_v25  ;;  %v3862_v6 = vshrl.u32 %v17334_v1, %v3847_v3  ;;  %v3802_v44 = vshll.u32 %v15434_v8, %v3800_v33  ;;  %v3806_v7 = vadd.s32 127, %v3805_v4 }
 0x3f6   :  { %v3848_v36 = vshrl.u32 %v17335_v42, %v3847_v3  ;;  %vm3864_vm10 = vcmp.lt.s32.totalorder %v3845_v59, 1  ;;  %vm3865_vm7 = vcmp.lt.s32.totalorder %v3845_v59, 2  ;;  %vm3866_vm6 = vcmp.lt.s32.totalorder %v3845_v59, 3 }
 0x3f7   :  { %v3863_v57 = vor.u32 %v3862_v6, %v3861_v22  ;;  %vm3867_vm11 = vcmp.lt.s32.totalorder %v3845_v59, 4  ;;  %v3872_v21 = vsel %vm3864_vm10, %v3851_v24, %v3854_v38  ;;  %v3876_v27 = vsel %vm3864_vm10, %v3854_v38, %v3857_v9 }
 0x3f8   :  { %v3869_v61 = vsel %vm3867_vm11, %v3857_v9, 2102212464  ;;  %v3873_v2 = vsel %vm3867_vm11, %v3860_v43, 920167782  ;;  %v3868_v11 = vsel %vm3864_vm10, %v3848_v36, %v3851_v24  ;;  %v3803_v60 = vshrl.u32 %v3785_v18, %v3801_v34 }
 0x3f9   :  { %v3870_v37 = vsel %vm3866_vm6, %v3854_v38, %v3869_v61  ;;  %v3874_v51 = vsel %vm3866_vm6, %v3857_v9, %v3873_v2  ;;  %v3877_v50 = vsel %vm3867_vm11, %v3863_v57, 1326507024  ;;  %v3807_v25 = vshll.u32 %v3806_v7, 23 }
 0x3fa   :  { %v3875_v8 = vsel %vm3865_vm7, %v3872_v21, %v3874_v51  ;;  %v3878_v33 = vsel %vm3866_vm6, %v3860_v43, %v3877_v50  ;;  %v15521_v4 = vshrl.u32 %v3947_v15, 5  ;;  %v3871_v10 = vsel %vm3865_vm7, %v3868_v11, %v3870_v37  ;;  %v17857_v37 = vld [vmem:[#allocation43_spill] sm:$0xff] }
 0x3fb   :  { %v3879_v3 = vsel %vm3865_vm7, %v3876_v27, %v3878_v33  ;;  %v15517_v22 = vmul.u32.u64.low %v15491_v35, %v3875_v8  ;;  %v15518_v6 = vmul.u32.u64.high %v15491_v35, %v3875_v8, %v15517_v22  ;;  %v3949_v57 = vand.u32 31, %v3947_v15  ;;  %v17992_v0 = vld [vmem:[#allocation62_spill] sm:$0xff] }
 0x3fc   :  { %v15525_v24 = vmul.u32.u64.low %v15491_v35, %v3879_v3  ;;  %v15526_v38 = vmul.u32.u64.high %v15491_v35, %v3879_v3, %v15525_v24  ;;  %v15528_v18 = vshll.u32 %v3943_v41, 8  ;;  %v15530_v34 = vand.u32 3, %v6519_v52 }
 0x3fd   :  { %v15533_v43 = vand.u32 3, %v15481_v16  ;;  %v15535_v9 = vand.u32 3, %v2582_v48  ;;  %v15537_v7 = vor.u32 %v3803_v60, %v3802_v44  ;;  %v15539_v36 = vor.u32 4788187, %v3807_v25 }
 0x3fe   :  { %v3950_v59 = vsub.s32 32, %v3949_v57  ;;  %vm6418_vm1 = vcmp.eq.s32.totalorder %v15508_v14, 0  ;;  %v3887_v61 = vmul.u32 %v15491_v35, %v3871_v10  ;;  %v3890_v15 = vadd.s32 1, %v15518_v6 }
 0x3ff   :  { %vm3967_vm8 = vcmp.lt.s32.totalorder %v15521_v4, 1  ;;  %vm3968_vm14 = vcmp.lt.s32.totalorder %v15521_v4, 2  ;;  %vm3889_vm10 = vc.u32 %v15526_v38, %v15517_v22  ;;  %v3952_v52 = vshll.u32 %v17335_v42, %v3949_v57 }
 0x400   :  { %v3955_v44 = vshll.u32 %v17331_v19, %v3949_v57  ;;  %vm3969_vm7 = vcmp.lt.s32.totalorder %v15521_v4, 3  ;;  %v3891_v16 = vsel %vm3889_vm10, %v3890_v15, %v15518_v6  ;;  %v3953_v41 = vshrl.u32 %v17331_v19, %v3950_v59 }
 0x401   :  { %v3956_v48 = vshrl.u32 %v17332_v28, %v3950_v59  ;;  %v3958_v35 = vshll.u32 %v17332_v28, %v3949_v57  ;;  %v3892_v21 = vadd.s32 %v3891_v16, %v3887_v61  ;;  %v3959_v2 = vshrl.u32 %v17333_v63, %v3950_v59  ;;  %v17859_v16 = vld [vmem:[#allocation26_spill] sm:$0xff] }
 0x402   :  { %v3961_v27 = vshll.u32 %v17333_v63, %v3949_v57  ;;  %v3962_v11 = vshrl.u32 %v17369_v23, %v3950_v59  ;;  %v3954_v51 = vor.u32 %v3953_v41, %v3952_v52  ;;  %v3964_v60 = vshll.u32 %v17369_v23, %v3949_v57 }
 0x403   :  { %v3957_v50 = vor.u32 %v3956_v48, %v3955_v44  ;;  %v3965_v25 = vshrl.u32 %v17334_v1, %v3950_v59  ;;  %v3893_v8 = vadd.s32 536870912, %v3892_v21  ;;  %v3951_v33 = vshrl.u32 %v17335_v42, %v3950_v59 }
 0x404   :  { %v3960_v3 = vor.u32 %v3959_v2, %v3958_v35  ;;  %v3963_v6 = vor.u32 %v3962_v11, %v3961_v27  ;;  %vm3970_vm10 = vcmp.lt.s32.totalorder %v15521_v4, 4  ;;  %v17858_v61 = vxor.u32 2147483648, %v17850_v26 }
 0x405   :  { %v3966_v10 = vor.u32 %v3965_v25, %v3964_v60  ;;  %v3975_v24 = vsel %vm3967_vm8, %v3954_v51, %v3957_v50  ;;  %v15571_v57 = vshrl.u32 %v3893_v8, 30  ;;  %vm17287_vm11 = vweird.f32 %v17859_v16 }
 0x406   :  { %v6420_v15 = vsel %vm6418_vm1, %v17851_v30, %v17858_v61  ;;  %v3972_v52 = vsel %vm3970_vm10, %v3960_v3, 2102212464  ;;  %v3976_v44 = vsel %vm3970_vm10, %v3963_v6, 920167782  ;;  %vm6421_vm6 = vcmp.eq.s32.totalorder %v15508_v14, 2 }
 0x407   :  { %v3977_v59 = vsel %vm3969_vm7, %v3960_v3, %v3976_v44  ;;  %v3979_v41 = vsel %vm3967_vm8, %v3957_v50, %v3960_v3  ;;  %v3980_v48 = vsel %vm3970_vm10, %v3966_v10, 1326507024  ;;  %v17860_v35 = vxor.u32 2147483648, %v17851_v30 }
 0x408   :  { %v3895_v27 = vshll.u32 %v15571_v57, 30  ;;  %v3971_v11 = vsel %vm3967_vm8, %v3951_v33, %v3954_v51  ;;  %v3973_v60 = vsel %vm3969_vm7, %v3957_v50, %v3972_v52  ;;  %v3978_v25 = vsel %vm3968_vm14, %v3975_v24, %v3977_v59  ;;  %v250_v52 = vpop.permute.xlu1 %249 }
 0x409   :  { %v6423_v2 = vsel %vm6421_vm6, %v17860_v35, %v17850_v26  ;;  %v3811_v8 = vcvt.s32.f32 %v15537_v7  ;;  %v3981_v3 = vsel %vm3969_vm7, %v3963_v6, %v3980_v48  ;;  %v3809_v51 = vand.u32 2147483647, %v15539_v36 }
 0x40a   :  { %v15594_v10 = vmul.u32.u64.low %v15528_v18, %v3978_v25  ;;  %v15595_v61 = vmul.u32.u64.high %v15528_v18, %v3978_v25, %v15594_v10  ;;  %v15599_v33 = vsub.s32 %v3892_v21, %v3895_v27  ;;  %v3982_v50 = vsel %vm3968_vm14, %v3979_v41, %v3981_v3 }
 0x40b   :  { %vm17861_vm8 = vcmp.lt.s32.totalorder %v15508_v14, 2  ;;  %v3974_v7 = vsel %vm3968_vm14, %v3971_v11, %v3973_v60  ;;  %v15608_v6 = vmul.u32.u64.low %v15528_v18, %v3982_v50  ;;  %v15609_v44 = vmul.u32.u64.high %v15528_v18, %v3982_v50, %v15608_v6  ;;  %v17863_v14 = vld [vmem:[#allocation27_spill] sm:$0xff]  ;;  %v10990_v50 = vld [vmem:[%s17032_s5] sm:$0xff]  }
 0x40c   :  { %v6424_v24 = vsel %vm17861_vm8, %v6420_v15, %v6423_v2  ;;  %vm17862_vm7 = vweird.f32 %v17857_v37  ;;  %v3898_v36 = vsub.s32 0, %v15599_v33  ;;  %vm6521_vm6 = vcmp.lt.s32.totalorder %v15530_v34, 2  ;;  %10603 = vmatpush3.bf16.msra.mxu0 %v10990_v50 }
 0x40d   :  { %v6425_v59 = vsel %vm17862_vm7, nan, %v6424_v24  ;;  %vm6522_vm10 = vcmp.eq.s32.totalorder %v15530_v34, 0  ;;  %vm6525_vm1 = vcmp.eq.s32.totalorder %v15530_v34, 2  ;;  %v3993_v4 = vadd.s32 1, %v15595_v61  ;;  %10604 = vmatprep.subr.bf16.mxu0 %v17436_v13 }
 0x40e   :  { %v17864_v21 = vxor.u32 2147483648, %v17853_v32  ;;  %v17865_v41 = vxor.u32 2147483648, %v17854_v20  ;;  %vm2485_vm14 = vcmp.eq.s32.totalorder %v15533_v43, 0  ;;  %v10072_v35 = vmin.u32 %v3898_v36, %v15599_v33 }
 0x40f   :  { %v17866_v27 = vxor.u32 2147483648, %v17850_v26  ;;  %vm2488_vm7 = vcmp.eq.s32.totalorder %v15533_v43, 2  ;;  %v3990_v11 = vmul.u32 %v15528_v18, %v3974_v7  ;;  %v17867_v25 = vxor.u32 2147483648, %v17851_v30 }
 0x410   :  { %v6524_v15 = vsel %vm6522_vm10, %v17854_v20, %v17864_v21  ;;  %v6527_v48 = vsel %vm6525_vm1, %v17865_v41, %v17853_v32  ;;  %vm3992_vm10 = vc.u32 %v15609_v44, %v15594_v10  ;;  %v17868_v24 = vand.u32 2147483647, %v17863_v14 }
 0x411   :  { %v6528_v2 = vsel %vm6521_vm6, %v6524_v15, %v6527_v48  ;;  %v2487_v34 = vsel %vm2485_vm14, %v17851_v30, %v17866_v27  ;;  %v2490_v3 = vsel %vm2488_vm7, %v17867_v25, %v17850_v26  ;;  %v3812_v18 = vmul.f32 %v3811_v8, %v3809_v51  ;;  %v446_v15 = vpop.permute.xlu1 %445 }
 0x412   :  { %v6529_v60 = vsel %vm17287_vm11, nan, %v6528_v2  ;;  %vm15645_vm1 = vcmp.le.f32.partialorder %v17868_v24, 0.7853982  ;;  %v3900_v7 = vclz %v10072_v35  ;;  %v3994_v36 = vsel %vm3992_vm10, %v3993_v4, %v15595_v61 }
 0x413   :  { %v8438_v21 = vpack.c.bf16 %v6529_v60, %v6425_v59  ;;  %v3995_v41 = vadd.s32 %v3994_v36, %v3990_v11  ;;  %vm17871_vm6 = vcmp.lt.s32.totalorder %v15533_v43, 2  ;;  %vm2588_vm14 = vcmp.eq.s32.totalorder %v15535_v9, 0 }
 0x414   :  { %v2491_v26 = vsel %vm17871_vm6, %v2487_v34, %v2490_v3  ;;  %vm2591_vm7 = vcmp.eq.s32.totalorder %v15535_v9, 2  ;;  %v10073_v30 = vadd.s32 4294967294, %v3900_v7  ;;  %vm17872_vm8 = vcmask 523264  }
 0x415   :  { %10479 = vmatmul.mubr.msk.bf16.gmra.mrb[36].mxu0 %vm17872_vm8, %v8438_v21  ;;  %vm2587_vm11 = vcmp.lt.s32.totalorder %v15535_v9, 2  ;;  %v17873_v8 = vxor.u32 2147483648, %v17853_v32  ;;  %v17874_v51 = vxor.u32 2147483648, %v17854_v20  ;;  %v3996_v43 = vadd.s32 536870912, %v3995_v41 }
 0x416   :  { %v301_v48 = vmul.f32 %v17717_v58, %v250_v52  ;;  %v495_v35 = vmul.f32 %v11498_v39, %v446_v15  ;;  %10482 = vmatprep.mubr.msk.bf16.mxu0 %vm17476_vm5, %v17436_v13  ;;  %v3813_v9 = vxor.u32 2147483648, %v3812_v18  ;;  %vm10074_vm8 = vcmp.lt.s32.totalorder %v10073_v30, 0 }
 0x417   :  { %v2590_v61 = vsel %vm2588_vm14, %v17854_v20, %v17873_v8  ;;  %v2593_v59 = vsel %vm2591_vm7, %v17874_v51, %v17853_v32  ;;  %vm17875_vm10 = vweird.f32 %v17857_v37  ;;  %vm17876_vm6 = vweird.f32 %v17859_v16 }
 0x418   :  { %v2594_v4 = vsel %vm2587_vm11, %v2590_v61, %v2593_v59  ;;  %v2492_v2 = vsel %vm17875_vm10, nan, %v2491_v26  ;;  %v3903_v32 = vsel %vm10074_vm8, 0, %v10073_v30  ;;  %v15671_v27 = vshrl.u32 %v3996_v43, 30  ;;  %v17885_v30 = vld [vmem:[#allocation25_spill] sm:$0xff] }
 0x419   :  { %v2595_v20 = vsel %vm17876_vm6, nan, %v2594_v4  ;;  %v15673_v11 = vadd.f32 %v495_v35, %v301_v48  ;;  %v17877_v52 = vxor.u32 2147483648, %v15446_v29  ;;  %vm17878_vm11 = vcmp.lt.s32.totalorder %v17863_v14, 0 }
 0x41a   :  { %v8411_v34 = vpack.c.bf16 %v2595_v20, %v2492_v2  ;;  %v3888_v25 = vadd.s32 %v15517_v22, %v15526_v38  ;;  %v3904_v37 = vsub.s32 32, %v3903_v32  ;;  %v3908_v3 = vsub.s32 4294967266, %v3903_v32 }
 0x41b   :  { %v3608_v60 = vsel %vm17878_vm11, %v17877_v52, %v15446_v29  ;;  %11118 = vcosq.f32 %v15472_v49  ;;  %v17879_v16 = vand.u32 2147483647, %v15228_v62  ;;  %v17880_v50 = vmov 0 }
 0x41c   :  { %v3998_v24 = vshll.u32 %v15671_v27, 30  ;;  %vm17883_vm7 = vcmask 523264   ;;  %v17288_v7 = vand.u32 2147483647, %v15673_v11  ;;  %vm17884_vm8 = vcmp.lt.s32.totalorder %v15228_v62, 0 }
 0x41d   :  { %vm15685_vm14 = vcmp.le.f32.partialorder %v17879_v16, 0.7853982  ;;  %10563 = vmatmul.mubr.msk.bf16.gmra.mrb[36].mxu1 %vm17883_vm7, %v8411_v34  ;;  %v3814_v29 = vsel %vm17884_vm8, %v3813_v9, %v3812_v18  ;;  %v3906_v22 = vshrl.u32 %v3888_v25, %v3904_v37  ;;  %v3909_v38 = vadd.s32 127, %v3908_v3  ;;  %vm17891_vm10 = vmmov %vm17884_vm8 }
 0x41e   :  { %v17881_v50 = vsel %vm15685_vm14, 4294967295, %v17880_v50  ;;  %v4144_v36 = vand.u32 2139095040, %v15673_v11  ;;  %10566 = vmatprep.mubr.msk.bf16.mxu1 %vm17476_vm5, %v17436_v13  ;;  %v3611_v21 = vsel %vm15645_vm1, %v17863_v14, %v3608_v60  ;;  %v3905_v15 = vshll.u32 %v15599_v33, %v3903_v32  ;;  %v17889_v32 = vld [vmem:[#allocation51_spill] sm:$0xff] }
 0x41f   :  { %17882 = vst [vmem:[#allocation49_spill] sm:$0xff] %v17881_v50  ;;  %v15701_v26 = vsub.s32 %v3995_v41, %v3998_v24  ;;  %v2685_v61 = vsel %vm14798_vm9, 0, %v17885_v30  ;;  %11120 = vsinq.f32 %v15472_v49  ;;  %v3815_v18 = vsub.s32 4, %v15408_v56  ;;  %vm17888_vm9 = vmmov %vm17878_vm11  ;;  %v17893_v30 = vld [vmem:[#allocation69_spill] sm:$0xff] }
 0x420   :  { %v3910_v51 = vshll.u32 %v3909_v38, 23  ;;  %v4145_v59 = vshrl.u32 %v4144_v36, 23  ;;  %v15711_v43 = vsel %vm15685_vm14, %v15228_v62, %v3814_v29  ;;  %v3907_v4 = vor.u32 %v3906_v22, %v3905_v15 }
 0x421   :  { %v4001_v33 = vsub.s32 0, %v15701_v26  ;;  %v4148_v41 = vand.u32 8388607, %v17288_v7  ;;  %11122 = vcosq.f32 %v3611_v21  ;;  %v6623_v9 = vadd.s32 3, %v2685_v61 }
 0x422   :  { %v3911_v48 = vor.u32 4788187, %v3910_v51  ;;  %v10083_v35 = vadd.s32 4294967169, %v4145_v59  ;;  %v17887_v49 = vsub.s32 4, %v15236_v54  ;;  %11124 = vsinq.f32 %v3611_v21  ;;  %v17894_v51 = vld [vmem:[#allocation56_spill] sm:$0xff] }
 0x423   :  { %v10076_v20 = vmin.u32 %v4001_v33, %v15701_v26  ;;  %v2788_v52 = vsel %vm14833_vm3, 0, %v17889_v32  ;;  %v15730_v60 = vsel %vm17891_vm10, %v3815_v18, %v15408_v56  ;;  %11126 = vcosq.f32 %v15711_v43 }
 0x424   :  { %v15721_v2 = vsel %vm17888_vm9, %v17887_v49, %v15236_v54  ;;  %17892 = vst [vmem:[#allocation55_spill] sm:$0xff] %v15730_v60  ;;  %v3912_v25 = vand.u32 2147483647, %v3911_v48  ;;  %v4151_v37 = vadd.s32 1, %v10083_v35  ;;  %v3914_v3 = vcvt.s32.f32 %v3907_v4  ;;  %v17895_v4 = vld [vmem:[#allocation2_spill] sm:$0xff]  ;;  %v10991_v48 = vld [vmem:[%s17032_s5 + $0x8] sm:$0xff]  }
 0x425   :  { %v4003_v16 = vclz %v10076_v20  ;;  %v4149_v24 = vor.u32 8388608, %v4148_v41  ;;  %v3991_v29 = vadd.s32 %v15594_v10, %v15609_v44  ;;  %v15736_v22 = vand.u32 3, %v6623_v9  ;;  %v15738_v36 = vpop.eup %11118  ;;  %v17896_v41 = vld [vmem:[#allocation38_spill] sm:$0xff]  ;;  %10605 = vmatpush3.bf16.msra.mxu0 %v10991_v48 }
 0x426   :  { %vm4152_vm6 = vcmp.gt.s32.totalorder %v4151_v37, 0  ;;  %v6727_v38 = vadd.s32 3, %v2788_v52  ;;  %v15740_v56 = vmul.f32 %v3914_v3, %v3912_v25  ;;  %v17289_v8 = vxor.u32 2147483648, %v17893_v30  ;;  %10606 = vmatprep.subr.bf16.mxu0 %v17436_v13 }
 0x427   :  { %v10077_v21 = vadd.s32 4294967294, %v4003_v16  ;;  %v4153_v15 = vsel %vm4152_vm6, %v4151_v37, 0  ;;  %v15746_v10 = vshll.u32 %v4149_v24, 8  ;;  %v15748_v44 = vand.u32 3, %v2685_v61 }
 0x428   :  { %v4155_v18 = vand.u32 31, %v4153_v15  ;;  %v15750_v35 = vand.u32 3, %v2788_v52  ;;  %vm6626_vm11 = vcmp.eq.s32.totalorder %v15736_v22, 0  ;;  %v15755_v32 = vand.u32 3, %v6727_v38 }
 0x429   :  { %vm10078_vm3 = vcmp.lt.s32.totalorder %v10077_v21, 0  ;;  %v15752_v9 = vpop.eup %11120  ;;  %v15761_v3 = vsel %vm6626_vm11, %v17894_v51, %v17289_v8  ;;  %v4154_v16 = vshrl.u32 %v4153_v15, 5  ;;  %vm17297_vm10 = vcmp.lt.s32.totalorder %v15417_v31, 0 }
 0x42a   :  { %v4006_v49 = vsel %vm10078_vm3, 0, %v10077_v21  ;;  %v4156_v20 = vsub.s32 32, %v4155_v18  ;;  %v4158_v24 = vshll.u32 %v17335_v42, %v4155_v18  ;;  %v4161_v34 = vshll.u32 %v17331_v19, %v4155_v18 }
 0x42b   :  { %v4007_v25 = vsub.s32 32, %v4006_v49  ;;  %v4011_v37 = vsub.s32 4294967266, %v4006_v49  ;;  %v15763_v61 = vpop.eup %11122  ;;  %v4008_v52 = vshll.u32 %v15701_v26, %v4006_v49  ;;  %v4164_v33 = vshll.u32 %v17332_v28, %v4155_v18 }
 0x42c   :  { %17897 = vst [vmem:[#allocation46_spill] sm:$0xff] %v15763_v61  ;;  %v4159_v21 = vshrl.u32 %v17331_v19, %v4156_v20  ;;  %v15769_v38 = vpop.eup %11124  ;;  %v4162_v8 = vshrl.u32 %v17332_v28, %v4156_v20  ;;  %v4157_v15 = vshrl.u32 %v17335_v42, %v4156_v20  ;;  %v4165_v59 = vshrl.u32 %v17333_v63, %v4156_v20 }
 0x42d   :  { %17898 = vst [vmem:[#allocation54_spill] sm:$0xff] %v15769_v38  ;;  %v4009_v7 = vshrl.u32 %v3991_v29, %v4007_v25  ;;  %v4012_v54 = vadd.s32 127, %v4011_v37  ;;  %v15776_v26 = vpop.eup %11126  ;;  %v4167_v25 = vshll.u32 %v17333_v63, %v4155_v18  ;;  %v4168_v37 = vshrl.u32 %v17369_v23, %v4156_v20 }
 0x42e   :  { %17899 = vst [vmem:[#allocation63_spill] sm:$0xff] %v15776_v26  ;;  %v4160_v49 = vor.u32 %v4159_v21, %v4158_v24  ;;  %v4163_v29 = vor.u32 %v4162_v8, %v4161_v34  ;;  %v4166_v60 = vor.u32 %v4165_v59, %v4164_v33  ;;  %v4170_v26 = vshll.u32 %v17369_v23, %v4155_v18  ;;  %v15787_v24 = vpop.permute.xlu1 %254  ;;  %v17900_v59 = vld [vmem:[#allocation39_spill] sm:$0xff]  ;;  %v17901_v18 = vld [vmem:[#allocation53_spill] sm:$0xff] }
 0x42f   :  { %v4013_v62 = vshll.u32 %v4012_v54, 23  ;;  %v4010_v50 = vor.u32 %v4009_v7, %v4008_v52  ;;  %v4171_v61 = vshrl.u32 %v17334_v1, %v4156_v20  ;;  %v4169_v8 = vor.u32 %v4168_v37, %v4167_v25 }
 0x430   :  { %vm4173_vm6 = vcmp.lt.s32.totalorder %v4154_v16, 1  ;;  %vm4174_vm3 = vcmp.lt.s32.totalorder %v4154_v16, 2  ;;  %vm4175_vm11 = vcmp.lt.s32.totalorder %v4154_v16, 3  ;;  %vm4176_vm8 = vcmp.lt.s32.totalorder %v4154_v16, 4 }
 0x431   :  { %v4014_v54 = vor.u32 4788187, %v4013_v62  ;;  %v4172_v34 = vor.u32 %v4171_v61, %v4170_v26  ;;  %v4177_v7 = vsel %vm4173_vm6, %v4157_v15, %v4160_v49  ;;  %v4178_v48 = vsel %vm4176_vm8, %v4166_v60, 2102212464 }
 0x432   :  { %v4181_v20 = vsel %vm4173_vm6, %v4160_v49, %v4163_v29  ;;  %v4182_v52 = vsel %vm4176_vm8, %v4169_v8, 920167782  ;;  %v4179_v21 = vsel %vm4175_vm11, %v4163_v29, %v4178_v48  ;;  %v4185_v25 = vsel %vm4173_vm6, %v4163_v29, %v4166_v60 }
 0x433   :  { %v4015_v33 = vand.u32 2147483647, %v4014_v54  ;;  %v4183_v62 = vsel %vm4175_vm11, %v4166_v60, %v4182_v52  ;;  %v4186_v37 = vsel %vm4176_vm8, %v4172_v34, 1326507024  ;;  %v4017_v61 = vcvt.s32.f32 %v4010_v50  ;;  %v450_v50 = vpop.permute.xlu1 %449 }
 0x434   :  { %v4184_v26 = vsel %vm4174_vm3, %v4181_v20, %v4183_v62  ;;  %v4187_v15 = vsel %vm4175_vm11, %v4169_v8, %v4186_v37  ;;  %v17902_v38 = vxor.u32 2147483648, %v17894_v51  ;;  %vm17903_vm14 = vcmp.eq.s32.totalorder %v15736_v22, 2 }
 0x435   :  { %v4188_v54 = vsel %vm4174_vm3, %v4185_v25, %v4187_v15  ;;  %v15806_v48 = vmul.u32.u64.low %v15746_v10, %v4184_v26  ;;  %v15807_v52 = vmul.u32.u64.high %v15746_v10, %v4184_v26, %v15806_v48  ;;  %vm6730_vm8 = vcmp.eq.s32.totalorder %v15755_v32, 0 }
 0x436   :  { %v6631_v49 = vsel %vm17903_vm14, %v17902_v38, %v17893_v30  ;;  %v17904_v60 = vand.u32 2147483647, %v15417_v31  ;;  %v17905_v29 = vmov 0  ;;  %v4018_v8 = vmul.f32 %v4017_v61, %v4015_v33 }
 0x437   :  { %v4180_v38 = vsel %vm4174_vm3, %v4177_v7, %v4179_v21  ;;  %v15819_v34 = vmul.u32.u64.low %v15746_v10, %v4188_v54  ;;  %v15820_v20 = vmul.u32.u64.high %v15746_v10, %v4188_v54, %v15819_v34  ;;  %vm17908_vm14 = vcmp.lt.s32.totalorder %v15736_v22, 2 }
 0x438   :  { %vm15813_vm6 = vcmp.le.f32.partialorder %v17904_v60, 0.7853982  ;;  %v6632_v62 = vsel %vm17908_vm14, %v15761_v3, %v6631_v49  ;;  %v17909_v25 = vxor.u32 2147483648, %v17895_v4  ;;  %vm6733_vm11 = vcmp.eq.s32.totalorder %v15755_v32, 2 }
 0x439   :  { %v17906_v29 = vsel %vm15813_vm6, 4294967295, %v17905_v29  ;;  %vm2694_vm7 = vcmp.eq.s32.totalorder %v15748_v44, 2  ;;  %v17910_v33 = vand.u32 2147483647, %v15425_v5  ;;  %v17911_v16 = vmov 0 }
 0x43a   :  { %17907 = vst [vmem:[#allocation7_spill] sm:$0xff] %v17906_v29  ;;  %v6732_v37 = vsel %vm6730_vm8, %v17896_v41, %v17909_v25  ;;  %vm6729_vm3 = vcmp.lt.s32.totalorder %v15755_v32, 2  ;;  %v17914_v22 = vxor.u32 2147483648, %v17896_v41  ;;  %v17915_v7 = vxor.u32 2147483648, %v17893_v30 }
 0x43b   :  { %vm15832_vm9 = vcmp.le.f32.partialorder %v17910_v33, 0.7853982  ;;  %vm17916_vm8 = vcmp.eq.s32.totalorder %v15748_v44, 0  ;;  %v17917_v61 = vxor.u32 2147483648, %v17894_v51  ;;  %v17918_v15 = vxor.u32 2147483648, %v15740_v56 }
 0x43c   :  { %v17912_v16 = vsel %vm15832_vm9, 4294967295, %v17911_v16  ;;  %v6735_v3 = vsel %vm6733_vm11, %v17914_v22, %v17895_v4  ;;  %v2693_v21 = vsel %vm17916_vm8, %v17894_v51, %v17915_v7  ;;  %v4196_v49 = vmul.u32 %v15746_v10, %v4180_v38  ;;  %v260_v51 = vpop.permute.xlu0 %259  ;;  %v454_v10 = vpop.permute.xlu1 %453 }
 0x43d   :  { %17913 = vst [vmem:[#allocation29_spill] sm:$0xff] %v17912_v16  ;;  %v2696_v26 = vsel %vm2694_vm7, %v17917_v61, %v17893_v30  ;;  %v3917_v32 = vsel %vm17297_vm10, %v17918_v15, %v15740_v56  ;;  %v4199_v54 = vadd.s32 1, %v15807_v52  ;;  %v6736_v60 = vsel %vm6729_vm3, %v6732_v37, %v6735_v3 }
 0x43e   :  { %v4019_v34 = vxor.u32 2147483648, %v4018_v8  ;;  %vm4198_vm14 = vc.u32 %v15820_v20, %v15806_v48  ;;  %vm17919_vm11 = vweird.f32 %v17900_v59  ;;  %vm17920_vm7 = vweird.f32 %v17901_v18 }
 0x43f   :  { %v6633_v25 = vsel %vm17919_vm11, nan, %v6632_v62  ;;  %v6737_v30 = vsel %vm17920_vm7, nan, %v6736_v60  ;;  %v4200_v33 = vsel %vm4198_vm14, %v4199_v54, %v15807_v52  ;;  %vm17921_vm8 = vcmp.lt.s32.totalorder %v15748_v44, 2 }
 0x440   :  { %v8439_v22 = vpack.c.bf16 %v6737_v30, %v6633_v25  ;;  %v2697_v56 = vsel %vm17921_vm8, %v2693_v21, %v2696_v26  ;;  %vm2793_vm10 = vcmp.lt.s32.totalorder %v15750_v35, 2  ;;  %v4201_v38 = vadd.s32 %v4200_v33, %v4196_v49 }
 0x441   :  { %vm2794_vm3 = vcmp.eq.s32.totalorder %v15750_v35, 0  ;;  %vm2797_vm15 = vcmp.eq.s32.totalorder %v15750_v35, 2  ;;  %v302_v62 = vmul.f32 %v17717_v58, %v15787_v24  ;;  %vm17922_vm11 = vcmask 523264  }
 0x442   :  { %10483 = vmatmul.mubr.msk.bf16.gmra.mrb[40].mxu0 %vm17922_vm11, %v8439_v22  ;;  %v17923_v37 = vxor.u32 2147483648, %v17895_v4  ;;  %v17924_v44 = vxor.u32 2147483648, %v17896_v41  ;;  %v496_v7 = vmul.f32 %v11498_v39, %v450_v50  ;;  %v303_v21 = vmul.f32 %v17717_v58, %v260_v51  ;;  %vm17930_vm8 = vmmov %vm17922_vm11  ;;  %v15920_v22 = vpop.f32.mrb[0].mxu0 }
 0x443   :  { %vm17925_vm14 = vcmp.lt.s32.totalorder %v15425_v5, 0  ;;  %v4202_v61 = vadd.s32 536870912, %v4201_v38  ;;  %10486 = vmatprep.mubr.msk.bf16.mxu0 %vm17476_vm5, %v17436_v13  ;;  %v497_v24 = vmul.f32 %v11498_v39, %v454_v10  ;;  %v3920_v15 = vsel %vm15813_vm6, %v15417_v31, %v3917_v32  ;;  %17931 = vst [vmem:[#allocation71_spill] sm:$0xff] %v15920_v22  ;;  %v10993_v22 = vld [vmem:[%s17032_s5 + $0x18] sm:$0xff]  }
 0x444   :  { %v2796_v52 = vsel %vm2794_vm3, %v17896_v41, %v17923_v37  ;;  %v2799_v3 = vsel %vm2797_vm15, %v17924_v44, %v17895_v4  ;;  %v4020_v35 = vsel %vm17925_vm14, %v4019_v34, %v4018_v8  ;;  %vm17926_vm15 = vweird.f32 %v17900_v59  ;;  %v17932_v37 = vld [vmem:[#allocation35_spill] sm:$0xff] }
 0x445   :  { %v2800_v26 = vsel %vm2793_vm10, %v2796_v52, %v2799_v3  ;;  %v2698_v4 = vsel %vm17926_vm15, nan, %v2697_v56  ;;  %v15890_v41 = vadd.f32 %v496_v7, %v302_v62  ;;  %11128 = vsinq.f32 %v15711_v43  ;;  %v17933_v52 = vld [vmem:[#allocation32_spill] sm:$0xff]  ;;  %v10444_v3 = vpop.f32.mrb[1].mxu0 }
 0x446   :  { %v2801_v58 = vsel %vm17920_vm7, nan, %v2800_v26  ;;  %v4203_v50 = vshrl.u32 %v4202_v61, 30  ;;  %v15893_v49 = vadd.f32 %v497_v24, %v303_v21  ;;  %v17927_v39 = vsub.s32 4, %v15571_v57  ;;  %v17936_v24 = vld [vmem:[#allocation74_spill] sm:$0xff] }
 0x447   :  { %v8412_v8 = vpack.c.bf16 %v2801_v58, %v2698_v4  ;;  %vm17928_vm10 = vcmp.lt.s32.totalorder %v15417_v31, 0  ;;  %v4023_v59 = vsel %vm15832_vm9, %v15425_v5, %v4020_v35  ;;  %v17300_v18 = vand.u32 2147483647, %v15890_v41 }
 0x448   :  { %v15900_v32 = vsel %vm17928_vm10, %v17927_v39, %v15571_v57  ;;  %v4247_v54 = vand.u32 2139095040, %v15890_v41  ;;  %11130 = vcosq.f32 %v3920_v15  ;;  %v4021_v43 = vsub.s32 4, %v15671_v27 }
 0x449   :  { %17929 = vst [vmem:[#allocation72_spill] sm:$0xff] %v15900_v32  ;;  %v4204_v60 = vshll.u32 %v4203_v50, 30  ;;  %10567 = vmatmul.mubr.msk.bf16.gmra.mrb[40].mxu1 %vm17930_vm8, %v8412_v8  ;;  %v17299_v34 = vand.u32 2147483647, %v15893_v49  ;;  %11132 = vsinq.f32 %v3920_v15  ;;  %v4251_v57 = vand.u32 8388607, %v17300_v18 }
 0x44a   :  { %v4248_v25 = vshrl.u32 %v4247_v54, 23  ;;  %10570 = vmatprep.mubr.msk.bf16.mxu1 %vm17476_vm5, %v17436_v13  ;;  %v4350_v30 = vand.u32 2139095040, %v15893_v49  ;;  %11134 = vcosq.f32 %v4023_v59  ;;  %vm4143_vm3 = vcmp.lt.s32.totalorder %v15673_v11, 0  ;;  %v17937_v8 = vld [vmem:[#allocation9_spill] sm:$0xff] }
 0x44b   :  { %v15916_v51 = vsub.s32 %v4201_v38, %v4204_v60  ;;  %v4354_v33 = vand.u32 8388607, %v17299_v34  ;;  %v4227_v56 = vsub.s32 4, %v4203_v50  ;;  %vm17934_vm11 = vnez %v17933_v52  ;;  %v15975_v34 = vpop.f32.mrb[2].mxu0 }
 0x44c   :  { %v10087_v10 = vadd.s32 4294967169, %v4248_v25  ;;  %v4351_v62 = vshrl.u32 %v4350_v30, 23  ;;  %v15925_v44 = vsel %vm17934_vm11, 0, %v17932_v37  ;;  %v15930_v7 = vsel %vm17925_vm14, %v4021_v43, %v15671_v27  ;;  %17945 = vst [vmem:[#allocation81_spill] sm:$0xff] %v15975_v34 }
 0x44d   :  { %17935 = vst [vmem:[#allocation76_spill] sm:$0xff] %v15930_v7  ;;  %11136 = vsinq.f32 %v4023_v59  ;;  %v15934_v38 = vadd.s32 %v15806_v48, %v15820_v20  ;;  %v4207_v21 = vsub.s32 0, %v15916_v51  ;;  %v4252_v35 = vor.u32 8388608, %v4251_v57  ;;  %v17939_v20 = vld [vmem:[#allocation17_spill] sm:$0xff] }
 0x44e   :  { %v4254_v61 = vadd.s32 1, %v10087_v10  ;;  %v10091_v26 = vadd.s32 4294967169, %v4351_v62  ;;  %v4355_v58 = vor.u32 8388608, %v4354_v33  ;;  %v6831_v27 = vadd.s32 3, %v15925_v44 }
 0x44f   :  { %v10084_v4 = vmin.u32 %v4207_v21, %v15916_v51  ;;  %v15943_v59 = vsel %vm4143_vm3, %v4227_v56, %v4203_v50  ;;  %v15948_v43 = vsel %vm15024_vm4, 0, %v17939_v20  ;;  %v15950_v60 = vpop.eup %11128  ;;  %v15956_v50 = vshll.u32 %v4252_v35, 8  ;;  %v15958_v56 = vpop.f32.mrb[0].mxu1 }
 0x450   :  { %17938 = vst [vmem:[#allocation75_spill] sm:$0xff] %v15943_v59  ;;  %vm4255_vm15 = vcmp.gt.s32.totalorder %v4254_v61, 0  ;;  %v4357_v48 = vadd.s32 1, %v10091_v26  ;;  %17941 = vst [vmem:[#allocation23_spill] sm:$0xff] %v15950_v60  ;;  %v15962_v3 = vshll.u32 %v4355_v58, 8  ;;  %v15964_v21 = vand.u32 3, %v6831_v27 }
 0x451   :  { %v4209_v25 = vclz %v10084_v4  ;;  %v4256_v57 = vsel %vm4255_vm15, %v4254_v61, 0  ;;  %17942 = vst [vmem:[#allocation64_spill] sm:$0xff] %v15958_v56  ;;  %v15967_v61 = vadd.s32 3, %v15948_v43  ;;  %v10992_v58 = vld [vmem:[%s17032_s5 + $0x10] sm:$0xff]  }
 0x452   :  { %v15954_v10 = vshrl.u32 %v4256_v57, 5  ;;  %v4258_v62 = vand.u32 31, %v4256_v57  ;;  %vm4358_vm7 = vcmp.gt.s32.totalorder %v4357_v48, 0  ;;  %v15960_v37 = vpop.eup %11130  ;;  %v10528_v57 = vpop.f32.mrb[1].mxu1  ;;  %10607 = vmatpush3.bf16.msra.mxu0 %v10992_v58 }
 0x453   :  { %17943 = vst [vmem:[#allocation80_spill] sm:$0xff] %v15960_v37  ;;  %v10085_v52 = vadd.s32 4294967294, %v4209_v25  ;;  %v15969_v26 = vpop.eup %11132  ;;  %v15973_v54 = vsel %vm4358_vm7, %v4357_v48, 0  ;;  %v15985_v30 = vpop.f32.mrb[2].mxu1  ;;  %10608 = vmatprep.subr.bf16.mxu0 %v17436_v13  ;;  %vm6834_vm7 = vcmp.eq.s32.totalorder %v15964_v21, 0 }
 0x454   :  { %17944 = vst [vmem:[#allocation79_spill] sm:$0xff] %v15969_v26  ;;  %v4259_v4 = vsub.s32 32, %v4258_v62  ;;  %v4261_v20 = vshll.u32 %v17335_v42, %v4258_v62  ;;  %v4264_v35 = vshll.u32 %v17331_v19, %v4258_v62  ;;  %v15980_v27 = vpop.eup %11134  ;;  %v4267_v25 = vshll.u32 %v17332_v28, %v4258_v62  ;;  %17947 = vst [vmem:[#allocation42_spill] sm:$0xff] %v15985_v30  ;;  %v10445_v48 = vpop.f32.mrb[3].mxu0 }
 0x455   :  { %17946 = vst [vmem:[#allocation31_spill] sm:$0xff] %v15980_v27  ;;  %vm10086_vm4 = vcmp.lt.s32.totalorder %v10085_v52, 0  ;;  %v4270_v18 = vshll.u32 %v17333_v63, %v4258_v62  ;;  %v4273_v33 = vshll.u32 %v17369_v23, %v4258_v62  ;;  %vm4276_vm10 = vcmp.lt.s32.totalorder %v15954_v10, 1  ;;  %v10529_v34 = vpop.f32.mrb[3].mxu1  ;;  %v15990_v56 = vpop.f32.mrb[4].mxu0 }
 0x456   :  { %v4212_v39 = vsel %vm10086_vm4, 0, %v10085_v52  ;;  %v4262_v57 = vshrl.u32 %v17331_v19, %v4259_v4  ;;  %v4265_v15 = vshrl.u32 %v17332_v28, %v4259_v4  ;;  %17948 = vst [vmem:[#allocation13_spill] sm:$0xff] %v15990_v56  ;;  %v4260_v52 = vshrl.u32 %v17335_v42, %v4259_v4  ;;  %v16000_v27 = vpop.f32.mrb[4].mxu1  ;;  %v10448_v58 = vpop.f32.mrb[5].mxu0  ;;  %10609 = vmatpush3.bf16.msra.mxu0 %v10993_v22 }
 0x457   :  { %v15995_v59 = vpop.eup %11136  ;;  %v4213_v62 = vsub.s32 32, %v4212_v39  ;;  %v4217_v30 = vsub.s32 4294967266, %v4212_v39  ;;  %v4268_v48 = vshrl.u32 %v17333_v63, %v4259_v4  ;;  %17950 = vst [vmem:[#allocation50_spill] sm:$0xff] %v16000_v27  ;;  %v4271_v56 = vshrl.u32 %v17369_v23, %v4259_v4  ;;  %v10532_v26 = vpop.f32.mrb[5].mxu1 }
 0x458   :  { %17949 = vst [vmem:[#allocation48_spill] sm:$0xff] %v15995_v59  ;;  %v4263_v34 = vor.u32 %v4262_v57, %v4261_v20  ;;  %v4266_v5 = vor.u32 %v4265_v15, %v4264_v35  ;;  %v4274_v37 = vshrl.u32 %v17334_v1, %v4259_v4  ;;  %v16004_v16 = vpop.f32.mrb[6].mxu0  ;;  %v4214_v59 = vshll.u32 %v15916_v51, %v4212_v39  ;;  %v16008_v32 = vpop.f32.mrb[6].mxu1 }
 0x459   :  { %v4215_v7 = vshrl.u32 %v15934_v38, %v4213_v62  ;;  %v4218_v31 = vadd.s32 127, %v4217_v30  ;;  %v4269_v29 = vor.u32 %v4268_v48, %v4267_v25  ;;  %v10449_v60 = vpop.f32.mrb[7].mxu0  ;;  %v4272_v27 = vor.u32 %v4271_v56, %v4270_v18  ;;  %v10533_v15 = vpop.f32.mrb[7].mxu1 }
 0x45a   :  { %v4275_v58 = vor.u32 %v4274_v37, %v4273_v33  ;;  %vm4278_vm8 = vcmp.lt.s32.totalorder %v15954_v10, 3  ;;  %vm4279_vm11 = vcmp.lt.s32.totalorder %v15954_v10, 4  ;;  %v4280_v51 = vsel %vm4276_vm10, %v4260_v52, %v4263_v34  ;;  %v16016_v39 = vpop.f32.mrb[8].mxu0  ;;  %v16018_v30 = vpop.f32.mrb[8].mxu1 }
 0x45b   :  { %v4216_v26 = vor.u32 %v4215_v7, %v4214_v59  ;;  %v4219_v4 = vshll.u32 %v4218_v31, 23  ;;  %v4281_v38 = vsel %vm4279_vm11, %v4269_v29, 2102212464  ;;  %vm4277_vm14 = vcmp.lt.s32.totalorder %v15954_v10, 2  ;;  %v10452_v7 = vpop.f32.mrb[9].mxu0  ;;  %v10536_v59 = vpop.f32.mrb[9].mxu1 }
 0x45c   :  { %v4282_v18 = vsel %vm4278_vm8, %v4266_v5, %v4281_v38  ;;  %v4284_v22 = vsel %vm4276_vm10, %v4263_v34, %v4266_v5  ;;  %v4285_v31 = vsel %vm4279_vm11, %v4272_v27, 920167782  ;;  %v4288_v37 = vsel %vm4276_vm10, %v4266_v5, %v4269_v29 }
 0x45d   :  { %v4220_v60 = vor.u32 4788187, %v4219_v4  ;;  %v4223_v33 = vcvt.s32.f32 %v4216_v26  ;;  %v4286_v56 = vsel %vm4278_vm8, %v4269_v29, %v4285_v31  ;;  %v4283_v20 = vsel %vm4277_vm14, %v4280_v51, %v4282_v18 }
 0x45e   :  { %v4287_v35 = vsel %vm4277_vm14, %v4284_v22, %v4286_v56  ;;  %v4289_v25 = vsel %vm4279_vm11, %v4275_v58, 1326507024  ;;  %v16038_v57 = vshrl.u32 %v15973_v54, 5  ;;  %v4361_v29 = vand.u32 31, %v15973_v54  ;;  %v16068_v54 = vpop.f32.mrb[10].mxu1 }
 0x45f   :  { %v4221_v62 = vand.u32 2147483647, %v4220_v60  ;;  %v4290_v52 = vsel %vm4278_vm8, %v4272_v27, %v4289_v25  ;;  %v16043_v48 = vmul.u32.u64.low %v15956_v50, %v4287_v35  ;;  %v16044_v34 = vmul.u32.u64.high %v15956_v50, %v4287_v35, %v16043_v48  ;;  %17951 = vst [vmem:[#allocation16_spill] sm:$0xff] %v16068_v54  ;;  %v10537_v31 = vpop.f32.mrb[11].mxu1 }
 0x460   :  { %v4291_v5 = vsel %vm4277_vm14, %v4288_v37, %v4290_v52  ;;  %v16051_v15 = vand.u32 3, %v15925_v44  ;;  %v16054_v58 = vand.u32 3, %v15948_v43  ;;  %v16061_v51 = vand.u32 3, %v15967_v61  ;;  %v16066_v44 = vpop.f32.mrb[10].mxu0  ;;  %v16079_v56 = vpop.f32.mrb[12].mxu1 }
 0x461   :  { %v4224_v26 = vmul.f32 %v4223_v33, %v4221_v62  ;;  %v16057_v4 = vmul.u32.u64.low %v15956_v50, %v4291_v5  ;;  %v16058_v27 = vmul.u32.u64.high %v15956_v50, %v4291_v5, %v16057_v4  ;;  %v4299_v38 = vmul.u32 %v15956_v50, %v4283_v20  ;;  %v10453_v61 = vpop.f32.mrb[11].mxu0  ;;  %17953 = vst [vmem:[#allocation41_spill] sm:$0xff] %v16079_v56  ;;  %v10540_v52 = vpop.f32.mrb[13].mxu1 }
 0x462   :  { %v4362_v10 = vsub.s32 32, %v4361_v29  ;;  %vm4379_vm15 = vcmp.lt.s32.totalorder %v16038_v57, 1  ;;  %v4302_v43 = vadd.s32 1, %v16044_v34  ;;  %v4364_v18 = vshll.u32 %v17335_v42, %v4361_v29  ;;  %v16077_v33 = vpop.f32.mrb[12].mxu0 }
 0x463   :  { %v4367_v22 = vshll.u32 %v17331_v19, %v4361_v29  ;;  %vm4380_vm4 = vcmp.lt.s32.totalorder %v16038_v57, 2  ;;  %v4225_v50 = vxor.u32 2147483648, %v4224_v26  ;;  %17952 = vst [vmem:[#allocation20_spill] sm:$0xff] %v16077_v33  ;;  %v17954_v37 = vand.u32 2147483647, %v15673_v11  ;;  %v10456_v62 = vpop.f32.mrb[13].mxu0 }
 0x464   :  { %v4365_v7 = vshrl.u32 %v17331_v19, %v4362_v10  ;;  %v4368_v59 = vshrl.u32 %v17332_v28, %v4362_v10  ;;  %v4371_v60 = vshrl.u32 %v17333_v63, %v4362_v10  ;;  %v17955_v20 = vmov 0 }
 0x465   :  { %vm16083_vm10 = vcmp.le.f32.partialorder %v17954_v37, 0.7853982  ;;  %vm4301_vm8 = vc.u32 %v16058_v27, %v16043_v48  ;;  %v4370_v35 = vshll.u32 %v17332_v28, %v4361_v29  ;;  %v4373_v19 = vshll.u32 %v17333_v63, %v4361_v29 }
 0x466   :  { %v17956_v20 = vsel %vm16083_vm10, 4294967295, %v17955_v20  ;;  %v4374_v25 = vshrl.u32 %v17369_v23, %v4362_v10  ;;  %v4303_v5 = vsel %vm4301_vm8, %v4302_v43, %v16044_v34  ;;  %v4366_v4 = vor.u32 %v4365_v7, %v4364_v18  ;;  %v16114_v18 = vpop.f32.mrb[14].mxu0 }
 0x467   :  { %v4369_v61 = vor.u32 %v4368_v59, %v4367_v22  ;;  %vm4381_vm11 = vcmp.lt.s32.totalorder %v16038_v57, 3  ;;  %v4304_v31 = vadd.s32 %v4303_v5, %v4299_v38  ;;  %v4372_v37 = vor.u32 %v4371_v60, %v4370_v35  ;;  %v16116_v22 = vpop.f32.mrb[14].mxu1 }
 0x468   :  { %v4375_v56 = vor.u32 %v4374_v25, %v4373_v19  ;;  %v4376_v33 = vshll.u32 %v17369_v23, %v4361_v29  ;;  %v4226_v28 = vsel %vm4143_vm3, %v4225_v50, %v4224_v26  ;;  %v4363_v63 = vshrl.u32 %v17335_v42, %v4362_v10  ;;  %v17957_v26 = vld [vmem:[#allocation59_spill] sm:$0xff]  ;;  %v10541_v35 = vpop.f32.mrb[15].mxu1 }
 0x469   :  { %v4377_v54 = vshrl.u32 %v17334_v1, %v4362_v10  ;;  %vm4382_vm14 = vcmp.lt.s32.totalorder %v16038_v57, 4  ;;  %v4305_v62 = vadd.s32 536870912, %v4304_v31  ;;  %v4387_v38 = vsel %vm4379_vm15, %v4366_v4, %v4369_v61  ;;  %v17958_v10 = vld [vmem:[#allocation37_spill] sm:$0xff]  ;;  %v16182_v35 = vpop.f32.mrb[16].mxu1 }
 0x46a   :  { %v4384_v34 = vsel %vm4382_vm14, %v4372_v37, 2102212464  ;;  %v4388_v43 = vsel %vm4382_vm14, %v4375_v56, 920167782  ;;  %v4383_v29 = vsel %vm4379_vm15, %v4363_v63, %v4366_v4  ;;  %vm2894_vm3 = vweird.f32 %v17957_v26 }
 0x46b   :  { %v4378_v23 = vor.u32 %v4377_v54, %v4376_v33  ;;  %v4385_v42 = vsel %vm4381_vm11, %v4369_v61, %v4384_v34  ;;  %v4389_v1 = vsel %vm4381_vm11, %v4372_v37, %v4388_v43  ;;  %v16118_v50 = vshrl.u32 %v4305_v62, 30  ;;  %v10457_v33 = vpop.f32.mrb[15].mxu0 }
 0x46c   :  { %v4390_v54 = vsel %vm4380_vm4, %v4387_v38, %v4389_v1  ;;  %v4391_v7 = vsel %vm4379_vm15, %v4369_v61, %v4372_v37  ;;  %v17959_v59 = vxor.u32 2147483648, %v17936_v24  ;;  %vm6837_vm8 = vcmp.eq.s32.totalorder %v15964_v21, 2  ;;  %v16180_v33 = vpop.f32.mrb[16].mxu0 }
 0x46d   :  { %v4392_v19 = vsel %vm4382_vm14, %v4378_v23, 1326507024  ;;  %v16132_v25 = vmul.u32.u64.low %v15962_v3, %v4390_v54  ;;  %v16133_v52 = vmul.u32.u64.high %v15962_v3, %v4390_v54, %v16132_v25  ;;  %vm2896_vm15 = vcmp.lt.s32.totalorder %v16051_v15, 2 }
 0x46e   :  { %v6836_v60 = vsel %vm6834_vm7, %v17937_v8, %v17959_v59  ;;  %v4307_v5 = vshll.u32 %v16118_v50, 30  ;;  %v4393_v4 = vsel %vm4381_vm11, %v4375_v56, %v4392_v19  ;;  %vm6833_vm7 = vcmp.lt.s32.totalorder %v15964_v21, 2 }
 0x46f   :  { %v17960_v61 = vxor.u32 2147483648, %v17937_v8  ;;  %v16148_v63 = vsel %vm16083_vm10, %v15673_v11, %v4226_v28  ;;  %v4386_v62 = vsel %vm4380_vm4, %v4383_v29, %v4385_v42  ;;  %v4394_v34 = vsel %vm4380_vm4, %v4391_v7, %v4393_v4  ;;  %v10460_v4 = vpop.f32.mrb[17].mxu0 }
 0x470   :  { %v16154_v43 = vsub.s32 %v4304_v31, %v4307_v5  ;;  %v16157_v21 = vmul.u32.u64.low %v15962_v3, %v4394_v34  ;;  %v16158_v56 = vmul.u32.u64.high %v15962_v3, %v4394_v34, %v16157_v21  ;;  %vm6938_vm11 = vcmp.eq.s32.totalorder %v16061_v51, 0 }
 0x471   :  { %v6839_v37 = vsel %vm6837_vm8, %v17960_v61, %v17936_v24  ;;  %v4405_v23 = vadd.s32 1, %v16133_v52  ;;  %vm6937_vm14 = vcmp.lt.s32.totalorder %v16061_v51, 2  ;;  %v17961_v28 = vxor.u32 2147483648, %v15309_v12 }
 0x472   :  { %v6840_v38 = vsel %vm6833_vm7, %v6836_v60, %v6839_v37  ;;  %vm6941_vm8 = vcmp.eq.s32.totalorder %v16061_v51, 2  ;;  %v4310_v57 = vsub.s32 0, %v16154_v43  ;;  %v17962_v31 = vxor.u32 2147483648, %v15305_v55 }
 0x473   :  { %v6940_v29 = vsel %vm6938_vm11, %v15305_v55, %v17961_v28  ;;  %vm2897_vm4 = vcmp.eq.s32.totalorder %v16051_v15, 0  ;;  %vm2900_vm7 = vcmp.eq.s32.totalorder %v16051_v15, 2  ;;  %v4402_v1 = vmul.u32 %v15962_v3, %v4386_v62  ;;  %v16195_v62 = vpop.f32.mrb[18].mxu0 }
 0x474   :  { %v6943_v42 = vsel %vm6941_vm8, %v17962_v31, %v15309_v12  ;;  %v17963_v7 = vmov %v17959_v59  ;;  %v17964_v51 = vmov %v17960_v61  ;;  %v10088_v19 = vmin.u32 %v4310_v57, %v16154_v43  ;;  %v10544_v61 = vpop.f32.mrb[17].mxu1  ;;  %v10461_v31 = vpop.f32.mrb[19].mxu0 }
 0x475   :  { %v6944_v54 = vsel %vm6937_vm14, %v6940_v29, %v6943_v42  ;;  %v2899_v59 = vsel %vm2897_vm4, %v17937_v8, %v17963_v7  ;;  %v2902_v60 = vsel %vm2900_vm7, %v17964_v51, %v17936_v24  ;;  %vm4404_vm11 = vc.u32 %v16158_v56, %v16132_v25  ;;  %v16197_v34 = vpop.f32.mrb[18].mxu1 }
 0x476   :  { %v6841_v3 = vsel %vm2894_vm3, nan, %v6840_v38  ;;  %vm17965_vm14 = vweird.f32 %v17958_v10  ;;  %v4300_v24 = vadd.s32 %v16043_v48, %v16058_v27  ;;  %v4406_v8 = vsel %vm4404_vm11, %v4405_v23, %v16133_v52  ;;  %v10545_v48 = vpop.f32.mrb[19].mxu1  ;;  %v16209_v52 = vpop.f32.mrb[20].mxu0 }
 0x477   :  { %v6945_v5 = vsel %vm17965_vm14, nan, %v6944_v54  ;;  %vm3000_vm8 = vcmp.eq.s32.totalorder %v16054_v58, 0  ;;  %v4312_v21 = vclz %v10088_v19  ;;  %v4407_v28 = vadd.s32 %v4406_v8, %v4402_v1  ;;  %v16211_v15 = vpop.f32.mrb[20].mxu1 }
 0x478   :  { %v8440_v37 = vpack.c.bf16 %v6945_v5, %v6841_v3  ;;  %v2903_v38 = vsel %vm2896_vm15, %v2899_v59, %v2902_v60  ;;  %v17966_v29 = vxor.u32 2147483648, %v15309_v12  ;;  %11138 = vcosq.f32 %v16148_v63  ;;  %v10464_v59 = vpop.f32.mrb[21].mxu0  ;;  %v10548_v51 = vpop.f32.mrb[21].mxu1  ;;  %v17969_v3 = vld [vmem:[#allocation24_spill] sm:$0xff] }
 0x479   :  { %vm17967_vm4 = vcmask 523264   ;;  %vm2999_vm7 = vcmp.lt.s32.totalorder %v16054_v58, 2  ;;  %vm3003_vm11 = vcmp.eq.s32.totalorder %v16054_v58, 2  ;;  %v10089_v23 = vadd.s32 4294967294, %v4312_v21 }
 0x47a   :  { %v3002_v57 = vsel %vm3000_vm8, %v15305_v55, %v17966_v29  ;;  %10487 = vmatmul.mubr.msk.bf16.gmra.mrb[44].mxu0 %vm17967_vm4, %v8440_v37  ;;  %v4408_v42 = vadd.s32 536870912, %v4407_v28  ;;  %v17968_v1 = vxor.u32 2147483648, %v15305_v55  ;;  %v3097_v7 = vsel %vm15204_vm12, 0, %v15264_v40  ;;  %v17972_v40 = vld [vmem:[#allocation14_spill] sm:$0xff]  ;;  %v16235_v29 = vpop.f32.mrb[22].mxu1 }
 0x47b   :  { %10490 = vmatprep.mubr.msk.bf16.mxu0 %vm17476_vm5, %v17436_v13  ;;  %v2904_v58 = vsel %vm2894_vm3, nan, %v2903_v38  ;;  %v3104_v19 = vxor.u32 2147483648, %v15324_v17  ;;  %v3200_v55 = vsel %vm15232_vm0, 0, %v17969_v3  ;;  %vm10090_vm15 = vcmp.lt.s32.totalorder %v10089_v23, 0  ;;  %v16233_v38 = vpop.f32.mrb[22].mxu0  ;;  %vm17974_vm3 = vmmov %vm17967_vm4 }
 0x47c   :  { %v3005_v54 = vsel %vm3003_vm11, %v17968_v1, %v15309_v12  ;;  %v16227_v12 = vshrl.u32 %v4408_v42, 30  ;;  %vm3100_vm12 = vweird.f32 %v17971_v47  ;;  %v3107_v61 = vxor.u32 2147483648, %v17972_v40  ;;  %v17973_v42 = vld [vmem:[#allocation68_spill] sm:$0xff]  ;;  %v10465_v1 = vpop.f32.mrb[23].mxu0 }
 0x47d   :  { %v3006_v60 = vsel %vm2999_vm7, %v3002_v57, %v3005_v54  ;;  %v4315_v8 = vsel %vm10090_vm15, 0, %v10089_v23  ;;  %v7039_v37 = vadd.s32 3, %v3097_v7  ;;  %v7143_v21 = vadd.s32 3, %v3200_v55  ;;  %v10549_v54 = vpop.f32.mrb[23].mxu1 }
 0x47e   :  { %v3007_v4 = vsel %vm17965_vm14, nan, %v3006_v60  ;;  %v4316_v57 = vsub.s32 32, %v4315_v8  ;;  %v4320_v31 = vsub.s32 4294967266, %v4315_v8  ;;  %v4410_v48 = vshll.u32 %v16227_v12, 30 }
 0x47f   :  { %v8413_v26 = vpack.c.bf16 %v3007_v4, %v2904_v58  ;;  %vm17314_vm0 = vweird.f32 %v17973_v42  ;;  %v17313_v10 = vxor.u32 2147483648, %v15489_v46  ;;  %v4317_v59 = vshll.u32 %v16154_v43, %v4315_v8 }
 0x480   :  { %v17312_v23 = vxor.u32 2147483648, %v15467_v53  ;;  %v7040_v51 = vand.u32 3, %v7039_v37  ;;  %v7144_v58 = vand.u32 3, %v7143_v21  ;;  %vm4246_vm8 = vcmp.lt.s32.totalorder %v15890_v41, 0 }
 0x481   :  { %10571 = vmatmul.mubr.msk.bf16.gmra.mrb[44].mxu1 %vm17974_vm3, %v8413_v26  ;;  %v4318_v60 = vshrl.u32 %v4300_v24, %v4316_v57  ;;  %v4321_v3 = vadd.s32 127, %v4320_v31  ;;  %v16244_v5 = vsub.s32 %v4407_v28, %v4410_v48  ;;  %v4433_v4 = vsub.s32 4, %v16227_v12 }
 0x482   :  { %10574 = vmatprep.mubr.msk.bf16.mxu1 %vm17476_vm5, %v17436_v13  ;;  %vm7042_vm4 = vcmp.eq.s32.totalorder %v7040_v51, 0  ;;  %vm7045_vm7 = vcmp.eq.s32.totalorder %v7040_v51, 2  ;;  %v3101_v43 = vand.u32 3, %v3097_v7  ;;  %v3204_v8 = vand.u32 3, %v3200_v55  ;;  %v16254_v28 = vpop.eup %11138 }
 0x483   :  { %v4319_v26 = vor.u32 %v4318_v60, %v4317_v59  ;;  %v4322_v1 = vshll.u32 %v4321_v3, 23  ;;  %v4413_v37 = vsub.s32 0, %v16244_v5  ;;  %v7044_v24 = vsel %vm7042_vm4, %v17972_v40, %v3104_v19  ;;  %v16270_v60 = vpop.f32.mrb[24].mxu1 }
 0x484   :  { %vm7041_vm15 = vcmp.lt.s32.totalorder %v7040_v51, 2  ;;  %v7047_v21 = vsel %vm7045_vm7, %v3107_v61, %v15324_v17  ;;  %vm7145_vm14 = vcmp.lt.s32.totalorder %v7144_v58, 2  ;;  %vm7146_vm3 = vcmp.eq.s32.totalorder %v7144_v58, 0  ;;  %v16268_v51 = vpop.f32.mrb[24].mxu0 }
 0x485   :  { %v4323_v7 = vor.u32 4788187, %v4322_v1  ;;  %v10092_v55 = vmin.u32 %v4413_v37, %v16244_v5  ;;  %v7048_v57 = vsel %vm7041_vm15, %v7044_v24, %v7047_v21  ;;  %vm7149_vm11 = vcmp.eq.s32.totalorder %v7144_v58, 2  ;;  %v10468_v24 = vpop.f32.mrb[25].mxu0  ;;  %v10552_v21 = vpop.f32.mrb[25].mxu1 }
 0x486   :  { %v4326_v31 = vcvt.s32.f32 %v4319_v26  ;;  %v7049_v48 = vsel %vm3100_vm12, nan, %v7048_v57  ;;  %v7148_v54 = vsel %vm7146_vm3, %v15467_v53, %v17313_v10  ;;  %v7151_v59 = vsel %vm7149_vm11, %v17312_v23, %v15489_v46  ;;  %v16283_v10 = vpop.f32.mrb[26].mxu0 }
 0x487   :  { %v17975_v3 = vand.u32 2147483647, %v15890_v41  ;;  %v17976_v58 = vmov 0  ;;  %v4324_v26 = vand.u32 2147483647, %v4323_v7  ;;  %v4415_v1 = vclz %v10092_v55 }
 0x488   :  { %v7152_v37 = vsel %vm7145_vm14, %v7148_v54, %v7151_v59  ;;  %vm3103_vm7 = vcmp.eq.s32.totalorder %v3101_v43, 0  ;;  %vm3102_vm11 = vcmp.lt.s32.totalorder %v3101_v43, 2  ;;  %vm3106_vm15 = vcmp.eq.s32.totalorder %v3101_v43, 2  ;;  %v10469_v59 = vpop.f32.mrb[27].mxu0 }
 0x489   :  { %vm16274_vm4 = vcmp.le.f32.partialorder %v17975_v3, 0.7853982  ;;  %v7153_v57 = vsel %vm17314_vm0, nan, %v7152_v37  ;;  %v3105_v23 = vsel %vm3103_vm7, %v17972_v40, %v3104_v19  ;;  %v16285_v3 = vpop.f32.mrb[26].mxu1  ;;  %v4327_v27 = vmul.f32 %v4326_v31, %v4324_v26 }
 0x48a   :  { %v17977_v58 = vsel %vm16274_vm4, 4294967295, %v17976_v58  ;;  %v10093_v7 = vadd.s32 4294967294, %v4415_v1  ;;  %v8441_v55 = vpack.c.bf16 %v7153_v57, %v7049_v48  ;;  %v3108_v54 = vsel %vm3106_vm15, %v3107_v61, %v15324_v17  ;;  %v10553_v24 = vpop.f32.mrb[27].mxu1  ;;  %v17984_v57 = vld [vmem:[#allocation36_spill] sm:$0xff] }
 0x48b   :  { %11140 = vsinq.f32 %v16148_v63  ;;  %v17978_v37 = vsub.s32 4, %v16118_v50  ;;  %v3109_v43 = vsel %vm3102_vm11, %v3105_v23, %v3108_v54  ;;  %vm3206_vm14 = vcmp.eq.s32.totalorder %v3204_v8, 0  ;;  %v17988_v54 = vld [vmem:[#allocation78_spill] sm:$0xff] }
 0x48c   :  { %v4328_v31 = vxor.u32 2147483648, %v4327_v27  ;;  %vm10094_vm3 = vcmp.lt.s32.totalorder %v10093_v7, 0  ;;  %vm17979_vm7 = vcmask 523264   ;;  %v17980_v40 = vxor.u32 2147483648, %v15489_v46 }
 0x48d   :  { %v16296_v19 = vsel %vm4246_vm8, %v17978_v37, %v16118_v50  ;;  %10491 = vmatmul.mubr.msk.bf16.gmra.mrb[48].mxu0 %vm17979_vm7, %v8441_v55  ;;  %vm3209_vm15 = vcmp.eq.s32.totalorder %v3204_v8, 2  ;;  %v4403_v63 = vadd.s32 %v16132_v25, %v16158_v56  ;;  %v4418_v61 = vsel %vm10094_vm3, 0, %v10093_v7 }
 0x48e   :  { %v3208_v17 = vsel %vm3206_vm14, %v15467_v53, %v17980_v40  ;;  %vm17981_vm0 = vcmp.lt.s32.totalorder %v15893_v49, 0  ;;  %v17982_v23 = vxor.u32 2147483648, %v15467_v53  ;;  %10494 = vmatprep.mubr.msk.bf16.mxu0 %vm17476_vm5, %v17436_v13  ;;  %v4329_v26 = vsel %vm4246_vm8, %v4328_v31, %v4327_v27  ;;  %vm17990_vm8 = vmmov %vm17979_vm7 }
 0x48f   :  { %v16307_v50 = vsel %vm17981_vm0, %v4433_v4, %v16227_v12  ;;  %v4419_v1 = vsub.s32 32, %v4418_v61  ;;  %v4423_v21 = vsub.s32 4294967266, %v4418_v61  ;;  %vm3205_vm11 = vcmp.lt.s32.totalorder %v3204_v8, 2  ;;  %v17983_v4 = vld [vmem:[#allocation47_spill] sm:$0xff]  ;;  %v17987_v8 = vld [vmem:[#allocation66_spill] sm:$0xff] }
 0x490   :  { %v3211_v48 = vsel %vm3209_vm15, %v17982_v23, %v15489_v46  ;;  %v4420_v25 = vshll.u32 %v16244_v5, %v4418_v61  ;;  %v3110_v56 = vsel %vm3100_vm12, nan, %v3109_v43  ;;  %vm17985_vm0 = vnez %v17984_v57  ;;  %v17989_v43 = vld [vmem:[#allocation77_spill] sm:$0xff] }
 0x491   :  { %v3212_v12 = vsel %vm3205_vm11, %v3208_v17, %v3211_v48  ;;  %v3303_v53 = vsel %vm17985_vm0, 0, %v17983_v4  ;;  %v4421_v46 = vshrl.u32 %v4403_v63, %v4419_v1  ;;  %v4424_v7 = vadd.s32 127, %v4423_v21 }
 0x492   :  { %vm17986_vm14 = vweird.f32 %v17973_v42  ;;  %v3406_v27 = vsel %vm15365_vm2, 0, %v15451_v45  ;;  %v4332_v5 = vsel %vm16274_vm4, %v15890_v41, %v4329_v26  ;;  %v3310_v59 = vxor.u32 2147483648, %v17988_v54  ;;  %v17991_v42 = vld [vmem:[#allocation21_spill] sm:$0xff]  ;;  %v17996_v26 = vld [vmem:[#allocation10_spill] sm:$0xff] }
 0x493   :  { %v3213_v55 = vsel %vm17986_vm14, nan, %v3212_v12  ;;  %v4422_v24 = vor.u32 %v4421_v46, %v4420_v25  ;;  %v4425_v37 = vshll.u32 %v4424_v7, 23  ;;  %v3313_v31 = vxor.u32 2147483648, %v17989_v43 }
 0x494   :  { %v8414_v47 = vpack.c.bf16 %v3213_v55, %v3110_v56  ;;  %v7247_v40 = vadd.s32 3, %v3303_v53  ;;  %v3413_v45 = vxor.u32 2147483648, %v17992_v0  ;;  %v7351_v17 = vadd.s32 3, %v3406_v27 }
 0x495   :  { %v3307_v63 = vand.u32 3, %v3303_v53  ;;  %v17993_v61 = vand.u32 2147483647, %v15893_v49  ;;  %v4426_v48 = vor.u32 4788187, %v4425_v37  ;;  %v3416_v1 = vxor.u32 2147483648, %v17996_v26  ;;  %v16345_v56 = vpop.eup %11140 }
 0x496   :  { %10575 = vmatmul.mubr.msk.bf16.gmra.mrb[48].mxu1 %vm17990_vm8, %v8414_v47  ;;  %v7248_v21 = vand.u32 3, %v7247_v40  ;;  %v3410_v25 = vand.u32 3, %v3406_v27  ;;  %v4429_v12 = vcvt.s32.f32 %v4422_v24  ;;  %v7352_v4 = vand.u32 3, %v7351_v17 }
 0x497   :  { %vm16338_vm2 = vcmp.le.f32.partialorder %v17993_v61, 0.7853982  ;;  %10578 = vmatprep.mubr.msk.bf16.mxu1 %vm17476_vm5, %v17436_v13  ;;  %vm3309_vm7 = vcmp.eq.s32.totalorder %v3307_v63, 0  ;;  %vm3312_vm15 = vcmp.eq.s32.totalorder %v3307_v63, 2  ;;  %v4427_v57 = vand.u32 2147483647, %v4426_v48 }
 0x498   :  { %vm7249_vm11 = vcmp.lt.s32.totalorder %v7248_v21, 2  ;;  %vm7250_vm0 = vcmp.eq.s32.totalorder %v7248_v21, 0  ;;  %vm7253_vm14 = vcmp.eq.s32.totalorder %v7248_v21, 2  ;;  %vm7354_vm8 = vcmp.eq.s32.totalorder %v7352_v4, 0 }
 0x499   :  { %v7252_v53 = vsel %vm7250_vm0, %v17989_v43, %v3310_v59  ;;  %v7255_v46 = vsel %vm7253_vm14, %v3313_v31, %v17988_v54  ;;  %vm3308_vm3 = vcmp.lt.s32.totalorder %v3307_v63, 2  ;;  %v4430_v7 = vmul.f32 %v4429_v12, %v4427_v57  ;;  %v18000_v63 = vld [vmem:[#allocation6_spill] sm:$0xff] }
 0x49a   :  { %v7256_v55 = vsel %vm7249_vm11, %v7252_v53, %v7255_v46  ;;  %v7356_v27 = vsel %vm7354_vm8, %v17996_v26, %v3413_v45  ;;  %vm7357_vm12 = vcmp.eq.s32.totalorder %v7352_v4, 2  ;;  %vm7353_vm4 = vcmp.lt.s32.totalorder %v7352_v4, 2 }
 0x49b   :  { %v7359_v47 = vsel %vm7357_vm12, %v3416_v1, %v17992_v0  ;;  %v3311_v24 = vsel %vm3309_vm7, %v17989_v43, %v3310_v59  ;;  %v3314_v37 = vsel %vm3312_vm15, %v3313_v31, %v17988_v54  ;;  %v4431_v40 = vxor.u32 2147483648, %v4430_v7 }
 0x49c   :  { %vm17997_vm0 = vweird.f32 %v17987_v8  ;;  %v7360_v61 = vsel %vm7353_vm4, %v7356_v27, %v7359_v47  ;;  %v3315_v48 = vsel %vm3308_vm3, %v3311_v24, %v3314_v37  ;;  %vm17998_vm11 = vweird.f32 %v17991_v42  ;;  %v18007_v24 = vld [vmem:[#allocation54_spill] sm:$0xff] }
 0x49d   :  { %v7257_v17 = vsel %vm17997_vm0, nan, %v7256_v55  ;;  %v7361_v21 = vsel %vm17998_vm11, nan, %v7360_v61  ;;  %vm3411_vm14 = vcmp.lt.s32.totalorder %v3410_v25, 2  ;;  %vm3412_vm8 = vcmp.eq.s32.totalorder %v3410_v25, 0  ;;  %vm18003_vm3 = vmmov %vm17997_vm0  ;;  %v18009_v61 = vld [vmem:[#allocation52_spill] sm:$0xff] }
 0x49e   :  { %vm3415_vm10 = vcmp.eq.s32.totalorder %v3410_v25, 2  ;;  %vm17999_vm12 = vcmp.lt.s32.totalorder %v15893_v49, 0  ;;  %v8442_v4 = vpack.c.bf16 %v7361_v21, %v7257_v17  ;;  %v3414_v59 = vsel %vm3412_vm8, %v17996_v26, %v3413_v45  ;;  %v16371_v25 = vpop.f32.mrb[28].mxu0 }
 0x49f   :  { %v4432_v12 = vsel %vm17999_vm12, %v4431_v40, %v4430_v7  ;;  %v3417_v54 = vsel %vm3415_vm10, %v3416_v1, %v17992_v0  ;;  %11142 = vcosq.f32 %v4332_v5  ;;  %v3509_v53 = vsel %vm15455_vm13, 0, %v18000_v63  ;;  %vm18004_vm10 = vmmov %vm17998_vm11  ;;  %v10472_v1 = vpop.f32.mrb[29].mxu0  ;;  %v18008_v40 = vld [vmem:[#allocation46_spill] sm:$0xff] }
 0x4a0   :  { %v16366_v43 = vsel %vm16338_vm2, %v15893_v49, %v4432_v12  ;;  %v3418_v31 = vsel %vm3411_vm14, %v3414_v59, %v3417_v54  ;;  %11144 = vsinq.f32 %v4332_v5  ;;  %vm18002_vm4 = vcmask 523264   ;;  %v18005_v5 = vld [vmem:[#allocation11_spill] sm:$0xff]  ;;  %v16387_v55 = vpop.f32.mrb[30].mxu0 }
 0x4a1   :  { %10495 = vmatmul.mubr.msk.bf16.gmra.mrb[52].mxu0 %vm18002_vm4, %v8442_v4  ;;  %v3316_v45 = vsel %vm18003_vm3, nan, %v3315_v48  ;;  %v3419_v0 = vsel %vm18004_vm10, nan, %v3418_v31  ;;  %v3612_v26 = vsel %vm15645_vm1, 0, %v15721_v2  ;;  %11146 = vcosq.f32 %v16366_v43  ;;  %v10473_v2 = vpop.f32.mrb[31].mxu0  ;;  %vm18006_vm1 = vmmov %vm18002_vm4  ;;  %v18010_v48 = vld [vmem:[#allocation44_spill] sm:$0xff]  ;;  %v18012_v59 = vld [vmem:[#allocation67_spill] sm:$0xff] }
 0x4a2   :  { %v8415_v46 = vpack.c.bf16 %v3419_v0, %v3316_v45  ;;  %10498 = vmatprep.mubr.msk.bf16.mxu0 %vm17476_vm5, %v17436_v13  ;;  %vm3512_vm13 = vweird.f32 %v18005_v5  ;;  %v3516_v7 = vxor.u32 2147483648, %v15752_v9  ;;  %v3519_v8 = vxor.u32 2147483648, %v15738_v36  ;;  %v18021_v54 = vld [vmem:[#allocation63_spill] sm:$0xff] }
 0x4a3   :  { %v7455_v42 = vadd.s32 3, %v3509_v53  ;;  %v7559_v27 = vadd.s32 3, %v3612_v26  ;;  %v3513_v47 = vand.u32 3, %v3509_v53  ;;  %v3616_v6 = vand.u32 3, %v3612_v26  ;;  %v16402_v53 = vpop.f32.mrb[28].mxu1 }
 0x4a4   :  { %10579 = vmatmul.mubr.msk.bf16.gmra.mrb[52].mxu1 %vm18006_vm1, %v8415_v46  ;;  %vm3615_vm7 = vweird.f32 %v17863_v14  ;;  %v3619_v37 = vxor.u32 2147483648, %v18007_v24  ;;  %v3622_v17 = vxor.u32 2147483648, %v18008_v40  ;;  %vm18011_vm15 = vnez %v18010_v48  ;;  %v18013_v46 = vld [vmem:[#allocation30_spill] sm:$0xff] }
 0x4a5   :  { %v3715_v21 = vsel %vm18011_vm15, 0, %v18009_v61  ;;  %10582 = vmatprep.mubr.msk.bf16.mxu1 %vm17476_vm5, %v17436_v13  ;;  %v7456_v12 = vand.u32 3, %v7455_v42  ;;  %v7560_v4 = vand.u32 3, %v7559_v27  ;;  %vm3515_vm0 = vcmp.eq.s32.totalorder %v3513_v47, 0  ;;  %v10556_v42 = vpop.f32.mrb[29].mxu1  ;;  %v18014_v61 = vld [vmem:[#allocation57_spill] sm:$0xff] }
 0x4a6   :  { %vm3514_vm11 = vcmp.lt.s32.totalorder %v3513_v47, 2  ;;  %v3517_v31 = vsel %vm3515_vm0, %v15738_v36, %v3516_v7  ;;  %vm3518_vm14 = vcmp.eq.s32.totalorder %v3513_v47, 2  ;;  %vm3618_vm8 = vcmp.eq.s32.totalorder %v3616_v6, 0 }
 0x4a7   :  { %vm7457_vm12 = vcmp.lt.s32.totalorder %v7456_v12, 2  ;;  %vm7458_vm4 = vcmp.eq.s32.totalorder %v7456_v12, 0  ;;  %vm7461_vm3 = vcmp.eq.s32.totalorder %v7456_v12, 2  ;;  %vm7561_vm10 = vcmp.lt.s32.totalorder %v7560_v4, 2  ;;  %v16414_v12 = vpop.f32.mrb[30].mxu1 }
 0x4a8   :  { %v7460_v63 = vsel %vm7458_vm4, %v15738_v36, %v3516_v7  ;;  %v7463_v57 = vsel %vm7461_vm3, %v3519_v8, %v15752_v9  ;;  %vm7562_vm1 = vcmp.eq.s32.totalorder %v7560_v4, 0  ;;  %vm7565_vm15 = vcmp.eq.s32.totalorder %v7560_v4, 2 }
 0x4a9   :  { %v7464_v45 = vsel %vm7457_vm12, %v7460_v63, %v7463_v57  ;;  %v7564_v0 = vsel %vm7562_vm1, %v18008_v40, %v3619_v37  ;;  %v7567_v26 = vsel %vm7565_vm15, %v3622_v17, %v18007_v24  ;;  %v3520_v1 = vsel %vm3518_vm14, %v3519_v8, %v15752_v9  ;;  %v16408_v27 = vpop.eup %11142  ;;  %v18015_v63 = vld [vmem:[#allocation55_spill] sm:$0xff]  ;;  %v18016_v57 = vld [vmem:[#allocation49_spill] sm:$0xff] }
 0x4aa   :  { %vm3718_vm0 = vweird.f32 %v18013_v46  ;;  %v7568_v2 = vsel %vm7561_vm10, %v7564_v0, %v7567_v26  ;;  %v3521_v36 = vsel %vm3514_vm11, %v3517_v31, %v3520_v1  ;;  %v3620_v7 = vsel %vm3618_vm8, %v18008_v40, %v3619_v37  ;;  %v16416_v4 = vpop.eup %11144  ;;  %v10557_v31 = vpop.f32.mrb[31].mxu1  ;;  %v18033_v46 = vld [vmem:[#allocation22_spill] sm:$0xff] }
 0x4ab   :  { %v3725_v48 = vxor.u32 2147483648, %v18014_v61  ;;  %v7465_v9 = vsel %vm3512_vm13, nan, %v7464_v45  ;;  %v7569_v8 = vsel %vm3615_vm7, nan, %v7568_v2  ;;  %vm3621_vm14 = vcmp.eq.s32.totalorder %v3616_v6, 2  ;;  %v16425_v0 = vpop.eup %11146  ;;  %v18018_v45 = vld [vmem:[#allocation82_spill] sm:$0xff] }
 0x4ac   :  { %vm18017_vm12 = vnez %v18016_v57  ;;  %v8443_v37 = vpack.c.bf16 %v7569_v8, %v7465_v9  ;;  %v3522_v40 = vsel %vm3512_vm13, nan, %v3521_v36  ;;  %vm3617_vm11 = vcmp.lt.s32.totalorder %v3616_v6, 2  ;;  %v18020_v57 = vld [vmem:[#allocation23_spill] sm:$0xff]  ;;  %v18022_v36 = vld [vmem:[#allocation72_spill] sm:$0xff] }
 0x4ad   :  { %v3818_v47 = vsel %vm18017_vm12, 0, %v18015_v63  ;;  %v3623_v26 = vsel %vm3621_vm14, %v3622_v17, %v18007_v24  ;;  %vm3821_vm8 = vweird.f32 %v18018_v45  ;;  %v7663_v42 = vadd.s32 3, %v3715_v21 }
 0x4ae   :  { %v3624_v1 = vsel %vm3617_vm11, %v3620_v7, %v3623_v26  ;;  %v7767_v2 = vadd.s32 3, %v3818_v47  ;;  %vm18019_vm4 = vcmask 523264   ;;  %v3825_v31 = vxor.u32 2147483648, %v18020_v57 }
 0x4af   :  { %10499 = vmatmul.mubr.msk.bf16.gmra.mrb[56].mxu0 %vm18019_vm4, %v8443_v37  ;;  %v3625_v63 = vsel %vm3615_vm7, nan, %v3624_v1  ;;  %v3828_v9 = vxor.u32 2147483648, %v18021_v54  ;;  %v3719_v8 = vand.u32 3, %v3715_v21  ;;  %v7664_v6 = vand.u32 3, %v7663_v42  ;;  %vm18024_vm7 = vmmov %vm18019_vm4 }
 0x4b0   :  { %v8416_v5 = vpack.c.bf16 %v3625_v63, %v3522_v40  ;;  %10502 = vmatprep.mubr.msk.bf16.mxu0 %vm17476_vm5, %v17436_v13  ;;  %v7768_v24 = vand.u32 3, %v7767_v2  ;;  %v3822_v17 = vand.u32 3, %v3818_v47  ;;  %v3921_v14 = vsel %vm15813_vm6, 0, %v18022_v36 }
 0x4b1   :  { %vm3720_vm13 = vcmp.lt.s32.totalorder %v3719_v8, 2  ;;  %vm3721_vm3 = vcmp.eq.s32.totalorder %v3719_v8, 0  ;;  %vm3724_vm10 = vcmp.eq.s32.totalorder %v3719_v8, 2  ;;  %vm7665_vm1 = vcmp.lt.s32.totalorder %v7664_v6, 2 }
 0x4b2   :  { %10583 = vmatmul.mubr.msk.bf16.gmra.mrb[56].mxu1 %vm18024_vm7, %v8416_v5  ;;  %vm7666_vm15 = vcmp.eq.s32.totalorder %v7664_v6, 0  ;;  %vm7669_vm14 = vcmp.eq.s32.totalorder %v7664_v6, 2  ;;  %vm7769_vm12 = vcmp.lt.s32.totalorder %v7768_v24, 2  ;;  %v18025_v21 = vxor.u32 2147483648, %v18012_v59 }
 0x4b3   :  { %10586 = vmatprep.mubr.msk.bf16.mxu1 %vm17476_vm5, %v17436_v13  ;;  %v7671_v37 = vsel %vm7669_vm14, %v3725_v48, %v18012_v59  ;;  %vm7770_vm11 = vcmp.eq.s32.totalorder %v7768_v24, 0  ;;  %vm7773_vm4 = vcmp.eq.s32.totalorder %v7768_v24, 2  ;;  %v3726_v6 = vsel %vm3724_vm10, %v3725_v48, %v18012_v59  ;;  %v18027_v59 = vld [vmem:[#allocation5_spill] sm:$0xff]  ;;  %v18028_v48 = vld [vmem:[#allocation76_spill] sm:$0xff] }
 0x4b4   :  { %v7668_v47 = vsel %vm7666_vm15, %v18014_v61, %v18025_v21  ;;  %v7772_v26 = vsel %vm7770_vm11, %v18021_v54, %v3825_v31  ;;  %v7775_v1 = vsel %vm7773_vm4, %v3828_v9, %v18020_v57  ;;  %v18026_v42 = vmov %v18025_v21 }
 0x4b5   :  { %v7672_v40 = vsel %vm7665_vm1, %v7668_v47, %v7671_v37  ;;  %v3723_v2 = vsel %vm3721_vm3, %v18014_v61, %v18026_v42  ;;  %v7776_v5 = vsel %vm7769_vm12, %v7772_v26, %v7775_v1  ;;  %vm3824_vm6 = vcmp.eq.s32.totalorder %v3822_v17, 0 }
 0x4b6   :  { %v7673_v63 = vsel %vm3718_vm0, nan, %v7672_v40  ;;  %v7777_v24 = vsel %vm3821_vm8, nan, %v7776_v5  ;;  %v3727_v36 = vsel %vm3720_vm13, %v3723_v2, %v3726_v6  ;;  %v3826_v7 = vsel %vm3824_vm6, %v18021_v54, %v3825_v31  ;;  %v18034_v2 = vld [vmem:[#allocation48_spill] sm:$0xff]  ;;  %v18035_v5 = vld [vmem:[#allocation31_spill] sm:$0xff] }
 0x4b7   :  { %vm3827_vm7 = vcmp.eq.s32.totalorder %v3822_v17, 2  ;;  %11148 = vsinq.f32 %v16366_v43  ;;  %v8444_v21 = vpack.c.bf16 %v7777_v24, %v7673_v63  ;;  %vm3823_vm3 = vcmp.lt.s32.totalorder %v3822_v17, 2  ;;  %v18031_v43 = vld [vmem:[#allocation79_spill] sm:$0xff]  ;;  %v18032_v17 = vld [vmem:[#allocation80_spill] sm:$0xff] }
 0x4b8   :  { %v3829_v61 = vsel %vm3827_vm7, %v3828_v9, %v18020_v57  ;;  %v3728_v47 = vsel %vm3718_vm0, nan, %v3727_v36  ;;  %vm3924_vm10 = vweird.f32 %v18027_v59  ;;  %v4024_v8 = vsel %vm15832_vm9, 0, %v18028_v48 }
 0x4b9   :  { %v3830_v37 = vsel %vm3823_vm3, %v3826_v7, %v3829_v61  ;;  %vm18030_vm13 = vcmask 523264   ;;  %v3928_v31 = vxor.u32 2147483648, %v18031_v43  ;;  %v3931_v26 = vxor.u32 2147483648, %v18032_v17  ;;  %v18037_v7 = vld [vmem:[#allocation15_spill] sm:$0xff] }
 0x4ba   :  { %10503 = vmatmul.mubr.msk.bf16.gmra.mrb[60].mxu0 %vm18030_vm13, %v8444_v21  ;;  %v3831_v54 = vsel %vm3821_vm8, nan, %v3830_v37  ;;  %v7871_v57 = vadd.s32 3, %v3921_v14  ;;  %vm4027_vm0 = vweird.f32 %v18033_v46  ;;  %v7975_v1 = vadd.s32 3, %v4024_v8  ;;  %vm18036_vm9 = vmmov %vm18030_vm13  ;;  %v18038_v21 = vld [vmem:[#allocation60_spill] sm:$0xff] }
 0x4bb   :  { %v8417_v9 = vpack.c.bf16 %v3831_v54, %v3728_v47  ;;  %10506 = vmatprep.mubr.msk.bf16.mxu0 %vm17476_vm5, %v17436_v13  ;;  %v3925_v42 = vand.u32 3, %v3921_v14  ;;  %v4031_v63 = vxor.u32 2147483648, %v18034_v2  ;;  %v4034_v6 = vxor.u32 2147483648, %v18035_v5 }
 0x4bc   :  { %v7872_v24 = vand.u32 3, %v7871_v57  ;;  %v4028_v45 = vand.u32 3, %v4024_v8  ;;  %v7976_v36 = vand.u32 3, %v7975_v1  ;;  %vm18039_vm15 = vnez %v18038_v21  ;;  %v18041_v1 = vld [vmem:[#allocation58_spill] sm:$0xff] }
 0x4bd   :  { %10587 = vmatmul.mubr.msk.bf16.gmra.mrb[60].mxu1 %vm18036_vm9, %v8417_v9  ;;  %vm3926_vm8 = vcmp.lt.s32.totalorder %v3925_v42, 2  ;;  %vm3927_vm1 = vcmp.eq.s32.totalorder %v3925_v42, 0  ;;  %v4127_v61 = vsel %vm18039_vm15, 0, %v18037_v7  ;;  %vm3930_vm11 = vcmp.eq.s32.totalorder %v3925_v42, 2  ;;  %v18040_v9 = vld [vmem:[#allocation40_spill] sm:$0xff] }
 0x4be   :  { %10590 = vmatprep.mubr.msk.bf16.mxu1 %vm17476_vm5, %v17436_v13  ;;  %vm7874_vm14 = vcmp.eq.s32.totalorder %v7872_v24, 0  ;;  %vm7877_vm12 = vcmp.eq.s32.totalorder %v7872_v24, 2  ;;  %v3929_v14 = vsel %vm3927_vm1, %v18032_v17, %v3928_v31  ;;  %vm7873_vm4 = vcmp.lt.s32.totalorder %v7872_v24, 2 }
 0x4bf   :  { %v7876_v47 = vsel %vm7874_vm14, %v18032_v17, %v3928_v31  ;;  %v7879_v37 = vsel %vm7877_vm12, %v3931_v26, %v18031_v43  ;;  %vm7978_vm6 = vcmp.eq.s32.totalorder %v7976_v36, 0  ;;  %vm7981_vm7 = vcmp.eq.s32.totalorder %v7976_v36, 2 }
 0x4c0   :  { %v7880_v48 = vsel %vm7873_vm4, %v7876_v47, %v7879_v37  ;;  %v7980_v40 = vsel %vm7978_vm6, %v18035_v5, %v4031_v63  ;;  %v3932_v8 = vsel %vm3930_vm11, %v3931_v26, %v18031_v43  ;;  %vm7977_vm3 = vcmp.lt.s32.totalorder %v7976_v36, 2  ;;  %v18042_v47 = vld [vmem:[#allocation75_spill] sm:$0xff] }
 0x4c1   :  { %v7983_v54 = vsel %vm7981_vm7, %v4034_v6, %v18034_v2  ;;  %v3933_v57 = vsel %vm3926_vm8, %v3929_v14, %v3932_v8  ;;  %vm4130_vm13 = vweird.f32 %v18040_v9  ;;  %v4134_v24 = vxor.u32 2147483648, %v18041_v1  ;;  %v16495_v7 = vpop.eup %11148  ;;  %v16553_v9 = vld [vmem:[%s17033_s4] ss:$0 sm:$0xff] }
 0x4c2   :  { %v7881_v31 = vsel %vm3924_vm10, nan, %v7880_v48  ;;  %v7984_v17 = vsel %vm7977_vm3, %v7980_v40, %v7983_v54  ;;  %vm4030_vm9 = vcmp.eq.s32.totalorder %v4028_v45, 0  ;;  %vm4033_vm1 = vcmp.eq.s32.totalorder %v4028_v45, 2  ;;  %v18044_v40 = vld [vmem:[#allocation45_spill] sm:$0xff] }
 0x4c3   :  { %v7985_v43 = vsel %vm4027_vm0, nan, %v7984_v17  ;;  %vm4029_vm15 = vcmp.lt.s32.totalorder %v4028_v45, 2  ;;  %v4032_v26 = vsel %vm4030_vm9, %v18035_v5, %v4031_v63  ;;  %v4035_v42 = vsel %vm4033_vm1, %v4034_v6, %v18034_v2 }
 0x4c4   :  { %v8445_v36 = vpack.c.bf16 %v7985_v43, %v7881_v31  ;;  %v3934_v21 = vsel %vm3924_vm10, nan, %v3933_v57  ;;  %v4036_v14 = vsel %vm4029_vm15, %v4032_v26, %v4035_v42  ;;  %vm18043_vm8 = vnez %v17956_v20  ;;  %v16524_v31 = vpop.f32.mrb[32].mxu0 }
 0x4c5   :  { %v4230_v37 = vsel %vm18043_vm8, 0, %v18042_v47  ;;  %v4037_v48 = vsel %vm4027_vm0, nan, %v4036_v14  ;;  %v4137_v8 = vxor.u32 2147483648, %v18044_v40  ;;  %vm4233_vm14 = vweird.f32 %v15673_v11  ;;  %v10476_v43 = vpop.f32.mrb[33].mxu0 }
 0x4c6   :  { %v8079_v45 = vadd.s32 3, %v4127_v61  ;;  %vm18045_vm12 = vcmask 523264   ;;  %v8418_v2 = vpack.c.bf16 %v4037_v48, %v3934_v21  ;;  %v4237_v63 = vxor.u32 2147483648, %v16345_v56  ;;  %v16531_v21 = vpop.f32.mrb[34].mxu0 }
 0x4c7   :  { %10507 = vmatmul.mubr.msk.bf16.gmra.mrb[64].mxu0 %vm18045_vm12, %v8445_v36  ;;  %v8183_v59 = vadd.s32 3, %v4230_v37  ;;  %v4131_v5 = vand.u32 3, %v4127_v61  ;;  %v4240_v20 = vxor.u32 2147483648, %v16254_v28  ;;  %v4234_v46 = vand.u32 3, %v4230_v37  ;;  %vm18047_vm0 = vmmov %vm18045_vm12  ;;  %v10477_v37 = vpop.f32.mrb[35].mxu0 }
 0x4c8   :  { %10510 = vmatprep.mubr.msk.bf16.mxu0 %vm17476_vm5, %v17436_v13  ;;  %v8080_v6 = vand.u32 3, %v8079_v45  ;;  %vm18046_vm10 = vnez %v17977_v58  ;;  %10591 = vmatmul.mubr.msk.bf16.gmra.mrb[64].mxu1 %vm18047_vm0, %v8418_v2  ;;  %v16544_v2 = vpop.f32.mrb[32].mxu1  ;;  %v18053_v37 = vld [vmem:[#allocation13_spill] sm:$0xff] }
 0x4c9   :  { %v4333_v54 = vsel %vm18046_vm10, 0, %v16296_v19  ;;  %v8184_v57 = vand.u32 3, %v8183_v59  ;;  %vm4132_vm11 = vcmp.lt.s32.totalorder %v4131_v5, 2  ;;  %vm4133_vm4 = vcmp.eq.s32.totalorder %v4131_v5, 0  ;;  %10594 = vmatprep.mubr.msk.bf16.mxu1 %vm17476_vm5, %v17436_v13 }
 0x4ca   :  { %vm4136_vm6 = vcmp.eq.s32.totalorder %v4131_v5, 2  ;;  %vm8081_vm7 = vcmp.lt.s32.totalorder %v8080_v6, 2  ;;  %vm8082_vm3 = vcmp.eq.s32.totalorder %v8080_v6, 0  ;;  %vm8085_vm9 = vcmp.eq.s32.totalorder %v8080_v6, 2 }
 0x4cb   :  { %v4135_v61 = vsel %vm4133_vm4, %v18044_v40, %v4134_v24  ;;  %v8084_v17 = vsel %vm8082_vm3, %v18044_v40, %v4134_v24  ;;  %v8087_v58 = vsel %vm8085_vm9, %v4137_v8, %v18041_v1  ;;  %vm8186_vm1 = vcmp.eq.s32.totalorder %v8184_v57, 0 }
 0x4cc   :  { %v4340_v19 = vxor.u32 2147483648, %v16416_v4  ;;  %v8088_v26 = vsel %vm8081_vm7, %v8084_v17, %v8087_v58  ;;  %v8188_v42 = vsel %vm8186_vm1, %v16254_v28, %v4237_v63  ;;  %vm8189_vm15 = vcmp.eq.s32.totalorder %v8184_v57, 2  ;;  %v18049_v17 = vld [vmem:[#allocation71_spill] sm:$0xff]  ;;  %v18050_v58 = vld [vmem:[#allocation64_spill] sm:$0xff] }
 0x4cd   :  { %v4138_v36 = vsel %vm4136_vm6, %v4137_v8, %v18041_v1  ;;  %v8089_v14 = vsel %vm4130_vm13, nan, %v8088_v26  ;;  %vm8185_vm8 = vcmp.lt.s32.totalorder %v8184_v57, 2  ;;  %v8191_v24 = vsel %vm8189_vm15, %v4240_v20, %v16345_v56 }
 0x4ce   :  { %v4139_v47 = vsel %vm4132_vm11, %v4135_v61, %v4138_v36  ;;  %v8192_v48 = vsel %vm8185_vm8, %v8188_v42, %v8191_v24  ;;  %vm4235_vm12 = vcmp.lt.s32.totalorder %v4234_v46, 2  ;;  %vm4236_vm10 = vcmp.eq.s32.totalorder %v4234_v46, 0  ;;  %v18052_v24 = vld [vmem:[#allocation42_spill] sm:$0xff] }
 0x4cf   :  { %vm4239_vm0 = vcmp.eq.s32.totalorder %v4234_v46, 2  ;;  %v8193_v40 = vsel %vm4233_vm14, nan, %v8192_v48  ;;  %v4140_v1 = vsel %vm4130_vm13, nan, %v4139_v47  ;;  %v4238_v8 = vsel %vm4236_vm10, %v16254_v28, %v4237_v63  ;;  %v10560_v28 = vpop.f32.mrb[33].mxu1  ;;  %v18054_v48 = vld [vmem:[#allocation50_spill] sm:$0xff] }
 0x4d0   :  { %v4241_v45 = vsel %vm4239_vm0, %v4240_v20, %v16345_v56  ;;  %vm4336_vm4 = vweird.f32 %v15890_v41  ;;  %v8446_v59 = vpack.c.bf16 %v8193_v40, %v8089_v14  ;;  %v4343_v6 = vxor.u32 2147483648, %v16408_v27  ;;  %v16560_v61 = vpop.f32.mrb[34].mxu1  ;;  %v18051_v14 = vld [vmem:[#allocation81_spill] sm:$0xff]  ;;  %v18056_v41 = vld [vmem:[#allocation16_spill] sm:$0xff] }
 0x4d1   :  { %v4242_v5 = vsel %vm4235_vm12, %v4238_v8, %v4241_v45  ;;  %v4436_v46 = vsel %vm16338_vm2, 0, %v16307_v50  ;;  %vm4439_vm13 = vweird.f32 %v15893_v49  ;;  %v4443_v63 = vxor.u32 2147483648, %v16495_v7  ;;  %v10561_v42 = vpop.f32.mrb[35].mxu1 }
 0x4d2   :  { %v4243_v56 = vsel %vm4233_vm14, nan, %v4242_v5  ;;  %v4446_v20 = vxor.u32 2147483648, %v16425_v0  ;;  %v8287_v57 = vadd.s32 3, %v4333_v54  ;;  %vm18048_vm11 = vcmask 523264  }
 0x4d3   :  { %10511 = vmatmul.mubr.msk.bf16.gmra.mrb[68].mxu0 %vm18048_vm11, %v8446_v59  ;;  %v8419_v50 = vpack.c.bf16 %v4243_v56, %v4140_v1  ;;  %v8391_v23 = vadd.s32 3, %v4436_v46  ;;  %v8839_v43 = vadd.f32 %v18050_v58, %v18049_v17  ;;  %v4337_v26 = vand.u32 3, %v4333_v54  ;;  %vm18055_vm2 = vmmov %vm18048_vm11 }
 0x4d4   :  { %10514 = vmatprep.mubr.msk.bf16.mxu0 %vm17476_vm5, %v17436_v13  ;;  %v8288_v11 = vand.u32 3, %v8287_v57  ;;  %v4440_v36 = vand.u32 3, %v4436_v46  ;;  %v8842_v47 = vadd.f32 %v18052_v24, %v18051_v14  ;;  %v8847_v40 = vadd.f32 %v18054_v48, %v18053_v37  ;;  %v18058_v24 = vld [vmem:[#allocation41_spill] sm:$0xff] }
 0x4d5   :  { %10595 = vmatmul.mubr.msk.bf16.gmra.mrb[68].mxu1 %vm18055_vm2, %v8419_v50  ;;  %v8392_v1 = vand.u32 3, %v8391_v23  ;;  %v8996_v8 = vadd.f32 %v16553_v9, %v8839_v43  ;;  %vm4338_vm14 = vcmp.lt.s32.totalorder %v4337_v26, 2  ;;  %vm4339_vm6 = vcmp.eq.s32.totalorder %v4337_v26, 0 }
 0x4d6   :  { %10598 = vmatprep.mubr.msk.bf16.mxu1 %vm17476_vm5, %v17436_v13  ;;  %vm8289_vm7 = vcmp.lt.s32.totalorder %v8288_v11, 2  ;;  %vm8290_vm3 = vcmp.eq.s32.totalorder %v8288_v11, 0  ;;  %vm8293_vm9 = vcmp.eq.s32.totalorder %v8288_v11, 2  ;;  %v4341_v54 = vsel %vm4339_vm6, %v16408_v27, %v4340_v19  ;;  %vm18062_vm6 = vmmov %vm18055_vm2 }
 0x4d7   :  { %v8292_v45 = vsel %vm8290_vm3, %v16408_v27, %v4340_v19  ;;  %v8295_v59 = vsel %vm8293_vm9, %v4343_v6, %v16416_v4  ;;  %vm8393_vm1 = vcmp.lt.s32.totalorder %v8392_v1, 2  ;;  %vm8394_vm15 = vcmp.eq.s32.totalorder %v8392_v1, 0  ;;  %vm18064_vm3 = vmmov %vm18055_vm2 }
 0x4d8   :  { %v8296_v5 = vsel %vm8289_vm7, %v8292_v45, %v8295_v59  ;;  %v8396_v46 = vsel %vm8394_vm15, %v16425_v0, %v4443_v63  ;;  %vm8397_vm8 = vcmp.eq.s32.totalorder %v8392_v1, 2  ;;  %v9034_v28 = vmax.f32 %v8996_v8, 0.0  ;;  %vm18063_vm7 = vmmov %vm18055_vm2 }
 0x4d9   :  { %v8297_v56 = vsel %vm4336_vm4, nan, %v8296_v5  ;;  %v8399_v57 = vsel %vm8397_vm8, %v4446_v20, %v16495_v7  ;;  %vm4342_vm12 = vcmp.eq.s32.totalorder %v4337_v26, 2  ;;  %vm4441_vm10 = vcmp.lt.s32.totalorder %v4440_v36, 2  ;;  %vm18065_vm9 = vmmov %vm18055_vm2 }
 0x4da   :  { %v8400_v50 = vsel %vm8393_vm1, %v8396_v46, %v8399_v57  ;;  %v4344_v23 = vsel %vm4342_vm12, %v4343_v6, %v16416_v4  ;;  %vm4442_vm0 = vcmp.eq.s32.totalorder %v4440_v36, 0  ;;  %vm4445_vm11 = vcmp.eq.s32.totalorder %v4440_v36, 2  ;;  %v18057_v36 = vld [vmem:[#allocation20_spill] sm:$0xff]  ;;  %vm18066_vm1 = vmmov %vm18055_vm2 }
 0x4db   :  { %v8401_v27 = vsel %vm4439_vm13, nan, %v8400_v50  ;;  %v4345_v19 = vsel %vm4338_vm14, %v4341_v54, %v4344_v23  ;;  %v4444_v17 = vsel %vm4442_vm0, %v16425_v0, %v4443_v63  ;;  %v4447_v58 = vsel %vm4445_vm11, %v4446_v20, %v16495_v7  ;;  %vm18061_vm14 = vmmov %vm18055_vm2 }
 0x4dc   :  { %v8447_v43 = vpack.c.bf16 %v8401_v27, %v8297_v56  ;;  %v4346_v42 = vsel %vm4336_vm4, nan, %v4345_v19  ;;  %v4448_v11 = vsel %vm4441_vm10, %v4444_v17, %v4447_v58  ;;  %v8997_v14 = vadd.f32 %v16553_v9, %v8842_v47  ;;  %vm18059_vm4 = vmmov %vm18055_vm2 }
 0x4dd   :  { %v4449_v4 = vsel %vm4439_vm13, nan, %v4448_v11  ;;  %v8998_v6 = vadd.f32 %v16553_v9, %v8847_v40  ;;  %v8850_v26 = vadd.f32 %v16008_v32, %v16004_v16  ;;  %v8855_v0 = vadd.f32 %v16018_v30, %v16016_v39  ;;  %vm18060_vm13 = vmmov %vm18055_vm2 }
 0x4de   :  { %10515 = vmatmul.mubr.msk.bf16.gmra.mrb[72].mxu0 %vm18055_vm2, %v8447_v43  ;;  %v8420_v7 = vpack.c.bf16 %v4449_v4, %v4346_v42  ;;  %v9035_v63 = vmax.f32 %v8997_v14, 0.0  ;;  %v8858_v20 = vadd.f32 %v18056_v41, %v16066_v44  ;;  %v8863_v47 = vadd.f32 %v18058_v24, %v18057_v36  ;;  %vm18067_vm15 = vmmov %vm18066_vm1 }
 0x4df   :  { %v9036_v49 = vmax.f32 %v8998_v6, 0.0  ;;  %v8999_v37 = vadd.f32 %v16553_v9, %v8850_v26  ;;  %10610 = vmatprep.mubr.msk.bf16.mxu0 %vm17476_vm5, %v17436_v13  ;;  %v9000_v16 = vadd.f32 %v16553_v9, %v8855_v0  ;;  %v8866_v32 = vadd.f32 %v16116_v22, %v16114_v18  ;;  %vm18068_vm8 = vmmov %vm18066_vm1 }
 0x4e0   :  { %10599 = vmatmul.mubr.msk.bf16.gmra.mrb[72].mxu1 %vm18059_vm4, %v8420_v7  ;;  %v9073_v39 = vpack.c.bf16 %v9035_v63, %v9034_v28  ;;  %v9001_v30 = vadd.f32 %v16553_v9, %v8858_v20  ;;  %v9002_v44 = vadd.f32 %v16553_v9, %v8863_v47  ;;  %v8871_v48 = vadd.f32 %v16182_v35, %v16180_v33  ;;  %vm18069_vm12 = vmmov %vm18066_vm1 }
 0x4e1   :  { %v9037_v40 = vmax.f32 %v8999_v37, 0.0  ;;  %v9038_v1 = vmax.f32 %v9000_v16, 0.0  ;;  %v9003_v8 = vadd.f32 %v16553_v9, %v8866_v32  ;;  %v8874_v54 = vadd.f32 %v16197_v34, %v16195_v62  ;;  %10694 = vmatprep.mubr.msk.bf16.mxu1 %vm17476_vm5, %v17436_v13  ;;  %vm18070_vm10 = vmmov %vm18066_vm1 }
 0x4e2   :  { %v9039_v18 = vmax.f32 %v9001_v30, 0.0  ;;  %v9040_v22 = vmax.f32 %v9002_v44, 0.0  ;;  %v9004_v45 = vadd.f32 %v16553_v9, %v8871_v48  ;;  %v8879_v59 = vadd.f32 %v16211_v15, %v16209_v52  ;;  %v10995_v30 = vld [vmem:[%s17034_s7 + $0x8] sm:$0xff]   ;;  %vm18071_vm0 = vmmov %vm18066_vm1 }
 0x4e3   :  { %v9074_v5 = vpack.c.bf16 %v9037_v40, %v9036_v49  ;;  %v9041_v46 = vmax.f32 %v9003_v8, 0.0  ;;  %v9005_v33 = vadd.f32 %v16553_v9, %v8874_v54  ;;  %v8882_v35 = vadd.f32 %v16235_v29, %v16233_v38  ;;  %vm18072_vm11 = vmmov %vm18071_vm0 }
 0x4e4   :  { %v9075_v28 = vpack.c.bf16 %v9039_v18, %v9038_v1  ;;  %v9042_v56 = vmax.f32 %v9004_v45, 0.0  ;;  %v9006_v62 = vadd.f32 %v16553_v9, %v8879_v59  ;;  %v8887_v34 = vadd.f32 %v16270_v60, %v16268_v51  ;;  %vm18073_vm2 = vmmov %vm18071_vm0 }
 0x4e5   :  { %v9076_v57 = vpack.c.bf16 %v9041_v46, %v9040_v22  ;;  %v9043_v50 = vmax.f32 %v9005_v33, 0.0  ;;  %v9007_v23 = vadd.f32 %v16553_v9, %v8882_v35  ;;  %v8890_v52 = vadd.f32 %v16285_v3, %v16283_v10  ;;  %vm18074_vm4 = vmmov %vm18071_vm0 }
 0x4e6   :  { %10611 = vmatmul.mubr.msk.bf16.vlgmr.msra.gmra.mrb[76].mxu0 %vm18060_vm13, %v9073_v39  ;;  %v9044_v15 = vmax.f32 %v9006_v62, 0.0  ;;  %v9008_v27 = vadd.f32 %v16553_v9, %v8887_v34  ;;  %v8895_v38 = vadd.f32 %v16402_v53, %v16371_v25  ;;  %v8898_v29 = vadd.f32 %v16414_v12, %v16387_v55  ;;  %v10997_v62 = vld [vmem:[%s17034_s7 + $0x18] sm:$0xff]   ;;  %vm18075_vm13 = vmmov %vm18071_vm0 }
 0x4e7   :  { %10614 = vmatprep.mubr.msk.bf16.mxu0 %vm17476_vm5, %v17436_v13  ;;  %v9077_v51 = vpack.c.bf16 %v9043_v50, %v9042_v56  ;;  %v9045_v60 = vmax.f32 %v9007_v23, 0.0  ;;  %v9009_v19 = vadd.f32 %v16553_v9, %v8890_v52  ;;  %v8903_v10 = vadd.f32 %v16544_v2, %v16524_v31  ;;  %v10996_v56 = vld [vmem:[%s17034_s7 + $0x10] sm:$0xff]  }
 0x4e8   :  { %v9010_v3 = vadd.f32 %v16553_v9, %v8895_v38  ;;  %v9011_v17 = vadd.f32 %v16553_v9, %v8898_v29  ;;  %v8906_v25 = vadd.f32 %v16560_v61, %v16531_v21  ;;  %v9046_v58 = vmax.f32 %v9008_v27, 0.0  ;;  %v10994_v21 = vld [vmem:[%s17034_s7] sm:$0xff]   ;;  %v8644_v61 = vpop.f32.mrb[36].mxu0 }
 0x4e9   :  { %v9078_v53 = vpack.c.bf16 %v9045_v60, %v9044_v15  ;;  %v9047_v55 = vmax.f32 %v9009_v19, 0.0  ;;  %v9012_v12 = vadd.f32 %v16553_v9, %v8903_v10  ;;  %10687 = vmatpush3.bf16.msra.mxu1 %v10994_v21  ;;  %v10480_v26 = vpop.f32.mrb[37].mxu0 }
 0x4ea   :  { %v9048_v43 = vmax.f32 %v9010_v3, 0.0  ;;  %v9049_v42 = vmax.f32 %v9011_v17, 0.0  ;;  %v9013_v11 = vadd.f32 %v16553_v9, %v8906_v25  ;;  %10688 = vmatprep.subr.bf16.mxu1 %v17436_v13  ;;  %v8647_v0 = vpop.f32.mrb[38].mxu0 }
 0x4eb   :  { %v9079_v14 = vpack.c.bf16 %v9047_v55, %v9046_v58  ;;  %v9050_v6 = vmax.f32 %v9012_v12, 0.0  ;;  %v10481_v7 = vpop.f32.mrb[39].mxu0 }
 0x4ec   :  { %v9080_v4 = vpack.c.bf16 %v9049_v42, %v9048_v43  ;;  %v9051_v31 = vmax.f32 %v9013_v11, 0.0 }
 0x4ed   :  { %10689 = vmatpush3.bf16.msra.mxu1 %v10995_v30 }
 0x4ee   :  { %10615 = vmatmul.mubr.msk.bf16.gmra.mrb[80].mxu0 %vm18061_vm14, %v9074_v5  ;;  %v9081_v2 = vpack.c.bf16 %v9051_v31, %v9050_v6  ;;  %10690 = vmatprep.subr.bf16.mxu1 %v17436_v13  ;;  %vm18076_vm14 = vmmov %vm18071_vm0 }
 0x4ef   :  { %10618 = vmatprep.mubr.msk.bf16.mxu0 %vm17476_vm5, %v17436_v13 }
 0x4f0   :  { %v8910_v63 = vpop.f32.mrb[36].mxu1 }
 0x4f1   :  { %v8911_v41 = vadd.f32 %v8910_v63, %v8644_v61  ;;  %v10564_v20 = vpop.f32.mrb[37].mxu1  ;;  %10691 = vmatpush3.bf16.msra.mxu1 %v10996_v56 }
 0x4f2   :  { %v8913_v36 = vpop.f32.mrb[38].mxu1  ;;  %10692 = vmatprep.subr.bf16.mxu1 %v17436_v13 }
 0x4f3   :  { %v9014_v24 = vadd.f32 %v16553_v9, %v8911_v41  ;;  %v8914_v47 = vadd.f32 %v8913_v36, %v8647_v0  ;;  %v10565_v49 = vpop.f32.mrb[39].mxu1 }
 0x4f5   :  { %v9015_v37 = vadd.f32 %v16553_v9, %v8914_v47  ;;  %v9052_v16 = vmax.f32 %v9014_v24, 0.0  ;;  %10693 = vmatpush3.bf16.msra.mxu1 %v10997_v62 }
 0x4f6   :  { %10619 = vmatmul.mubr.msk.bf16.gmra.mrb[84].mxu0 %vm18062_vm6, %v9075_v28  ;;  %vm18077_vm6 = vmmov %vm18071_vm0 }
 0x4f7   :  { %10622 = vmatprep.mubr.msk.bf16.mxu0 %vm17476_vm5, %v17436_v13  ;;  %v9053_v32 = vmax.f32 %v9015_v37, 0.0 }
 0x4f9   :  { %v9082_v39 = vpack.c.bf16 %v9053_v32, %v9052_v16 }
 0x4fe   :  { %10623 = vmatmul.mubr.msk.bf16.gmra.mrb[88].mxu0 %vm18063_vm7, %v9076_v57  ;;  %vm18078_vm7 = vmmov %vm18071_vm0 }
 0x4ff   :  { %10626 = vmatprep.mubr.msk.bf16.mxu0 %vm17476_vm5, %v17436_v13 }
 0x506   :  { %10627 = vmatmul.mubr.msk.bf16.gmra.mrb[92].mxu0 %vm18064_vm3, %v9077_v51  ;;  %vm18079_vm3 = vmmov %vm18071_vm0 }
 0x507   :  { %10630 = vmatprep.mubr.msk.bf16.mxu0 %vm17476_vm5, %v17436_v13 }
 0x50e   :  { %10631 = vmatmul.mubr.msk.bf16.gmra.mrb[96].mxu0 %vm18065_vm9, %v9078_v53  ;;  %vm18080_vm9 = vmmov %vm18071_vm0 }
 0x50f   :  { %10634 = vmatprep.mubr.msk.bf16.mxu0 %vm17476_vm5, %v17436_v13 }
 0x515   :  { %v8652_v44 = vpop.f32.mrb[40].mxu0 }
 0x516   :  { %10635 = vmatmul.mubr.msk.bf16.gmra.mrb[100].mxu0 %vm18066_vm1, %v9079_v14  ;;  %v10484_v48 = vpop.f32.mrb[41].mxu0  ;;  %vm18081_vm1 = vmmov %vm18071_vm0 }
 0x517   :  { %10638 = vmatprep.mubr.msk.bf16.mxu0 %vm17476_vm5, %v17436_v13  ;;  %v8655_v40 = vpop.f32.mrb[42].mxu0 }
 0x518   :  { %v10485_v1 = vpop.f32.mrb[43].mxu0 }
 0x51c   :  { %v8918_v8 = vpop.f32.mrb[40].mxu1 }
 0x51d   :  { %v8919_v54 = vadd.f32 %v8918_v8, %v8652_v44  ;;  %v10568_v18 = vpop.f32.mrb[41].mxu1 }
 0x51e   :  { %10639 = vmatmul.mubr.msk.bf16.gmra.mrb[104].mxu0 %vm18067_vm15, %v9080_v4  ;;  %v8921_v22 = vpop.f32.mrb[42].mxu1  ;;  %vm18082_vm15 = vmmov %vm18071_vm0 }
 0x51f   :  { %10642 = vmatprep.mubr.msk.bf16.mxu0 %vm17476_vm5, %v17436_v13  ;;  %v9016_v45 = vadd.f32 %v16553_v9, %v8919_v54  ;;  %v8922_v59 = vadd.f32 %v8921_v22, %v8655_v40  ;;  %v10569_v5 = vpop.f32.mrb[43].mxu1 }
 0x521   :  { %v9017_v46 = vadd.f32 %v16553_v9, %v8922_v59  ;;  %v9054_v33 = vmax.f32 %v9016_v45, 0.0 }
 0x523   :  { %v9055_v35 = vmax.f32 %v9017_v46, 0.0 }
 0x525   :  { %v9083_v28 = vpack.c.bf16 %v9055_v35, %v9054_v33 }
 0x526   :  { %10643 = vmatmul.mubr.msk.bf16.gmra.mrb[108].mxu0 %vm18068_vm8, %v9081_v2  ;;  %vm18083_vm8 = vmmov %vm18071_vm0 }
 0x527   :  { %10646 = vmatprep.mubr.msk.bf16.mxu0 %vm17476_vm5, %v17436_v13 }
 0x52e   :  { %10647 = vmatmul.mubr.msk.bf16.gmra.mrb[112].mxu0 %vm18069_vm12, %v9082_v39  ;;  %vm18084_vm12 = vmmov %vm18071_vm0 }
 0x52f   :  { %10650 = vmatprep.mubr.msk.bf16.mxu0 %vm17476_vm5, %v17436_v13 }
 0x536   :  { %10651 = vmatmul.mubr.msk.bf16.gmra.mrb[116].mxu0 %vm18070_vm10, %v9083_v28  ;;  %vm18085_vm10 = vmmov %vm18071_vm0 }
 0x537   :  { %10654 = vmatprep.mubr.msk.bf16.mxu0 %vm17476_vm5, %v17436_v13 }
 0x54d   :  { %v8660_v34 = vpop.f32.mrb[44].mxu0 }
 0x54e   :  { %v10488_v57 = vpop.f32.mrb[45].mxu0 }
 0x54f   :  { %v8663_v50 = vpop.f32.mrb[46].mxu0 }
 0x550   :  { %v10489_v23 = vpop.f32.mrb[47].mxu0 }
 0x554   :  { %v8926_v52 = vpop.f32.mrb[44].mxu1 }
 0x555   :  { %v8927_v15 = vadd.f32 %v8926_v52, %v8660_v34  ;;  %v10572_v27 = vpop.f32.mrb[45].mxu1 }
 0x556   :  { %v8929_v38 = vpop.f32.mrb[46].mxu1 }
 0x557   :  { %v9018_v29 = vadd.f32 %v16553_v9, %v8927_v15  ;;  %v8930_v51 = vadd.f32 %v8929_v38, %v8663_v50  ;;  %v10573_v60 = vpop.f32.mrb[47].mxu1 }
 0x559   :  { %v9019_v19 = vadd.f32 %v16553_v9, %v8930_v51  ;;  %v9056_v10 = vmax.f32 %v9018_v29, 0.0 }
 0x55b   :  { %v9057_v3 = vmax.f32 %v9019_v19, 0.0 }
 0x55d   :  { %v9084_v17 = vpack.c.bf16 %v9057_v3, %v9056_v10 }
 0x55f   :  { %10655 = vmatmul.mubr.msk.bf16.gmra.mrb[120].mxu0 %vm18071_vm0, %v9084_v17 }
 0x560   :  { %v8668_v25 = vpop.f32.mrb[48].mxu0  ;;  %10658 = vmatprep.mubr.msk.bf16.mxu0 %vm17476_vm5, %v17436_v13 }
 0x561   :  { %v10492_v53 = vpop.f32.mrb[49].mxu0 }
 0x562   :  { %v8671_v58 = vpop.f32.mrb[50].mxu0 }
 0x563   :  { %v10493_v55 = vpop.f32.mrb[51].mxu0 }
 0x569   :  { %v8934_v12 = vpop.f32.mrb[48].mxu1 }
 0x56a   :  { %v8935_v43 = vadd.f32 %v8934_v12, %v8668_v25  ;;  %v10576_v42 = vpop.f32.mrb[49].mxu1 }
 0x56b   :  { %v8937_v11 = vpop.f32.mrb[50].mxu1 }
 0x56c   :  { %v9020_v14 = vadd.f32 %v16553_v9, %v8935_v43  ;;  %v8938_v4 = vadd.f32 %v8937_v11, %v8671_v58  ;;  %v10577_v6 = vpop.f32.mrb[51].mxu1 }
 0x56e   :  { %v9021_v31 = vadd.f32 %v16553_v9, %v8938_v4  ;;  %v9058_v2 = vmax.f32 %v9020_v14, 0.0 }
 0x570   :  { %v9059_v21 = vmax.f32 %v9021_v31, 0.0 }
 0x572   :  { %v9085_v61 = vpack.c.bf16 %v9059_v21, %v9058_v2 }
 0x574   :  { %v8676_v26 = vpop.f32.mrb[52].mxu0  ;;  %10659 = vmatmul.mubr.msk.bf16.gmra.mrb[124].mxu0 %vm18072_vm11, %v9085_v61  ;;  %vm18086_vm11 = vmmov %vm18071_vm0 }
 0x575   :  { %v10496_v0 = vpop.f32.mrb[53].mxu0  ;;  %10662 = vmatprep.mubr.msk.bf16.mxu0 %vm17476_vm5, %v17436_v13 }
 0x576   :  { %v8679_v7 = vpop.f32.mrb[54].mxu0 }
 0x577   :  { %v8942_v63 = vpop.f32.mrb[52].mxu1  ;;  %v10497_v41 = vpop.f32.mrb[55].mxu0 }
 0x578   :  { %v8943_v20 = vadd.f32 %v8942_v63, %v8676_v26  ;;  %v10580_v36 = vpop.f32.mrb[53].mxu1 }
 0x579   :  { %v8945_v24 = vpop.f32.mrb[54].mxu1 }
 0x57a   :  { %v9022_v47 = vadd.f32 %v16553_v9, %v8943_v20  ;;  %v8946_v49 = vadd.f32 %v8945_v24, %v8679_v7  ;;  %v10581_v37 = vpop.f32.mrb[55].mxu1 }
 0x57c   :  { %v9023_v16 = vadd.f32 %v16553_v9, %v8946_v49  ;;  %v9060_v32 = vmax.f32 %v9022_v47, 0.0 }
 0x57e   :  { %v9061_v39 = vmax.f32 %v9023_v16, 0.0 }
 0x580   :  { %v9086_v30 = vpack.c.bf16 %v9061_v39, %v9060_v32 }
 0x582   :  { %v8684_v44 = vpop.f32.mrb[56].mxu0  ;;  %10663 = vmatmul.mubr.msk.bf16.gmra.mrb[128].mxu0 %vm18073_vm2, %v9086_v30  ;;  %vm18087_vm2 = vmmov %vm18071_vm0 }
 0x583   :  { %v10500_v48 = vpop.f32.mrb[57].mxu0  ;;  %10666 = vmatprep.mubr.msk.bf16.mxu0 %vm17476_vm5, %v17436_v13 }
 0x584   :  { %v8687_v40 = vpop.f32.mrb[58].mxu0 }
 0x585   :  { %v8950_v1 = vpop.f32.mrb[56].mxu1  ;;  %v10501_v8 = vpop.f32.mrb[59].mxu0 }
 0x586   :  { %v8951_v54 = vadd.f32 %v8950_v1, %v8684_v44  ;;  %v10584_v18 = vpop.f32.mrb[57].mxu1 }
 0x587   :  { %v8953_v22 = vpop.f32.mrb[58].mxu1 }
 0x588   :  { %v9024_v45 = vadd.f32 %v16553_v9, %v8951_v54  ;;  %v8954_v59 = vadd.f32 %v8953_v22, %v8687_v40  ;;  %v10585_v5 = vpop.f32.mrb[59].mxu1 }
 0x58a   :  { %v9025_v46 = vadd.f32 %v16553_v9, %v8954_v59  ;;  %v9062_v33 = vmax.f32 %v9024_v45, 0.0  ;;  %v16736_v59 = vld [vmem:[%s17035_s6] ss:$0 sm:$0xff] }
 0x58c   :  { %v9063_v35 = vmax.f32 %v9025_v46, 0.0 }
 0x58d   :  { %v8692_v28 = vpop.f32.mrb[60].mxu0 }
 0x58e   :  { %v10504_v56 = vpop.f32.mrb[61].mxu0  ;;  %v9087_v62 = vpack.c.bf16 %v9063_v35, %v9062_v33 }
 0x58f   :  { %v8695_v34 = vpop.f32.mrb[62].mxu0 }
 0x590   :  { %v8958_v57 = vpop.f32.mrb[60].mxu1  ;;  %v10505_v50 = vpop.f32.mrb[63].mxu0  ;;  %10667 = vmatmul.mubr.msk.bf16.gmra.mrb[132].mxu0 %vm18074_vm4, %v9087_v62  ;;  %vm18088_vm4 = vmmov %vm18071_vm0 }
 0x591   :  { %v8959_v23 = vadd.f32 %v8958_v57, %v8692_v28  ;;  %v10588_v52 = vpop.f32.mrb[61].mxu1  ;;  %10670 = vmatprep.mubr.msk.bf16.mxu0 %vm17476_vm5, %v17436_v13 }
 0x592   :  { %v8961_v15 = vpop.f32.mrb[62].mxu1 }
 0x593   :  { %v9026_v27 = vadd.f32 %v16553_v9, %v8959_v23  ;;  %v8962_v38 = vadd.f32 %v8961_v15, %v8695_v34  ;;  %v10589_v29 = vpop.f32.mrb[63].mxu1 }
 0x595   :  { %v9027_v51 = vadd.f32 %v16553_v9, %v8962_v38  ;;  %v9064_v60 = vmax.f32 %v9026_v27, 0.0 }
 0x597   :  { %v9065_v19 = vmax.f32 %v9027_v51, 0.0 }
 0x599   :  { %v9088_v10 = vpack.c.bf16 %v9065_v19, %v9064_v60 }
 0x59a   :  { %v8700_v3 = vpop.f32.mrb[64].mxu0 }
 0x59b   :  { %v10508_v17 = vpop.f32.mrb[65].mxu0  ;;  %10671 = vmatmul.mubr.msk.bf16.gmra.mrb[136].mxu0 %vm18075_vm13, %v9088_v10  ;;  %v8966_v25 = vpop.f32.mrb[64].mxu1  ;;  %vm18089_vm13 = vmmov %vm18071_vm0 }
 0x59c   :  { %v8703_v53 = vpop.f32.mrb[66].mxu0  ;;  %v8967_v58 = vadd.f32 %v8966_v25, %v8700_v3  ;;  %v10592_v55 = vpop.f32.mrb[65].mxu1  ;;  %10674 = vmatprep.mubr.msk.bf16.mxu0 %vm17476_vm5, %v17436_v13 }
 0x59d   :  { %v10509_v12 = vpop.f32.mrb[67].mxu0  ;;  %v8969_v43 = vpop.f32.mrb[66].mxu1 }
 0x59e   :  { %v9028_v42 = vadd.f32 %v16553_v9, %v8967_v58  ;;  %v8970_v11 = vadd.f32 %v8969_v43, %v8703_v53  ;;  %v10593_v14 = vpop.f32.mrb[67].mxu1 }
 0x5a0   :  { %v9029_v4 = vadd.f32 %v16553_v9, %v8970_v11  ;;  %v9066_v6 = vmax.f32 %v9028_v42, 0.0 }
 0x5a2   :  { %v9067_v31 = vmax.f32 %v9029_v4, 0.0 }
 0x5a4   :  { %v9089_v2 = vpack.c.bf16 %v9067_v31, %v9066_v6 }
 0x5a6   :  { %v8708_v21 = vpop.f32.mrb[68].mxu0  ;;  %10675 = vmatmul.mubr.msk.bf16.gmra.mrb[140].mxu0 %vm18076_vm14, %v9089_v2  ;;  %vm18090_vm14 = vmmov %vm18071_vm0 }
 0x5a7   :  { %v10512_v61 = vpop.f32.mrb[69].mxu0  ;;  %10678 = vmatprep.mubr.msk.bf16.mxu0 %vm17476_vm5, %v17436_v13 }
 0x5a8   :  { %v8974_v26 = vpop.f32.mrb[68].mxu1  ;;  %v8711_v0 = vpop.f32.mrb[70].mxu0 }
 0x5a9   :  { %v8975_v7 = vadd.f32 %v8974_v26, %v8708_v21  ;;  %v10596_v63 = vpop.f32.mrb[69].mxu1  ;;  %v10513_v41 = vpop.f32.mrb[71].mxu0 }
 0x5aa   :  { %v8977_v20 = vpop.f32.mrb[70].mxu1 }
 0x5ab   :  { %v9030_v36 = vadd.f32 %v16553_v9, %v8975_v7  ;;  %v8978_v24 = vadd.f32 %v8977_v20, %v8711_v0  ;;  %v10597_v47 = vpop.f32.mrb[71].mxu1 }
 0x5ad   :  { %v9031_v49 = vadd.f32 %v16553_v9, %v8978_v24  ;;  %v9068_v37 = vmax.f32 %v9030_v36, 0.0 }
 0x5af   :  { %v9069_v16 = vmax.f32 %v9031_v49, 0.0 }
 0x5b1   :  { %v9090_v32 = vpack.c.bf16 %v9069_v16, %v9068_v37  ;;  %v8716_v39 = vpop.f32.mrb[72].mxu0 }
 0x5b2   :  { %v10516_v30 = vpop.f32.mrb[73].mxu0 }
 0x5b3   :  { %10679 = vmatmul.mubr.msk.bf16.gmra.mrb[144].mxu0 %vm18077_vm6, %v9090_v32  ;;  %v8982_v44 = vpop.f32.mrb[72].mxu1  ;;  %v8719_v48 = vpop.f32.mrb[74].mxu0  ;;  %vm18091_vm6 = vmmov %vm18071_vm0 }
 0x5b4   :  { %v8983_v40 = vadd.f32 %v8982_v44, %v8716_v39  ;;  %v10600_v1 = vpop.f32.mrb[73].mxu1  ;;  %v10517_v8 = vpop.f32.mrb[75].mxu0  ;;  %10682 = vmatprep.mubr.msk.bf16.mxu0 %vm17476_vm5, %v17436_v13 }
 0x5b5   :  { %v8985_v54 = vpop.f32.mrb[74].mxu1 }
 0x5b6   :  { %v9032_v18 = vadd.f32 %v16553_v9, %v8983_v40  ;;  %v8986_v22 = vadd.f32 %v8985_v54, %v8719_v48  ;;  %v10601_v45 = vpop.f32.mrb[75].mxu1 }
 0x5b8   :  { %v9033_v5 = vadd.f32 %v16553_v9, %v8986_v22  ;;  %v9070_v33 = vmax.f32 %v9032_v18, 0.0 }
 0x5b9   :  { %v9221_v46 = vpop.f32.mrb[76].mxu0 }
 0x5ba   :  { %v9071_v35 = vmax.f32 %v9033_v5, 0.0  ;;  %v9222_v28 = vadd.f32 %v16736_v59, %v9221_v46  ;;  %v10612_v56 = vpop.f32.mrb[77].mxu0 }
 0x5bb   :  { %v9224_v62 = vpop.f32.mrb[78].mxu0 }
 0x5bc   :  { %v9091_v34 = vpack.c.bf16 %v9071_v35, %v9070_v33  ;;  %v9225_v57 = vadd.f32 %v16736_v59, %v9224_v62  ;;  %v10613_v50 = vpop.f32.mrb[79].mxu0  ;;  %v9372_v23 = vmax.f32 %v9222_v28, 0.0 }
 0x5be   :  { %10683 = vmatmul.mubr.msk.bf16.gmra.mrb[148].mxu0 %vm18078_vm7, %v9091_v34  ;;  %v9373_v52 = vmax.f32 %v9225_v57, 0.0  ;;  %vm18092_vm7 = vmmov %vm18071_vm0 }
 0x5c0   :  { %v9411_v15 = vpack.c.bf16 %v9373_v52, %v9372_v23 }
 0x5c1   :  { %v9229_v27 = vpop.f32.mrb[80].mxu0 }
 0x5c2   :  { %v9230_v38 = vadd.f32 %v16736_v59, %v9229_v27  ;;  %v10616_v9 = vpop.f32.mrb[81].mxu0  ;;  %10695 = vmatmul.mubr.msk.bf16.vlgmr.msra.gmra.mrb[76].mxu1 %vm18079_vm3, %v9411_v15  ;;  %vm18093_vm3 = vmmov %vm18071_vm0 }
 0x5c3   :  { %v9232_v29 = vpop.f32.mrb[82].mxu0  ;;  %10698 = vmatprep.mubr.msk.bf16.mxu1 %vm17476_vm5, %v17436_v13 }
 0x5c4   :  { %v9233_v51 = vadd.f32 %v16736_v59, %v9232_v29  ;;  %v10617_v60 = vpop.f32.mrb[83].mxu0  ;;  %v9374_v19 = vmax.f32 %v9230_v38, 0.0 }
 0x5c6   :  { %v9375_v10 = vmax.f32 %v9233_v51, 0.0 }
 0x5c8   :  { %v9412_v3 = vpack.c.bf16 %v9375_v10, %v9374_v19 }
 0x5c9   :  { %v9237_v17 = vpop.f32.mrb[84].mxu0 }
 0x5ca   :  { %10699 = vmatmul.mubr.msk.bf16.gmra.mrb[80].mxu1 %vm18080_vm9, %v9412_v3  ;;  %v9238_v25 = vadd.f32 %v16736_v59, %v9237_v17  ;;  %v10620_v53 = vpop.f32.mrb[85].mxu0  ;;  %vm18094_vm9 = vmmov %vm18071_vm0 }
 0x5cb   :  { %v9240_v58 = vpop.f32.mrb[86].mxu0  ;;  %10702 = vmatprep.mubr.msk.bf16.mxu1 %vm17476_vm5, %v17436_v13 }
 0x5cc   :  { %v9241_v55 = vadd.f32 %v16736_v59, %v9240_v58  ;;  %v10621_v12 = vpop.f32.mrb[87].mxu0  ;;  %v9376_v43 = vmax.f32 %v9238_v25, 0.0 }
 0x5ce   :  { %v9377_v42 = vmax.f32 %v9241_v55, 0.0 }
 0x5d0   :  { %v9413_v11 = vpack.c.bf16 %v9377_v42, %v9376_v43 }
 0x5d1   :  { %v9245_v14 = vpop.f32.mrb[88].mxu0 }
 0x5d2   :  { %10703 = vmatmul.mubr.msk.bf16.gmra.mrb[84].mxu1 %vm18081_vm1, %v9413_v11  ;;  %v9246_v4 = vadd.f32 %v16736_v59, %v9245_v14  ;;  %v10624_v6 = vpop.f32.mrb[89].mxu0  ;;  %vm18095_vm1 = vmmov %vm18071_vm0 }
 0x5d3   :  { %v9248_v31 = vpop.f32.mrb[90].mxu0  ;;  %10706 = vmatprep.mubr.msk.bf16.mxu1 %vm17476_vm5, %v17436_v13 }
 0x5d4   :  { %v9249_v2 = vadd.f32 %v16736_v59, %v9248_v31  ;;  %v10625_v21 = vpop.f32.mrb[91].mxu0  ;;  %v9378_v61 = vmax.f32 %v9246_v4, 0.0 }
 0x5d6   :  { %v9379_v26 = vmax.f32 %v9249_v2, 0.0 }
 0x5d8   :  { %v9414_v0 = vpack.c.bf16 %v9379_v26, %v9378_v61 }
 0x5d9   :  { %v9253_v7 = vpop.f32.mrb[92].mxu0 }
 0x5da   :  { %10707 = vmatmul.mubr.msk.bf16.gmra.mrb[88].mxu1 %vm18082_vm15, %v9414_v0  ;;  %v9254_v63 = vadd.f32 %v16736_v59, %v9253_v7  ;;  %v10628_v41 = vpop.f32.mrb[93].mxu0  ;;  %vm9900_vm15 = vcmask 64512  }
 0x5db   :  { %v9256_v20 = vpop.f32.mrb[94].mxu0  ;;  %10710 = vmatprep.mubr.msk.bf16.mxu1 %vm17476_vm5, %v17436_v13 }
 0x5dc   :  { %v9257_v36 = vadd.f32 %v16736_v59, %v9256_v20  ;;  %v10629_v24 = vpop.f32.mrb[95].mxu0  ;;  %v9380_v47 = vmax.f32 %v9254_v63, 0.0 }
 0x5de   :  { %v9381_v49 = vmax.f32 %v9257_v36, 0.0 }
 0x5e0   :  { %v9415_v37 = vpack.c.bf16 %v9381_v49, %v9380_v47 }
 0x5e1   :  { %v9261_v16 = vpop.f32.mrb[96].mxu0 }
 0x5e2   :  { %10711 = vmatmul.mubr.msk.bf16.gmra.mrb[92].mxu1 %vm18083_vm8, %v9415_v37  ;;  %v9262_v32 = vadd.f32 %v16736_v59, %v9261_v16  ;;  %v10632_v39 = vpop.f32.mrb[97].mxu0 }
 0x5e3   :  { %v9264_v30 = vpop.f32.mrb[98].mxu0  ;;  %10714 = vmatprep.mubr.msk.bf16.mxu1 %vm17476_vm5, %v17436_v13 }
 0x5e4   :  { %v9265_v44 = vadd.f32 %v16736_v59, %v9264_v30  ;;  %v10633_v48 = vpop.f32.mrb[99].mxu0  ;;  %v9382_v40 = vmax.f32 %v9262_v32, 0.0 }
 0x5e6   :  { %v9383_v1 = vmax.f32 %v9265_v44, 0.0 }
 0x5e8   :  { %v9416_v8 = vpack.c.bf16 %v9383_v1, %v9382_v40 }
 0x5e9   :  { %v9269_v54 = vpop.f32.mrb[100].mxu0 }
 0x5ea   :  { %10715 = vmatmul.mubr.msk.bf16.gmra.mrb[96].mxu1 %vm18084_vm12, %v9416_v8  ;;  %v9270_v18 = vadd.f32 %v16736_v59, %v9269_v54  ;;  %v10636_v22 = vpop.f32.mrb[101].mxu0 }
 0x5eb   :  { %v9272_v45 = vpop.f32.mrb[102].mxu0  ;;  %10718 = vmatprep.mubr.msk.bf16.mxu1 %vm17476_vm5, %v17436_v13 }
 0x5ec   :  { %v9273_v5 = vadd.f32 %v16736_v59, %v9272_v45  ;;  %v10637_v46 = vpop.f32.mrb[103].mxu0  ;;  %v9384_v33 = vmax.f32 %v9270_v18, 0.0 }
 0x5ee   :  { %v9385_v35 = vmax.f32 %v9273_v5, 0.0 }
 0x5f0   :  { %v9417_v28 = vpack.c.bf16 %v9385_v35, %v9384_v33 }
 0x5f1   :  { %v9277_v56 = vpop.f32.mrb[104].mxu0 }
 0x5f2   :  { %10719 = vmatmul.mubr.msk.bf16.gmra.mrb[100].mxu1 %vm18085_vm10, %v9417_v28  ;;  %v9278_v62 = vadd.f32 %v16736_v59, %v9277_v56  ;;  %v10640_v34 = vpop.f32.mrb[105].mxu0 }
 0x5f3   :  { %v9280_v57 = vpop.f32.mrb[106].mxu0  ;;  %10722 = vmatprep.mubr.msk.bf16.mxu1 %vm17476_vm5, %v17436_v13 }
 0x5f4   :  { %v9281_v50 = vadd.f32 %v16736_v59, %v9280_v57  ;;  %v10641_v23 = vpop.f32.mrb[107].mxu0  ;;  %v9386_v52 = vmax.f32 %v9278_v62, 0.0 }
 0x5f6   :  { %v9387_v15 = vmax.f32 %v9281_v50, 0.0 }
 0x5f8   :  { %v9418_v27 = vpack.c.bf16 %v9387_v15, %v9386_v52 }
 0x5f9   :  { %v9285_v38 = vpop.f32.mrb[108].mxu0 }
 0x5fa   :  { %10723 = vmatmul.mubr.msk.bf16.gmra.mrb[104].mxu1 %vm18071_vm0, %v9418_v27  ;;  %v9286_v9 = vadd.f32 %v16736_v59, %v9285_v38  ;;  %v10644_v29 = vpop.f32.mrb[109].mxu0 }
 0x5fb   :  { %v9288_v51 = vpop.f32.mrb[110].mxu0  ;;  %10726 = vmatprep.mubr.msk.bf16.mxu1 %vm17476_vm5, %v17436_v13 }
 0x5fc   :  { %v9289_v60 = vadd.f32 %v16736_v59, %v9288_v51  ;;  %v10645_v19 = vpop.f32.mrb[111].mxu0  ;;  %v9388_v10 = vmax.f32 %v9286_v9, 0.0 }
 0x5fe   :  { %v9389_v3 = vmax.f32 %v9289_v60, 0.0 }
 0x600   :  { %v9419_v17 = vpack.c.bf16 %v9389_v3, %v9388_v10 }
 0x601   :  { %v9293_v25 = vpop.f32.mrb[112].mxu0 }
 0x602   :  { %10727 = vmatmul.mubr.msk.bf16.gmra.mrb[108].mxu1 %vm18086_vm11, %v9419_v17  ;;  %v9294_v53 = vadd.f32 %v16736_v59, %v9293_v25  ;;  %v10648_v58 = vpop.f32.mrb[113].mxu0 }
 0x603   :  { %v9296_v55 = vpop.f32.mrb[114].mxu0  ;;  %10730 = vmatprep.mubr.msk.bf16.mxu1 %vm17476_vm5, %v17436_v13 }
 0x604   :  { %v9297_v12 = vadd.f32 %v16736_v59, %v9296_v55  ;;  %v10649_v43 = vpop.f32.mrb[115].mxu0  ;;  %v9390_v42 = vmax.f32 %v9294_v53, 0.0 }
 0x606   :  { %v9391_v11 = vmax.f32 %v9297_v12, 0.0 }
 0x608   :  { %v9420_v14 = vpack.c.bf16 %v9391_v11, %v9390_v42 }
 0x609   :  { %v9301_v4 = vpop.f32.mrb[116].mxu0 }
 0x60a   :  { %10731 = vmatmul.mubr.msk.bf16.gmra.mrb[112].mxu1 %vm18087_vm2, %v9420_v14  ;;  %v9302_v6 = vadd.f32 %v16736_v59, %v9301_v4  ;;  %v10652_v31 = vpop.f32.mrb[117].mxu0 }
 0x60b   :  { %v9304_v2 = vpop.f32.mrb[118].mxu0  ;;  %10734 = vmatprep.mubr.msk.bf16.mxu1 %vm17476_vm5, %v17436_v13 }
 0x60c   :  { %v9305_v21 = vadd.f32 %v16736_v59, %v9304_v2  ;;  %v10653_v61 = vpop.f32.mrb[119].mxu0  ;;  %v9392_v26 = vmax.f32 %v9302_v6, 0.0 }
 0x60e   :  { %v9393_v0 = vmax.f32 %v9305_v21, 0.0 }
 0x610   :  { %v9421_v7 = vpack.c.bf16 %v9393_v0, %v9392_v26 }
 0x612   :  { %10735 = vmatmul.mubr.msk.bf16.gmra.mrb[116].mxu1 %vm18088_vm4, %v9421_v7 }
 0x613   :  { %10738 = vmatprep.mubr.msk.bf16.mxu1 %vm17476_vm5, %v17436_v13 }
 0x632   :  { %v9309_v63 = vpop.f32.mrb[120].mxu0 }
 0x633   :  { %v9310_v41 = vadd.f32 %v16736_v59, %v9309_v63  ;;  %v10656_v20 = vpop.f32.mrb[121].mxu0 }
 0x634   :  { %v9312_v36 = vpop.f32.mrb[122].mxu0 }
 0x635   :  { %v9313_v24 = vadd.f32 %v16736_v59, %v9312_v36  ;;  %v10657_v47 = vpop.f32.mrb[123].mxu0  ;;  %v9394_v49 = vmax.f32 %v9310_v41, 0.0 }
 0x636   :  { %v16834_v47 = vld [vmem:[%s17036_s8] ss:$0 sm:$0xff] }
 0x637   :  { %v9395_v37 = vmax.f32 %v9313_v24, 0.0 }
 0x639   :  { %v9422_v16 = vpack.c.bf16 %v9395_v37, %v9394_v49 }
 0x63b   :  { %10739 = vmatmul.mubr.msk.bf16.gmra.mrb[120].mxu1 %vm18089_vm13, %v9422_v16 }
 0x63c   :  { %10742 = vmatprep.mubr.msk.bf16.mxu1 %vm17476_vm5, %v17436_v13 }
 0x647   :  { %v9317_v32 = vpop.f32.mrb[124].mxu0 }
 0x648   :  { %v9318_v39 = vadd.f32 %v16736_v59, %v9317_v32  ;;  %v10660_v30 = vpop.f32.mrb[125].mxu0 }
 0x649   :  { %v9320_v44 = vpop.f32.mrb[126].mxu0 }
 0x64a   :  { %v9321_v48 = vadd.f32 %v16736_v59, %v9320_v44  ;;  %v10661_v40 = vpop.f32.mrb[127].mxu0  ;;  %v9396_v1 = vmax.f32 %v9318_v39, 0.0 }
 0x64c   :  { %v9397_v8 = vmax.f32 %v9321_v48, 0.0 }
 0x64e   :  { %v9423_v54 = vpack.c.bf16 %v9397_v8, %v9396_v1 }
 0x650   :  { %10743 = vmatmul.mubr.msk.bf16.gmra.mrb[124].mxu1 %vm18090_vm14, %v9423_v54 }
 0x651   :  { %10746 = vmatprep.mubr.msk.bf16.mxu1 %vm17476_vm5, %v17436_v13 }
 0x655   :  { %v9325_v18 = vpop.f32.mrb[128].mxu0 }
 0x656   :  { %v9326_v22 = vadd.f32 %v16736_v59, %v9325_v18  ;;  %v10664_v45 = vpop.f32.mrb[129].mxu0 }
 0x657   :  { %v9328_v5 = vpop.f32.mrb[130].mxu0 }
 0x658   :  { %v9329_v46 = vadd.f32 %v16736_v59, %v9328_v5  ;;  %v10665_v33 = vpop.f32.mrb[131].mxu0  ;;  %v9398_v35 = vmax.f32 %v9326_v22, 0.0 }
 0x65a   :  { %v9399_v28 = vmax.f32 %v9329_v46, 0.0 }
 0x65c   :  { %v9424_v56 = vpack.c.bf16 %v9399_v28, %v9398_v35 }
 0x65e   :  { %10747 = vmatmul.mubr.msk.bf16.gmra.mrb[128].mxu1 %vm18091_vm6, %v9424_v56 }
 0x65f   :  { %10750 = vmatprep.mubr.msk.bf16.mxu1 %vm17476_vm5, %v17436_v13 }
 0x663   :  { %v9333_v62 = vpop.f32.mrb[132].mxu0 }
 0x664   :  { %v9334_v34 = vadd.f32 %v16736_v59, %v9333_v62  ;;  %v10668_v57 = vpop.f32.mrb[133].mxu0 }
 0x665   :  { %v9336_v50 = vpop.f32.mrb[134].mxu0 }
 0x666   :  { %v9337_v23 = vadd.f32 %v16736_v59, %v9336_v50  ;;  %v10669_v52 = vpop.f32.mrb[135].mxu0  ;;  %v9400_v15 = vmax.f32 %v9334_v34, 0.0 }
 0x668   :  { %v9401_v27 = vmax.f32 %v9337_v23, 0.0 }
 0x66a   :  { %v9425_v38 = vpack.c.bf16 %v9401_v27, %v9400_v15 }
 0x66c   :  { %10751 = vmatmul.mubr.msk.bf16.gmra.mrb[132].mxu1 %vm18092_vm7, %v9425_v38 }
 0x66d   :  { %10754 = vmatprep.mubr.msk.bf16.mxu1 %vm17476_vm5, %v17436_v13 }
 0x66e   :  { %v9341_v9 = vpop.f32.mrb[136].mxu0 }
 0x66f   :  { %v9342_v29 = vadd.f32 %v16736_v59, %v9341_v9  ;;  %v10672_v51 = vpop.f32.mrb[137].mxu0 }
 0x670   :  { %v9344_v60 = vpop.f32.mrb[138].mxu0 }
 0x671   :  { %v9345_v19 = vadd.f32 %v16736_v59, %v9344_v60  ;;  %v10673_v10 = vpop.f32.mrb[139].mxu0  ;;  %v9402_v3 = vmax.f32 %v9342_v29, 0.0 }
 0x673   :  { %v9403_v17 = vmax.f32 %v9345_v19, 0.0 }
 0x675   :  { %v9426_v25 = vpack.c.bf16 %v9403_v17, %v9402_v3 }
 0x677   :  { %10755 = vmatmul.mubr.msk.bf16.gmra.mrb[136].mxu1 %vm18093_vm3, %v9426_v25 }
 0x678   :  { %10758 = vmatprep.mubr.msk.bf16.mxu1 %vm17476_vm5, %v17436_v13 }
 0x679   :  { %v9349_v53 = vpop.f32.mrb[140].mxu0 }
 0x67a   :  { %v9350_v58 = vadd.f32 %v16736_v59, %v9349_v53  ;;  %v10676_v55 = vpop.f32.mrb[141].mxu0 }
 0x67b   :  { %v9352_v12 = vpop.f32.mrb[142].mxu0 }
 0x67c   :  { %v9353_v43 = vadd.f32 %v16736_v59, %v9352_v12  ;;  %v10677_v42 = vpop.f32.mrb[143].mxu0  ;;  %v9404_v11 = vmax.f32 %v9350_v58, 0.0 }
 0x67e   :  { %v9405_v14 = vmax.f32 %v9353_v43, 0.0 }
 0x680   :  { %v9427_v4 = vpack.c.bf16 %v9405_v14, %v9404_v11 }
 0x682   :  { %10759 = vmatmul.mubr.msk.bf16.gmra.mrb[140].mxu1 %vm18094_vm9, %v9427_v4 }
 0x683   :  { %10762 = vmatprep.mubr.msk.bf16.mxu1 %vm17476_vm5, %v17436_v13 }
 0x686   :  { %v9357_v6 = vpop.f32.mrb[144].mxu0 }
 0x687   :  { %v9358_v31 = vadd.f32 %v16736_v59, %v9357_v6  ;;  %v10680_v2 = vpop.f32.mrb[145].mxu0 }
 0x688   :  { %v9360_v21 = vpop.f32.mrb[146].mxu0 }
 0x689   :  { %v9361_v61 = vadd.f32 %v16736_v59, %v9360_v21  ;;  %v10681_v26 = vpop.f32.mrb[147].mxu0  ;;  %v9406_v0 = vmax.f32 %v9358_v31, 0.0 }
 0x68b   :  { %v9407_v7 = vmax.f32 %v9361_v61, 0.0 }
 0x68d   :  { %v9428_v63 = vpack.c.bf16 %v9407_v7, %v9406_v0 }
 0x68f   :  { %10763 = vmatmul.mubr.msk.bf16.gmra.mrb[144].mxu1 %vm18095_vm1, %v9428_v63 }
 0x690   :  { %10766 = vmatprep.mubr.msk.bf16.mxu1 %vm17476_vm5, %v17436_v13  ;;  %vm18096_vm5 = vmmov %vm18071_vm0 }
 0x691   :  { %v9365_v41 = vpop.f32.mrb[148].mxu0 }
 0x692   :  { %v9366_v20 = vadd.f32 %v16736_v59, %v9365_v41  ;;  %v10684_v36 = vpop.f32.mrb[149].mxu0 }
 0x693   :  { %v9368_v24 = vpop.f32.mrb[150].mxu0 }
 0x694   :  { %v9369_v49 = vadd.f32 %v16736_v59, %v9368_v24  ;;  %v10685_v37 = vpop.f32.mrb[151].mxu0  ;;  %v9408_v32 = vmax.f32 %v9366_v20, 0.0 }
 0x695   :  { %v9559_v16 = vpop.f32.mrb[76].mxu1 }
 0x696   :  { %v9409_v39 = vmax.f32 %v9369_v49, 0.0  ;;  %v9560_v30 = vadd.f32 %v16834_v47, %v9559_v16  ;;  %v10696_v44 = vpop.f32.mrb[77].mxu1 }
 0x697   :  { %v9562_v13 = vpop.f32.mrb[78].mxu1 }
 0x698   :  { %v9429_v48 = vpack.c.bf16 %v9409_v39, %v9408_v32  ;;  %v9710_v40 = vsub.f32 0.0, %v9560_v30  ;;  %v9563_v1 = vadd.f32 %v16834_v47, %v9562_v13  ;;  %v10697_v8 = vpop.f32.mrb[79].mxu1 }
 0x69a   :  { %v9748_v54 = vmul.f32 1.442695, %v9710_v40  ;;  %10767 = vmatmul.mubr.msk.bf16.gmra.mrb[148].mxu1 %vm18096_vm5, %v9429_v48  ;;  %v9711_v18 = vsub.f32 0.0, %v9563_v1 }
 0x69c   :  { %11150 = vpow2.f32 %v9748_v54  ;;  %v9750_v22 = vmul.f32 1.442695, %v9711_v18 }
 0x69d   :  { %v9567_v59 = vpop.f32.mrb[80].mxu1 }
 0x69e   :  { %11152 = vpow2.f32 %v9750_v22  ;;  %v9568_v45 = vadd.f32 %v16834_v47, %v9567_v59  ;;  %v10700_v5 = vpop.f32.mrb[81].mxu1 }
 0x69f   :  { %v9570_v46 = vpop.f32.mrb[82].mxu1 }
 0x6a0   :  { %v9712_v33 = vsub.f32 0.0, %v9568_v45  ;;  %v9571_v35 = vadd.f32 %v16834_v47, %v9570_v46  ;;  %v10701_v28 = vpop.f32.mrb[83].mxu1 }
 0x6a2   :  { %v9752_v56 = vmul.f32 1.442695, %v9712_v33  ;;  %v9713_v62 = vsub.f32 0.0, %v9571_v35 }
 0x6a4   :  { %11154 = vpow2.f32 %v9752_v56  ;;  %v9754_v34 = vmul.f32 1.442695, %v9713_v62 }
 0x6a5   :  { %v9575_v57 = vpop.f32.mrb[84].mxu1 }
 0x6a6   :  { %v11151_v50 = vpop.eup %11150  ;;  %11156 = vpow2.f32 %v9754_v34  ;;  %v9576_v23 = vadd.f32 %v16834_v47, %v9575_v57  ;;  %v10704_v52 = vpop.f32.mrb[85].mxu1 }
 0x6a7   :  { %v9824_v15 = vadd.f32 1.0, %v11151_v50  ;;  %v9578_v27 = vpop.f32.mrb[86].mxu1 }
 0x6a8   :  { %v11153_v38 = vpop.eup %11152  ;;  %v9714_v9 = vsub.f32 0.0, %v9576_v23  ;;  %v9579_v29 = vadd.f32 %v16834_v47, %v9578_v27  ;;  %v10705_v51 = vpop.f32.mrb[87].mxu1 }
 0x6a9   :  { %11158 = vrcp.f32 %v9824_v15  ;;  %v9825_v60 = vadd.f32 1.0, %v11153_v38 }
 0x6aa   :  { %v9756_v19 = vmul.f32 1.442695, %v9714_v9  ;;  %v9715_v10 = vsub.f32 0.0, %v9579_v29 }
 0x6ab   :  { %11160 = vrcp.f32 %v9825_v60 }
 0x6ac   :  { %11162 = vpow2.f32 %v9756_v19  ;;  %v9758_v3 = vmul.f32 1.442695, %v9715_v10 }
 0x6ad   :  { %v9583_v17 = vpop.f32.mrb[88].mxu1 }
 0x6ae   :  { %v11155_v25 = vpop.eup %11154  ;;  %11164 = vpow2.f32 %v9758_v3  ;;  %v9584_v53 = vadd.f32 %v16834_v47, %v9583_v17  ;;  %v10708_v58 = vpop.f32.mrb[89].mxu1 }
 0x6af   :  { %v9826_v55 = vadd.f32 1.0, %v11155_v25  ;;  %v9586_v12 = vpop.f32.mrb[90].mxu1 }
 0x6b0   :  { %v11157_v43 = vpop.eup %11156  ;;  %v9716_v42 = vsub.f32 0.0, %v9584_v53  ;;  %v9587_v11 = vadd.f32 %v16834_v47, %v9586_v12  ;;  %v10709_v14 = vpop.f32.mrb[91].mxu1 }
 0x6b1   :  { %11166 = vrcp.f32 %v9826_v55  ;;  %v9827_v4 = vadd.f32 1.0, %v11157_v43 }
 0x6b2   :  { %v9760_v6 = vmul.f32 1.442695, %v9716_v42  ;;  %v9717_v31 = vsub.f32 0.0, %v9587_v11 }
 0x6b3   :  { %v11159_v2 = vpop.eup %11158  ;;  %11168 = vrcp.f32 %v9827_v4 }
 0x6b4   :  { %9901 = vst.msk [vmem:[%s17037_s9] sm:$0xff] %vm9900_vm15, %v11159_v2  ;;  %11170 = vpow2.f32 %v9760_v6  ;;  %v9762_v21 = vmul.f32 1.442695, %v9717_v31 }
 0x6b5   :  { %v11161_v61 = vpop.eup %11160  ;;  %v9591_v26 = vpop.f32.mrb[92].mxu1 }
 0x6b6   :  { %v11163_v0 = vpop.eup %11162  ;;  %9902 = vst.msk [vmem:[%s17037_s9 + $0x8] sm:$0xff] %vm9900_vm15, %v11161_v61  ;;  %11172 = vpow2.f32 %v9762_v21  ;;  %v9592_v7 = vadd.f32 %v16834_v47, %v9591_v26  ;;  %v10712_v63 = vpop.f32.mrb[93].mxu1 }
 0x6b7   :  { %v9828_v41 = vadd.f32 1.0, %v11163_v0  ;;  %v9594_v20 = vpop.f32.mrb[94].mxu1 }
 0x6b8   :  { %v11165_v36 = vpop.eup %11164  ;;  %v9718_v24 = vsub.f32 0.0, %v9592_v7  ;;  %v9595_v49 = vadd.f32 %v16834_v47, %v9594_v20  ;;  %v10713_v37 = vpop.f32.mrb[95].mxu1 }
 0x6b9   :  { %11174 = vrcp.f32 %v9828_v41  ;;  %v9829_v16 = vadd.f32 1.0, %v11165_v36 }
 0x6ba   :  { %v9764_v32 = vmul.f32 1.442695, %v9718_v24  ;;  %v9719_v39 = vsub.f32 0.0, %v9595_v49 }
 0x6bb   :  { %v11167_v30 = vpop.eup %11166  ;;  %11176 = vrcp.f32 %v9829_v16 }
 0x6bc   :  { %9903 = vst.msk [vmem:[%s17037_s9 + $0x10] sm:$0xff] %vm9900_vm15, %v11167_v30  ;;  %11178 = vpow2.f32 %v9764_v32  ;;  %v9766_v44 = vmul.f32 1.442695, %v9719_v39 }
 0x6bd   :  { %v11169_v13 = vpop.eup %11168  ;;  %v9599_v48 = vpop.f32.mrb[96].mxu1 }
 0x6be   :  { %v11171_v40 = vpop.eup %11170  ;;  %9904 = vst.msk [vmem:[%s17037_s9 + $0x18] sm:$0xff] %vm9900_vm15, %v11169_v13  ;;  %11180 = vpow2.f32 %v9766_v44  ;;  %v9600_v1 = vadd.f32 %v16834_v47, %v9599_v48  ;;  %v10716_v8 = vpop.f32.mrb[97].mxu1 }
 0x6bf   :  { %v9830_v54 = vadd.f32 1.0, %v11171_v40  ;;  %v9602_v18 = vpop.f32.mrb[98].mxu1 }
 0x6c0   :  { %v11173_v22 = vpop.eup %11172  ;;  %v9720_v59 = vsub.f32 0.0, %v9600_v1  ;;  %v9603_v45 = vadd.f32 %v16834_v47, %v9602_v18  ;;  %v10717_v5 = vpop.f32.mrb[99].mxu1 }
 0x6c1   :  { %11182 = vrcp.f32 %v9830_v54  ;;  %v9831_v46 = vadd.f32 1.0, %v11173_v22 }
 0x6c2   :  { %v9768_v33 = vmul.f32 1.442695, %v9720_v59  ;;  %v9721_v35 = vsub.f32 0.0, %v9603_v45 }
 0x6c3   :  { %v11175_v28 = vpop.eup %11174  ;;  %11184 = vrcp.f32 %v9831_v46 }
 0x6c4   :  { %9905 = vst.msk [vmem:[%s17037_s9 + $0x20] sm:$0xff] %vm9900_vm15, %v11175_v28  ;;  %11186 = vpow2.f32 %v9768_v33  ;;  %v9770_v56 = vmul.f32 1.442695, %v9721_v35 }
 0x6c5   :  { %v11177_v62 = vpop.eup %11176  ;;  %v9607_v34 = vpop.f32.mrb[100].mxu1 }
 0x6c6   :  { %v11179_v57 = vpop.eup %11178  ;;  %9906 = vst.msk [vmem:[%s17037_s9 + $0x28] sm:$0xff] %vm9900_vm15, %v11177_v62  ;;  %11188 = vpow2.f32 %v9770_v56  ;;  %v9608_v50 = vadd.f32 %v16834_v47, %v9607_v34  ;;  %v10720_v23 = vpop.f32.mrb[101].mxu1 }
 0x6c7   :  { %v9832_v52 = vadd.f32 1.0, %v11179_v57  ;;  %v9610_v15 = vpop.f32.mrb[102].mxu1 }
 0x6c8   :  { %v11181_v27 = vpop.eup %11180  ;;  %v9722_v38 = vsub.f32 0.0, %v9608_v50  ;;  %v9611_v9 = vadd.f32 %v16834_v47, %v9610_v15  ;;  %v10721_v29 = vpop.f32.mrb[103].mxu1 }
 0x6c9   :  { %11190 = vrcp.f32 %v9832_v52  ;;  %v9833_v51 = vadd.f32 1.0, %v11181_v27 }
 0x6ca   :  { %v9772_v60 = vmul.f32 1.442695, %v9722_v38  ;;  %v9723_v19 = vsub.f32 0.0, %v9611_v9 }
 0x6cb   :  { %v11183_v10 = vpop.eup %11182  ;;  %11192 = vrcp.f32 %v9833_v51 }
 0x6cc   :  { %9907 = vst.msk [vmem:[%s17037_s9 + $0x30] sm:$0xff] %vm9900_vm15, %v11183_v10  ;;  %11194 = vpow2.f32 %v9772_v60  ;;  %v9774_v3 = vmul.f32 1.442695, %v9723_v19 }
 0x6cd   :  { %v11185_v17 = vpop.eup %11184  ;;  %v9615_v25 = vpop.f32.mrb[104].mxu1 }
 0x6ce   :  { %v11187_v53 = vpop.eup %11186  ;;  %9908 = vst.msk [vmem:[%s17037_s9 + $0x38] sm:$0xff] %vm9900_vm15, %v11185_v17  ;;  %11196 = vpow2.f32 %v9774_v3  ;;  %v9616_v58 = vadd.f32 %v16834_v47, %v9615_v25  ;;  %v10724_v55 = vpop.f32.mrb[105].mxu1 }
 0x6cf   :  { %v9834_v12 = vadd.f32 1.0, %v11187_v53  ;;  %v9618_v43 = vpop.f32.mrb[106].mxu1 }
 0x6d0   :  { %v11189_v42 = vpop.eup %11188  ;;  %v9724_v11 = vsub.f32 0.0, %v9616_v58  ;;  %v9619_v14 = vadd.f32 %v16834_v47, %v9618_v43  ;;  %v10725_v4 = vpop.f32.mrb[107].mxu1 }
 0x6d1   :  { %11198 = vrcp.f32 %v9834_v12  ;;  %v9835_v6 = vadd.f32 1.0, %v11189_v42 }
 0x6d2   :  { %v9776_v31 = vmul.f32 1.442695, %v9724_v11  ;;  %v9725_v2 = vsub.f32 0.0, %v9619_v14 }
 0x6d3   :  { %v11191_v21 = vpop.eup %11190  ;;  %11200 = vrcp.f32 %v9835_v6 }
 0x6d4   :  { %9909 = vst.msk [vmem:[%s17037_s9 + $0x40] sm:$0xff] %vm9900_vm15, %v11191_v21  ;;  %11202 = vpow2.f32 %v9776_v31  ;;  %v9778_v61 = vmul.f32 1.442695, %v9725_v2 }
 0x6d5   :  { %v11193_v26 = vpop.eup %11192  ;;  %v9623_v0 = vpop.f32.mrb[108].mxu1 }
 0x6d6   :  { %v11195_v7 = vpop.eup %11194  ;;  %9910 = vst.msk [vmem:[%s17037_s9 + $0x48] sm:$0xff] %vm9900_vm15, %v11193_v26  ;;  %11204 = vpow2.f32 %v9778_v61  ;;  %v9624_v63 = vadd.f32 %v16834_v47, %v9623_v0  ;;  %v10728_v41 = vpop.f32.mrb[109].mxu1 }
 0x6d7   :  { %v9836_v20 = vadd.f32 1.0, %v11195_v7  ;;  %v9626_v36 = vpop.f32.mrb[110].mxu1 }
 0x6d8   :  { %v11197_v24 = vpop.eup %11196  ;;  %v9726_v49 = vsub.f32 0.0, %v9624_v63  ;;  %v9627_v37 = vadd.f32 %v16834_v47, %v9626_v36  ;;  %v10729_v16 = vpop.f32.mrb[111].mxu1 }
 0x6d9   :  { %11206 = vrcp.f32 %v9836_v20  ;;  %v9837_v32 = vadd.f32 1.0, %v11197_v24 }
 0x6da   :  { %v9780_v39 = vmul.f32 1.442695, %v9726_v49  ;;  %v9727_v30 = vsub.f32 0.0, %v9627_v37 }
 0x6db   :  { %v11199_v44 = vpop.eup %11198  ;;  %11208 = vrcp.f32 %v9837_v32 }
 0x6dc   :  { %9911 = vst.msk [vmem:[%s17037_s9 + $0x50] sm:$0xff] %vm9900_vm15, %v11199_v44  ;;  %11210 = vpow2.f32 %v9780_v39  ;;  %v9782_v13 = vmul.f32 1.442695, %v9727_v30 }
 0x6dd   :  { %v11201_v48 = vpop.eup %11200  ;;  %v9631_v40 = vpop.f32.mrb[112].mxu1 }
 0x6de   :  { %v11203_v1 = vpop.eup %11202  ;;  %9912 = vst.msk [vmem:[%s17037_s9 + $0x58] sm:$0xff] %vm9900_vm15, %v11201_v48  ;;  %11212 = vpow2.f32 %v9782_v13  ;;  %v9632_v8 = vadd.f32 %v16834_v47, %v9631_v40  ;;  %v10732_v54 = vpop.f32.mrb[113].mxu1 }
 0x6df   :  { %v9838_v18 = vadd.f32 1.0, %v11203_v1  ;;  %v9634_v22 = vpop.f32.mrb[114].mxu1 }
 0x6e0   :  { %v11205_v59 = vpop.eup %11204  ;;  %v9728_v45 = vsub.f32 0.0, %v9632_v8  ;;  %v9635_v5 = vadd.f32 %v16834_v47, %v9634_v22  ;;  %v10733_v46 = vpop.f32.mrb[115].mxu1 }
 0x6e1   :  { %11214 = vrcp.f32 %v9838_v18  ;;  %v9839_v33 = vadd.f32 1.0, %v11205_v59 }
 0x6e2   :  { %v9784_v35 = vmul.f32 1.442695, %v9728_v45  ;;  %v9729_v28 = vsub.f32 0.0, %v9635_v5 }
 0x6e3   :  { %v11207_v56 = vpop.eup %11206  ;;  %11216 = vrcp.f32 %v9839_v33 }
 0x6e4   :  { %9913 = vst.msk [vmem:[%s17037_s9 + $0x60] sm:$0xff] %vm9900_vm15, %v11207_v56  ;;  %11218 = vpow2.f32 %v9784_v35  ;;  %v9786_v62 = vmul.f32 1.442695, %v9729_v28 }
 0x6e5   :  { %v11209_v34 = vpop.eup %11208  ;;  %v9639_v57 = vpop.f32.mrb[116].mxu1 }
 0x6e6   :  { %v11211_v50 = vpop.eup %11210  ;;  %9914 = vst.msk [vmem:[%s17037_s9 + $0x68] sm:$0xff] %vm9900_vm15, %v11209_v34  ;;  %11220 = vpow2.f32 %v9786_v62  ;;  %v9640_v23 = vadd.f32 %v16834_v47, %v9639_v57  ;;  %v10736_v52 = vpop.f32.mrb[117].mxu1 }
 0x6e7   :  { %v9840_v15 = vadd.f32 1.0, %v11211_v50  ;;  %v9642_v27 = vpop.f32.mrb[118].mxu1 }
 0x6e8   :  { %v11213_v38 = vpop.eup %11212  ;;  %v9730_v9 = vsub.f32 0.0, %v9640_v23  ;;  %v9643_v29 = vadd.f32 %v16834_v47, %v9642_v27  ;;  %v10737_v51 = vpop.f32.mrb[119].mxu1 }
 0x6e9   :  { %11222 = vrcp.f32 %v9840_v15  ;;  %v9841_v60 = vadd.f32 1.0, %v11213_v38 }
 0x6ea   :  { %v9788_v19 = vmul.f32 1.442695, %v9730_v9  ;;  %v9731_v10 = vsub.f32 0.0, %v9643_v29 }
 0x6eb   :  { %v11215_v3 = vpop.eup %11214  ;;  %11224 = vrcp.f32 %v9841_v60 }
 0x6ec   :  { %9915 = vst.msk [vmem:[%s17037_s9 + $0x70] sm:$0xff] %vm9900_vm15, %v11215_v3  ;;  %11226 = vpow2.f32 %v9788_v19  ;;  %v9790_v17 = vmul.f32 1.442695, %v9731_v10 }
 0x6ed   :  { %v11217_v25 = vpop.eup %11216 }
 0x6ee   :  { %v11219_v53 = vpop.eup %11218  ;;  %9916 = vst.msk [vmem:[%s17037_s9 + $0x78] sm:$0xff] %vm9900_vm15, %v11217_v25  ;;  %11228 = vpow2.f32 %v9790_v17 }
 0x6ef   :  { %v9842_v58 = vadd.f32 1.0, %v11219_v53 }
 0x6f0   :  { %v11221_v55 = vpop.eup %11220 }
 0x6f1   :  { %11230 = vrcp.f32 %v9842_v58  ;;  %v9843_v12 = vadd.f32 1.0, %v11221_v55 }
 0x6f3   :  { %v11223_v43 = vpop.eup %11222  ;;  %11232 = vrcp.f32 %v9843_v12 }
 0x6f4   :  { %9917 = vst.msk [vmem:[%s17037_s9 + $0x80] sm:$0xff] %vm9900_vm15, %v11223_v43 }
 0x6f5   :  { %v11225_v42 = vpop.eup %11224 }
 0x6f6   :  { %v11227_v11 = vpop.eup %11226  ;;  %9918 = vst.msk [vmem:[%s17037_s9 + $0x88] sm:$0xff] %vm9900_vm15, %v11225_v42 }
 0x6f7   :  { %v9844_v14 = vadd.f32 1.0, %v11227_v11 }
 0x6f8   :  { %v11229_v4 = vpop.eup %11228 }
 0x6f9   :  { %11234 = vrcp.f32 %v9844_v14  ;;  %v9845_v6 = vadd.f32 1.0, %v11229_v4 }
 0x6fb   :  { %v11231_v31 = vpop.eup %11230  ;;  %11236 = vrcp.f32 %v9845_v6 }
 0x6fc   :  { %9919 = vst.msk [vmem:[%s17037_s9 + $0x90] sm:$0xff] %vm9900_vm15, %v11231_v31 }
 0x6fd   :  { %v11233_v2 = vpop.eup %11232 }
 0x6fe   :  { %9920 = vst.msk [vmem:[%s17037_s9 + $0x98] sm:$0xff] %vm9900_vm15, %v11233_v2 }
 0x703   :  { %v11235_v21 = vpop.eup %11234 }
 0x704   :  { %9921 = vst.msk [vmem:[%s17037_s9 + $0xa0] sm:$0xff] %vm9900_vm15, %v11235_v21 }
 0x705   :  { %v11237_v61 = vpop.eup %11236 }
 0x706   :  { %9922 = vst.msk [vmem:[%s17037_s9 + $0xa8] sm:$0xff] %vm9900_vm15, %v11237_v61 }
 0x70e   :  { %v9647_v26 = vpop.f32.mrb[120].mxu1 }
 0x70f   :  { %v9648_v0 = vadd.f32 %v16834_v47, %v9647_v26  ;;  %v10740_v7 = vpop.f32.mrb[121].mxu1 }
 0x710   :  { %v9650_v63 = vpop.f32.mrb[122].mxu1 }
 0x711   :  { %v9732_v41 = vsub.f32 0.0, %v9648_v0  ;;  %v9651_v20 = vadd.f32 %v16834_v47, %v9650_v63  ;;  %v10741_v36 = vpop.f32.mrb[123].mxu1 }
 0x713   :  { %v9792_v24 = vmul.f32 1.442695, %v9732_v41  ;;  %v9733_v49 = vsub.f32 0.0, %v9651_v20 }
 0x715   :  { %11238 = vpow2.f32 %v9792_v24  ;;  %v9794_v37 = vmul.f32 1.442695, %v9733_v49 }
 0x717   :  { %11240 = vpow2.f32 %v9794_v37 }
 0x71f   :  { %v11239_v16 = vpop.eup %11238 }
 0x720   :  { %v9846_v32 = vadd.f32 1.0, %v11239_v16 }
 0x721   :  { %v11241_v30 = vpop.eup %11240 }
 0x722   :  { %11242 = vrcp.f32 %v9846_v32  ;;  %v9847_v48 = vadd.f32 1.0, %v11241_v30 }
 0x723   :  { %v9655_v39 = vpop.f32.mrb[124].mxu1 }
 0x724   :  { %v9656_v44 = vadd.f32 %v16834_v47, %v9655_v39  ;;  %v10744_v13 = vpop.f32.mrb[125].mxu1  ;;  %11244 = vrcp.f32 %v9847_v48 }
 0x725   :  { %v9658_v40 = vpop.f32.mrb[126].mxu1 }
 0x726   :  { %v9734_v1 = vsub.f32 0.0, %v9656_v44  ;;  %v9659_v8 = vadd.f32 %v16834_v47, %v9658_v40  ;;  %v10745_v54 = vpop.f32.mrb[127].mxu1 }
 0x728   :  { %v9796_v18 = vmul.f32 1.442695, %v9734_v1  ;;  %v9735_v22 = vsub.f32 0.0, %v9659_v8 }
 0x72a   :  { %11246 = vpow2.f32 %v9796_v18  ;;  %v9798_v59 = vmul.f32 1.442695, %v9735_v22 }
 0x72c   :  { %11248 = vpow2.f32 %v9798_v59  ;;  %v11243_v45 = vpop.eup %11242 }
 0x72d   :  { %9923 = vst.msk [vmem:[%s17037_s9 + $0xb0] sm:$0xff] %vm9900_vm15, %v11243_v45 }
 0x72e   :  { %v11245_v5 = vpop.eup %11244 }
 0x72f   :  { %9924 = vst.msk [vmem:[%s17037_s9 + $0xb8] sm:$0xff] %vm9900_vm15, %v11245_v5 }
 0x731   :  { %v9663_v46 = vpop.f32.mrb[128].mxu1 }
 0x732   :  { %v9664_v33 = vadd.f32 %v16834_v47, %v9663_v46  ;;  %v10748_v35 = vpop.f32.mrb[129].mxu1 }
 0x733   :  { %v9666_v28 = vpop.f32.mrb[130].mxu1 }
 0x734   :  { %v11247_v56 = vpop.eup %11246  ;;  %v9736_v62 = vsub.f32 0.0, %v9664_v33  ;;  %v9667_v34 = vadd.f32 %v16834_v47, %v9666_v28  ;;  %v10749_v57 = vpop.f32.mrb[131].mxu1 }
 0x735   :  { %v9848_v50 = vadd.f32 1.0, %v11247_v56 }
 0x736   :  { %v11249_v23 = vpop.eup %11248  ;;  %v9800_v52 = vmul.f32 1.442695, %v9736_v62  ;;  %v9737_v15 = vsub.f32 0.0, %v9667_v34 }
 0x737   :  { %11250 = vrcp.f32 %v9848_v50  ;;  %v9849_v27 = vadd.f32 1.0, %v11249_v23 }
 0x738   :  { %11252 = vpow2.f32 %v9800_v52  ;;  %v9802_v38 = vmul.f32 1.442695, %v9737_v15 }
 0x739   :  { %11254 = vrcp.f32 %v9849_v27 }
 0x73a   :  { %11256 = vpow2.f32 %v9802_v38 }
 0x73f   :  { %v9671_v9 = vpop.f32.mrb[132].mxu1 }
 0x740   :  { %v9672_v29 = vadd.f32 %v16834_v47, %v9671_v9  ;;  %v10752_v51 = vpop.f32.mrb[133].mxu1 }
 0x741   :  { %v9674_v60 = vpop.f32.mrb[134].mxu1  ;;  %v11251_v19 = vpop.eup %11250 }
 0x742   :  { %v9738_v10 = vsub.f32 0.0, %v9672_v29  ;;  %v9675_v3 = vadd.f32 %v16834_v47, %v9674_v60  ;;  %v10753_v17 = vpop.f32.mrb[135].mxu1  ;;  %v11253_v25 = vpop.eup %11252  ;;  %9925 = vst.msk [vmem:[%s17037_s9 + $0xc0] sm:$0xff] %vm9900_vm15, %v11251_v19 }
 0x743   :  { %v11255_v53 = vpop.eup %11254  ;;  %v9850_v58 = vadd.f32 1.0, %v11253_v25 }
 0x744   :  { %v9804_v55 = vmul.f32 1.442695, %v9738_v10  ;;  %v9739_v12 = vsub.f32 0.0, %v9675_v3  ;;  %v11257_v43 = vpop.eup %11256  ;;  %9926 = vst.msk [vmem:[%s17037_s9 + $0xc8] sm:$0xff] %vm9900_vm15, %v11255_v53 }
 0x745   :  { %11258 = vrcp.f32 %v9850_v58  ;;  %v9851_v42 = vadd.f32 1.0, %v11257_v43 }
 0x746   :  { %v9806_v11 = vmul.f32 1.442695, %v9739_v12  ;;  %11260 = vpow2.f32 %v9804_v55 }
 0x747   :  { %11262 = vrcp.f32 %v9851_v42 }
 0x748   :  { %11264 = vpow2.f32 %v9806_v11 }
 0x74a   :  { %v9679_v14 = vpop.f32.mrb[136].mxu1 }
 0x74b   :  { %v9680_v4 = vadd.f32 %v16834_v47, %v9679_v14  ;;  %v10756_v6 = vpop.f32.mrb[137].mxu1 }
 0x74c   :  { %v9682_v31 = vpop.f32.mrb[138].mxu1 }
 0x74d   :  { %v9740_v2 = vsub.f32 0.0, %v9680_v4  ;;  %v9683_v21 = vadd.f32 %v16834_v47, %v9682_v31  ;;  %v10757_v61 = vpop.f32.mrb[139].mxu1 }
 0x74f   :  { %v9808_v26 = vmul.f32 1.442695, %v9740_v2  ;;  %v9741_v0 = vsub.f32 0.0, %v9683_v21  ;;  %v11259_v7 = vpop.eup %11258 }
 0x750   :  { %v11261_v41 = vpop.eup %11260  ;;  %9927 = vst.msk [vmem:[%s17037_s9 + $0xd0] sm:$0xff] %vm9900_vm15, %v11259_v7 }
 0x751   :  { %11266 = vpow2.f32 %v9808_v26  ;;  %v9810_v63 = vmul.f32 1.442695, %v9741_v0  ;;  %v11263_v20 = vpop.eup %11262  ;;  %v9852_v36 = vadd.f32 1.0, %v11261_v41 }
 0x752   :  { %v11265_v24 = vpop.eup %11264  ;;  %9928 = vst.msk [vmem:[%s17037_s9 + $0xd8] sm:$0xff] %vm9900_vm15, %v11263_v20 }
 0x753   :  { %11268 = vpow2.f32 %v9810_v63  ;;  %v9853_v49 = vadd.f32 1.0, %v11265_v24 }
 0x754   :  { %11270 = vrcp.f32 %v9852_v36 }
 0x755   :  { %v9687_v37 = vpop.f32.mrb[140].mxu1  ;;  %11272 = vrcp.f32 %v9853_v49 }
 0x756   :  { %v9688_v16 = vadd.f32 %v16834_v47, %v9687_v37  ;;  %v10760_v32 = vpop.f32.mrb[141].mxu1 }
 0x757   :  { %v9690_v39 = vpop.f32.mrb[142].mxu1 }
 0x758   :  { %v9742_v30 = vsub.f32 0.0, %v9688_v16  ;;  %v9691_v44 = vadd.f32 %v16834_v47, %v9690_v39  ;;  %v10761_v13 = vpop.f32.mrb[143].mxu1 }
 0x75a   :  { %v9812_v48 = vmul.f32 1.442695, %v9742_v30  ;;  %v9743_v40 = vsub.f32 0.0, %v9691_v44 }
 0x75b   :  { %v11267_v1 = vpop.eup %11266 }
 0x75c   :  { %v9854_v8 = vadd.f32 1.0, %v11267_v1  ;;  %11274 = vpow2.f32 %v9812_v48  ;;  %v9814_v54 = vmul.f32 1.442695, %v9743_v40 }
 0x75d   :  { %v11269_v18 = vpop.eup %11268 }
 0x75e   :  { %11276 = vrcp.f32 %v9854_v8  ;;  %v9855_v22 = vadd.f32 1.0, %v11269_v18  ;;  %v11271_v59 = vpop.eup %11270 }
 0x75f   :  { %11278 = vpow2.f32 %v9814_v54  ;;  %9929 = vst.msk [vmem:[%s17037_s9 + $0xe0] sm:$0xff] %vm9900_vm15, %v11271_v59  ;;  %v11273_v5 = vpop.eup %11272 }
 0x760   :  { %11280 = vrcp.f32 %v9855_v22  ;;  %9930 = vst.msk [vmem:[%s17037_s9 + $0xe8] sm:$0xff] %vm9900_vm15, %v11273_v5 }
 0x762   :  { %v9695_v45 = vpop.f32.mrb[144].mxu1 }
 0x763   :  { %v9696_v46 = vadd.f32 %v16834_v47, %v9695_v45  ;;  %v10764_v33 = vpop.f32.mrb[145].mxu1 }
 0x764   :  { %v9698_v35 = vpop.f32.mrb[146].mxu1 }
 0x765   :  { %v9744_v28 = vsub.f32 0.0, %v9696_v46  ;;  %v9699_v56 = vadd.f32 %v16834_v47, %v9698_v35  ;;  %v10765_v62 = vpop.f32.mrb[147].mxu1 }
 0x766   :  { %v11275_v50 = vpop.eup %11274 }
 0x767   :  { %v9816_v34 = vmul.f32 1.442695, %v9744_v28  ;;  %v9745_v57 = vsub.f32 0.0, %v9699_v56  ;;  %v9856_v23 = vadd.f32 1.0, %v11275_v50 }
 0x768   :  { %v11277_v15 = vpop.eup %11276 }
 0x769   :  { %11282 = vpow2.f32 %v9816_v34  ;;  %v9818_v52 = vmul.f32 1.442695, %v9745_v57  ;;  %v11279_v27 = vpop.eup %11278  ;;  %9931 = vst.msk [vmem:[%s17037_s9 + $0xf0] sm:$0xff] %vm9900_vm15, %v11277_v15 }
 0x76a   :  { %11284 = vrcp.f32 %v9856_v23  ;;  %v11281_v38 = vpop.eup %11280  ;;  %v9857_v9 = vadd.f32 1.0, %v11279_v27 }
 0x76b   :  { %11286 = vpow2.f32 %v9818_v52  ;;  %9932 = vst.msk [vmem:[%s17037_s9 + $0xf8] sm:$0xff] %vm9900_vm15, %v11281_v38 }
 0x76c   :  { %11288 = vrcp.f32 %v9857_v9 }
 0x76d   :  { %v9703_v29 = vpop.f32.mrb[148].mxu1 }
 0x76e   :  { %v9704_v51 = vadd.f32 %v16834_v47, %v9703_v29  ;;  %v10768_v60 = vpop.f32.mrb[149].mxu1 }
 0x76f   :  { %v9706_v19 = vpop.f32.mrb[150].mxu1 }
 0x770   :  { %v9746_v10 = vsub.f32 0.0, %v9704_v51  ;;  %v9707_v3 = vadd.f32 %v16834_v47, %v9706_v19  ;;  %v10769_v17 = vpop.f32.mrb[151].mxu1 }
 0x772   :  { %v9820_v25 = vmul.f32 1.442695, %v9746_v10  ;;  %v9747_v53 = vsub.f32 0.0, %v9707_v3 }
 0x773   :  { %v11283_v58 = vpop.eup %11282 }
 0x774   :  { %v9858_v55 = vadd.f32 1.0, %v11283_v58  ;;  %11290 = vpow2.f32 %v9820_v25  ;;  %v9822_v12 = vmul.f32 1.442695, %v9747_v53  ;;  %v11285_v43 = vpop.eup %11284 }
 0x775   :  { %v11287_v42 = vpop.eup %11286  ;;  %9933 = vst.msk [vmem:[%s17037_s9 + $0x100] sm:$0xff] %vm9900_vm15, %v11285_v43 }
 0x776   :  { %11292 = vrcp.f32 %v9858_v55  ;;  %v9859_v11 = vadd.f32 1.0, %v11287_v42  ;;  %v11289_v14 = vpop.eup %11288 }
 0x777   :  { %11294 = vpow2.f32 %v9822_v12  ;;  %9934 = vst.msk [vmem:[%s17037_s9 + $0x108] sm:$0xff] %vm9900_vm15, %v11289_v14 }
 0x778   :  { %11296 = vrcp.f32 %v9859_v11 }
 0x77e   :  { %v11291_v47 = vpop.eup %11290 }
 0x77f   :  { %v9860_v4 = vadd.f32 1.0, %v11291_v47 }
 0x780   :  { %v11293_v6 = vpop.eup %11292 }
 0x781   :  { %v11295_v31 = vpop.eup %11294  ;;  %9935 = vst.msk [vmem:[%s17037_s9 + $0x110] sm:$0xff] %vm9900_vm15, %v11293_v6  ;;  %11298 = vrcp.f32 %v9860_v4 }
 0x782   :  { %v9861_v2 = vadd.f32 1.0, %v11295_v31  ;;  %v11297_v21 = vpop.eup %11296 }
 0x783   :  { %9936 = vst.msk [vmem:[%s17037_s9 + $0x118] sm:$0xff] %vm9900_vm15, %v11297_v21 }
 0x784   :  { %11300 = vrcp.f32 %v9861_v2 }
 0x78b   :  { %v11299_v61 = vpop.eup %11298 }
 0x78c   :  { %9937 = vst.msk [vmem:[%s17037_s9 + $0x120] sm:$0xff] %vm9900_vm15, %v11299_v61 }
 0x78e   :  { %v11301_v26 = vpop.eup %11300 }
 0x78f   :  { %9938 = vst.msk [vmem:[%s17037_s9 + $0x128] sm:$0xff] %vm9900_vm15, %v11301_v26 }

</bundles_post_ra>
